<compile_context>
chip_gen: v5e
topology: v5e:2x2
jax: 0.10.0
libtpu: 0.0.40
codegen_flags: <defaults>
</compile_context>

<pallas_src>
import numpy as np
import jax
import jax.numpy as jnp
from jax import lax
from jax.experimental import pallas as pl
from jax.experimental.pallas import tpu as pltpu


def prepare_params(params, *, in_channels, num_heads):
    """One-time weight-side prep (run once; constant-folds if params are jit consts).

    - qkv = Conv1d(c, 3c, 1): rows arrive interleaved per head as [q|k|v]; permute
      once to [Q(all heads) | K(all heads) | V(all heads)] so kernel slices are
      contiguous sublane blocks.
    - Fold the dual D**-0.25 scaling of q and k into the Q/K rows of W_qkv/b_qkv.
    - Ship matmul weights in bf16 (halved DMA bytes, MXU-native operands).
    """
    c, H = in_channels, num_heads
    D = c // H
    scale = 1.0 / float(D) ** 0.25                      # matches 1/sqrt(sqrt(channel))
    perm = np.arange(3 * c).reshape(H, 3, D).transpose(1, 0, 2).reshape(3 * c)

    w_qkv = jnp.asarray(params["qkv_weight"])[:, :, 0][perm]          # (3c, c) f32
    b_qkv = jnp.asarray(params["qkv_bias"])[perm]                     # (3c,)  f32
    row_scale = jnp.concatenate([jnp.full((2 * c,), scale, jnp.float32),
                                 jnp.ones((c,), jnp.float32)])        # Q,K scaled; V not
    return dict(
        w_qkv=(w_qkv * row_scale[:, None]).astype(jnp.bfloat16),      # (3c, c) bf16
        b_qkv=(b_qkv * row_scale).reshape(3 * c, 1).astype(jnp.float32),
        w_proj=jnp.asarray(params["proj_weight"])[:, :, 0].astype(jnp.bfloat16),
        b_proj=jnp.asarray(params["proj_bias"]).reshape(c, 1).astype(jnp.float32),
        gamma=jnp.asarray(params["gn_weight"]).reshape(c, 1).astype(jnp.float32),
        beta=jnp.asarray(params["gn_bias"]).reshape(c, 1).astype(jnp.float32),
    )


def _make_kernel(c, T, H, D, G, TQ, eps):
    Cg = c // G
    nqb = T // TQ
    bf16 = jnp.bfloat16

    def kernel(x_ref, wqkv_ref, bqkv_ref, wproj_ref, bproj_ref,
               gamma_ref, beta_ref, o_ref, qkv_s, h_s):
        # ---- GroupNorm over (channels-in-group, T); f32, two-pass variance ----
        xg = x_ref[0].reshape(G, Cg, T)                         # (G, Cg, T), lanes = T
        cnt = float(Cg * T)
        mean = jnp.sum(jnp.sum(xg, axis=2, keepdims=True), axis=1, keepdims=True) / cnt
        xc = xg - mean
        var = jnp.sum(jnp.sum(xc * xc, axis=2, keepdims=True), axis=1, keepdims=True) / cnt
        xn = (xc * lax.rsqrt(var + eps)).reshape(c, T) * gamma_ref[...] + beta_ref[...]

        # ---- qkv projection (1x1 conv == matmul); bf16 operands, f32 accumulate.
        # scale is already folded into the Q/K rows of W/b. Result kept in bf16 scratch.
        qkv_s[...] = (jnp.dot(wqkv_ref[...], xn.astype(bf16),
                              preferred_element_type=jnp.float32)
                      + bqkv_ref[...]).astype(bf16)             # rows = Q | K | V

        ones_row = jnp.ones((1, T), bf16)                       # lane-dense row-sum helper

        # ---- per-head attention, tiled over lane-aligned query blocks ----
        for h in range(H):
            k = qkv_s[c + h * D: c + (h + 1) * D, :]            # (D, T) bf16, pure load
            v = qkv_s[2 * c + h * D: 2 * c + (h + 1) * D, :]    # (D, T) bf16
            for qb in range(nqb):
                q = qkv_s[h * D:(h + 1) * D, qb * TQ:(qb + 1) * TQ]     # (D, TQ) bf16
                # scores: contract over D on axis 0 of both operands; the operand
                # "transpose" folds into the MXU feed (no XLU transpose, no (T,D) temp).
                s = lax.dot_general(q, k, (((0,), (0,)), ((), ())),
                                    preferred_element_type=jnp.float32)  # (TQ, T) f32
                m = jnp.max(s, axis=-1, keepdims=True)                   # (TQ, 1)
                p = jnp.exp(s - m).astype(bf16)                          # unnormalized
                # head out: out[d, t] = sum_s v[d, s] * p[t, s]
                pv = lax.dot_general(v, p, (((1,), (1,)), ((), ())),
                                     preferred_element_type=jnp.float32)  # (D, TQ)
                # deferred normalization: lane-dense (1, TQ) row-sum via MXU,
                # approx reciprocal on the EUP (free slot), (D, TQ) multiply.
                rs = lax.dot_general(ones_row, p, (((1,), (1,)), ((), ())),
                                     preferred_element_type=jnp.float32)  # (1, TQ)
                h_s[h * D:(h + 1) * D, qb * TQ:(qb + 1) * TQ] = \
                    (pv * pl.reciprocal(rs, approx=True)).astype(bf16)

        # ---- output projection + residual ----
        o_ref[0] = (jnp.dot(wproj_ref[...], h_s[...],
                            preferred_element_type=jnp.float32)
                    + bproj_ref[...] + x_ref[0]).astype(o_ref.dtype)

    return kernel


def multi_head_attention(x, prepped, *, num_heads=1, num_groups=32, eps=1e-5):
    """PyTorch-equivalent forward of MultiHeadAttention(in_channels, num_heads, GN)."""
    b, c = int(x.shape[0]), int(x.shape[1])
    spatial = x.shape[2:]
    T = int(np.prod(spatial))
    assert c % num_heads == 0, "in_channels must be divisible by num_heads"
    assert c % num_groups == 0, "in_channels must be divisible by num_groups"
    H, D, G = num_heads, c // num_heads, num_groups
    TQ = 128 if T % 128 == 0 else T              # lane-aligned query-row tile

    # Activation: (b, c, *spatial) -> (b, c, T) is a free reshape (no transpose/copy);
    # T sits on the 128-lane axis for every load/store and matmul output.
    xf = x.reshape(b, c, T)

    kernel = _make_kernel(c, T, H, D, G, TQ, eps)

    flops = b * (8 * c * c * T + 4 * c * T * T)          # qkv + proj + 2 attn matmuls
    transcendentals = b * H * T * T                       # exp in softmax
    bytes_accessed = (4 * 2 * b * c * T                   # x in + y out (f32)
                      + 2 * (3 * c * c + c * c)           # bf16 weights
                      + 4 * (3 * c + c + 2 * c))          # biases + GN affine

    # NOTE: constant-index weight inputs are not re-DMA'd across grid steps; at these
    # sizes the default double-buffer of them costs < 40 KiB, so no pl.Buffered(1).
    out = pl.pallas_call(
        kernel,
        out_shape=jax.ShapeDtypeStruct((b, c, T), x.dtype),
        grid_spec=pltpu.PrefetchScalarGridSpec(
            num_scalar_prefetch=0,
            grid=(b,),
            in_specs=[
                pl.BlockSpec((1, c, T), lambda n: (n, 0, 0)),   # x (per-batch block)
                pl.BlockSpec((3 * c, c), lambda n: (0, 0)),     # W_qkv (bf16, scale folded)
                pl.BlockSpec((3 * c, 1), lambda n: (0, 0)),     # b_qkv (scale folded)
                pl.BlockSpec((c, c), lambda n: (0, 0)),         # W_proj (bf16)
                pl.BlockSpec((c, 1), lambda n: (0, 0)),         # b_proj
                pl.BlockSpec((c, 1), lambda n: (0, 0)),         # GN gamma
                pl.BlockSpec((c, 1), lambda n: (0, 0)),         # GN beta
            ],
            out_specs=pl.BlockSpec((1, c, T), lambda n: (n, 0, 0)),
            scratch_shapes=[
                pltpu.VMEM((3 * c, T), jnp.bfloat16),   # qkv rows [Q | K | V]
                pltpu.VMEM((c, T), jnp.bfloat16),       # concatenated head outputs
            ]),
        compiler_params=pltpu.CompilerParams(
            dimension_semantics=("parallel",),
            vmem_limit_bytes=32 * 1024 * 1024),
        cost_estimate=pl.CostEstimate(
            flops=flops, transcendentals=transcendentals,
            bytes_accessed=bytes_accessed),
    )(xf, prepped["w_qkv"], prepped["b_qkv"], prepped["w_proj"],
      prepped["b_proj"], prepped["gamma"], prepped["beta"])

    return out.reshape(x.shape)


def reference_forward(x, params, *, num_heads, num_groups, eps=1e-5):
    """Pure-JAX port of the PyTorch forward (bf16 matmul operands, f32 accumulation
    to match the kernel's MXU precision)."""
    b, c = int(x.shape[0]), int(x.shape[1])
    T = int(np.prod(x.shape[2:]))
    H, D, G = num_heads, c // num_heads, num_groups
    bf = jnp.bfloat16

    xf = x.reshape(b, c, T).astype(jnp.float32)
    xg = xf.reshape(b, G, c // G, T)
    mean = jnp.mean(xg, axis=(2, 3), keepdims=True)
    var = jnp.mean((xg - mean) ** 2, axis=(2, 3), keepdims=True)
    xn = ((xg - mean) * lax.rsqrt(var + eps)).reshape(b, c, T)
    xn = xn * params["gn_weight"][None, :, None] + params["gn_bias"][None, :, None]

    w_qkv = params["qkv_weight"][:, :, 0]
    qkv = jnp.einsum("oc,bct->bot", w_qkv.astype(bf), xn.astype(bf),
                     preferred_element_type=jnp.float32)
    qkv = qkv + params["qkv_bias"][None, :, None]
    qkv = qkv.reshape(b * H, 3 * D, T)
    q, k, v = jnp.split(qkv, 3, axis=1)
    scale = 1.0 / float(D) ** 0.25
    attn = jnp.einsum("bct,bcs->bts", (q * scale).astype(bf), (k * scale).astype(bf),
                      preferred_element_type=jnp.float32)
    attn = jax.nn.softmax(attn, axis=-1)
    h = jnp.einsum("bts,bcs->bct", attn.astype(bf), v.astype(bf),
                   preferred_element_type=jnp.float32)
    h = h.reshape(b, c, T)
    w_proj = params["proj_weight"][:, :, 0]
    h = jnp.einsum("oc,bct->bot", w_proj.astype(bf), h.astype(bf),
                   preferred_element_type=jnp.float32)
    h = h + params["proj_bias"][None, :, None]
    return (h + xf).reshape(x.shape)


if __name__ == "__main__":
    key = jax.random.PRNGKey(0)
    ks = jax.random.split(key, 7)

    # Small shapes consistent with the module (GN groups must divide channels);
    # num_groups=8 keeps each GN group 8 channels (sublane-aligned) at C=64.
    N, C, HS, WS = 2, 64, 16, 16            # T = 256 spatial positions (lane-dense)
    NUM_HEADS, NUM_GROUPS = 4, 8

    x = jax.random.normal(ks[0], (N, C, HS, WS), dtype=jnp.float32)
    params = {
        "gn_weight": 1.0 + 0.1 * jax.random.normal(ks[1], (C,), jnp.float32),
        "gn_bias": 0.1 * jax.random.normal(ks[2], (C,), jnp.float32),
        "qkv_weight": 0.1 * jax.random.normal(ks[3], (3 * C, C, 1), jnp.float32),
        "qkv_bias": 0.1 * jax.random.normal(ks[4], (3 * C,), jnp.float32),
        # NOTE: the PyTorch module zero-inits proj (constant_init(self.proj, 0));
        # random weights are used here so the attention path is actually exercised.
        "proj_weight": 0.1 * jax.random.normal(ks[5], (C, C, 1), jnp.float32),
        "proj_bias": 0.1 * jax.random.normal(ks[6], (C,), jnp.float32),
    }

    prepped = prepare_params(params, in_channels=C, num_heads=NUM_HEADS)
    y = multi_head_attention(x, prepped, num_heads=NUM_HEADS, num_groups=NUM_GROUPS)
    y = jax.block_until_ready(y)

    y_ref = reference_forward(x, params, num_heads=NUM_HEADS, num_groups=NUM_GROUPS)
    assert y.shape == x.shape
    # Tolerance: weight-side scale folding, bf16 qkv scratch, deferred (approx-recip)
    # softmax normalization move a few bf16 rounding points vs. the literal reference;
    # real bugs (wrong permutation / scale / normalization) are O(0.1 .. 1) errors.
    assert jnp.allclose(y, y_ref, atol=1e-2, rtol=1e-2), \
        f"max abs err {float(jnp.max(jnp.abs(y - y_ref)))}"
    print("KERNEL_OK")
</pallas_src>

<mosaic_0001>
module attributes {stable_mosaic.version = 11 : i64} {
  func.func @kernel(%arg0: i32, %arg1: memref<1x64x256xf32, #tpu.memory_space<vmem>>, %arg2: memref<192x64xbf16, #tpu.memory_space<vmem>>, %arg3: memref<192x1xf32, #tpu.memory_space<vmem>>, %arg4: memref<64x64xbf16, #tpu.memory_space<vmem>>, %arg5: memref<64x1xf32, #tpu.memory_space<vmem>>, %arg6: memref<64x1xf32, #tpu.memory_space<vmem>>, %arg7: memref<64x1xf32, #tpu.memory_space<vmem>>, %arg8: memref<1x64x256xf32, #tpu.memory_space<vmem>>, %arg9: memref<192x256xbf16, #tpu.memory_space<vmem>>, %arg10: memref<64x256xbf16, #tpu.memory_space<vmem>>) attributes {dimension_semantics = [#tpu.dimension_semantics<parallel>], iteration_bounds = array<i64: 2>, scalar_prefetch = 0 : i64, scratch_operands = 2 : i64, tpu.core_type = #tpu.core_type<tc>, window_params = [{transform_indices = @transform_0, window_bounds = array<i64: 1, 64, 256>}, {pipeline_mode = #tpu.pipeline_mode<synchronous>, transform_indices = @transform_1, window_bounds = array<i64: 192, 64>}, {pipeline_mode = #tpu.pipeline_mode<synchronous>, transform_indices = @transform_2, window_bounds = array<i64: 192, 1>}, {pipeline_mode = #tpu.pipeline_mode<synchronous>, transform_indices = @transform_3, window_bounds = array<i64: 64, 64>}, {pipeline_mode = #tpu.pipeline_mode<synchronous>, transform_indices = @transform_4, window_bounds = array<i64: 64, 1>}, {pipeline_mode = #tpu.pipeline_mode<synchronous>, transform_indices = @transform_5, window_bounds = array<i64: 64, 1>}, {pipeline_mode = #tpu.pipeline_mode<synchronous>, transform_indices = @transform_6, window_bounds = array<i64: 64, 1>}, {transform_indices = @transform_7, window_bounds = array<i64: 1, 64, 256>}]} {
    %c0 = arith.constant 0 : index
    %c0_0 = arith.constant 0 : index
    %c0_1 = arith.constant 0 : index
    %0 = vector.load %arg1[%c0, %c0_0, %c0_1] : memref<1x64x256xf32, #tpu.memory_space<vmem>>, vector<1x64x256xf32>
    %1 = vector.shape_cast %0 : vector<1x64x256xf32> to vector<64x256xf32>
    %2 = vector.shape_cast %1 : vector<64x256xf32> to vector<8x8x256xf32>
    %cst = arith.constant dense<0.000000e+00> : vector<8x8xf32>
    %3 = vector.multi_reduction <add>, %2, %cst [2] : vector<8x8x256xf32> to vector<8x8xf32>
    %4 = vector.shape_cast %3 : vector<8x8xf32> to vector<8x8x1xf32>
    %cst_2 = arith.constant dense<0.000000e+00> : vector<8x1xf32>
    %5 = vector.multi_reduction <add>, %4, %cst_2 [1] : vector<8x8x1xf32> to vector<8x1xf32>
    %6 = vector.shape_cast %5 : vector<8x1xf32> to vector<8x1x1xf32>
    %cst_3 = arith.constant 2.048000e+03 : f32
    %7 = vector.broadcast %cst_3 : f32 to vector<8x1x1xf32>
    %8 = arith.divf %6, %7 : vector<8x1x1xf32>
    %9 = vector.broadcast %8 : vector<8x1x1xf32> to vector<8x8x256xf32>
    %10 = arith.subf %2, %9 : vector<8x8x256xf32>
    %11 = arith.mulf %10, %10 : vector<8x8x256xf32>
    %cst_4 = arith.constant dense<0.000000e+00> : vector<8x8xf32>
    %12 = vector.multi_reduction <add>, %11, %cst_4 [2] : vector<8x8x256xf32> to vector<8x8xf32>
    %13 = vector.shape_cast %12 : vector<8x8xf32> to vector<8x8x1xf32>
    %cst_5 = arith.constant dense<0.000000e+00> : vector<8x1xf32>
    %14 = vector.multi_reduction <add>, %13, %cst_5 [1] : vector<8x8x1xf32> to vector<8x1xf32>
    %15 = vector.shape_cast %14 : vector<8x1xf32> to vector<8x1x1xf32>
    %cst_6 = arith.constant 2.048000e+03 : f32
    %16 = vector.broadcast %cst_6 : f32 to vector<8x1x1xf32>
    %17 = arith.divf %15, %16 : vector<8x1x1xf32>
    %cst_7 = arith.constant 9.99999974E-6 : f32
    %18 = vector.broadcast %cst_7 : f32 to vector<8x1x1xf32>
    %19 = arith.addf %17, %18 : vector<8x1x1xf32>
    %20 = math.rsqrt %19 : vector<8x1x1xf32>
    %21 = vector.broadcast %20 : vector<8x1x1xf32> to vector<8x8x256xf32>
    %22 = arith.mulf %10, %21 : vector<8x8x256xf32>
    %23 = vector.shape_cast %22 : vector<8x8x256xf32> to vector<64x256xf32>
    %c0_8 = arith.constant 0 : index
    %c0_9 = arith.constant 0 : index
    %24 = vector.load %arg6[%c0_8, %c0_9] : memref<64x1xf32, #tpu.memory_space<vmem>>, vector<64x1xf32>
    %25 = vector.broadcast %24 : vector<64x1xf32> to vector<64x256xf32>
    %26 = arith.mulf %23, %25 : vector<64x256xf32>
    %c0_10 = arith.constant 0 : index
    %c0_11 = arith.constant 0 : index
    %27 = vector.load %arg7[%c0_10, %c0_11] : memref<64x1xf32, #tpu.memory_space<vmem>>, vector<64x1xf32>
    %28 = vector.broadcast %27 : vector<64x1xf32> to vector<64x256xf32>
    %29 = arith.addf %26, %28 : vector<64x256xf32>
    %c0_12 = arith.constant 0 : index
    %c0_13 = arith.constant 0 : index
    %30 = vector.load %arg2[%c0_12, %c0_13] : memref<192x64xbf16, #tpu.memory_space<vmem>>, vector<192x64xbf16>
    %31 = arith.truncf %29 : vector<64x256xf32> to vector<64x256xbf16>
    %cst_14 = arith.constant dense<0.000000e+00> : vector<192x256xf32>
    %32 = tpu.matmul %30, %31, %cst_14 {dimension_numbers = #tpu.dot_dimension_numbers<[1], [0], [0], [1], [0, 0, 1, 1], [], []>} : vector<192x64xbf16>, vector<64x256xbf16>, vector<192x256xf32> -> vector<192x256xf32>
    %c0_15 = arith.constant 0 : index
    %c0_16 = arith.constant 0 : index
    %33 = vector.load %arg3[%c0_15, %c0_16] : memref<192x1xf32, #tpu.memory_space<vmem>>, vector<192x1xf32>
    %34 = vector.broadcast %33 : vector<192x1xf32> to vector<192x256xf32>
    %35 = arith.addf %32, %34 : vector<192x256xf32>
    %36 = arith.truncf %35 : vector<192x256xf32> to vector<192x256xbf16>
    %c0_17 = arith.constant 0 : index
    %c0_18 = arith.constant 0 : index
    %37 = vector.load %arg9[%c0_17, %c0_18] : memref<192x256xbf16, #tpu.memory_space<vmem>>, vector<192x256xbf16>
    tpu.vector_store %arg9[%c0_17, %c0_18], %36 {strides = array<i32>} : memref<192x256xbf16, #tpu.memory_space<vmem>>, vector<192x256xbf16>,
    %cst_19 = arith.constant 1.000000e+00 : bf16
    %38 = vector.broadcast %cst_19 : bf16 to vector<1x256xbf16>
    %c64 = arith.constant 64 : index
    %c0_20 = arith.constant 0 : index
    %39 = vector.load %arg9[%c64, %c0_20] : memref<192x256xbf16, #tpu.memory_space<vmem>>, vector<16x256xbf16>
    %c128 = arith.constant 128 : index
    %c0_21 = arith.constant 0 : index
    %40 = vector.load %arg9[%c128, %c0_21] : memref<192x256xbf16, #tpu.memory_space<vmem>>, vector<16x256xbf16>
    %c0_22 = arith.constant 0 : index
    %c0_23 = arith.constant 0 : index
    %41 = vector.load %arg9[%c0_22, %c0_23] : memref<192x256xbf16, #tpu.memory_space<vmem>>, vector<16x128xbf16>
    %cst_24 = arith.constant dense<0.000000e+00> : vector<128x256xf32>
    %42 = tpu.matmul %41, %39, %cst_24 {dimension_numbers = #tpu.dot_dimension_numbers<[0], [0], [1], [1], [0, 1, 1, 1], [], []>} : vector<16x128xbf16>, vector<16x256xbf16>, vector<128x256xf32> -> vector<128x256xf32>
    %cst_25 = arith.constant dense<0xFF800000> : vector<128xf32>
    %43 = vector.multi_reduction <maximumf>, %42, %cst_25 [1] : vector<128x256xf32> to vector<128xf32>
    %44 = vector.shape_cast %43 : vector<128xf32> to vector<128x1xf32>
    %45 = vector.broadcast %44 : vector<128x1xf32> to vector<128x256xf32>
    %46 = arith.subf %42, %45 : vector<128x256xf32>
    %47 = math.exp %46 : vector<128x256xf32>
    %48 = arith.truncf %47 : vector<128x256xf32> to vector<128x256xbf16>
    %cst_26 = arith.constant dense<0.000000e+00> : vector<16x128xf32>
    %49 = tpu.matmul %40, %48, %cst_26 {dimension_numbers = #tpu.dot_dimension_numbers<[1], [1], [0], [0], [0, 0, 1, 0], [], []>} : vector<16x256xbf16>, vector<128x256xbf16>, vector<16x128xf32> -> vector<16x128xf32>
    %cst_27 = arith.constant dense<0.000000e+00> : vector<1x128xf32>
    %50 = tpu.matmul %38, %48, %cst_27 {dimension_numbers = #tpu.dot_dimension_numbers<[1], [1], [0], [0], [0, 0, 1, 0], [], []>} : vector<1x256xbf16>, vector<128x256xbf16>, vector<1x128xf32> -> vector<1x128xf32>
    %51 = tpu.reciprocal %50 {approx = true} : vector<1x128xf32> -> vector<1x128xf32>
    %52 = vector.broadcast %51 : vector<1x128xf32> to vector<16x128xf32>
    %53 = arith.mulf %49, %52 : vector<16x128xf32>
    %54 = arith.truncf %53 : vector<16x128xf32> to vector<16x128xbf16>
    %c0_28 = arith.constant 0 : index
    %c0_29 = arith.constant 0 : index
    %55 = vector.load %arg10[%c0_28, %c0_29] : memref<64x256xbf16, #tpu.memory_space<vmem>>, vector<16x128xbf16>
    tpu.vector_store %arg10[%c0_28, %c0_29], %54 {strides = array<i32>} : memref<64x256xbf16, #tpu.memory_space<vmem>>, vector<16x128xbf16>,
    %c0_30 = arith.constant 0 : index
    %c128_31 = arith.constant 128 : index
    %56 = vector.load %arg9[%c0_30, %c128_31] : memref<192x256xbf16, #tpu.memory_space<vmem>>, vector<16x128xbf16>
    %cst_32 = arith.constant dense<0.000000e+00> : vector<128x256xf32>
    %57 = tpu.matmul %56, %39, %cst_32 {dimension_numbers = #tpu.dot_dimension_numbers<[0], [0], [1], [1], [0, 1, 1, 1], [], []>} : vector<16x128xbf16>, vector<16x256xbf16>, vector<128x256xf32> -> vector<128x256xf32>
    %cst_33 = arith.constant dense<0xFF800000> : vector<128xf32>
    %58 = vector.multi_reduction <maximumf>, %57, %cst_33 [1] : vector<128x256xf32> to vector<128xf32>
    %59 = vector.shape_cast %58 : vector<128xf32> to vector<128x1xf32>
    %60 = vector.broadcast %59 : vector<128x1xf32> to vector<128x256xf32>
    %61 = arith.subf %57, %60 : vector<128x256xf32>
    %62 = math.exp %61 : vector<128x256xf32>
    %63 = arith.truncf %62 : vector<128x256xf32> to vector<128x256xbf16>
    %cst_34 = arith.constant dense<0.000000e+00> : vector<16x128xf32>
    %64 = tpu.matmul %40, %63, %cst_34 {dimension_numbers = #tpu.dot_dimension_numbers<[1], [1], [0], [0], [0, 0, 1, 0], [], []>} : vector<16x256xbf16>, vector<128x256xbf16>, vector<16x128xf32> -> vector<16x128xf32>
    %cst_35 = arith.constant dense<0.000000e+00> : vector<1x128xf32>
    %65 = tpu.matmul %38, %63, %cst_35 {dimension_numbers = #tpu.dot_dimension_numbers<[1], [1], [0], [0], [0, 0, 1, 0], [], []>} : vector<1x256xbf16>, vector<128x256xbf16>, vector<1x128xf32> -> vector<1x128xf32>
    %66 = tpu.reciprocal %65 {approx = true} : vector<1x128xf32> -> vector<1x128xf32>
    %67 = vector.broadcast %66 : vector<1x128xf32> to vector<16x128xf32>
    %68 = arith.mulf %64, %67 : vector<16x128xf32>
    %69 = arith.truncf %68 : vector<16x128xf32> to vector<16x128xbf16>
    %c0_36 = arith.constant 0 : index
    %c128_37 = arith.constant 128 : index
    %70 = vector.load %arg10[%c0_36, %c128_37] : memref<64x256xbf16, #tpu.memory_space<vmem>>, vector<16x128xbf16>
    tpu.vector_store %arg10[%c0_36, %c128_37], %69 {strides = array<i32>} : memref<64x256xbf16, #tpu.memory_space<vmem>>, vector<16x128xbf16>,
    %c80 = arith.constant 80 : index
    %c0_38 = arith.constant 0 : index
    %71 = vector.load %arg9[%c80, %c0_38] : memref<192x256xbf16, #tpu.memory_space<vmem>>, vector<16x256xbf16>
    %c144 = arith.constant 144 : index
    %c0_39 = arith.constant 0 : index
    %72 = vector.load %arg9[%c144, %c0_39] : memref<192x256xbf16, #tpu.memory_space<vmem>>, vector<16x256xbf16>
    %c16 = arith.constant 16 : index
    %c0_40 = arith.constant 0 : index
    %73 = vector.load %arg9[%c16, %c0_40] : memref<192x256xbf16, #tpu.memory_space<vmem>>, vector<16x128xbf16>
    %cst_41 = arith.constant dense<0.000000e+00> : vector<128x256xf32>
    %74 = tpu.matmul %73, %71, %cst_41 {dimension_numbers = #tpu.dot_dimension_numbers<[0], [0], [1], [1], [0, 1, 1, 1], [], []>} : vector<16x128xbf16>, vector<16x256xbf16>, vector<128x256xf32> -> vector<128x256xf32>
    %cst_42 = arith.constant dense<0xFF800000> : vector<128xf32>
    %75 = vector.multi_reduction <maximumf>, %74, %cst_42 [1] : vector<128x256xf32> to vector<128xf32>
    %76 = vector.shape_cast %75 : vector<128xf32> to vector<128x1xf32>
    %77 = vector.broadcast %76 : vector<128x1xf32> to vector<128x256xf32>
    %78 = arith.subf %74, %77 : vector<128x256xf32>
    %79 = math.exp %78 : vector<128x256xf32>
    %80 = arith.truncf %79 : vector<128x256xf32> to vector<128x256xbf16>
    %cst_43 = arith.constant dense<0.000000e+00> : vector<16x128xf32>
    %81 = tpu.matmul %72, %80, %cst_43 {dimension_numbers = #tpu.dot_dimension_numbers<[1], [1], [0], [0], [0, 0, 1, 0], [], []>} : vector<16x256xbf16>, vector<128x256xbf16>, vector<16x128xf32> -> vector<16x128xf32>
    %cst_44 = arith.constant dense<0.000000e+00> : vector<1x128xf32>
    %82 = tpu.matmul %38, %80, %cst_44 {dimension_numbers = #tpu.dot_dimension_numbers<[1], [1], [0], [0], [0, 0, 1, 0], [], []>} : vector<1x256xbf16>, vector<128x256xbf16>, vector<1x128xf32> -> vector<1x128xf32>
    %83 = tpu.reciprocal %82 {approx = true} : vector<1x128xf32> -> vector<1x128xf32>
    %84 = vector.broadcast %83 : vector<1x128xf32> to vector<16x128xf32>
    %85 = arith.mulf %81, %84 : vector<16x128xf32>
    %86 = arith.truncf %85 : vector<16x128xf32> to vector<16x128xbf16>
    %c16_45 = arith.constant 16 : index
    %c0_46 = arith.constant 0 : index
    %87 = vector.load %arg10[%c16_45, %c0_46] : memref<64x256xbf16, #tpu.memory_space<vmem>>, vector<16x128xbf16>
    tpu.vector_store %arg10[%c16_45, %c0_46], %86 {strides = array<i32>} : memref<64x256xbf16, #tpu.memory_space<vmem>>, vector<16x128xbf16>,
    %c16_47 = arith.constant 16 : index
    %c128_48 = arith.constant 128 : index
    %88 = vector.load %arg9[%c16_47, %c128_48] : memref<192x256xbf16, #tpu.memory_space<vmem>>, vector<16x128xbf16>
    %cst_49 = arith.constant dense<0.000000e+00> : vector<128x256xf32>
    %89 = tpu.matmul %88, %71, %cst_49 {dimension_numbers = #tpu.dot_dimension_numbers<[0], [0], [1], [1], [0, 1, 1, 1], [], []>} : vector<16x128xbf16>, vector<16x256xbf16>, vector<128x256xf32> -> vector<128x256xf32>
    %cst_50 = arith.constant dense<0xFF800000> : vector<128xf32>
    %90 = vector.multi_reduction <maximumf>, %89, %cst_50 [1] : vector<128x256xf32> to vector<128xf32>
    %91 = vector.shape_cast %90 : vector<128xf32> to vector<128x1xf32>
    %92 = vector.broadcast %91 : vector<128x1xf32> to vector<128x256xf32>
    %93 = arith.subf %89, %92 : vector<128x256xf32>
    %94 = math.exp %93 : vector<128x256xf32>
    %95 = arith.truncf %94 : vector<128x256xf32> to vector<128x256xbf16>
    %cst_51 = arith.constant dense<0.000000e+00> : vector<16x128xf32>
    %96 = tpu.matmul %72, %95, %cst_51 {dimension_numbers = #tpu.dot_dimension_numbers<[1], [1], [0], [0], [0, 0, 1, 0], [], []>} : vector<16x256xbf16>, vector<128x256xbf16>, vector<16x128xf32> -> vector<16x128xf32>
    %cst_52 = arith.constant dense<0.000000e+00> : vector<1x128xf32>
    %97 = tpu.matmul %38, %95, %cst_52 {dimension_numbers = #tpu.dot_dimension_numbers<[1], [1], [0], [0], [0, 0, 1, 0], [], []>} : vector<1x256xbf16>, vector<128x256xbf16>, vector<1x128xf32> -> vector<1x128xf32>
    %98 = tpu.reciprocal %97 {approx = true} : vector<1x128xf32> -> vector<1x128xf32>
    %99 = vector.broadcast %98 : vector<1x128xf32> to vector<16x128xf32>
    %100 = arith.mulf %96, %99 : vector<16x128xf32>
    %101 = arith.truncf %100 : vector<16x128xf32> to vector<16x128xbf16>
    %c16_53 = arith.constant 16 : index
    %c128_54 = arith.constant 128 : index
    %102 = vector.load %arg10[%c16_53, %c128_54] : memref<64x256xbf16, #tpu.memory_space<vmem>>, vector<16x128xbf16>
    tpu.vector_store %arg10[%c16_53, %c128_54], %101 {strides = array<i32>} : memref<64x256xbf16, #tpu.memory_space<vmem>>, vector<16x128xbf16>,
    %c96 = arith.constant 96 : index
    %c0_55 = arith.constant 0 : index
    %103 = vector.load %arg9[%c96, %c0_55] : memref<192x256xbf16, #tpu.memory_space<vmem>>, vector<16x256xbf16>
    %c160 = arith.constant 160 : index
    %c0_56 = arith.constant 0 : index
    %104 = vector.load %arg9[%c160, %c0_56] : memref<192x256xbf16, #tpu.memory_space<vmem>>, vector<16x256xbf16>
    %c32 = arith.constant 32 : index
    %c0_57 = arith.constant 0 : index
    %105 = vector.load %arg9[%c32, %c0_57] : memref<192x256xbf16, #tpu.memory_space<vmem>>, vector<16x128xbf16>
    %cst_58 = arith.constant dense<0.000000e+00> : vector<128x256xf32>
    %106 = tpu.matmul %105, %103, %cst_58 {dimension_numbers = #tpu.dot_dimension_numbers<[0], [0], [1], [1], [0, 1, 1, 1], [], []>} : vector<16x128xbf16>, vector<16x256xbf16>, vector<128x256xf32> -> vector<128x256xf32>
    %cst_59 = arith.constant dense<0xFF800000> : vector<128xf32>
    %107 = vector.multi_reduction <maximumf>, %106, %cst_59 [1] : vector<128x256xf32> to vector<128xf32>
    %108 = vector.shape_cast %107 : vector<128xf32> to vector<128x1xf32>
    %109 = vector.broadcast %108 : vector<128x1xf32> to vector<128x256xf32>
    %110 = arith.subf %106, %109 : vector<128x256xf32>
    %111 = math.exp %110 : vector<128x256xf32>
    %112 = arith.truncf %111 : vector<128x256xf32> to vector<128x256xbf16>
    %cst_60 = arith.constant dense<0.000000e+00> : vector<16x128xf32>
    %113 = tpu.matmul %104, %112, %cst_60 {dimension_numbers = #tpu.dot_dimension_numbers<[1], [1], [0], [0], [0, 0, 1, 0], [], []>} : vector<16x256xbf16>, vector<128x256xbf16>, vector<16x128xf32> -> vector<16x128xf32>
    %cst_61 = arith.constant dense<0.000000e+00> : vector<1x128xf32>
    %114 = tpu.matmul %38, %112, %cst_61 {dimension_numbers = #tpu.dot_dimension_numbers<[1], [1], [0], [0], [0, 0, 1, 0], [], []>} : vector<1x256xbf16>, vector<128x256xbf16>, vector<1x128xf32> -> vector<1x128xf32>
    %115 = tpu.reciprocal %114 {approx = true} : vector<1x128xf32> -> vector<1x128xf32>
    %116 = vector.broadcast %115 : vector<1x128xf32> to vector<16x128xf32>
    %117 = arith.mulf %113, %116 : vector<16x128xf32>
    %118 = arith.truncf %117 : vector<16x128xf32> to vector<16x128xbf16>
    %c32_62 = arith.constant 32 : index
    %c0_63 = arith.constant 0 : index
    %119 = vector.load %arg10[%c32_62, %c0_63] : memref<64x256xbf16, #tpu.memory_space<vmem>>, vector<16x128xbf16>
    tpu.vector_store %arg10[%c32_62, %c0_63], %118 {strides = array<i32>} : memref<64x256xbf16, #tpu.memory_space<vmem>>, vector<16x128xbf16>,
    %c32_64 = arith.constant 32 : index
    %c128_65 = arith.constant 128 : index
    %120 = vector.load %arg9[%c32_64, %c128_65] : memref<192x256xbf16, #tpu.memory_space<vmem>>, vector<16x128xbf16>
    %cst_66 = arith.constant dense<0.000000e+00> : vector<128x256xf32>
    %121 = tpu.matmul %120, %103, %cst_66 {dimension_numbers = #tpu.dot_dimension_numbers<[0], [0], [1], [1], [0, 1, 1, 1], [], []>} : vector<16x128xbf16>, vector<16x256xbf16>, vector<128x256xf32> -> vector<128x256xf32>
    %cst_67 = arith.constant dense<0xFF800000> : vector<128xf32>
    %122 = vector.multi_reduction <maximumf>, %121, %cst_67 [1] : vector<128x256xf32> to vector<128xf32>
    %123 = vector.shape_cast %122 : vector<128xf32> to vector<128x1xf32>
    %124 = vector.broadcast %123 : vector<128x1xf32> to vector<128x256xf32>
    %125 = arith.subf %121, %124 : vector<128x256xf32>
    %126 = math.exp %125 : vector<128x256xf32>
    %127 = arith.truncf %126 : vector<128x256xf32> to vector<128x256xbf16>
    %cst_68 = arith.constant dense<0.000000e+00> : vector<16x128xf32>
    %128 = tpu.matmul %104, %127, %cst_68 {dimension_numbers = #tpu.dot_dimension_numbers<[1], [1], [0], [0], [0, 0, 1, 0], [], []>} : vector<16x256xbf16>, vector<128x256xbf16>, vector<16x128xf32> -> vector<16x128xf32>
    %cst_69 = arith.constant dense<0.000000e+00> : vector<1x128xf32>
    %129 = tpu.matmul %38, %127, %cst_69 {dimension_numbers = #tpu.dot_dimension_numbers<[1], [1], [0], [0], [0, 0, 1, 0], [], []>} : vector<1x256xbf16>, vector<128x256xbf16>, vector<1x128xf32> -> vector<1x128xf32>
    %130 = tpu.reciprocal %129 {approx = true} : vector<1x128xf32> -> vector<1x128xf32>
    %131 = vector.broadcast %130 : vector<1x128xf32> to vector<16x128xf32>
    %132 = arith.mulf %128, %131 : vector<16x128xf32>
    %133 = arith.truncf %132 : vector<16x128xf32> to vector<16x128xbf16>
    %c32_70 = arith.constant 32 : index
    %c128_71 = arith.constant 128 : index
    %134 = vector.load %arg10[%c32_70, %c128_71] : memref<64x256xbf16, #tpu.memory_space<vmem>>, vector<16x128xbf16>
    tpu.vector_store %arg10[%c32_70, %c128_71], %133 {strides = array<i32>} : memref<64x256xbf16, #tpu.memory_space<vmem>>, vector<16x128xbf16>,
    %c112 = arith.constant 112 : index
    %c0_72 = arith.constant 0 : index
    %135 = vector.load %arg9[%c112, %c0_72] : memref<192x256xbf16, #tpu.memory_space<vmem>>, vector<16x256xbf16>
    %c176 = arith.constant 176 : index
    %c0_73 = arith.constant 0 : index
    %136 = vector.load %arg9[%c176, %c0_73] : memref<192x256xbf16, #tpu.memory_space<vmem>>, vector<16x256xbf16>
    %c48 = arith.constant 48 : index
    %c0_74 = arith.constant 0 : index
    %137 = vector.load %arg9[%c48, %c0_74] : memref<192x256xbf16, #tpu.memory_space<vmem>>, vector<16x128xbf16>
    %cst_75 = arith.constant dense<0.000000e+00> : vector<128x256xf32>
    %138 = tpu.matmul %137, %135, %cst_75 {dimension_numbers = #tpu.dot_dimension_numbers<[0], [0], [1], [1], [0, 1, 1, 1], [], []>} : vector<16x128xbf16>, vector<16x256xbf16>, vector<128x256xf32> -> vector<128x256xf32>
    %cst_76 = arith.constant dense<0xFF800000> : vector<128xf32>
    %139 = vector.multi_reduction <maximumf>, %138, %cst_76 [1] : vector<128x256xf32> to vector<128xf32>
    %140 = vector.shape_cast %139 : vector<128xf32> to vector<128x1xf32>
    %141 = vector.broadcast %140 : vector<128x1xf32> to vector<128x256xf32>
    %142 = arith.subf %138, %141 : vector<128x256xf32>
    %143 = math.exp %142 : vector<128x256xf32>
    %144 = arith.truncf %143 : vector<128x256xf32> to vector<128x256xbf16>
    %cst_77 = arith.constant dense<0.000000e+00> : vector<16x128xf32>
    %145 = tpu.matmul %136, %144, %cst_77 {dimension_numbers = #tpu.dot_dimension_numbers<[1], [1], [0], [0], [0, 0, 1, 0], [], []>} : vector<16x256xbf16>, vector<128x256xbf16>, vector<16x128xf32> -> vector<16x128xf32>
    %cst_78 = arith.constant dense<0.000000e+00> : vector<1x128xf32>
    %146 = tpu.matmul %38, %144, %cst_78 {dimension_numbers = #tpu.dot_dimension_numbers<[1], [1], [0], [0], [0, 0, 1, 0], [], []>} : vector<1x256xbf16>, vector<128x256xbf16>, vector<1x128xf32> -> vector<1x128xf32>
    %147 = tpu.reciprocal %146 {approx = true} : vector<1x128xf32> -> vector<1x128xf32>
    %148 = vector.broadcast %147 : vector<1x128xf32> to vector<16x128xf32>
    %149 = arith.mulf %145, %148 : vector<16x128xf32>
    %150 = arith.truncf %149 : vector<16x128xf32> to vector<16x128xbf16>
    %c48_79 = arith.constant 48 : index
    %c0_80 = arith.constant 0 : index
    %151 = vector.load %arg10[%c48_79, %c0_80] : memref<64x256xbf16, #tpu.memory_space<vmem>>, vector<16x128xbf16>
    tpu.vector_store %arg10[%c48_79, %c0_80], %150 {strides = array<i32>} : memref<64x256xbf16, #tpu.memory_space<vmem>>, vector<16x128xbf16>,
    %c48_81 = arith.constant 48 : index
    %c128_82 = arith.constant 128 : index
    %152 = vector.load %arg9[%c48_81, %c128_82] : memref<192x256xbf16, #tpu.memory_space<vmem>>, vector<16x128xbf16>
    %cst_83 = arith.constant dense<0.000000e+00> : vector<128x256xf32>
    %153 = tpu.matmul %152, %135, %cst_83 {dimension_numbers = #tpu.dot_dimension_numbers<[0], [0], [1], [1], [0, 1, 1, 1], [], []>} : vector<16x128xbf16>, vector<16x256xbf16>, vector<128x256xf32> -> vector<128x256xf32>
    %cst_84 = arith.constant dense<0xFF800000> : vector<128xf32>
    %154 = vector.multi_reduction <maximumf>, %153, %cst_84 [1] : vector<128x256xf32> to vector<128xf32>
    %155 = vector.shape_cast %154 : vector<128xf32> to vector<128x1xf32>
    %156 = vector.broadcast %155 : vector<128x1xf32> to vector<128x256xf32>
    %157 = arith.subf %153, %156 : vector<128x256xf32>
    %158 = math.exp %157 : vector<128x256xf32>
    %159 = arith.truncf %158 : vector<128x256xf32> to vector<128x256xbf16>
    %cst_85 = arith.constant dense<0.000000e+00> : vector<16x128xf32>
    %160 = tpu.matmul %136, %159, %cst_85 {dimension_numbers = #tpu.dot_dimension_numbers<[1], [1], [0], [0], [0, 0, 1, 0], [], []>} : vector<16x256xbf16>, vector<128x256xbf16>, vector<16x128xf32> -> vector<16x128xf32>
    %cst_86 = arith.constant dense<0.000000e+00> : vector<1x128xf32>
    %161 = tpu.matmul %38, %159, %cst_86 {dimension_numbers = #tpu.dot_dimension_numbers<[1], [1], [0], [0], [0, 0, 1, 0], [], []>} : vector<1x256xbf16>, vector<128x256xbf16>, vector<1x128xf32> -> vector<1x128xf32>
    %162 = tpu.reciprocal %161 {approx = true} : vector<1x128xf32> -> vector<1x128xf32>
    %163 = vector.broadcast %162 : vector<1x128xf32> to vector<16x128xf32>
    %164 = arith.mulf %160, %163 : vector<16x128xf32>
    %165 = arith.truncf %164 : vector<16x128xf32> to vector<16x128xbf16>
    %c48_87 = arith.constant 48 : index
    %c128_88 = arith.constant 128 : index
    %166 = vector.load %arg10[%c48_87, %c128_88] : memref<64x256xbf16, #tpu.memory_space<vmem>>, vector<16x128xbf16>
    tpu.vector_store %arg10[%c48_87, %c128_88], %165 {strides = array<i32>} : memref<64x256xbf16, #tpu.memory_space<vmem>>, vector<16x128xbf16>,
    %c0_89 = arith.constant 0 : index
    %c0_90 = arith.constant 0 : index
    %167 = vector.load %arg4[%c0_89, %c0_90] : memref<64x64xbf16, #tpu.memory_space<vmem>>, vector<64x64xbf16>
    %c0_91 = arith.constant 0 : index
    %c0_92 = arith.constant 0 : index
    %168 = vector.load %arg10[%c0_91, %c0_92] : memref<64x256xbf16, #tpu.memory_space<vmem>>, vector<64x256xbf16>
    %cst_93 = arith.constant dense<0.000000e+00> : vector<64x256xf32>
    %169 = tpu.matmul %167, %168, %cst_93 {dimension_numbers = #tpu.dot_dimension_numbers<[1], [0], [0], [1], [0, 0, 1, 1], [], []>} : vector<64x64xbf16>, vector<64x256xbf16>, vector<64x256xf32> -> vector<64x256xf32>
    %c0_94 = arith.constant 0 : index
    %c0_95 = arith.constant 0 : index
    %170 = vector.load %arg5[%c0_94, %c0_95] : memref<64x1xf32, #tpu.memory_space<vmem>>, vector<64x1xf32>
    %171 = vector.broadcast %170 : vector<64x1xf32> to vector<64x256xf32>
    %172 = arith.addf %169, %171 : vector<64x256xf32>
    %c0_96 = arith.constant 0 : index
    %c0_97 = arith.constant 0 : index
    %c0_98 = arith.constant 0 : index
    %173 = vector.load %arg1[%c0_96, %c0_97, %c0_98] : memref<1x64x256xf32, #tpu.memory_space<vmem>>, vector<1x64x256xf32>
    %174 = vector.shape_cast %173 : vector<1x64x256xf32> to vector<64x256xf32>
    %175 = arith.addf %172, %174 : vector<64x256xf32>
    %c0_99 = arith.constant 0 : index
    %c0_100 = arith.constant 0 : index
    %c0_101 = arith.constant 0 : index
    %176 = vector.load %arg8[%c0_99, %c0_100, %c0_101] : memref<1x64x256xf32, #tpu.memory_space<vmem>>, vector<1x64x256xf32>
    %177 = vector.shape_cast %176 : vector<1x64x256xf32> to vector<64x256xf32>
    %178 = vector.shape_cast %175 : vector<64x256xf32> to vector<1x64x256xf32>
    tpu.vector_store %arg8[%c0_99, %c0_100, %c0_101], %178 {strides = array<i32>} : memref<1x64x256xf32, #tpu.memory_space<vmem>>, vector<1x64x256xf32>,
    return
  }
  func.func @transform_0(%arg0: i32) -> (i32, i32, i32) {
    %c0_i32 = arith.constant 0 : i32
    %c0_i32_0 = arith.constant 0 : i32
    %c0_i32_1 = arith.constant 0 : i32
    return %arg0, %c0_i32, %c0_i32_0 : i32, i32, i32
  }
  func.func @transform_1(%arg0: i32) -> (i32, i32) {
    %c0_i32 = arith.constant 0 : i32
    %c0_i32_0 = arith.constant 0 : i32
    %c0_i32_1 = arith.constant 0 : i32
    return %c0_i32, %c0_i32_0 : i32, i32
  }
  func.func @transform_2(%arg0: i32) -> (i32, i32) {
    %c0_i32 = arith.constant 0 : i32
    %c0_i32_0 = arith.constant 0 : i32
    %c0_i32_1 = arith.constant 0 : i32
    return %c0_i32, %c0_i32_0 : i32, i32
  }
  func.func @transform_3(%arg0: i32) -> (i32, i32) {
    %c0_i32 = arith.constant 0 : i32
    %c0_i32_0 = arith.constant 0 : i32
    %c0_i32_1 = arith.constant 0 : i32
    return %c0_i32, %c0_i32_0 : i32, i32
  }
  func.func @transform_4(%arg0: i32) -> (i32, i32) {
    %c0_i32 = arith.constant 0 : i32
    %c0_i32_0 = arith.constant 0 : i32
    %c0_i32_1 = arith.constant 0 : i32
    return %c0_i32, %c0_i32_0 : i32, i32
  }
  func.func @transform_5(%arg0: i32) -> (i32, i32) {
    %c0_i32 = arith.constant 0 : i32
    %c0_i32_0 = arith.constant 0 : i32
    %c0_i32_1 = arith.constant 0 : i32
    return %c0_i32, %c0_i32_0 : i32, i32
  }
  func.func @transform_6(%arg0: i32) -> (i32, i32) {
    %c0_i32 = arith.constant 0 : i32
    %c0_i32_0 = arith.constant 0 : i32
    %c0_i32_1 = arith.constant 0 : i32
    return %c0_i32, %c0_i32_0 : i32, i32
  }
  func.func @transform_7(%arg0: i32) -> (i32, i32, i32) {
    %c0_i32 = arith.constant 0 : i32
    %c0_i32_0 = arith.constant 0 : i32
    %c0_i32_1 = arith.constant 0 : i32
    return %arg0, %c0_i32, %c0_i32_0 : i32, i32, i32
  }
}

</mosaic_0001>

<bundles_post_ra>
// kernel: tpu_custom_call.1
= control target key start
LH: loop header
LB: loop body
LE: loop exit
PB: predicated region body
PF: predicated region fallthrough
CT: control target
= control target key end

     0   :  { %12 = vsyncpa [#allocation5], 0  ;;  %s8469_s0 = inlined_call_operand.vmem [shape: f32[2,64,256], index: 0, kind: input, shape index: {}]   ;;  %s8470_s1 = inlined_call_operand.vmem [shape: bf16[192,64], index: 1, kind: input, shape index: {}]   ;;  %s8471_s2 = inlined_call_operand.vmem [shape: f32[192,1], index: 2, kind: input, shape index: {}]   ;;  %s8472_s3 = inlined_call_operand.vmem [shape: bf16[64,64], index: 3, kind: input, shape index: {}]   ;;  %s8473_s4 = inlined_call_operand.vmem [shape: f32[64,1], index: 4, kind: input, shape index: {}]   ;;  %s8474_s5 = inlined_call_operand.vmem [shape: f32[64,1], index: 5, kind: input, shape index: {}]   ;;  %s8475_s6 = inlined_call_operand.vmem [shape: f32[64,1], index: 6, kind: input, shape index: {}]   ;;  %s8476_s7 = inlined_call_operand.hbm [shape: f32[2,64,256], index: 7, kind: output, shape index: {}]  }
   0x1   :  { %14 = vsyncpa [#allocation5 + $0x1], 0  ;;  %s5704_s24 = smov 0   ;;  %s5706_s25 = smov 0  }
   0x2   :  { %s5708_s26 = smov 0   ;;  %s5710_s27 = smov 0  }
   0x3 LB: > { %s5725_s28 = sadd.s32 4294967295, %s5657_s27   ;;  %s4546_s29 = sadd.s32 4294967294, %s5657_s27   ;;  %s5657_s27 = sphi %s5710_s27, %s9297_s27   ;;  %s5653_s26 = sphi %s5708_s26, %s9296_s26   ;;  %s5649_s25 = sphi %s5706_s25, %s9295_s25   ;;  %s5645_s24 = sphi %s5704_s24, %s9294_s24  }
   0x4   : > { %s5729_s30 = sadd.s32 1, %s5657_s27   ;;  %s179_s8 = sadd.s32 1, %s5653_s26 }
   0x5   : > { %s176_s9 = ssub.s32 %s5657_s27, %s5729_s30  ;;  %p189_p0 = scmp.ne.s32.totalorder %s5653_s26, %s5649_s25 }
   0x6   : > { %p177_p1 = scmp.eq.s32.totalorder %s176_s9, 0  ;;  %p190_p2 = scmp.eq.s32.totalorder %s5725_s28, 1 }
   0x7   : > { %p195_p3 = scmp.ne.s32.totalorder %s5649_s25, %s5645_s24  ;;  %p196_p4 = scmp.eq.s32.totalorder %s4546_s29, 1 }
   0x8   : > { %s5740_s10 = scalar_select %p177_p1, %s5653_s26, %s179_s8  }
   0x9   : > { %p5742_p5 = por %p190_p2, %p189_p0  ;;  %p5746_p6 = por %p196_p4, %p195_p3 }
   0xa   : > { %p4549_p7 = scmp.ge.s32.totalorder %s5657_s27, 1  ;;  %p240_p8 = scmp.lt.s32.totalorder %s5657_s27, 3 }
   0xc   : > { %p241_p9 = pnand %p4549_p7, %p240_p8 }
   0xe   : > { %244 = sbr.rel (%p241_p9) target bundleno = 2604 (0xa2c), region = 48 }
  0x13   : > { %p272_p10 = scmp.lt.s32.totalorder %s5725_s28, 1  ;;  %v5659_v0 = vmov 0   ;;  %v605_v25 = vld [vmem:[%s8474_s5 + $0x38] sm:$0xff]  ;;  %v668_v26 = vld [vmem:[%s8475_s6 + $0x30] sm:$0xff]  ;;  %v603_v30 = vld [vmem:[%s8474_s5 + $0x28] sm:$0xff]  ;;  %v5660_v36 = vmov 2048.0  }
  0x14   : > { %5013 = vset.pattern.permute.xlu2 %v5659_v0  ;;  %5012 = vset.pattern.permute.xlu1 %v5659_v0  ;;  %v669_v27 = vld [vmem:[%s8475_s6 + $0x38] sm:$0xff]  ;;  %v604_v28 = vld [vmem:[%s8474_s5 + $0x30] sm:$0xff]  ;;  %v602_v31 = vld [vmem:[%s8474_s5 + $0x20] sm:$0xff]  ;;  %5049 = vrcp.f32 %v5660_v36  ;;  %s269_s15 = sand.u32 1, %s5649_s25   ;;  %s4959_s19 = sshll.u32 %s5725_s28, 7 }
  0x15   : > { %s273_s13 = scalar_select %p272_p10, %s5725_s28, 1  ;;  %5014 = vset.pattern.permute.xlu0 %v5659_v0  ;;  %v601_v29 = vld [vmem:[%s8474_s5 + $0x18] sm:$0xff]  ;;  %v667_v32 = vld [vmem:[%s8475_s6 + $0x28] sm:$0xff]  ;;  %v666_v33 = vld [vmem:[%s8475_s6 + $0x20] sm:$0xff] }
  0x16   : > { %v664_v34 = vld [vmem:[%s8475_s6 + $0x10] sm:$0xff]  ;;  %s4550_s16 = sshll.u32 %s269_s15, 7  ;;  %s4480_s22 = scalar_lea.hbm %s8476_s7, %s4959_s19 }
  0x17   : > { %s4910_s14 = sshll.u32 %s273_s13, 7  ;;  %v600_v35 = vld [vmem:[%s8474_s5 + $0x10] sm:$0xff]  ;;  %s8397_s18 = scalar_lea.vmem [#allocation4], %s4550_s16 }
  0x18   : > { %s5757_s17 = scalar_lea.vmem %s8469_s0, %s4910_s14  ;;  %s4481_s23 = sshll.u32 %s8397_s18, 4  ;;  %s4482_s23 = int_to_ptr.vmem [resolvable:$true] %s4481_s23 }
  0x19   : > { %v5760_v1 = vld [vmem:[%s5757_s17 + $0x60] sm:$0xff]  ;;  %v5763_v2 = vld [vmem:[%s5757_s17 + $0x68] sm:$0xff]  ;;  %v5784_v10 = vld [vmem:[%s5757_s17 + $0x70] sm:$0xff]  ;;  %s4483_s29 = sshll.u32 %s4480_s22, 4  ;;  %s4469_s8 = scalar_lea.sflag [#allocation5], %s269_s15  ;;  %s4484_s29 = int_to_ptr.hbm [resolvable:$true] %s4483_s29 }
  0x1a   : > { %v5766_v3 = vld [vmem:[%s5757_s17 + $0x40] sm:$0xff]  ;;  %v313_v4 = vadd.f32 %v5763_v2, %v5760_v1  ;;  %v5771_v5 = vld [vmem:[%s5757_s17 + $0x48] sm:$0xff]  ;;  %v5787_v11 = vld [vmem:[%s5757_s17 + $0x78] sm:$0xff]  ;;  %v5050_v37 = vpop.eup %5049  ;;  %s5609_s9 = sshra.s32 %s4484_s29, 4  ;;  %s5615_s16 = scalar_lea.hbm %s8476_s7, 256  ;;  %s5610_s9 = int_to_ptr.hbm [resolvable:$true] %s5609_s9 }
  0x1b   : > { %v5774_v6 = vld [vmem:[%s5757_s17 + $0x20] sm:$0xff]  ;;  %v5777_v7 = vld [vmem:[%s5757_s17 + $0x28] sm:$0xff]  ;;  %v307_v8 = vadd.f32 %v5771_v5, %v5766_v3  ;;  %v5790_v12 = vld [vmem:[%s5757_s17 + $0x50] sm:$0xff]  ;;  %v316_v16 = vadd.f32 %v5787_v11, %v5784_v10  ;;  %v368_v38 = vmul.f32 2048.0, %v5050_v37  ;;  %vm372_vm0 = vweird.f32 %v5050_v37  ;;  %s5611_s28 = scalar_lea.hbm %s5610_s9, 128  ;;  %p5616_p0 = scmp.lt.s32.totalorder %s5610_s9, %s8476_s7 }
  0x1c   : > { %v301_v9 = vadd.f32 %v5777_v7, %v5774_v6  ;;  %314 = vadd.xlane.f32.xlu0 %v313_v4  ;;  %v5793_v13 = vld [vmem:[%s5757_s17 + $0x58] sm:$0xff]  ;;  %v5796_v14 = vld [vmem:[%s5757_s17 + $0x30] sm:$0xff]  ;;  %v5808_v19 = vld [vmem:[%s5757_s17] sm:$0xff]  ;;  %p5612_p11 = scmp.ne.s32.totalorder %s5610_s9, %s5611_s28  ;;  %p5617_p1 = scmp.lt.s32.totalorder %s5615_s16, %s5611_s28 }
  0x1d   : > { %308 = vadd.xlane.f32.xlu1 %v307_v8  ;;  %v5799_v15 = vld [vmem:[%s5757_s17 + $0x38] sm:$0xff]  ;;  %v310_v17 = vadd.f32 %v5793_v13, %v5790_v12  ;;  %v5811_v20 = vld [vmem:[%s5757_s17 + $0x8] sm:$0xff]  ;;  %v5814_v21 = vld [vmem:[%s5757_s17 + $0x10] sm:$0xff]  ;;  %v369_v39 = vsub.f32 1.0, %v368_v38 }
  0x1e   : > { %302 = vadd.xlane.f32.xlu2 %v301_v9  ;;  %v304_v18 = vadd.f32 %v5799_v15, %v5796_v14  ;;  %v5817_v22 = vld [vmem:[%s5757_s17 + $0x18] sm:$0xff]  ;;  %v295_v23 = vadd.f32 %v5811_v20, %v5808_v19  ;;  %p5613_p12 = pnand %p5612_p11, %p5742_p5  ;;  %p5618_p2 = por %p5617_p1, %p5616_p0 }
  0x1f   : > { %v298_v24 = vadd.f32 %v5817_v22, %v5814_v21  ;;  %v370_v46 = vmul.f32 %v5050_v37, %v369_v39 }
  0x20   : > { %p5614_p13 = pneg %p5613_p12 }
  0x21   : > { %v371_v52 = vadd.f32 %v5050_v37, %v370_v46 }
  0x22   : > { %p5619_p3 = pnand %p5618_p2, %p5614_p13 }
  0x23   : > { %v5856_v0 = vsel %vm372_vm0, %v5050_v37, %v371_v52 }
  0x24   : > { %317 = vadd.xlane.f32.xlu0 %v316_v16 }
  0x25   : > { %311 = vadd.xlane.f32.xlu1 %v310_v17 }
  0x26   : > { %305 = vadd.xlane.f32.xlu2 %v304_v18 }
  0x2c   : > { %296 = vadd.xlane.f32.xlu0 %v295_v23 }
  0x2d   : > { %299 = vadd.xlane.f32.xlu1 %v298_v24 }
  0x3e   : > { %643 = vperm.xlu2 %5013, %v605_v25  }
  0x40   : > { %702 = vperm.xlu0 %5014, %v668_v26  }
  0x46   : > { %707 = vperm.xlu2 %5013, %v669_v27   ;;  %638 = vperm.xlu1 %5012, %v604_v28  }
  0x48   : > { %623 = vperm.xlu0 %5014, %v601_v29  }
  0x4e   : > { %633 = vperm.xlu2 %5013, %v603_v30   ;;  %628 = vperm.xlu1 %5012, %v602_v31  }
  0x56   : > { %697 = vperm.xlu2 %5013, %v667_v32   ;;  %692 = vperm.xlu1 %5012, %v666_v33  }
  0x5e   : > { %682 = vperm.xlu2 %5013, %v664_v34   ;;  %618 = vperm.xlu1 %5012, %v600_v35  }
  0x8f   : > { %v315_v40 = vpop.xlane.xlu0 %314 }
  0x90   : > { %v355_v41 = vrot.slane %v315_v40, 4  ;;  %v309_v42 = vpop.xlane.xlu1 %308 }
  0x91   : > { %v303_v43 = vpop.xlane.xlu2 %302  ;;  %v343_v44 = vrot.slane %v309_v42, 4 }
  0x92   : > { %v331_v45 = vrot.slane %v303_v43, 4  ;;  %v356_v47 = vadd.f32 %v355_v41, %v315_v40 }
  0x93   : > { %v344_v48 = vadd.f32 %v343_v44, %v309_v42 }
  0x94   : > { %v332_v49 = vadd.f32 %v331_v45, %v303_v43  ;;  %v357_v50 = vrot.slane %v356_v47, 2 }
  0x95   : > { %v345_v51 = vrot.slane %v344_v48, 2 }
  0x96   : > { %v358_v53 = vadd.f32 %v357_v50, %v356_v47  ;;  %v333_v54 = vrot.slane %v332_v49, 2 }
  0x97   : > { %v346_v55 = vadd.f32 %v345_v51, %v344_v48  ;;  %v318_v56 = vpop.xlane.xlu0 %317 }
  0x98   : > { %v359_v57 = vrot.slane %v358_v53, 1  ;;  %v361_v58 = vrot.slane %v318_v56, 4  ;;  %v312_v59 = vpop.xlane.xlu1 %311  ;;  %v334_v8 = vadd.f32 %v333_v54, %v332_v49 }
  0x99   : > { %v306_v60 = vpop.xlane.xlu2 %305  ;;  %v347_v61 = vrot.slane %v346_v55, 1  ;;  %v349_v62 = vrot.slane %v312_v59, 4 }
  0x9a   : > { %v337_v63 = vrot.slane %v306_v60, 4  ;;  %v360_v4 = vadd.f32 %v359_v57, %v358_v53  ;;  %v362_v9 = vadd.f32 %v361_v58, %v318_v56  ;;  %v335_v28 = vrot.slane %v334_v8, 1 }
  0x9b   : > { %v348_v16 = vadd.f32 %v347_v61, %v346_v55  ;;  %v350_v17 = vadd.f32 %v349_v62, %v312_v59 }
  0x9c   : > { %v338_v18 = vadd.f32 %v337_v63, %v306_v60  ;;  %v363_v23 = vrot.slane %v362_v9, 2  ;;  %v380_v24 = vmul.f32 %v5856_v0, %v360_v4  ;;  %v336_v42 = vadd.f32 %v335_v28, %v334_v8  ;;  %v599_v28 = vld [vmem:[%s8474_s5 + $0x8] sm:$0xff] }
  0x9d   : > { %v351_v25 = vrot.slane %v350_v17, 2  ;;  %v378_v27 = vmul.f32 %v5856_v0, %v348_v16 }
  0x9e   : > { %v339_v26 = vrot.slane %v338_v18, 2  ;;  %v364_v29 = vadd.f32 %v363_v23, %v362_v9  ;;  %v5861_v30 = vsub.f32 %v5760_v1, %v380_v24  ;;  %v5864_v31 = vsub.f32 %v5763_v2, %v380_v24 }
  0x9f   : > { %v352_v32 = vadd.f32 %v351_v25, %v350_v17  ;;  %v297_v34 = vpop.xlane.xlu0 %296  ;;  %v5867_v35 = vsub.f32 %v5766_v3, %v378_v27  ;;  %v5870_v36 = vsub.f32 %v5771_v5, %v378_v27  ;;  %v376_v55 = vmul.f32 %v5856_v0, %v336_v42  ;;  %v665_v27 = vld [vmem:[%s8475_s6 + $0x18] sm:$0xff] }
  0xa0   : > { %v340_v33 = vadd.f32 %v339_v26, %v338_v18  ;;  %v365_v37 = vrot.slane %v364_v29, 1  ;;  %v319_v38 = vrot.slane %v297_v34, 4  ;;  %v410_v39 = vmul.f32 %v5861_v30, %v5861_v30 }
  0xa1   : > { %v411_v1 = vmul.f32 %v5864_v31, %v5864_v31  ;;  %v353_v40 = vrot.slane %v352_v32, 1  ;;  %v406_v41 = vmul.f32 %v5867_v35, %v5867_v35  ;;  %v407_v3 = vmul.f32 %v5870_v36, %v5870_v36  ;;  %v5960_v42 = vpop.permute.xlu2 %643 }
  0xa2   : > { %v341_v2 = vrot.slane %v340_v33, 1  ;;  %v366_v43 = vadd.f32 %v365_v37, %v364_v29  ;;  %v320_v5 = vadd.f32 %v319_v38, %v297_v34  ;;  %v5915_v63 = vsub.f32 %v5774_v6, %v376_v55  ;;  %v662_v29 = vld [vmem:[%s8475_s6] sm:$0xff]  ;;  %v759_v37 = vld [vmem:[%s8471_s2 + $0x8] sm:$0xff] }
  0xa3   : > { %v432_v44 = vadd.f32 %v411_v1, %v410_v39  ;;  %v354_v45 = vadd.f32 %v353_v40, %v352_v32  ;;  %v426_v47 = vadd.f32 %v407_v3, %v406_v41  ;;  %v5918_v4 = vsub.f32 %v5777_v7, %v376_v55  ;;  %v758_v34 = vld [vmem:[%s8471_s2] sm:$0xff]  ;;  %v767_v1 = vld [vmem:[%s8471_s2 + $0x48] sm:$0xff]  ;;  %v761_v41 = vld [vmem:[%s8471_s2 + $0x18] sm:$0xff] }
  0xa4   : > { %v342_v46 = vadd.f32 %v341_v2, %v340_v33  ;;  %v321_v48 = vrot.slane %v320_v5, 2  ;;  %v381_v49 = vmul.f32 %v5856_v0, %v366_v43  ;;  %v402_v17 = vmul.f32 %v5915_v63, %v5915_v63  ;;  %v663_v55 = vld [vmem:[%s8475_s6 + $0x8] sm:$0xff] }
  0xa5   : > { %433 = vadd.xlane.f32.xlu2 %v432_v44  ;;  %427 = vadd.xlane.f32.xlu1 %v426_v47  ;;  %v379_v50 = vmul.f32 %v5856_v0, %v354_v45  ;;  %v403_v18 = vmul.f32 %v5918_v4, %v5918_v4  ;;  %v769_v44 = vld [vmem:[%s8471_s2 + $0x58] sm:$0xff] }
  0xa6   : > { %v377_v51 = vmul.f32 %v5856_v0, %v342_v46  ;;  %v322_v52 = vadd.f32 %v321_v48, %v320_v5  ;;  %v5884_v53 = vsub.f32 %v5784_v10, %v381_v49  ;;  %v5887_v54 = vsub.f32 %v5787_v11, %v381_v49 }
  0xa7   : > { %v5891_v56 = vsub.f32 %v5790_v12, %v379_v50  ;;  %v5894_v57 = vsub.f32 %v5793_v13, %v379_v50  ;;  %v420_v25 = vadd.f32 %v403_v18, %v402_v17 }
  0xa8   : > { %v5897_v58 = vsub.f32 %v5796_v14, %v377_v51  ;;  %v5900_v59 = vsub.f32 %v5799_v15, %v377_v51  ;;  %v323_v60 = vrot.slane %v322_v52, 1  ;;  %v412_v10 = vmul.f32 %v5884_v53, %v5884_v53 }
  0xa9   : > { %v413_v11 = vmul.f32 %v5887_v54, %v5887_v54  ;;  %v408_v12 = vmul.f32 %v5891_v56, %v5891_v56  ;;  %v409_v13 = vmul.f32 %v5894_v57, %v5894_v57  ;;  %v5977_v49 = vpop.permute.xlu2 %707 }
  0xaa   : > { %v404_v14 = vmul.f32 %v5897_v58, %v5897_v58  ;;  %v405_v15 = vmul.f32 %v5900_v59, %v5900_v59  ;;  %v324_v61 = vadd.f32 %v323_v60, %v322_v52  ;;  %v773_v52 = vld [vmem:[%s8471_s2 + $0x78] sm:$0xff] }
  0xab   : > { %v435_v62 = vadd.f32 %v413_v11, %v412_v10  ;;  %v429_v8 = vadd.f32 %v409_v13, %v408_v12  ;;  %v766_v11 = vld [vmem:[%s8471_s2 + $0x40] sm:$0xff] }
  0xac   : > { %v423_v9 = vadd.f32 %v405_v15, %v404_v14  ;;  %v374_v16 = vmul.f32 %v5856_v0, %v324_v61  ;;  %v760_v15 = vld [vmem:[%s8471_s2 + $0x10] sm:$0xff] }
  0xad   : > { %436 = vadd.xlane.f32.xlu0 %v435_v62  ;;  %430 = vadd.xlane.f32.xlu2 %v429_v8 }
  0xae   : > { %424 = vadd.xlane.f32.xlu1 %v423_v9  ;;  %v5926_v23 = vsub.f32 %v5808_v19, %v374_v16  ;;  %v5929_v6 = vsub.f32 %v5811_v20, %v374_v16  ;;  %v598_v19 = vld [vmem:[%s8474_s5] sm:$0xff]  ;;  %v300_v20 = vpop.xlane.xlu1 %299 }
  0xaf   : > { %v325_v32 = vrot.slane %v300_v20, 4 }
  0xb0   : > { %v398_v7 = vmul.f32 %v5926_v23, %v5926_v23  ;;  %v399_v24 = vmul.f32 %v5929_v6, %v5929_v6 }
  0xb1   : > { %v326_v33 = vadd.f32 %v325_v32, %v300_v20  ;;  %v5987_v51 = vpop.permute.xlu2 %633 }
  0xb2   : > { %v414_v26 = vadd.f32 %v399_v24, %v398_v7  ;;  %v6002_v12 = vpop.permute.xlu0 %702  ;;  %v768_v7 = vld [vmem:[%s8471_s2 + $0x50] sm:$0xff] }
  0xb3   : > { %v327_v38 = vrot.slane %v326_v33, 2 }
  0xb5   : > { %421 = vadd.xlane.f32.xlu0 %v420_v25  ;;  %415 = vadd.xlane.f32.xlu2 %v414_v26  ;;  %v328_v39 = vadd.f32 %v327_v38, %v326_v33 }
  0xb7   : > { %v329_v40 = vrot.slane %v328_v39, 1 }
  0xb8   : > { %v5975_v48 = vpop.permute.xlu1 %638 }
  0xb9   : > { %v330_v2 = vadd.f32 %v329_v40, %v328_v39  ;;  %v5997_v10 = vpop.permute.xlu2 %697 }
  0xba   : > { %v6011_v61 = vpop.permute.xlu0 %623 }
  0xbb   : > { %v375_v3 = vmul.f32 %v5856_v0, %v330_v2 }
  0xbd   : > { %v5963_v43 = vsub.f32 %v5814_v21, %v375_v3  ;;  %v5966_v5 = vsub.f32 %v5817_v22, %v375_v3  ;;  %v770_v21 = vld [vmem:[%s8471_s2 + $0x60] sm:$0xff]  ;;  %v764_v22 = vld [vmem:[%s8471_s2 + $0x30] sm:$0xff] }
  0xbf   : > { %v400_v45 = vmul.f32 %v5963_v43, %v5963_v43  ;;  %v401_v46 = vmul.f32 %v5966_v5, %v5966_v5 }
  0xc0   : > { %v5985_v50 = vpop.permute.xlu1 %628 }
  0xc1   : > { %v417_v47 = vadd.f32 %v401_v46, %v400_v45  ;;  %v6006_v14 = vpop.permute.xlu2 %682 }
  0xc7   : > { %687 = vperm.xlu1 %5012, %v665_v27  }
  0xc8   : > { %v5995_v60 = vpop.permute.xlu1 %692 }
  0xc9   : > { %608 = vperm.xlu0 %5014, %v598_v19  }
  0xcd   : > { %613 = vperm.xlu2 %5013, %v599_v28  }
  0xcf   : > { %672 = vperm.xlu1 %5012, %v662_v29  }
  0xd0   : > { %v6004_v13 = vpop.permute.xlu1 %618 }
  0xd5   : > { %784 = vperm.xlu2 %5013, %v758_v34  }
  0xd7   : > { %789 = vperm.xlu1 %5012, %v759_v37  }
  0xdd   : > { %829 = vperm.xlu2 %5013, %v767_v1  }
  0xe5   : > { %799 = vperm.xlu2 %5013, %v761_v41   ;;  %v763_v41 = vld [vmem:[%s8471_s2 + $0x28] sm:$0xff] }
  0xed   : > { %839 = vperm.xlu2 %5013, %v769_v44  }
  0xf3   : > { %418 = vadd.xlane.f32.xlu0 %v417_v47 }
  0xf5   : > { %844 = vperm.xlu2 %5013, %v770_v21  }
  0xfd   : > { %814 = vperm.xlu2 %5013, %v764_v22  }
 0x105   : > { %859 = vperm.xlu2 %5013, %v773_v52  }
 0x107   : > { %677 = vperm.xlu0 %5014, %v663_v55  }
 0x10f   : > { %824 = vperm.xlu0 %5014, %v766_v11  }
 0x117   : > { %794 = vperm.xlu0 %5014, %v760_v15  }
 0x118   : > { %v434_v62 = vpop.xlane.xlu2 %433  ;;  %v428_v9 = vpop.xlane.xlu1 %427 }
 0x119   : > { %v474_v8 = vrot.slane %v434_v62, 4  ;;  %v462_v16 = vrot.slane %v428_v9, 4 }
 0x11b   : > { %v475_v17 = vadd.f32 %v474_v8, %v434_v62  ;;  %v463_v18 = vadd.f32 %v462_v16, %v428_v9 }
 0x11d   : > { %v476_v24 = vrot.slane %v475_v17, 2  ;;  %v464_v25 = vrot.slane %v463_v18, 2 }
 0x11f   : > { %v477_v26 = vadd.f32 %v476_v24, %v475_v17  ;;  %834 = vperm.xlu0 %5014, %v768_v7   ;;  %v465_v27 = vadd.f32 %v464_v25, %v463_v18  ;;  %v765_v25 = vld [vmem:[%s8471_s2 + $0x38] sm:$0xff] }
 0x120   : > { %v437_v19 = vpop.xlane.xlu0 %436  ;;  %v431_v28 = vpop.xlane.xlu2 %430 }
 0x121   : > { %v478_v20 = vrot.slane %v477_v26, 1  ;;  %v425_v29 = vpop.xlane.xlu1 %424  ;;  %v480_v32 = vrot.slane %v437_v19, 4  ;;  %v466_v33 = vrot.slane %v465_v27, 1  ;;  %v468_v34 = vrot.slane %v431_v28, 4 }
 0x122   : > { %v456_v37 = vrot.slane %v425_v29, 4 }
 0x123   : > { %v479_v38 = vadd.f32 %v478_v20, %v477_v26  ;;  %v481_v39 = vadd.f32 %v480_v32, %v437_v19  ;;  %v467_v1 = vadd.f32 %v466_v33, %v465_v27  ;;  %v469_v40 = vadd.f32 %v468_v34, %v431_v28 }
 0x124   : > { %v457_v2 = vadd.f32 %v456_v37, %v425_v29 }
 0x125   : > { %v492_v3 = vmul.f32 %v479_v38, %v5856_v0  ;;  %v482_v44 = vrot.slane %v481_v39, 2  ;;  %v490_v45 = vmul.f32 %v467_v1, %v5856_v0  ;;  %v470_v46 = vrot.slane %v469_v40, 2 }
 0x126   : > { %v458_v47 = vrot.slane %v457_v2, 2 }
 0x127   : > { %v500_v21 = vadd.f32 1e-05, %v492_v3  ;;  %v483_v22 = vadd.f32 %v482_v44, %v481_v39  ;;  %809 = vperm.xlu0 %5014, %v763_v41   ;;  %v498_v52 = vadd.f32 1e-05, %v490_v45  ;;  %v471_v55 = vadd.f32 %v470_v46, %v469_v40 }
 0x128   : > { %v459_v11 = vadd.f32 %v458_v47, %v457_v2  ;;  %v422_v15 = vpop.xlane.xlu0 %421 }
 0x129   : > { %5051 = vrsqrt.f32 %v500_v21  ;;  %v484_v62 = vrot.slane %v483_v22, 1  ;;  %v450_v8 = vrot.slane %v422_v15, 4  ;;  %v472_v9 = vrot.slane %v471_v55, 1 }
 0x12a   : > { %5053 = vrsqrt.f32 %v498_v52  ;;  %v460_v16 = vrot.slane %v459_v11, 1  ;;  %vm548_vm2 = vweird.f32 %v498_v52  ;;  %vm568_vm4 = vweird.f32 %v500_v21 }
 0x12b   : > { %v485_v17 = vadd.f32 %v484_v62, %v483_v22  ;;  %v451_v18 = vadd.f32 %v450_v8, %v422_v15  ;;  %v473_v7 = vadd.f32 %v472_v9, %v471_v55 }
 0x12c   : > { %v461_v24 = vadd.f32 %v460_v16, %v459_v11  ;;  %v416_v16 = vpop.xlane.xlu2 %415 }
 0x12d   : > { %v493_v26 = vmul.f32 %v485_v17, %v5856_v0  ;;  %v452_v27 = vrot.slane %v451_v18, 2  ;;  %v491_v19 = vmul.f32 %v473_v7, %v5856_v0 }
 0x12e   : > { %v489_v20 = vmul.f32 %v461_v24, %v5856_v0 }
 0x12f   : > { %v5052_v28 = vpop.eup %5051  ;;  %v6027_v29 = vadd.f32 1e-05, %v493_v26  ;;  %v453_v32 = vadd.f32 %v452_v27, %v451_v18  ;;  %819 = vperm.xlu0 %5014, %v765_v25   ;;  %v499_v37 = vadd.f32 1e-05, %v491_v19  ;;  %v438_v25 = vrot.slane %v416_v16, 4 }
 0x130   : > { %v5054_v33 = vpop.eup %5053  ;;  %v563_v34 = vmul.f32 %v5052_v28, %v500_v21  ;;  %v6029_v38 = vadd.f32 1e-05, %v489_v20  ;;  %vm569_vm1 = vweird.f32 %v5052_v28 }
 0x131   : > { %v543_v39 = vmul.f32 %v5054_v33, %v498_v52  ;;  %5055 = vrsqrt.f32 %v6027_v29  ;;  %v454_v1 = vrot.slane %v453_v32, 1  ;;  %vm549_vm3 = vweird.f32 %v5054_v33  ;;  %vm570_vm5 = vmor %vm568_vm4, %vm569_vm1 }
 0x132   : > { %5057 = vrsqrt.f32 %v499_v37  ;;  %v564_v40 = vmul.f32 %v5052_v28, %v563_v34  ;;  %vm550_vm6 = vmor %vm548_vm2, %vm549_vm3  ;;  %vm558_vm7 = vweird.f32 %v499_v37  ;;  %vm578_vm10 = vweird.f32 %v6027_v29 }
 0x133   : > { %5059 = vrsqrt.f32 %v6029_v38  ;;  %v455_v2 = vadd.f32 %v454_v1, %v453_v32  ;;  %v544_v41 = vmul.f32 %v5054_v33, %v543_v39  ;;  %vm538_vm12 = vweird.f32 %v6029_v38 }
 0x134   : > { %v565_v3 = vmul.f32 0.5, %v564_v40 }
 0x135   : > { %v488_v44 = vmul.f32 %v455_v2, %v5856_v0  ;;  %v545_v45 = vmul.f32 0.5, %v544_v41  ;;  %v6044_v2 = vadd.f32 %v438_v25, %v416_v16 }
 0x136   : > { %v566_v46 = vsub.f32 1.5, %v565_v3 }
 0x137   : > { %v5056_v47 = vpop.eup %5055  ;;  %v6034_v22 = vadd.f32 1e-05, %v488_v44  ;;  %v546_v55 = vsub.f32 1.5, %v545_v45 }
 0x138   : > { %v5058_v11 = vpop.eup %5057  ;;  %v573_v15 = vmul.f32 %v5056_v47, %v6027_v29  ;;  %v567_v62 = vmul.f32 %v5052_v28, %v566_v46  ;;  %vm579_vm8 = vweird.f32 %v5056_v47 }
 0x139   : > { %v5060_v8 = vpop.eup %5059  ;;  %v553_v9 = vmul.f32 %v5058_v11, %v499_v37  ;;  %5061 = vrsqrt.f32 %v6034_v22  ;;  %v547_v17 = vmul.f32 %v5054_v33, %v546_v55  ;;  %vm559_vm9 = vweird.f32 %v5058_v11  ;;  %vm580_vm14 = vmor %vm578_vm10, %vm579_vm8 }
 0x13a   : > { %v533_v18 = vmul.f32 %v5060_v8, %v6029_v38  ;;  %v571_v7 = vsel %vm570_vm5, %v5052_v28, %v567_v62  ;;  %v574_v24 = vmul.f32 %v5056_v47, %v573_v15  ;;  %vm560_vm11 = vmor %vm558_vm7, %vm559_vm9  ;;  %vm539_vm13 = vweird.f32 %v5060_v8 }
 0x13b   : > { %v551_v21 = vsel %vm550_vm6, %v5054_v33, %v547_v17  ;;  %v554_v26 = vmul.f32 %v5058_v11, %v553_v9  ;;  %v594_v19 = vmul.f32 %v571_v7, %v5861_v30  ;;  %v595_v32 = vmul.f32 %v571_v7, %v5864_v31  ;;  %vm540_vm0 = vmor %vm538_vm12, %vm539_vm13 }
 0x13c   : > { %v575_v27 = vmul.f32 0.5, %v574_v24  ;;  %v534_v20 = vmul.f32 %v5060_v8, %v533_v18  ;;  %v590_v1 = vmul.f32 %v551_v21, %v5867_v35  ;;  %v591_v28 = vmul.f32 %v551_v21, %v5870_v36 }
 0x13d   : > { %v555_v34 = vmul.f32 0.5, %v554_v26  ;;  %v658_v3 = vmul.f32 %v5975_v48, %v594_v19  ;;  %vm528_vm15 = vweird.f32 %v6034_v22  ;;  %v659_v45 = vmul.f32 %v5975_v48, %v595_v32 }
 0x13e   : > { %v576_v52 = vsub.f32 1.5, %v575_v27  ;;  %v535_v40 = vmul.f32 0.5, %v534_v20  ;;  %v654_v29 = vmul.f32 %v5985_v50, %v590_v1  ;;  %v655_v46 = vmul.f32 %v5985_v50, %v591_v28  ;;  %v688_v20 = vpop.permute.xlu1 %687 }
 0x13f   : > { %v5062_v39 = vpop.eup %5061  ;;  %v556_v30 = vsub.f32 1.5, %v555_v34  ;;  %v722_v9 = vadd.f32 %v6002_v12, %v658_v3  ;;  %vm962_vm9 = vcmask 523264   ;;  %vm1223_vm10 = vcmask 130048  }
 0x140   : > { %v523_v33 = vmul.f32 %v5062_v39, %v6034_v22  ;;  %v577_v41 = vmul.f32 %v5056_v47, %v576_v52  ;;  %v536_v36 = vsub.f32 1.5, %v535_v40  ;;  %vm529_vm1 = vweird.f32 %v5062_v39 }
 0x141   : > { %v557_v31 = vmul.f32 %v5058_v11, %v556_v30  ;;  %vm530_vm2 = vmor %vm528_vm15, %vm529_vm1  ;;  %v719_v22 = vadd.f32 %v5995_v60, %v655_v46 }
 0x142   : > { %v524_v35 = vmul.f32 %v5062_v39, %v523_v33  ;;  %v581_v44 = vsel %vm580_vm14, %v5056_v47, %v577_v41  ;;  %v537_v48 = vmul.f32 %v5060_v8, %v536_v36 }
 0x143   : > { %v596_v37 = vmul.f32 %v581_v44, %v5884_v53  ;;  %v597_v55 = vmul.f32 %v581_v44, %v5887_v54  ;;  %v561_v15 = vsel %vm560_vm11, %v5058_v11, %v557_v31  ;;  %v723_v53 = vadd.f32 %v6002_v12, %v659_v45 }
 0x144   : > { %v525_v62 = vmul.f32 0.5, %v524_v35  ;;  %v592_v16 = vmul.f32 %v561_v15, %v5891_v56  ;;  %v593_v47 = vmul.f32 %v561_v15, %v5894_v57  ;;  %v541_v11 = vsel %vm540_vm0, %v5060_v8, %v537_v48 }
 0x145   : > { %v660_v17 = vmul.f32 %v5960_v42, %v596_v37  ;;  %v661_v50 = vmul.f32 %v5960_v42, %v597_v55  ;;  %v588_v57 = vmul.f32 %v541_v11, %v5897_v58  ;;  %v589_v42 = vmul.f32 %v541_v11, %v5900_v59 }
 0x146   : > { %v526_v18 = vsub.f32 1.5, %v525_v62  ;;  %v656_v54 = vmul.f32 %v5987_v51, %v592_v16  ;;  %v657_v38 = vmul.f32 %v5987_v51, %v593_v47  ;;  %v718_v58 = vadd.f32 %v5995_v60, %v654_v29 }
 0x147   : > { %v724_v7 = vadd.f32 %v5977_v49, %v660_v17  ;;  %v725_v56 = vadd.f32 %v5977_v49, %v661_v50  ;;  %v652_v27 = vmul.f32 %v6011_v61, %v588_v57  ;;  %v440_v49 = vrot.slane %v6044_v2, 2  ;;  %v614_v57 = vpop.permute.xlu2 %613 }
 0x148   : > { %v527_v24 = vmul.f32 %v5062_v39, %v526_v18  ;;  %v720_v12 = vadd.f32 %v5997_v10, %v656_v54  ;;  %v721_v51 = vadd.f32 %v5997_v10, %v657_v38  ;;  %v653_v10 = vmul.f32 %v6011_v61, %v589_v42 }
 0x149   : > { %v756_v25 = vpack.c.bf16 %v724_v7, %v722_v9  ;;  %v757_v21 = vpack.c.bf16 %v725_v56, %v723_v53  ;;  %v441_v1 = vadd.f32 %v440_v49, %v6044_v2  ;;  %v4911_v49 = vld [vmem:[%s8470_s1] sm:$0xff] }
 0x14a   : > { %v531_v26 = vsel %vm530_vm2, %v5062_v39, %v527_v24  ;;  %v755_v32 = vpack.c.bf16 %v721_v51, %v719_v22  ;;  %v716_v39 = vadd.f32 %v688_v20, %v652_v27  ;;  %v4915_v22 = vld [vmem:[%s8470_s1 + $0x20] sm:$0xff] }
 0x14b   : > { %v586_v8 = vmul.f32 %v531_v26, %v5915_v63  ;;  %1003 = vmatpush.bf16.msra.mxu0 %v756_v25  ;;  %4960 = vmatpush.bf16.msra.mxu2 %v756_v25  ;;  %v587_v19 = vmul.f32 %v531_v26, %v5918_v4  ;;  %v754_v63 = vpack.c.bf16 %v720_v12, %v718_v58  ;;  %v442_v61 = vrot.slane %v441_v1, 1  ;;  %v4914_v58 = vld [vmem:[%s8470_s1 + $0x18] sm:$0xff] }
 0x14c   : > { %1072 = vmatpush.bf16.msra.mxu1 %v757_v21  ;;  %4964 = vmatpush.bf16.msra.mxu3 %v757_v21  ;;  %v717_v4 = vadd.f32 %v688_v20, %v653_v10  ;;  %v673_v21 = vpop.permute.xlu1 %672  ;;  %v4918_v10 = vld [vmem:[%s8470_s1 + $0x38] sm:$0xff] }
 0x14d   : > { %v650_v59 = vmul.f32 %v6004_v13, %v586_v8  ;;  %v651_v52 = vmul.f32 %v6004_v13, %v587_v19  ;;  %v443_v33 = vadd.f32 %v442_v61, %v441_v1  ;;  %v609_v13 = vpop.permute.xlu0 %608  ;;  %v4917_v19 = vld [vmem:[%s8470_s1 + $0x30] sm:$0xff] }
 0x14f   : > { %v714_v34 = vadd.f32 %v6006_v14, %v650_v59  ;;  %1004 = vmatpush.bf16.msra.mxu0 %v754_v63  ;;  %4961 = vmatpush.bf16.msra.mxu2 %v754_v63  ;;  %v715_v28 = vadd.f32 %v6006_v14, %v651_v52  ;;  %v486_v30 = vmul.f32 %v443_v33, %v5856_v0  ;;  %v4916_v59 = vld [vmem:[%s8470_s1 + $0x28] sm:$0xff]  ;;  %v785_v20 = vpop.permute.xlu2 %784 }
 0x150   : > { %1073 = vmatpush.bf16.msra.mxu1 %v755_v32  ;;  %4965 = vmatpush.bf16.msra.mxu3 %v755_v32 }
 0x151   : > { %v752_v60 = vpack.c.bf16 %v716_v39, %v714_v34  ;;  %v753_v40 = vpack.c.bf16 %v717_v4, %v715_v28  ;;  %v494_v41 = vadd.f32 1e-05, %v486_v30 }
 0x153   : > { %1005 = vmatpush.bf16.msra.mxu0 %v752_v60  ;;  %4962 = vmatpush.bf16.msra.mxu2 %v752_v60  ;;  %5063 = vrsqrt.f32 %v494_v41  ;;  %vm508_vm3 = vweird.f32 %v494_v41 }
 0x154   : > { %1074 = vmatpush.bf16.msra.mxu1 %v753_v40  ;;  %4966 = vmatpush.bf16.msra.mxu3 %v753_v40  ;;  %v790_v28 = vpop.permute.xlu1 %789 }
 0x157   : > { %v6136_v60 = vpop.permute.xlu2 %829 }
 0x159   : > { %v5064_v35 = vpop.eup %5063 }
 0x15a   : > { %v503_v14 = vmul.f32 %v5064_v35, %v494_v41  ;;  %vm509_vm4 = vweird.f32 %v5064_v35 }
 0x15b   : > { %vm510_vm5 = vmor %vm508_vm3, %vm509_vm4 }
 0x15c   : > { %v504_v46 = vmul.f32 %v5064_v35, %v503_v14 }
 0x15e   : > { %v505_v15 = vmul.f32 0.5, %v504_v46 }
 0x160   : > { %v506_v62 = vsub.f32 1.5, %v505_v15 }
 0x162   : > { %v507_v16 = vmul.f32 %v5064_v35, %v506_v62 }
 0x164   : > { %v511_v17 = vsel %vm510_vm5, %v5064_v35, %v507_v16 }
 0x165   : > { %v582_v53 = vmul.f32 %v511_v17, %v5926_v23  ;;  %v583_v54 = vmul.f32 %v511_v17, %v5929_v6 }
 0x166   : > { %v419_v2 = vpop.xlane.xlu0 %418 }
 0x167   : > { %v444_v3 = vrot.slane %v419_v2, 4  ;;  %v646_v11 = vmul.f32 %v609_v13, %v582_v53  ;;  %v647_v7 = vmul.f32 %v609_v13, %v583_v54 }
 0x169   : > { %v445_v31 = vadd.f32 %v444_v3, %v419_v2  ;;  %v710_v23 = vadd.f32 %v673_v21, %v646_v11  ;;  %v711_v8 = vadd.f32 %v673_v21, %v647_v7 }
 0x16b   : > { %v446_v36 = vrot.slane %v445_v31, 2 }
 0x16d   : > { %v447_v44 = vadd.f32 %v446_v36, %v445_v31  ;;  %v800_v31 = vpop.permute.xlu2 %799 }
 0x16f   : > { %v448_v45 = vrot.slane %v447_v44, 1 }
 0x171   : > { %v449_v29 = vadd.f32 %v448_v45, %v447_v44 }
 0x173   : > { %v487_v37 = vmul.f32 %v449_v29, %v5856_v0 }
 0x175   : > { %v495_v55 = vadd.f32 1e-05, %v487_v37  ;;  %v6138_v16 = vpop.permute.xlu2 %839 }
 0x177   : > { %5065 = vrsqrt.f32 %v495_v55  ;;  %vm518_vm7 = vweird.f32 %v495_v55 }
 0x179   : > { %v678_v12 = vpop.permute.xlu0 %677 }
 0x17d   : > { %v5066_v9 = vpop.eup %5065 }
 0x17e   : > { %v513_v47 = vmul.f32 %v5066_v9, %v495_v55  ;;  %vm519_vm6 = vweird.f32 %v5066_v9 }
 0x17f   : > { %vm520_vm8 = vmor %vm518_vm7, %vm519_vm6 }
 0x180   : > { %v514_v48 = vmul.f32 %v5066_v9, %v513_v47 }
 0x181   : > { %v6134_v1 = vpop.permute.xlu0 %824 }
 0x182   : > { %v515_v50 = vmul.f32 0.5, %v514_v48 }
 0x184   : > { %v516_v18 = vsub.f32 1.5, %v515_v50 }
 0x186   : > { %v517_v0 = vmul.f32 %v5066_v9, %v516_v18 }
 0x188   : > { %v521_v38 = vsel %vm520_vm8, %v5066_v9, %v517_v0 }
 0x189   : > { %v584_v56 = vmul.f32 %v521_v38, %v5963_v43  ;;  %v585_v24 = vmul.f32 %v521_v38, %v5966_v5  ;;  %v4912_v43 = vld [vmem:[%s8470_s1 + $0x8] sm:$0xff]  ;;  %v4913_v5 = vld [vmem:[%s8470_s1 + $0x10] sm:$0xff]  ;;  %v795_v13 = vpop.permute.xlu0 %794  ;;  %v6144_v38 = vpop.permute.xlu2 %844 }
 0x18b   : > { %v648_v42 = vmul.f32 %v614_v57, %v584_v56  ;;  %v649_v25 = vmul.f32 %v614_v57, %v585_v24 }
 0x18d   : > { %v712_v26 = vadd.f32 %v678_v12, %v648_v42  ;;  %v713_v51 = vadd.f32 %v678_v12, %v649_v25 }
 0x18f   : > { %v750_v6 = vpack.c.bf16 %v712_v26, %v710_v23  ;;  %v751_v27 = vpack.c.bf16 %v713_v51, %v711_v8 }
 0x191   : > { %1006 = vmatpush.bf16.msra.mxu0 %v750_v6  ;;  %4963 = vmatpush.bf16.msra.mxu2 %v750_v6  ;;  %v835_v48 = vpop.permute.xlu0 %834  ;;  %v815_v12 = vpop.permute.xlu2 %814 }
 0x192   : > { %1075 = vmatpush.bf16.msra.mxu1 %v751_v27  ;;  %4967 = vmatpush.bf16.msra.mxu3 %v751_v27 }
 0x194   : > { %4601 = vmatmul.msk.bf16.vlgmr.msra.gmra.mxu0 %vm962_vm9, %v4911_v49 }
 0x195   : > { %4613 = vmatmul.msk.bf16.vlgmr.msra.gmra.mxu1 %vm962_vm9, %v4911_v49 }
 0x199   : > { %v810_v56 = vpop.permute.xlu0 %809 }
 0x1a1   : > { %v820_v27 = vpop.permute.xlu0 %819 }
 0x1a4   : > { %4602 = vmatmul.msk.bf16.gmra.mxu0 %vm962_vm9, %v4912_v43 }
 0x1a5   : > { %4614 = vmatmul.msk.bf16.gmra.mxu1 %vm962_vm9, %v4912_v43 }
 0x1b4   : > { %4603 = vmatmul.msk.bf16.gmra.mxu0 %vm962_vm9, %v4913_v5 }
 0x1b5   : > { %4615 = vmatmul.msk.bf16.gmra.mxu1 %vm962_vm9, %v4913_v5 }
 0x1c4   : > { %4604 = vmatmul.msk.bf16.gmra.mxu0 %vm962_vm9, %v4914_v58 }
 0x1c5   : > { %4616 = vmatmul.msk.bf16.gmra.mxu1 %vm962_vm9, %v4914_v58 }
 0x1d4   : > { %4605 = vmatmul.msk.bf16.gmra.mxu0 %vm962_vm9, %v4915_v22 }
 0x1d5   : > { %4617 = vmatmul.msk.bf16.gmra.mxu1 %vm962_vm9, %v4915_v22 }
 0x1e4   : > { %4606 = vmatmul.msk.bf16.gmra.mxu0 %vm962_vm9, %v4916_v59 }
 0x1e5   : > { %4618 = vmatmul.msk.bf16.gmra.mxu1 %vm962_vm9, %v4916_v59 }
 0x1f4   : > { %4607 = vmatmul.msk.bf16.gmra.mxu0 %vm962_vm9, %v4917_v19 }
 0x1f5   : > { %4619 = vmatmul.msk.bf16.gmra.mxu1 %vm962_vm9, %v4917_v19 }
 0x204   : > { %4608 = vmatmul.msk.bf16.gmra.mxu0 %vm962_vm9, %v4918_v10 }
 0x205   : > { %4620 = vmatmul.msk.bf16.gmra.mxu1 %vm962_vm9, %v4918_v10 }
 0x211   : > { %v1008_v63 = vpop.f32.mrf.mxu0 }
 0x212   : > { %v1009_v32 = vadd.f32 %v1008_v63, %v785_v20  ;;  %v1077_v34 = vpop.f32.mrf.mxu1 }
 0x213   : > { %v1078_v39 = vadd.f32 %v1077_v34, %v785_v20 }
 0x215   : > { %v1137_v52 = vpack.c.bf16 %v1078_v39, %v1009_v32 }
 0x217   : > { %1161 = vst [vmem:[#allocation2] sm:$0xff] %v1137_v52 }
 0x219   : > { %v1010_v4 = vpop.f32.mrf.mxu0 }
 0x21a   : > { %v1011_v40 = vadd.f32 %v1010_v4, %v790_v28  ;;  %v1079_v61 = vpop.f32.mrf.mxu1 }
 0x21b   : > { %v1080_v33 = vadd.f32 %v1079_v61, %v790_v28 }
 0x21d   : > { %v1138_v30 = vpack.c.bf16 %v1080_v33, %v1011_v40 }
 0x21e   : > { %v4663_v44 = vld [vmem:[#allocation2 + $0x4] sm:$0xf]  ;;  %v4627_v45 = vld [vmem:[#allocation2] sm:$0xf] }
 0x21f   : > { %1162 = vst [vmem:[#allocation2 + $0x8] sm:$0xff] %v1138_v30 }
 0x221   : > { %v1013_v41 = vpop.f32.mrf.mxu0 }
 0x222   : > { %v1014_v2 = vadd.f32 %v1013_v41, %v795_v13  ;;  %v1082_v3 = vpop.f32.mrf.mxu1 }
 0x223   : > { %v1083_v35 = vadd.f32 %v1082_v3, %v795_v13 }
 0x225   : > { %v1139_v36 = vpack.c.bf16 %v1083_v35, %v1014_v2 }
 0x226   : > { %v4928_v14 = vld [vmem:[#allocation2 + $0x8] sm:$0xf0]  ;;  %v4927_v29 = vld [vmem:[#allocation2 + $0x4] sm:$0xf0] }
 0x227   : > { %1163 = vst [vmem:[#allocation2 + $0x10] sm:$0xff] %v1139_v36  ;;  %v4664_v46 = vor.u32 %v4928_v14, %v4663_v44  ;;  %v4628_v37 = vor.u32 %v4927_v29, %v4627_v45  ;;  %v4919_v45 = vld [vmem:[%s8470_s1 + $0x40] sm:$0xff]  ;;  %v4922_v29 = vld [vmem:[%s8470_s1 + $0x58] sm:$0xff] }
 0x228   : > { %4609 = vmatmul.msk.bf16.gmra.mxu0 %vm962_vm9, %v4919_v45  ;;  %4621 = vmatmul.msk.bf16.gmra.mxu1 %vm962_vm9, %v4919_v45 }
 0x229   : > { %1586 = vxpose.xlu1.c.b16.start.end [1/1] (short) %v4664_v46, 128  ;;  %1197 = vxpose.xlu2.c.b16.start.end [1/1] (short) %v4628_v37, 128  ;;  %v1015_v55 = vpop.f32.mrf.mxu0 }
 0x22a   : > { %v1016_v15 = vadd.f32 %v1015_v55, %v800_v31  ;;  %v1084_v62 = vpop.f32.mrf.mxu1  ;;  %4612 = vmatmul.msk.bf16.vlgmr.msra.gmra.mxu2 %vm962_vm9, %v4922_v29  ;;  %4624 = vmatmul.msk.bf16.vlgmr.msra.gmra.mxu3 %vm962_vm9, %v4922_v29 }
 0x22b   : > { %v1085_v9 = vadd.f32 %v1084_v62, %v800_v31 }
 0x22d   : > { %v1140_v47 = vpack.c.bf16 %v1085_v9, %v1016_v15 }
 0x22e   : > { %v4683_v18 = vld [vmem:[#allocation2 + $0x10] sm:$0xf]  ;;  %v4719_v54 = vld [vmem:[#allocation2 + $0x14] sm:$0xf] }
 0x22f   : > { %1164 = vst [vmem:[#allocation2 + $0x18] sm:$0xff] %v1140_v47 }
 0x231   : > { %v6140_v17 = vpop.f32.mrf.mxu0 }
 0x232   : > { %v6142_v50 = vpop.f32.mrf.mxu1 }
 0x236   : > { %v4933_v53 = vld [vmem:[#allocation2 + $0x14] sm:$0xf0]  ;;  %v4934_v0 = vld [vmem:[#allocation2 + $0x18] sm:$0xf0] }
 0x237   : > { %v4684_v11 = vor.u32 %v4933_v53, %v4683_v18  ;;  %v4720_v7 = vor.u32 %v4934_v0, %v4719_v54 }
 0x239   : > { %5015 = vxpose.binary.xlu0.c.b16.start.end [1/2] (short) %v4720_v7, %v4684_v11, 128  ;;  %v1020_v24 = vpop.f32.mrf.mxu0  ;;  %v4920_v11 = vld [vmem:[%s8470_s1 + $0x48] sm:$0xff] }
 0x23a   : > { %v1021_v57 = vadd.f32 %v1020_v24, %v810_v56  ;;  %v1089_v42 = vpop.f32.mrf.mxu1  ;;  %4610 = vmatmul.msk.bf16.gmra.mxu0 %vm962_vm9, %v4920_v11  ;;  %4622 = vmatmul.msk.bf16.gmra.mxu1 %vm962_vm9, %v4920_v11 }
 0x23b   : > { %v1090_v25 = vadd.f32 %v1089_v42, %v810_v56  ;;  %v860_v56 = vpop.permute.xlu2 %859 }
 0x23d   : > { %v1142_v21 = vpack.c.bf16 %v1090_v25, %v1021_v57 }
 0x23f   : > { %1166 = vst [vmem:[#allocation2 + $0x28] sm:$0xff] %v1142_v21 }
 0x241   : > { %v1023_v26 = vpop.f32.mrf.mxu0 }
 0x242   : > { %v1024_v51 = vadd.f32 %v1023_v26, %v815_v12  ;;  %v1092_v23 = vpop.f32.mrf.mxu1 }
 0x243   : > { %v1093_v8 = vadd.f32 %v1092_v23, %v815_v12  ;;  %v4921_v12 = vld [vmem:[%s8470_s1 + $0x50] sm:$0xff] }
 0x245   : > { %v1143_v6 = vpack.c.bf16 %v1093_v8, %v1024_v51 }
 0x247   : > { %1167 = vst [vmem:[#allocation2 + $0x30] sm:$0xff] %v1143_v6 }
 0x249   : > { %v1025_v49 = vpop.f32.mrf.mxu0 }
 0x24a   : > { %v1026_v43 = vadd.f32 %v1025_v49, %v820_v27  ;;  %v1094_v5 = vpop.f32.mrf.mxu1  ;;  %4611 = vmatmul.msk.bf16.gmra.mxu0 %vm962_vm9, %v4921_v12  ;;  %4623 = vmatmul.msk.bf16.gmra.mxu1 %vm962_vm9, %v4921_v12 }
 0x24b   : > { %v1095_v58 = vadd.f32 %v1094_v5, %v820_v27  ;;  %v762_v27 = vld [vmem:[%s8471_s2 + $0x20] sm:$0xff] }
 0x24d   : > { %v1144_v22 = vpack.c.bf16 %v1095_v58, %v1026_v43  ;;  %v771_v43 = vld [vmem:[%s8471_s2 + $0x68] sm:$0xff] }
 0x24f   : > { %1168 = vst [vmem:[#allocation2 + $0x38] sm:$0xff] %v1144_v22 }
 0x251   : > { %v1028_v59 = vpop.f32.mrf.mxu0 }
 0x252   : > { %v1029_v19 = vadd.f32 %v1028_v59, %v6134_v1  ;;  %v1097_v10 = vpop.f32.mrf.mxu1 }
 0x253   : > { %v1098_v20 = vadd.f32 %v1097_v10, %v6134_v1 }
 0x255   : > { %v1145_v63 = vpack.c.bf16 %v1098_v20, %v1029_v19 }
 0x257   : > { %1169 = vst [vmem:[#allocation2 + $0x40] sm:$0xff] %v1145_v63 }
 0x259   : > { %v1030_v32 = vpop.f32.mrf.mxu0 }
 0x25a   : > { %v1031_v34 = vadd.f32 %v1030_v32, %v6136_v60  ;;  %v1099_v39 = vpop.f32.mrf.mxu1 }
 0x25b   : > { %v1100_v52 = vadd.f32 %v1099_v39, %v6136_v60 }
 0x25d   : > { %v1146_v28 = vpack.c.bf16 %v1100_v52, %v1031_v34 }
 0x25e   : > { %v4631_v13 = vld [vmem:[#allocation2 + $0x40] sm:$0xf]  ;;  %v4923_v2 = vld [vmem:[#allocation2 + $0x44] sm:$0xf] }
 0x25f   : > { %1170 = vst [vmem:[#allocation2 + $0x48] sm:$0xff] %v1146_v28 }
 0x261   : > { %v1033_v4 = vpop.f32.mrf.mxu0 }
 0x262   : > { %v1034_v40 = vadd.f32 %v1033_v4, %v835_v48  ;;  %v1102_v61 = vpop.f32.mrf.mxu1 }
 0x263   : > { %v1103_v33 = vadd.f32 %v1102_v61, %v835_v48 }
 0x265   : > { %v1147_v30 = vpack.c.bf16 %v1103_v33, %v1034_v40 }
 0x266   : > { %v4924_v41 = vld [vmem:[#allocation2 + $0x44] sm:$0xf0]  ;;  %v4633_v3 = vld [vmem:[#allocation2 + $0x48] sm:$0xf0] }
 0x267   : > { %1171 = vst [vmem:[#allocation2 + $0x50] sm:$0xff] %v1147_v30  ;;  %v4632_v1 = vor.u32 %v4924_v41, %v4631_v13  ;;  %v4636_v31 = vor.u32 %v4923_v2, %v4633_v3 }
 0x269   : > { %1255 = vmatpush.bf16.msrb.mxu2 %v4632_v1  ;;  %1304 = vmatpush.bf16.msrb.mxu3 %v4636_v31  ;;  %v1035_v35 = vpop.f32.mrf.mxu0 }
 0x26a   : > { %1633 = vmatpush.bf16.msrb.mxu0 %v4632_v1  ;;  %1682 = vmatpush.bf16.msrb.mxu1 %v4636_v31  ;;  %v1036_v60 = vadd.f32 %v1035_v35, %v6138_v16  ;;  %v1104_v36 = vpop.f32.mrf.mxu1 }
 0x26b   : > { %v1105_v44 = vadd.f32 %v1104_v36, %v6138_v16 }
 0x26d   : > { %v1148_v14 = vpack.c.bf16 %v1105_v44, %v1036_v60 }
 0x26e   : > { %v4687_v9 = vld [vmem:[#allocation2 + $0x50] sm:$0xf]  ;;  %v4929_v47 = vld [vmem:[#allocation2 + $0x54] sm:$0xf] }
 0x26f   : > { %1172 = vst [vmem:[#allocation2 + $0x58] sm:$0xff] %v1148_v14 }
 0x271   : > { %v1038_v46 = vpop.f32.mrf.mxu0 }
 0x272   : > { %v1039_v37 = vadd.f32 %v1038_v46, %v6144_v38  ;;  %v1107_v55 = vpop.f32.mrf.mxu1 }
 0x273   : > { %v1108_v15 = vadd.f32 %v1107_v55, %v6144_v38 }
 0x275   : > { %v1149_v62 = vpack.c.bf16 %v1108_v15, %v1039_v37 }
 0x276   : > { %v4930_v16 = vld [vmem:[#allocation2 + $0x54] sm:$0xf0]  ;;  %v4689_v48 = vld [vmem:[#allocation2 + $0x58] sm:$0xf0] }
 0x277   : > { %1173 = vst [vmem:[#allocation2 + $0x60] sm:$0xff] %v1149_v62  ;;  %v4688_v18 = vor.u32 %v4930_v16, %v4687_v9  ;;  %v4692_v53 = vor.u32 %v4929_v47, %v4689_v48 }
 0x279   : > { %2015 = vmatpush.bf16.msra.mxu0 %v4688_v18  ;;  %2064 = vmatpush.bf16.msra.mxu1 %v4692_v53  ;;  %v6164_v54 = vpop.f32.mrf.mxu0 }
 0x27a   : > { %v6166_v0 = vpop.f32.mrf.mxu1 }
 0x281   : > { %v6171_v7 = vpop.f32.mrf.mxu0 }
 0x282   : > { %v6175_v38 = vpop.f32.mrf.mxu1 }
 0x289   : > { %v1045_v24 = vpop.f32.mrf.mxu0 }
 0x28a   : > { %v1046_v57 = vadd.f32 %v1045_v24, %v860_v56  ;;  %v1114_v42 = vpop.f32.mrf.mxu1 }
 0x28b   : > { %v1115_v25 = vadd.f32 %v1114_v42, %v860_v56 }
 0x28d   : > { %v1152_v21 = vpack.c.bf16 %v1115_v25, %v1046_v57 }
 0x28f   : > { %1176 = vst [vmem:[#allocation2 + $0x78] sm:$0xff] %v1152_v21 }
 0x2a5   : > { %v6208_v19 = vpop.f32.mrf.mxu0  ;;  %v6210_v10 = vpop.f32.mrf.mxu1 }
 0x2ad   : > { %v6214_v63 = vpop.f32.mrf.mxu0  ;;  %v6216_v32 = vpop.f32.mrf.mxu1 }
 0x2ae   : > { %8732 = vst [vmem:[#allocation7_spill] sm:$0xff] %v6214_v63  ;;  %v6233_v13 = vpop.f32.mrf.mxu2  ;;  %v6235_v41 = vpop.f32.mrf.mxu3 }
 0x2af   : > { %8733 = vst [vmem:[#allocation8_spill] sm:$0xff] %v6216_v32 }
 0x2b0   : > { %8738 = vst [vmem:[#allocation13_spill] sm:$0xff] %v6233_v13 }
 0x2b1   : > { %8739 = vst [vmem:[#allocation14_spill] sm:$0xff] %v6235_v41 }
 0x2b6   : > { %v6244_v35 = vpop.f32.mrf.mxu2  ;;  %v6246_v60 = vpop.f32.mrf.mxu3 }
 0x2b7   : > { %v6220_v52 = vpop.f32.mrf.mxu0  ;;  %v6223_v28 = vpop.f32.mrf.mxu1  ;;  %8742 = vst [vmem:[#allocation17_spill] sm:$0xff] %v6244_v35 }
 0x2b8   : > { %8734 = vst [vmem:[#allocation9_spill] sm:$0xff] %v6220_v52 }
 0x2b9   : > { %8735 = vst [vmem:[#allocation10_spill] sm:$0xff] %v6223_v28 }
 0x2ba   : > { %8743 = vst [vmem:[#allocation18_spill] sm:$0xff] %v6246_v60 }
 0x2bf   : > { %v6226_v4 = vpop.f32.mrf.mxu0  ;;  %v6228_v61 = vpop.f32.mrf.mxu1 }
 0x2c0   : > { %8736 = vst [vmem:[#allocation11_spill] sm:$0xff] %v6226_v4 }
 0x2c1   : > { %8737 = vst [vmem:[#allocation12_spill] sm:$0xff] %v6228_v61 }
 0x2c7   : > { %v6238_v2 = vpop.f32.mrf.mxu0  ;;  %v6240_v3 = vpop.f32.mrf.mxu1 }
 0x2c8   : > { %8740 = vst [vmem:[#allocation15_spill] sm:$0xff] %v6238_v2 }
 0x2c9   : > { %8741 = vst [vmem:[#allocation16_spill] sm:$0xff] %v6240_v3 }
 0x2ca   : > { %v1205_v26 = vpop.trf.xlu2 }
 0x2cb   : > { %4637 = vmatmul.msk.bf16.vlgmr.msrb.gmra.mxu2 %vm1223_vm10, %v1205_v26  ;;  %4645 = vmatmul.msk.bf16.vlgmr.msrb.gmra.mxu3 %vm1223_vm10, %v1205_v26 }
 0x2cf   : > { %v6250_v36 = vpop.f32.mrf.mxu0  ;;  %v6252_v44 = vpop.f32.mrf.mxu1 }
 0x2d0   : > { %8744 = vst [vmem:[#allocation19_spill] sm:$0xff] %v6250_v36 }
 0x2d1   : > { %8745 = vst [vmem:[#allocation20_spill] sm:$0xff] %v6252_v44 }
 0x2d5   : > { %v1594_v51 = vpop.trf.xlu1 }
 0x2d6   : > { %4665 = vmatmul.msk.bf16.vlgmr.msrb.gmra.mxu0 %vm1223_vm10, %v1594_v51  ;;  %4673 = vmatmul.msk.bf16.vlgmr.msrb.gmra.mxu1 %vm1223_vm10, %v1594_v51 }
 0x2d7   : > { %2393 = vmatpush.bf16.msrb.mxu0 %v4688_v18  ;;  %2442 = vmatpush.bf16.msrb.mxu1 %v4692_v53 }
 0x2da   : > { %v1206_v23 = vpop.trf.xlu2 }
 0x2db   : > { %4638 = vmatmul.msk.bf16.gmra.mxu2 %vm1223_vm10, %v1206_v23  ;;  %4646 = vmatmul.msk.bf16.gmra.mxu3 %vm1223_vm10, %v1206_v23 }
 0x2e5   : > { %v1595_v8 = vpop.trf.xlu1  ;;  %v5016_v33 = vpop.trf.xlu0 }
 0x2e6   : > { %4666 = vmatmul.msk.bf16.gmra.mxu0 %vm1223_vm10, %v1595_v8  ;;  %4674 = vmatmul.msk.bf16.gmra.mxu1 %vm1223_vm10, %v1595_v8 }
 0x2ea   : > { %v1207_v6 = vpop.trf.xlu2 }
 0x2eb   : > { %4639 = vmatmul.msk.bf16.gmra.mxu2 %vm1223_vm10, %v1207_v6  ;;  %4647 = vmatmul.msk.bf16.gmra.mxu3 %vm1223_vm10, %v1207_v6 }
 0x2ed   : > { %v6242_v1 = vpop.trf.xlu0 }
 0x2f3   : > { %804 = vperm.xlu1 %5012, %v762_v27  }
 0x2f5   : > { %v1596_v49 = vpop.trf.xlu1  ;;  %v5018_v14 = vpop.trf.xlu0 }
 0x2f6   : > { %4667 = vmatmul.msk.bf16.gmra.mxu0 %vm1223_vm10, %v1596_v49  ;;  %4675 = vmatmul.msk.bf16.gmra.mxu1 %vm1223_vm10, %v1596_v49 }
 0x2fa   : > { %v1208_v5 = vpop.trf.xlu2 }
 0x2fb   : > { %849 = vperm.xlu1 %5012, %v771_v43   ;;  %4640 = vmatmul.msk.bf16.gmra.mxu2 %vm1223_vm10, %v1208_v5 }
 0x2fc   : > { %4648 = vmatmul.msk.bf16.gmra.mxu3 %vm1223_vm10, %v1208_v5 }
 0x2fd   : > { %v6258_v46 = vpop.trf.xlu0 }
 0x305   : > { %v1597_v58 = vpop.trf.xlu1  ;;  %v5020_v47 = vpop.trf.xlu0 }
 0x306   : > { %4668 = vmatmul.msk.bf16.gmra.mxu0 %vm1223_vm10, %v1597_v58  ;;  %4676 = vmatmul.msk.bf16.gmra.mxu1 %vm1223_vm10, %v1597_v58  ;;  %v4939_v58 = vld [vmem:[#allocation2 + $0x24] sm:$0xf0] }
 0x30a   : > { %v1209_v22 = vpop.trf.xlu2 }
 0x30b   : > { %4641 = vmatmul.msk.bf16.gmra.mxu2 %vm1223_vm10, %v1209_v22 }
 0x30c   : > { %4649 = vmatmul.msk.bf16.gmra.mxu3 %vm1223_vm10, %v1209_v22 }
 0x30d   : > { %v6294_v51 = vpop.trf.xlu0 }
 0x315   : > { %v1598_v59 = vpop.trf.xlu1 }
 0x316   : > { %4669 = vmatmul.msk.bf16.gmra.mxu0 %vm1223_vm10, %v1598_v59  ;;  %4677 = vmatmul.msk.bf16.gmra.mxu1 %vm1223_vm10, %v1598_v59 }
 0x31a   : > { %v1210_v20 = vpop.trf.xlu2 }
 0x31b   : > { %4642 = vmatmul.msk.bf16.gmra.mxu2 %vm1223_vm10, %v1210_v20 }
 0x31c   : > { %4650 = vmatmul.msk.bf16.gmra.mxu3 %vm1223_vm10, %v1210_v20  ;;  %v4940_v20 = vld [vmem:[#allocation2 + $0x28] sm:$0xf0] }
 0x325   : > { %v1599_v34 = vpop.trf.xlu1 }
 0x326   : > { %4670 = vmatmul.msk.bf16.gmra.mxu0 %vm1223_vm10, %v1599_v34  ;;  %4678 = vmatmul.msk.bf16.gmra.mxu1 %vm1223_vm10, %v1599_v34 }
 0x32a   : > { %v1211_v39 = vpop.trf.xlu2 }
 0x32b   : > { %4643 = vmatmul.msk.bf16.gmra.mxu2 %vm1223_vm10, %v1211_v39 }
 0x32c   : > { %4651 = vmatmul.msk.bf16.gmra.mxu3 %vm1223_vm10, %v1211_v39 }
 0x335   : > { %v1600_v40 = vpop.trf.xlu1 }
 0x336   : > { %4671 = vmatmul.msk.bf16.gmra.mxu0 %vm1223_vm10, %v1600_v40  ;;  %4679 = vmatmul.msk.bf16.gmra.mxu1 %vm1223_vm10, %v1600_v40  ;;  %v5022_v40 = vpop.trf.xlu0 }
 0x33a   : > { %v1212_v30 = vpop.trf.xlu2 }
 0x33b   : > { %4644 = vmatmul.msk.bf16.gmra.mxu2 %vm1223_vm10, %v1212_v30 }
 0x33c   : > { %4652 = vmatmul.msk.bf16.gmra.mxu3 %vm1223_vm10, %v1212_v30 }
 0x345   : > { %v1601_v31 = vpop.trf.xlu1 }
 0x346   : > { %4672 = vmatmul.msk.bf16.gmra.mxu0 %vm1223_vm10, %v1601_v31  ;;  %4680 = vmatmul.msk.bf16.gmra.mxu1 %vm1223_vm10, %v1601_v31 }
 0x34e   : > { %v6254_v45 = vpop.f32.mrf.mxu2  ;;  %v6256_v29 = vpop.f32.mrf.mxu3 }
 0x353   : > { %v6260_v37 = vpop.f32.mrf.mxu0  ;;  %v6262_v55 = vpop.f32.mrf.mxu1 }
 0x354   : > { %8746 = vst [vmem:[#allocation21_spill] sm:$0xff] %v6260_v37 }
 0x355   : > { %8747 = vst [vmem:[#allocation22_spill] sm:$0xff] %v6262_v55 }
 0x356   : > { %v6264_v15 = vpop.f32.mrf.mxu2  ;;  %v6266_v62 = vpop.f32.mrf.mxu3  ;;  %4693 = vmatmul.msk.bf16.vlgmr.msra.gmra.mxu0 %vm1223_vm10, %v5016_v33  ;;  %4701 = vmatmul.msk.bf16.vlgmr.msra.gmra.mxu1 %vm1223_vm10, %v5016_v33 }
 0x35b   : > { %v6270_v9 = vpop.f32.mrf.mxu0  ;;  %v6272_v16 = vpop.f32.mrf.mxu1 }
 0x35e   : > { %v6274_v48 = vpop.f32.mrf.mxu2  ;;  %v6276_v18 = vpop.f32.mrf.mxu3 }
 0x35f   : > { %8748 = vst [vmem:[#allocation23_spill] sm:$0xff] %v6274_v48  ;;  %v1352_v53 = vmax.f32 %v6274_v48, %v6276_v18 }
 0x360   : > { %8749 = vst [vmem:[#allocation24_spill] sm:$0xff] %v6276_v18 }
 0x361   : > { %1353 = vmax.xlane.f32.xlu2 %v1352_v53 }
 0x363   : > { %v6280_v11 = vpop.f32.mrf.mxu0  ;;  %v6282_v56 = vpop.f32.mrf.mxu1 }
 0x364   : > { %8750 = vst [vmem:[#allocation25_spill] sm:$0xff] %v6282_v56 }
 0x365   : > { %v805_v24 = vpop.permute.xlu1 %804 }
 0x366   : > { %v1019_v57 = vadd.f32 %v6140_v17, %v805_v24  ;;  %v1088_v42 = vadd.f32 %v6142_v50, %v805_v24  ;;  %v6286_v25 = vpop.f32.mrf.mxu2  ;;  %v6288_v21 = vpop.f32.mrf.mxu3  ;;  %4694 = vmatmul.msk.bf16.gmra.mxu0 %vm1223_vm10, %v5018_v14  ;;  %4702 = vmatmul.msk.bf16.gmra.mxu1 %vm1223_vm10, %v5018_v14  ;;  %v4743_v14 = vld [vmem:[#allocation2 + $0x60] sm:$0xf]  ;;  %v4935_v24 = vld [vmem:[#allocation2 + $0x64] sm:$0xf] }
 0x367   : > { %8751 = vst [vmem:[#allocation26_spill] sm:$0xff] %v6286_v25  ;;  %v1355_v12 = vmax.f32 %v6286_v25, %v6288_v21 }
 0x368   : > { %8752 = vst [vmem:[#allocation27_spill] sm:$0xff] %v6288_v21  ;;  %v1141_v26 = vpack.c.bf16 %v1088_v42, %v1019_v57 }
 0x369   : > { %1356 = vmax.xlane.f32.xlu0 %v1355_v12 }
 0x36a   : > { %1165 = vst [vmem:[#allocation2 + $0x20] sm:$0xff] %v1141_v26 }
 0x36b   : > { %v6296_v23 = vpop.f32.mrf.mxu0  ;;  %v6298_v17 = vpop.f32.mrf.mxu1 }
 0x36d   : > { %v850_v50 = vpop.permute.xlu1 %849 }
 0x36e   : > { %v1041_v8 = vadd.f32 %v6164_v54, %v850_v50  ;;  %v1110_v6 = vadd.f32 %v6166_v0, %v850_v50  ;;  %v6302_v27 = vpop.f32.mrf.mxu2  ;;  %v6304_v49 = vpop.f32.mrf.mxu3 }
 0x36f   : > { %8753 = vst [vmem:[#allocation28_spill] sm:$0xff] %v6302_v27  ;;  %v1358_v43 = vmax.f32 %v6302_v27, %v6304_v49 }
 0x370   : > { %8754 = vst [vmem:[#allocation29_spill] sm:$0xff] %v6304_v49  ;;  %v1150_v5 = vpack.c.bf16 %v1110_v6, %v1041_v8 }
 0x371   : > { %1359 = vmax.xlane.f32.xlu2 %v1358_v43  ;;  %v4739_v22 = vld [vmem:[#allocation2 + $0x20] sm:$0xf]  ;;  %v4775_v59 = vld [vmem:[#allocation2 + $0x24] sm:$0xf] }
 0x372   : > { %1174 = vst [vmem:[#allocation2 + $0x68] sm:$0xff] %v1150_v5  ;;  %v4740_v34 = vor.u32 %v4939_v58, %v4739_v22  ;;  %v4776_v39 = vor.u32 %v4940_v20, %v4775_v59 }
 0x373   : > { %v6308_v54 = vpop.f32.mrf.mxu0  ;;  %v6310_v0 = vpop.f32.mrf.mxu1 }
 0x374   : > { %5032 = vxpose.binary.xlu1.c.b16.start.end [1/2] (short) %v4776_v39, %v4740_v34, 128 }
 0x376   : > { %v6312_v33 = vpop.f32.mrf.mxu2  ;;  %v6314_v30 = vpop.f32.mrf.mxu3  ;;  %4695 = vmatmul.msk.bf16.gmra.mxu0 %vm1223_vm10, %v5020_v47  ;;  %4703 = vmatmul.msk.bf16.gmra.mxu1 %vm1223_vm10, %v5020_v47 }
 0x377   : > { %8755 = vst [vmem:[#allocation30_spill] sm:$0xff] %v6312_v33  ;;  %v1361_v31 = vmax.f32 %v6312_v33, %v6314_v30  ;;  %v6330_v47 = vpop.trf.xlu0 }
 0x378   : > { %8756 = vst [vmem:[#allocation31_spill] sm:$0xff] %v6314_v30 }
 0x379   : > { %1362 = vmax.xlane.f32.xlu0 %v1361_v31  ;;  %v4936_v53 = vld [vmem:[#allocation2 + $0x64] sm:$0xf0]  ;;  %v4745_v57 = vld [vmem:[#allocation2 + $0x68] sm:$0xf0] }
 0x37a   : > { %v6320_v42 = vor.u32 %v4936_v53, %v4743_v14  ;;  %v6322_v12 = vor.u32 %v4935_v24, %v4745_v57 }
 0x37b   : > { %v6324_v26 = vpop.f32.mrf.mxu0  ;;  %v6326_v50 = vpop.f32.mrf.mxu1 }
 0x37c   : > { %2775 = vmatpush.bf16.msra.mxu0 %v6320_v42  ;;  %2824 = vmatpush.bf16.msra.mxu1 %v6322_v12 }
 0x37e   : > { %v6332_v8 = vpop.f32.mrf.mxu2 }
 0x37f   : > { %8757 = vst [vmem:[#allocation32_spill] sm:$0xff] %v6332_v8  ;;  %v6334_v6 = vpop.f32.mrf.mxu3  ;;  %v5024_v59 = vpop.trf.xlu0 }
 0x380   : > { %8758 = vst [vmem:[#allocation33_spill] sm:$0xff] %v6334_v6  ;;  %v1364_v43 = vmax.f32 %v6332_v8, %v6334_v6 }
 0x382   : > { %1365 = vmax.xlane.f32.xlu2 %v1364_v43 }
 0x383   : > { %v6338_v5 = vpop.f32.mrf.mxu0  ;;  %v6340_v58 = vpop.f32.mrf.mxu1 }
 0x386   : > { %v6342_v22 = vpop.f32.mrf.mxu2  ;;  %4696 = vmatmul.msk.bf16.gmra.mxu0 %vm1223_vm10, %v5022_v40  ;;  %4704 = vmatmul.msk.bf16.gmra.mxu1 %vm1223_vm10, %v5022_v40 }
 0x387   : > { %8759 = vst [vmem:[#allocation34_spill] sm:$0xff] %v6342_v22  ;;  %v6346_v20 = vpop.f32.mrf.mxu3  ;;  %v6360_v57 = vpop.trf.xlu0 }
 0x388   : > { %8760 = vst [vmem:[#allocation35_spill] sm:$0xff] %v6346_v20  ;;  %v1367_v34 = vmax.f32 %v6342_v22, %v6346_v20 }
 0x38a   : > { %1368 = vmax.xlane.f32.xlu0 %v1367_v34 }
 0x38b   : > { %v6350_v39 = vpop.f32.mrf.mxu0  ;;  %v6352_v31 = vpop.f32.mrf.mxu1 }
 0x38e   : > { %v6354_v14 = vpop.f32.mrf.mxu2 }
 0x38f   : > { %v6356_v53 = vpop.f32.mrf.mxu3  ;;  %v5026_v60 = vpop.trf.xlu0 }
 0x390   : > { %v1370_v24 = vmax.f32 %v6354_v14, %v6356_v53 }
 0x392   : > { %1371 = vmax.xlane.f32.xlu0 %v1370_v24 }
 0x393   : > { %v6362_v40 = vpop.f32.mrf.mxu0  ;;  %v6364_v43 = vpop.f32.mrf.mxu1 }
 0x394   : > { %8761 = vst [vmem:[#allocation36_spill] sm:$0xff] %v6362_v40 }
 0x395   : > { %8762 = vst [vmem:[#allocation37_spill] sm:$0xff] %v6364_v43 }
 0x396   : > { %v6366_v41 = vpop.f32.mrf.mxu2  ;;  %4697 = vmatmul.msk.bf16.gmra.mxu0 %vm1223_vm10, %v5024_v59  ;;  %4705 = vmatmul.msk.bf16.gmra.mxu1 %vm1223_vm10, %v5024_v59 }
 0x397   : > { %v6370_v34 = vpop.f32.mrf.mxu3  ;;  %v6388_v44 = vpop.trf.xlu0 }
 0x398   : > { %v1373_v13 = vmax.f32 %v6366_v41, %v6370_v34 }
 0x39a   : > { %1374 = vmax.xlane.f32.xlu0 %v1373_v13 }
 0x39b   : > { %v6374_v35 = vpop.f32.mrf.mxu0  ;;  %v6376_v24 = vpop.f32.mrf.mxu1 }
 0x39c   : > { %8763 = vst [vmem:[#allocation38_spill] sm:$0xff] %v6374_v35 }
 0x39d   : > { %8764 = vst [vmem:[#allocation39_spill] sm:$0xff] %v6376_v24 }
 0x39e   : > { %v6378_v3 = vpop.f32.mrf.mxu2 }
 0x39f   : > { %8765 = vst [vmem:[#allocation40_spill] sm:$0xff] %v6378_v3  ;;  %v6380_v2 = vpop.f32.mrf.mxu3  ;;  %v5028_v18 = vpop.trf.xlu0 }
 0x3a0   : > { %8766 = vst [vmem:[#allocation41_spill] sm:$0xff] %v6380_v2  ;;  %v1376_v61 = vmax.f32 %v6378_v3, %v6380_v2 }
 0x3a2   : > { %1377 = vmax.xlane.f32.xlu0 %v1376_v61  ;;  %v1346_v61 = vmax.f32 %v6254_v45, %v6256_v29 }
 0x3a3   : > { %v6384_v59 = vpop.f32.mrf.mxu0  ;;  %v6386_v4 = vpop.f32.mrf.mxu1 }
 0x3a4   : > { %8767 = vst [vmem:[#allocation42_spill] sm:$0xff] %v6384_v59 }
 0x3a5   : > { %8768 = vst [vmem:[#allocation43_spill] sm:$0xff] %v6386_v4 }
 0x3a6   : > { %v6390_v13 = vpop.f32.mrf.mxu2  ;;  %4698 = vmatmul.msk.bf16.gmra.mxu0 %vm1223_vm10, %v5026_v60  ;;  %4706 = vmatmul.msk.bf16.gmra.mxu1 %vm1223_vm10, %v5026_v60  ;;  %v1349_v60 = vmax.f32 %v6264_v15, %v6266_v62 }
 0x3a7   : > { %8769 = vst [vmem:[#allocation44_spill] sm:$0xff] %v6390_v13  ;;  %v6394_v36 = vpop.f32.mrf.mxu3  ;;  %v6422_v27 = vpop.trf.xlu0 }
 0x3a8   : > { %8770 = vst [vmem:[#allocation45_spill] sm:$0xff] %v6394_v36  ;;  %v1379_v28 = vmax.f32 %v6390_v13, %v6394_v36 }
 0x3aa   : > { %1380 = vmax.xlane.f32.xlu2 %v1379_v28  ;;  %1347 = vmax.xlane.f32.xlu0 %v1346_v61 }
 0x3ab   : > { %v6400_v52 = vpop.f32.mrf.mxu0  ;;  %v6402_v32 = vpop.f32.mrf.mxu1 }
 0x3ac   : > { %8771 = vst [vmem:[#allocation46_spill] sm:$0xff] %v6400_v52 }
 0x3ad   : > { %8772 = vst [vmem:[#allocation47_spill] sm:$0xff] %v6402_v32 }
 0x3ae   : > { %v6404_v63 = vpop.f32.mrf.mxu2 }
 0x3af   : > { %v6406_v21 = vpop.f32.mrf.mxu3 }
 0x3b2   : > { %1350 = vmax.xlane.f32.xlu0 %v1349_v60 }
 0x3b3   : > { %v6410_v48 = vpop.f32.mrf.mxu0  ;;  %v6412_v25 = vpop.f32.mrf.mxu1 }
 0x3b4   : > { %8773 = vst [vmem:[#allocation48_spill] sm:$0xff] %v6410_v48 }
 0x3b5   : > { %8774 = vst [vmem:[#allocation49_spill] sm:$0xff] %v6412_v25 }
 0x3b6   : > { %v6414_v49 = vpop.f32.mrf.mxu2  ;;  %4699 = vmatmul.msk.bf16.gmra.mxu0 %vm1223_vm10, %v5028_v18  ;;  %4707 = vmatmul.msk.bf16.gmra.mxu1 %vm1223_vm10, %v5028_v18  ;;  %v5030_v18 = vpop.trf.xlu0 }
 0x3b7   : > { %8775 = vst [vmem:[#allocation50_spill] sm:$0xff] %v6414_v49  ;;  %v6418_v28 = vpop.f32.mrf.mxu3 }
 0x3b8   : > { %8776 = vst [vmem:[#allocation51_spill] sm:$0xff] %v6418_v28  ;;  %v1385_v61 = vmax.f32 %v6414_v49, %v6418_v28 }
 0x3ba   : > { %1386 = vmax.xlane.f32.xlu2 %v1385_v61  ;;  %v772_v61 = vld [vmem:[%s8471_s2 + $0x70] sm:$0xff] }
 0x3bb   : > { %v6424_v30 = vpop.f32.mrf.mxu0  ;;  %v6426_v60 = vpop.f32.mrf.mxu1 }
 0x3bc   : > { %8777 = vst [vmem:[#allocation52_spill] sm:$0xff] %v6424_v30 }
 0x3bd   : > { %8778 = vst [vmem:[#allocation53_spill] sm:$0xff] %v6426_v60 }
 0x3be   : > { %v6428_v33 = vpop.f32.mrf.mxu2  ;;  %v6464_v28 = vpop.trf.xlu0 }
 0x3bf   : > { %8779 = vst [vmem:[#allocation54_spill] sm:$0xff] %v6428_v33  ;;  %v6430_v6 = vpop.f32.mrf.mxu3 }
 0x3c0   : > { %8780 = vst [vmem:[#allocation55_spill] sm:$0xff] %v6430_v6  ;;  %v1388_v8 = vmax.f32 %v6428_v33, %v6430_v6 }
 0x3c2   : > { %1389 = vmax.xlane.f32.xlu2 %v1388_v8  ;;  %v774_v8 = vld [vmem:[%s8471_s2 + $0x80] sm:$0xff] }
 0x3c3   : > { %v6434_v20 = vpop.f32.mrf.mxu0  ;;  %v6436_v22 = vpop.f32.mrf.mxu1 }
 0x3c4   : > { %8781 = vst [vmem:[#allocation56_spill] sm:$0xff] %v6434_v20 }
 0x3c5   : > { %8782 = vst [vmem:[#allocation57_spill] sm:$0xff] %v6436_v22 }
 0x3c6   : > { %854 = vperm.xlu0 %5014, %v772_v61   ;;  %4700 = vmatmul.msk.bf16.gmra.mxu0 %vm1223_vm10, %v5030_v18 }
 0x3c7   : > { %4708 = vmatmul.msk.bf16.gmra.mxu1 %vm1223_vm10, %v5030_v18 }
 0x3cb   : > { %v6443_v2 = vpop.f32.mrf.mxu0  ;;  %v6445_v3 = vpop.f32.mrf.mxu1 }
 0x3ce   : > { %864 = vperm.xlu0 %5014, %v774_v8  }
 0x3d3   : > { %v6450_v36 = vpop.f32.mrf.mxu0  ;;  %v6452_v13 = vpop.f32.mrf.mxu1 }
 0x3d4   : > { %8783 = vst [vmem:[#allocation58_spill] sm:$0xff] %v6450_v36  ;;  %v4945_v36 = vld [vmem:[#allocation2 + $0x34] sm:$0xf0] }
 0x3d5   : > { %8784 = vst [vmem:[#allocation59_spill] sm:$0xff] %v6452_v13 }
 0x3d6   : > { %4721 = vmatmul.msk.bf16.vlgmr.msrb.gmra.mxu0 %vm1223_vm10, %v6242_v1 }
 0x3d7   : > { %4729 = vmatmul.msk.bf16.vlgmr.msrb.gmra.mxu1 %vm1223_vm10, %v6242_v1  ;;  %3153 = vmatpush.bf16.msrb.mxu0 %v6320_v42  ;;  %v4795_v1 = vld [vmem:[#allocation2 + $0x30] sm:$0xf] }
 0x3d8   : > { %3202 = vmatpush.bf16.msrb.mxu1 %v6322_v12  ;;  %v4796_v42 = vor.u32 %v4945_v36, %v4795_v1 }
 0x3db   : > { %v6460_v18 = vpop.f32.mrf.mxu0  ;;  %v6462_v61 = vpop.f32.mrf.mxu1 }
 0x3dc   : > { %8785 = vst [vmem:[#allocation60_spill] sm:$0xff] %v6460_v18 }
 0x3dd   : > { %8786 = vst [vmem:[#allocation61_spill] sm:$0xff] %v6462_v61  ;;  %v6478_v61 = vpop.xlane.xlu0 %1356 }
 0x3de   : > { %8789 = vst [vmem:[#allocation64_spill] sm:$0xff] %v6478_v61  ;;  %v1760_v61 = vmax.f32 %v6410_v48, %v6412_v25 }
 0x3e3   : > { %v6466_v8 = vpop.f32.mrf.mxu0  ;;  %v6468_v49 = vpop.f32.mrf.mxu1 }
 0x3e6   : > { %4722 = vmatmul.msk.bf16.gmra.mxu0 %vm1223_vm10, %v6258_v46 }
 0x3e7   : > { %4730 = vmatmul.msk.bf16.gmra.mxu1 %vm1223_vm10, %v6258_v46  ;;  %v1766_v46 = vmax.f32 %v6434_v20, %v6436_v22 }
 0x3eb   : > { %3478 = vxpose.xlu2.c.b16.start.end [1/1] (short) %v4796_v42, 128  ;;  %v6474_v12 = vpop.f32.mrf.mxu0  ;;  %v6476_v18 = vpop.f32.mrf.mxu1 }
 0x3ec   : > { %8787 = vst [vmem:[#allocation62_spill] sm:$0xff] %v6474_v12  ;;  %v6484_v33 = vpop.xlane.xlu0 %1362 }
 0x3ed   : > { %8788 = vst [vmem:[#allocation63_spill] sm:$0xff] %v6476_v18 }
 0x3ee   : > { %8790 = vst [vmem:[#allocation65_spill] sm:$0xff] %v6484_v33 }
 0x3f3   : > { %v6480_v13 = vpop.f32.mrf.mxu0  ;;  %v6482_v6 = vpop.f32.mrf.mxu1 }
 0x3f6   : > { %4723 = vmatmul.msk.bf16.gmra.mxu0 %vm1223_vm10, %v6294_v51 }
 0x3f7   : > { %4731 = vmatmul.msk.bf16.gmra.mxu1 %vm1223_vm10, %v6294_v51  ;;  %v1754_v51 = vmax.f32 %v6384_v59, %v6386_v4  ;;  %v1748_v4 = vmax.f32 %v6362_v40, %v6364_v43 }
 0x3f8   : > { %1767 = vmax.xlane.f32.xlu0 %v1766_v46 }
 0x3fb   : > { %v6492_v36 = vpop.f32.mrf.mxu0  ;;  %v6494_v1 = vpop.f32.mrf.mxu1 }
 0x3fc   : > { %8791 = vst [vmem:[#allocation66_spill] sm:$0xff] %v6492_v36 }
 0x3fd   : > { %8792 = vst [vmem:[#allocation67_spill] sm:$0xff] %v6494_v1  ;;  %v6496_v42 = vpop.xlane.xlu0 %1368 }
 0x3fe   : > { %8793 = vst [vmem:[#allocation68_spill] sm:$0xff] %v6496_v42 }
 0x400   : > { %1761 = vmax.xlane.f32.xlu0 %v1760_v61 }
 0x403   : > { %v6500_v33 = vpop.f32.mrf.mxu0  ;;  %v6502_v12 = vpop.f32.mrf.mxu1 }
 0x404   : > { %8794 = vst [vmem:[#allocation69_spill] sm:$0xff] %v6500_v33 }
 0x405   : > { %8795 = vst [vmem:[#allocation70_spill] sm:$0xff] %v6502_v12  ;;  %v1372_v18 = vpop.xlane.xlu0 %1371 }
 0x406   : > { %4724 = vmatmul.msk.bf16.gmra.mxu0 %vm1223_vm10, %v6330_v47  ;;  %v1410_v46 = vsub.f32 %v6354_v14, %v1372_v18  ;;  %v1411_v25 = vsub.f32 %v6356_v53, %v1372_v18 }
 0x407   : > { %4732 = vmatmul.msk.bf16.gmra.mxu1 %vm1223_vm10, %v6330_v47 }
 0x408   : > { %1755 = vmax.xlane.f32.xlu0 %v1754_v51  ;;  %v1458_v42 = vmul.f32 1.442695, %v1410_v46  ;;  %v1460_v22 = vmul.f32 1.442695, %v1411_v25 }
 0x40a   : > { %5067 = vpow2.f32 %v1458_v42 }
 0x40b   : > { %v6512_v61 = vpop.f32.mrf.mxu0  ;;  %v6514_v48 = vpop.f32.mrf.mxu1  ;;  %5069 = vpow2.f32 %v1460_v22 }
 0x40c   : > { %8796 = vst [vmem:[#allocation71_spill] sm:$0xff] %v6512_v61 }
 0x40d   : > { %8797 = vst [vmem:[#allocation72_spill] sm:$0xff] %v6514_v48  ;;  %v1375_v20 = vpop.xlane.xlu0 %1374 }
 0x40e   : > { %v1412_v36 = vsub.f32 %v6366_v41, %v1375_v20  ;;  %v1413_v1 = vsub.f32 %v6370_v34, %v1375_v20  ;;  %v1742_v41 = vmax.f32 %v6338_v5, %v6340_v58 }
 0x410   : > { %v1462_v47 = vmul.f32 1.442695, %v1412_v36  ;;  %v1464_v14 = vmul.f32 1.442695, %v1413_v1  ;;  %1749 = vmax.xlane.f32.xlu0 %v1748_v4  ;;  %v5068_v51 = vpop.eup %5067 }
 0x411   : > { %v5070_v20 = vpop.eup %5069 }
 0x412   : > { %5071 = vpow2.f32 %v1462_v47  ;;  %v1736_v47 = vmax.f32 %v6308_v54, %v6310_v0 }
 0x413   : > { %5073 = vpow2.f32 %v1464_v14  ;;  %v6520_v53 = vpop.f32.mrf.mxu0  ;;  %v6522_v18 = vpop.f32.mrf.mxu1 }
 0x414   : > { %8798 = vst [vmem:[#allocation73_spill] sm:$0xff] %v6520_v53 }
 0x415   : > { %8799 = vst [vmem:[#allocation74_spill] sm:$0xff] %v6522_v18  ;;  %v6524_v25 = vpop.xlane.xlu0 %1377 }
 0x416   : > { %4725 = vmatmul.msk.bf16.gmra.mxu0 %vm1223_vm10, %v6360_v57 }
 0x417   : > { %4733 = vmatmul.msk.bf16.gmra.mxu1 %vm1223_vm10, %v6360_v57 }
 0x418   : > { %v5072_v4 = vpop.eup %5071  ;;  %1743 = vmax.xlane.f32.xlu0 %v1742_v41 }
 0x419   : > { %v5074_v22 = vpop.eup %5073  ;;  %v6532_v34 = vpack.c.bf16 %v5072_v4, %v5068_v51 }
 0x41a   : > { %v6534_v36 = vpack.c.bf16 %v5074_v22, %v5070_v20 }
 0x41b   : > { %v6536_v1 = vpop.f32.mrf.mxu0  ;;  %v6538_v42 = vpop.f32.mrf.mxu1 }
 0x41c   : > { %8800 = vst [vmem:[#allocation75_spill] sm:$0xff] %v6536_v1 }
 0x41d   : > { %8801 = vst [vmem:[#allocation76_spill] sm:$0xff] %v6538_v42  ;;  %v1348_v46 = vpop.xlane.xlu0 %1347 }
 0x41e   : > { %v1394_v14 = vsub.f32 %v6254_v45, %v1348_v46  ;;  %v1395_v57 = vsub.f32 %v6256_v29, %v1348_v46  ;;  %v1730_v45 = vmax.f32 %v6280_v11, %v6282_v56 }
 0x420   : > { %1737 = vmax.xlane.f32.xlu0 %v1736_v47  ;;  %v6543_v43 = vpop.trf.xlu1  ;;  %v1426_v20 = vmul.f32 1.442695, %v1394_v14  ;;  %v1428_v4 = vmul.f32 1.442695, %v1395_v57  ;;  %v1724_v57 = vmax.f32 %v6260_v37, %v6262_v55 }
 0x422   : > { %5075 = vpow2.f32 %v1426_v20 }
 0x423   : > { %v6546_v41 = vpop.f32.mrf.mxu0  ;;  %v6548_v51 = vpop.f32.mrf.mxu1  ;;  %5077 = vpow2.f32 %v1428_v4 }
 0x424   : > { %8802 = vst [vmem:[#allocation77_spill] sm:$0xff] %v6546_v41 }
 0x425   : > { %8803 = vst [vmem:[#allocation78_spill] sm:$0xff] %v6548_v51  ;;  %v1351_v22 = vpop.xlane.xlu0 %1350 }
 0x426   : > { %v1396_v40 = vsub.f32 %v6264_v15, %v1351_v22  ;;  %v1397_v59 = vsub.f32 %v6266_v62, %v1351_v22  ;;  %4726 = vmatmul.msk.bf16.gmra.mxu0 %vm1223_vm10, %v6388_v44 }
 0x427   : > { %4734 = vmatmul.msk.bf16.gmra.mxu1 %vm1223_vm10, %v6388_v44 }
 0x428   : > { %v1430_v29 = vmul.f32 1.442695, %v1396_v40  ;;  %v1432_v46 = vmul.f32 1.442695, %v1397_v59  ;;  %1731 = vmax.xlane.f32.xlu0 %v1730_v45  ;;  %v6558_v47 = vpop.trf.xlu1  ;;  %v5076_v14 = vpop.eup %5075 }
 0x429   : > { %v5078_v22 = vpop.eup %5077 }
 0x42a   : > { %5079 = vpow2.f32 %v1430_v29  ;;  %v1769_v29 = vmax.f32 %v6443_v2, %v6445_v3 }
 0x42b   : > { %5081 = vpow2.f32 %v1432_v46  ;;  %v6560_v15 = vpop.f32.mrf.mxu0  ;;  %v6562_v62 = vpop.f32.mrf.mxu1 }
 0x42c   : > { %8804 = vst [vmem:[#allocation79_spill] sm:$0xff] %v6560_v15 }
 0x42d   : > { %8805 = vst [vmem:[#allocation80_spill] sm:$0xff] %v6562_v62 }
 0x430   : > { %v5080_v56 = vpop.eup %5079  ;;  %1725 = vmax.xlane.f32.xlu0 %v1724_v57  ;;  %v6566_v44 = vpop.trf.xlu1 }
 0x431   : > { %v5082_v40 = vpop.eup %5081  ;;  %v6568_v59 = vpack.c.bf16 %v5080_v56, %v5076_v14 }
 0x432   : > { %v6570_v20 = vpack.c.bf16 %v5082_v40, %v5078_v22  ;;  %v6586_v22 = vpop.f32.mrf.mxu2  ;;  %v6588_v40 = vpop.f32.mrf.mxu3 }
 0x433   : > { %8806 = vst [vmem:[#allocation81_spill] sm:$0xff] %v6568_v59  ;;  %v6572_v4 = vpop.f32.mrf.mxu0  ;;  %v6574_v45 = vpop.f32.mrf.mxu1 }
 0x434   : > { %8807 = vst [vmem:[#allocation82_spill] sm:$0xff] %v6570_v20 }
 0x435   : > { %8808 = vst [vmem:[#allocation83_spill] sm:$0xff] %v6572_v4 }
 0x436   : > { %8809 = vst [vmem:[#allocation84_spill] sm:$0xff] %v6574_v45  ;;  %4727 = vmatmul.msk.bf16.gmra.mxu0 %vm1223_vm10, %v6422_v27 }
 0x437   : > { %4735 = vmatmul.msk.bf16.gmra.mxu1 %vm1223_vm10, %v6422_v27  ;;  %v1391_v27 = vmax.f32 %v6586_v22, %v6588_v40 }
 0x438   : > { %1770 = vmax.xlane.f32.xlu0 %v1769_v29  ;;  %v855_v46 = vpop.permute.xlu0 %854  ;;  %v6582_v57 = vpop.trf.xlu1 }
 0x439   : > { %8810 = vst [vmem:[#allocation85_spill] sm:$0xff] %v6582_v57  ;;  %v1044_v56 = vadd.f32 %v6171_v7, %v855_v46  ;;  %v1113_v14 = vadd.f32 %v6175_v38, %v855_v46  ;;  %v1382_v46 = vmax.f32 %v6404_v63, %v6406_v21 }
 0x43b   : > { %v1151_v20 = vpack.c.bf16 %v1113_v14, %v1044_v56  ;;  %v6590_v59 = vpop.f32.mrf.mxu0  ;;  %v6592_v55 = vpop.f32.mrf.mxu1 }
 0x43c   : > { %8811 = vst [vmem:[#allocation86_spill] sm:$0xff] %v6590_v59 }
 0x43d   : > { %8812 = vst [vmem:[#allocation87_spill] sm:$0xff] %v6592_v55 }
 0x43e   : > { %1175 = vst [vmem:[#allocation2 + $0x70] sm:$0xff] %v1151_v20  ;;  %v2112_v20 = vmax.f32 %v6466_v8, %v6468_v49 }
 0x440   : > { %1392 = vmax.xlane.f32.xlu0 %v1391_v27  ;;  %v865_v29 = vpop.permute.xlu0 %864  ;;  %v6596_v37 = vpop.trf.xlu1 }
 0x441   : > { %v1049_v7 = vadd.f32 %v6208_v19, %v865_v29  ;;  %v1118_v38 = vadd.f32 %v6210_v10, %v865_v29  ;;  %v1763_v10 = vmax.f32 %v6424_v30, %v6426_v60  ;;  %v4942_v60 = vld [vmem:[#allocation2 + $0x74] sm:$0xf0] }
 0x443   : > { %v1153_v56 = vpack.c.bf16 %v1118_v38, %v1049_v7  ;;  %v6602_v14 = vpop.f32.mrf.mxu0  ;;  %v2118_v7 = vmax.f32 %v6480_v13, %v6482_v6  ;;  %v1757_v38 = vmax.f32 %v6400_v52, %v6402_v32 }
 0x444   : > { %8813 = vst [vmem:[#allocation88_spill] sm:$0xff] %v6602_v14  ;;  %v6604_v57 = vpop.f32.mrf.mxu1  ;;  %1383 = vmax.xlane.f32.xlu1 %v1382_v46 }
 0x445   : > { %8814 = vst [vmem:[#allocation89_spill] sm:$0xff] %v6604_v57  ;;  %v4799_v46 = vld [vmem:[#allocation2 + $0x70] sm:$0xf]  ;;  %v2148_v52 = vmax.f32 %v6602_v14, %v6604_v57  ;;  %v6696_v57 = vpop.xlane.xlu2 %1353  ;;  %v8833_v14 = vld [vmem:[#allocation62_spill] sm:$0xff] }
 0x446   : > { %1177 = vst [vmem:[#allocation2 + $0x80] sm:$0xff] %v1153_v56  ;;  %4728 = vmatmul.msk.bf16.gmra.mxu0 %vm1223_vm10, %v6464_v28  ;;  %v6628_v30 = vor.u32 %v4942_v60, %v4799_v46  ;;  %v1751_v60 = vmax.f32 %v6374_v35, %v6376_v24 }
 0x447   : > { %4736 = vmatmul.msk.bf16.gmra.mxu1 %vm1223_vm10, %v6464_v28 }
 0x448   : > { %2113 = vmax.xlane.f32.xlu0 %v2112_v20  ;;  %v6612_v19 = vpop.trf.xlu1  ;;  %v4941_v20 = vld [vmem:[#allocation2 + $0x74] sm:$0xf] }
 0x449   : > { %8815 = vst [vmem:[#allocation90_spill] sm:$0xff] %v6612_v19 }
 0x44b   : > { %v6616_v27 = vpop.f32.mrf.mxu0 }
 0x44c   : > { %8816 = vst [vmem:[#allocation91_spill] sm:$0xff] %v6616_v27  ;;  %v6618_v29 = vpop.f32.mrf.mxu1  ;;  %1764 = vmax.xlane.f32.xlu1 %v1763_v10  ;;  %v4801_v27 = vld [vmem:[#allocation2 + $0x78] sm:$0xf0]  ;;  %v2124_v10 = vmax.f32 %v6500_v33, %v6502_v12 }
 0x44d   : > { %8817 = vst [vmem:[#allocation92_spill] sm:$0xff] %v6618_v29 }
 0x450   : > { %2119 = vmax.xlane.f32.xlu0 %v2118_v7  ;;  %v5039_v28 = vpop.trf.xlu1  ;;  %v6634_v7 = vor.u32 %v4941_v20, %v4801_v27  ;;  %v2130_v27 = vmax.f32 %v6520_v53, %v6522_v18 }
 0x453   : > { %v6624_v56 = vpop.f32.mrf.mxu0 }
 0x454   : > { %8818 = vst [vmem:[#allocation93_spill] sm:$0xff] %v6624_v56  ;;  %v6626_v19 = vpop.f32.mrf.mxu1  ;;  %1758 = vmax.xlane.f32.xlu1 %v1757_v38 }
 0x455   : > { %8819 = vst [vmem:[#allocation94_spill] sm:$0xff] %v6626_v19 }
 0x456   : > { %4749 = vmatmul.msk.bf16.vlgmr.msra.gmra.mxu0 %vm1223_vm10, %v6543_v43 }
 0x457   : > { %4757 = vmatmul.msk.bf16.vlgmr.msra.gmra.mxu1 %vm1223_vm10, %v6543_v43  ;;  %3535 = vmatpush.bf16.msra.mxu0 %v6628_v30  ;;  %v1745_v43 = vmax.f32 %v6350_v39, %v6352_v31 }
 0x458   : > { %3584 = vmatpush.bf16.msra.mxu1 %v6634_v7  ;;  %2125 = vmax.xlane.f32.xlu0 %v2124_v10  ;;  %v6646_v32 = vpop.trf.xlu1  ;;  %v2136_v10 = vmax.f32 %v6546_v41, %v6548_v51  ;;  %v2142_v51 = vmax.f32 %v6572_v4, %v6574_v45 }
 0x459   : > { %8820 = vst [vmem:[#allocation95_spill] sm:$0xff] %v6646_v32 }
 0x45b   : > { %v6642_v38 = vpop.f32.mrf.mxu0 }
 0x45c   : > { %v6644_v46 = vpop.f32.mrf.mxu1  ;;  %1752 = vmax.xlane.f32.xlu1 %v1751_v60 }
 0x460   : > { %2131 = vmax.xlane.f32.xlu0 %v2130_v27  ;;  %v5041_v60 = vpop.trf.xlu1  ;;  %v1739_v27 = vmax.f32 %v6324_v26, %v6326_v50 }
 0x463   : > { %v6652_v20 = vpop.f32.mrf.mxu0 }
 0x464   : > { %8821 = vst [vmem:[#allocation96_spill] sm:$0xff] %v6652_v20  ;;  %v6656_v24 = vpop.f32.mrf.mxu1  ;;  %1746 = vmax.xlane.f32.xlu1 %v1745_v43 }
 0x465   : > { %8822 = vst [vmem:[#allocation97_spill] sm:$0xff] %v6656_v24  ;;  %v8839_v24 = vld [vmem:[#allocation66_spill] sm:$0xff] }
 0x466   : > { %4750 = vmatmul.msk.bf16.gmra.mxu0 %vm1223_vm10, %v6566_v44 }
 0x467   : > { %4758 = vmatmul.msk.bf16.gmra.mxu1 %vm1223_vm10, %v6566_v44  ;;  %v1733_v44 = vmax.f32 %v6296_v23, %v6298_v17 }
 0x468   : > { %2137 = vmax.xlane.f32.xlu0 %v2136_v10  ;;  %v6672_v43 = vpop.trf.xlu1 }
 0x469   : > { %8825 = vst [vmem:[#allocation100_spill] sm:$0xff] %v6672_v43 }
 0x46b   : > { %v6664_v18 = vpop.xlane.xlu0 %1767  ;;  %v6666_v53 = vpop.f32.mrf.mxu0 }
 0x46c   : > { %8823 = vst [vmem:[#allocation98_spill] sm:$0xff] %v6666_v53  ;;  %v6670_v41 = vpop.f32.mrf.mxu1  ;;  %1740 = vmax.xlane.f32.xlu1 %v1739_v27 }
 0x46d   : > { %8824 = vst [vmem:[#allocation99_spill] sm:$0xff] %v6670_v41 }
 0x470   : > { %2143 = vmax.xlane.f32.xlu0 %v2142_v51  ;;  %v1727_v51 = vmax.f32 %v6270_v9, %v6272_v16  ;;  %v5043_v27 = vpop.trf.xlu1 }
 0x473   : > { %v6676_v10 = vpop.xlane.xlu0 %1761  ;;  %v6678_v35 = vpop.f32.mrf.mxu0 }
 0x474   : > { %8826 = vst [vmem:[#allocation101_spill] sm:$0xff] %v6676_v10  ;;  %v6682_v20 = vpop.f32.mrf.mxu1  ;;  %1734 = vmax.xlane.f32.xlu1 %v1733_v44  ;;  %v8832_v44 = vld [vmem:[#allocation63_spill] sm:$0xff] }
 0x475   : > { %8827 = vst [vmem:[#allocation102_spill] sm:$0xff] %v6678_v35  ;;  %v2115_v43 = vmax.f32 %v8833_v14, %v8832_v44 }
 0x476   : > { %8828 = vst [vmem:[#allocation103_spill] sm:$0xff] %v6682_v20  ;;  %4751 = vmatmul.msk.bf16.gmra.mxu0 %vm1223_vm10, %v6596_v37 }
 0x477   : > { %4759 = vmatmul.msk.bf16.gmra.mxu1 %vm1223_vm10, %v6596_v37 }
 0x478   : > { %2149 = vmax.xlane.f32.xlu0 %v2148_v52  ;;  %v6706_v20 = vpop.trf.xlu1 }
 0x479   : > { %8837 = vst [vmem:[#allocation108_spill] sm:$0xff] %v6706_v20  ;;  %v2127_v20 = vmax.f32 %v6512_v61, %v6514_v48 }
 0x47b   : > { %v6690_v45 = vpop.xlane.xlu0 %1755  ;;  %v6692_v4 = vpop.f32.mrf.mxu0 }
 0x47c   : > { %8829 = vst [vmem:[#allocation104_spill] sm:$0xff] %v6690_v45  ;;  %v6694_v10 = vpop.f32.mrf.mxu1  ;;  %1728 = vmax.xlane.f32.xlu1 %v1727_v51  ;;  %v6710_v45 = vpop.xlane.xlu2 %1359  ;;  %v8838_v51 = vld [vmem:[#allocation67_spill] sm:$0xff] }
 0x47d   : > { %8830 = vst [vmem:[#allocation105_spill] sm:$0xff] %v6692_v4  ;;  %v2121_v32 = vmax.f32 %v8839_v24, %v8838_v51 }
 0x47e   : > { %8831 = vst [vmem:[#allocation106_spill] sm:$0xff] %v6694_v10 }
 0x483   : > { %v6700_v35 = vpop.xlane.xlu0 %1749  ;;  %v6702_v37 = vpop.f32.mrf.mxu0 }
 0x484   : > { %8834 = vst [vmem:[#allocation63_spill] sm:$0xff] %v6700_v35  ;;  %v6704_v52 = vpop.f32.mrf.mxu1  ;;  %2116 = vmax.xlane.f32.xlu1 %v2115_v43  ;;  %v6722_v43 = vpop.xlane.xlu2 %1365 }
 0x485   : > { %8835 = vst [vmem:[#allocation62_spill] sm:$0xff] %v6702_v37  ;;  %v6720_v37 = vpop.trf.xlu1 }
 0x486   : > { %8836 = vst [vmem:[#allocation107_spill] sm:$0xff] %v6704_v52  ;;  %4752 = vmatmul.msk.bf16.gmra.mxu0 %vm1223_vm10, %v5039_v28 }
 0x487   : > { %4760 = vmatmul.msk.bf16.gmra.mxu1 %vm1223_vm10, %v5039_v28 }
 0x48b   : > { %v6714_v56 = vpop.xlane.xlu0 %1743  ;;  %v6716_v19 = vpop.f32.mrf.mxu0 }
 0x48c   : > { %8840 = vst [vmem:[#allocation109_spill] sm:$0xff] %v6716_v19  ;;  %v6718_v35 = vpop.f32.mrf.mxu1  ;;  %2122 = vmax.xlane.f32.xlu1 %v2121_v32  ;;  %v6734_v19 = vpop.xlane.xlu2 %1380 }
 0x48d   : > { %8841 = vst [vmem:[#allocation110_spill] sm:$0xff] %v6718_v35  ;;  %v6736_v32 = vpop.trf.xlu1  ;;  %v2133_v35 = vmax.f32 %v6536_v1, %v6538_v42 }
 0x48e   : > { %8844 = vst [vmem:[#allocation113_spill] sm:$0xff] %v6736_v32 }
 0x493   : > { %v6726_v28 = vpop.xlane.xlu0 %1737  ;;  %v6728_v52 = vpop.f32.mrf.mxu0 }
 0x494   : > { %8842 = vst [vmem:[#allocation111_spill] sm:$0xff] %v6728_v52  ;;  %v6730_v12 = vpop.f32.mrf.mxu1  ;;  %2128 = vmax.xlane.f32.xlu1 %v2127_v20  ;;  %v4946_v52 = vld [vmem:[#allocation2 + $0x38] sm:$0xf0]  ;;  %v4831_v20 = vld [vmem:[#allocation2 + $0x34] sm:$0xf]  ;;  %v6746_v51 = vpop.xlane.xlu2 %1386 }
 0x495   : > { %8843 = vst [vmem:[#allocation112_spill] sm:$0xff] %v6730_v12  ;;  %v4832_v12 = vor.u32 %v4946_v52, %v4831_v20  ;;  %v6750_v32 = vpop.trf.xlu1  ;;  %v8850_v52 = vld [vmem:[#allocation57_spill] sm:$0xff] }
 0x496   : > { %4753 = vmatmul.msk.bf16.gmra.mxu0 %vm1223_vm10, %v5041_v60 }
 0x497   : > { %4761 = vmatmul.msk.bf16.gmra.mxu1 %vm1223_vm10, %v5041_v60  ;;  %v2139_v60 = vmax.f32 %v6560_v15, %v6562_v62  ;;  %v2145_v62 = vmax.f32 %v6590_v59, %v6592_v55  ;;  %v8855_v55 = vld [vmem:[#allocation55_spill] sm:$0xff]  ;;  %v8857_v59 = vld [vmem:[#allocation58_spill] sm:$0xff] }
 0x49b   : > { %v6740_v33 = vpop.xlane.xlu0 %1731  ;;  %v6742_v48 = vpop.f32.mrf.mxu0 }
 0x49c   : > { %8845 = vst [vmem:[#allocation114_spill] sm:$0xff] %v6742_v48  ;;  %v6744_v61 = vpop.f32.mrf.mxu1  ;;  %2134 = vmax.xlane.f32.xlu1 %v2133_v35  ;;  %v8849_v35 = vld [vmem:[#allocation56_spill] sm:$0xff]  ;;  %v1390_v20 = vpop.xlane.xlu2 %1389 }
 0x49d   : > { %8846 = vst [vmem:[#allocation115_spill] sm:$0xff] %v6744_v61  ;;  %v1800_v48 = vsub.f32 %v8849_v35, %v6664_v18  ;;  %v6772_v4 = vpop.trf.xlu1 }
 0x49e   : > { %8853 = vst [vmem:[#allocation118_spill] sm:$0xff] %v6772_v4 }
 0x49f   : > { %v1860_v15 = vmul.f32 1.442695, %v1800_v48  ;;  %v1423_v48 = vsub.f32 %v8855_v55, %v1390_v20 }
 0x4a1   : > { %3866 = vxpose.xlu0.c.b16.start.end [1/1] (short) %v4832_v12, 128  ;;  %v1801_v12 = vsub.f32 %v8850_v52, %v6664_v18  ;;  %v8854_v18 = vld [vmem:[#allocation54_spill] sm:$0xff]  ;;  %5083 = vpow2.f32 %v1860_v15 }
 0x4a3   : > { %v6752_v24 = vpop.xlane.xlu0 %1725  ;;  %v6754_v42 = vpop.f32.mrf.mxu0  ;;  %v1862_v61 = vmul.f32 1.442695, %v1801_v12  ;;  %v8856_v12 = vld [vmem:[#allocation59_spill] sm:$0xff] }
 0x4a4   : > { %8847 = vst [vmem:[#allocation116_spill] sm:$0xff] %v6754_v42  ;;  %v6756_v1 = vpop.f32.mrf.mxu1  ;;  %2140 = vmax.xlane.f32.xlu1 %v2139_v60 }
 0x4a5   : > { %8848 = vst [vmem:[#allocation117_spill] sm:$0xff] %v6756_v1  ;;  %5085 = vpow2.f32 %v1862_v61 }
 0x4a6   : > { %4754 = vmatmul.msk.bf16.gmra.mxu0 %vm1223_vm10, %v5043_v27 }
 0x4a7   : > { %4762 = vmatmul.msk.bf16.gmra.mxu1 %vm1223_vm10, %v5043_v27  ;;  %v1422_v27 = vsub.f32 %v8854_v18, %v1390_v20  ;;  %v8860_v18 = vld [vmem:[#allocation50_spill] sm:$0xff] }
 0x4ab   : > { %v1771_v42 = vpop.xlane.xlu0 %1770  ;;  %v6766_v29 = vpop.f32.mrf.mxu0 }
 0x4ac   : > { %8851 = vst [vmem:[#allocation56_spill] sm:$0xff] %v6766_v29  ;;  %v1802_v60 = vsub.f32 %v6443_v2, %v1771_v42  ;;  %v1803_v35 = vsub.f32 %v6445_v3, %v1771_v42  ;;  %v6770_v1 = vpop.f32.mrf.mxu1  ;;  %2146 = vmax.xlane.f32.xlu1 %v2145_v62  ;;  %v2106_v2 = vmax.f32 %v8857_v59, %v8856_v12  ;;  %v1482_v29 = vmul.f32 1.442695, %v1422_v27  ;;  %v5084_v62 = vpop.eup %5083 }
 0x4ad   : > { %8852 = vst [vmem:[#allocation57_spill] sm:$0xff] %v6770_v1  ;;  %v1484_v3 = vmul.f32 1.442695, %v1423_v48  ;;  %v5086_v55 = vpop.eup %5085  ;;  %v1420_v27 = vsub.f32 %v8860_v18, %v6746_v51  ;;  %v8863_v48 = vld [vmem:[#allocation51_spill] sm:$0xff] }
 0x4ae   : > { %v1864_v52 = vmul.f32 1.442695, %v1802_v60  ;;  %v1866_v10 = vmul.f32 1.442695, %v1803_v35 }
 0x4b0   : > { %5087 = vpow2.f32 %v1864_v52 }
 0x4b1   : > { %5089 = vpow2.f32 %v1866_v10 }
 0x4b2   : > { %5091 = vpow2.f32 %v1482_v29 }
 0x4b3   : > { %v1393_v42 = vpop.xlane.xlu0 %1392  ;;  %v6778_v1 = vpop.f32.mrf.mxu0  ;;  %5093 = vpow2.f32 %v1484_v3 }
 0x4b4   : > { %8858 = vst [vmem:[#allocation54_spill] sm:$0xff] %v6778_v1  ;;  %v1424_v4 = vsub.f32 %v6586_v22, %v1393_v42  ;;  %v1425_v15 = vsub.f32 %v6588_v40, %v1393_v42  ;;  %v6782_v60 = vpop.f32.mrf.mxu1  ;;  %2107 = vmax.xlane.f32.xlu1 %v2106_v2  ;;  %v1421_v2 = vsub.f32 %v8863_v48, %v6746_v51  ;;  %v8864_v42 = vld [vmem:[#allocation61_spill] sm:$0xff] }
 0x4b5   : > { %8859 = vst [vmem:[#allocation55_spill] sm:$0xff] %v6782_v60 }
 0x4b6   : > { %v5088_v61 = vpop.eup %5087  ;;  %v1486_v10 = vmul.f32 1.442695, %v1424_v4  ;;  %v1488_v20 = vmul.f32 1.442695, %v1425_v15  ;;  %4755 = vmatmul.msk.bf16.gmra.mxu0 %vm1223_vm10, %v6720_v37  ;;  %v8865_v15 = vld [vmem:[#allocation60_spill] sm:$0xff] }
 0x4b7   : > { %v5090_v35 = vpop.eup %5089  ;;  %4763 = vmatmul.msk.bf16.gmra.mxu1 %vm1223_vm10, %v6720_v37  ;;  %v1384_v22 = vpop.xlane.xlu1 %1383  ;;  %v6790_v40 = vpack.c.bf16 %v5088_v61, %v5084_v62  ;;  %v2109_v3 = vmax.f32 %v8865_v15, %v8864_v42  ;;  %v1478_v61 = vmul.f32 1.442695, %v1420_v27  ;;  %v8870_v27 = vld [vmem:[#allocation40_spill] sm:$0xff]  ;;  %v8882_v42 = vld [vmem:[#allocation33_spill] sm:$0xff] }
 0x4b8   : > { %5095 = vpow2.f32 %v1486_v10  ;;  %v1418_v52 = vsub.f32 %v6404_v63, %v1384_v22  ;;  %v1419_v4 = vsub.f32 %v6406_v21, %v1384_v22  ;;  %v6794_v29 = vpack.c.bf16 %v5090_v35, %v5086_v55  ;;  %v5092_v62 = vpop.eup %5091  ;;  %v8868_v35 = vld [vmem:[#allocation44_spill] sm:$0xff] }
 0x4b9   : > { %8861 = vst [vmem:[#allocation59_spill] sm:$0xff] %v6790_v40  ;;  %5097 = vpow2.f32 %v1488_v20  ;;  %v5094_v63 = vpop.eup %5093  ;;  %v1480_v21 = vmul.f32 1.442695, %v1421_v2  ;;  %v1416_v22 = vsub.f32 %v8868_v35, %v6734_v19  ;;  %v8869_v20 = vld [vmem:[#allocation45_spill] sm:$0xff]  ;;  %v1414_v60 = vsub.f32 %v8870_v27, %v6524_v25 }
 0x4ba   : > { %8862 = vst [vmem:[#allocation58_spill] sm:$0xff] %v6794_v29  ;;  %v1474_v18 = vmul.f32 1.442695, %v1418_v52  ;;  %v1476_v1 = vmul.f32 1.442695, %v1419_v4  ;;  %v1417_v48 = vsub.f32 %v8869_v20, %v6734_v19  ;;  %v8871_v2 = vld [vmem:[#allocation41_spill] sm:$0xff]  ;;  %v1407_v15 = vsub.f32 %v8882_v42, %v6722_v43 }
 0x4bb   : > { %v6800_v37 = vpop.f32.mrf.mxu0  ;;  %v1415_v29 = vsub.f32 %v8871_v2, %v6524_v25  ;;  %v1470_v19 = vmul.f32 1.442695, %v1416_v22  ;;  %v8884_v42 = vld [vmem:[#allocation65_spill] sm:$0xff] }
 0x4bc   : > { %8866 = vst [vmem:[#allocation50_spill] sm:$0xff] %v6800_v37  ;;  %v6802_v10 = vpop.f32.mrf.mxu1  ;;  %2110 = vmax.xlane.f32.xlu1 %v2109_v3  ;;  %5099 = vpow2.f32 %v1474_v18  ;;  %v1472_v18 = vmul.f32 1.442695, %v1417_v48 }
 0x4bd   : > { %8867 = vst [vmem:[#allocation51_spill] sm:$0xff] %v6802_v10  ;;  %5101 = vpow2.f32 %v1476_v1  ;;  %v775_v1 = vld [vmem:[%s8471_s2 + $0x88] sm:$0xff]  ;;  %v1468_v25 = vmul.f32 1.442695, %v1415_v29 }
 0x4be   : > { %v5096_v55 = vpop.eup %5095  ;;  %5103 = vpow2.f32 %v1478_v61  ;;  %v1466_v61 = vmul.f32 1.442695, %v1414_v60 }
 0x4bf   : > { %v5098_v51 = vpop.eup %5097  ;;  %v6808_v52 = vpop.xlane.xlu1 %1764  ;;  %v6810_v4 = vpack.c.bf16 %v5096_v55, %v5092_v62  ;;  %5105 = vpow2.f32 %v1480_v21 }
 0x4c0   : > { %v6814_v3 = vpack.c.bf16 %v5098_v51, %v5094_v63  ;;  %5107 = vpow2.f32 %v1470_v19  ;;  %v8877_v19 = vld [vmem:[#allocation34_spill] sm:$0xff] }
 0x4c1   : > { %1516 = vmatpush.bf16.xpose.msra.mxu2 %v6810_v4  ;;  %5109 = vpow2.f32 %v1472_v18 }
 0x4c2   : > { %1530 = vmatpush.bf16.xpose.msra.mxu3 %v6814_v3  ;;  %v5100_v55 = vpop.eup %5099  ;;  %5111 = vpow2.f32 %v1466_v61 }
 0x4c3   : > { %v6823_v62 = vpop.f32.mrf.mxu0  ;;  %v5102_v35 = vpop.eup %5101  ;;  %5113 = vpow2.f32 %v1468_v25 }
 0x4c4   : > { %8872 = vst [vmem:[#allocation44_spill] sm:$0xff] %v6823_v62  ;;  %869 = vperm.xlu2 %5013, %v775_v1   ;;  %v6825_v63 = vpop.f32.mrf.mxu1  ;;  %v5104_v21 = vpop.eup %5103  ;;  %v8881_v62 = vld [vmem:[#allocation32_spill] sm:$0xff] }
 0x4c5   : > { %8873 = vst [vmem:[#allocation45_spill] sm:$0xff] %v6825_v63  ;;  %v5106_v51 = vpop.eup %5105  ;;  %v6833_v20 = vpack.c.bf16 %v5104_v21, %v5100_v55  ;;  %v6845_v55 = vpop.trf.xlu2  ;;  %v1406_v63 = vsub.f32 %v8881_v62, %v6722_v43  ;;  %v1785_v62 = vsub.f32 %v6340_v58, %v6714_v56 }
 0x4c6   : > { %4756 = vmatmul.msk.bf16.gmra.mxu0 %vm1223_vm10, %v6750_v32  ;;  %v6835_v60 = vpack.c.bf16 %v5106_v51, %v5102_v35  ;;  %v5108_v48 = vpop.eup %5107  ;;  %v8879_v35 = vld [vmem:[#allocation35_spill] sm:$0xff] }
 0x4c7   : > { %4764 = vmatmul.msk.bf16.gmra.mxu1 %vm1223_vm10, %v6750_v32  ;;  %v6831_v22 = vpop.xlane.xlu1 %1758  ;;  %v5110_v2 = vpop.eup %5109  ;;  %v8876_v32 = vld [vmem:[#allocation68_spill] sm:$0xff]  ;;  %v1830_v58 = vmul.f32 1.442695, %v1785_v62 }
 0x4c8   : > { %v5112_v1 = vpop.eup %5111  ;;  %v1408_v18 = vsub.f32 %v8877_v19, %v8876_v32  ;;  %8878 = vst [vmem:[#allocation68_spill] sm:$0xff] %v6845_v55  ;;  %v1409_v25 = vsub.f32 %v8879_v35, %v8876_v32  ;;  %v1784_v55 = vsub.f32 %v6338_v5, %v6714_v56  ;;  %v1450_v32 = vmul.f32 1.442695, %v1406_v63  ;;  %v8887_v63 = vld [vmem:[#allocation28_spill] sm:$0xff] }
 0x4c9   : > { %1517 = vmatpush.bf16.xpose.msra.mxu2 %v6833_v20  ;;  %v5114_v61 = vpop.eup %5113  ;;  %v6851_v51 = vpack.c.bf16 %v5108_v48, %v5112_v1  ;;  %v776_v48 = vld [vmem:[%s8471_s2 + $0x90] sm:$0xff]  ;;  %v1452_v35 = vmul.f32 1.442695, %v1407_v15  ;;  %v1402_v15 = vsub.f32 %v8887_v63, %v6710_v45 }
 0x4ca   : > { %1531 = vmatpush.bf16.xpose.msra.mxu3 %v6835_v60  ;;  %v6855_v40 = vpack.c.bf16 %v5110_v2, %v5114_v61  ;;  %v1454_v19 = vmul.f32 1.442695, %v1408_v18  ;;  %v1456_v1 = vmul.f32 1.442695, %v1409_v25  ;;  %v8885_v18 = vld [vmem:[#allocation30_spill] sm:$0xff]  ;;  %v8886_v25 = vld [vmem:[#allocation31_spill] sm:$0xff] }
 0x4cb   : > { %v6839_v29 = vpop.f32.mrf.mxu0  ;;  %v1404_v61 = vsub.f32 %v8885_v18, %v8884_v42  ;;  %v1828_v5 = vmul.f32 1.442695, %v1784_v55  ;;  %v1442_v18 = vmul.f32 1.442695, %v1402_v15 }
 0x4cc   : > { %8874 = vst [vmem:[#allocation40_spill] sm:$0xff] %v6839_v29  ;;  %v6841_v27 = vpop.f32.mrf.mxu1  ;;  %5115 = vpow2.f32 %v1454_v19 }
 0x4cd   : > { %8875 = vst [vmem:[#allocation41_spill] sm:$0xff] %v6841_v27  ;;  %5117 = vpow2.f32 %v1456_v1  ;;  %v8889_v1 = vld [vmem:[#allocation29_spill] sm:$0xff] }
 0x4ce   : > { %5119 = vpow2.f32 %v1450_v32  ;;  %v1403_v62 = vsub.f32 %v8889_v1, %v6710_v45 }
 0x4cf   : > { %v6849_v21 = vpop.xlane.xlu1 %1752  ;;  %5121 = vpow2.f32 %v1452_v35 }
 0x4d0   : > { %8880 = vst [vmem:[#allocation34_spill] sm:$0xff] %v6849_v21  ;;  %v1405_v21 = vsub.f32 %v8886_v25, %v8884_v42  ;;  %v1446_v42 = vmul.f32 1.442695, %v1404_v61  ;;  %5123 = vpow2.f32 %v1828_v5  ;;  %v8892_v5 = vld [vmem:[#allocation64_spill] sm:$0xff]  ;;  %v8893_v25 = vld [vmem:[#allocation26_spill] sm:$0xff] }
 0x4d1   : > { %1518 = vmatpush.bf16.xpose.msra.mxu2 %v6851_v51  ;;  %5125 = vpow2.f32 %v1830_v58 }
 0x4d2   : > { %1532 = vmatpush.bf16.xpose.msra.mxu3 %v6855_v40  ;;  %v5116_v45 = vpop.eup %5115 }
 0x4d3   : > { %v6868_v2 = vpop.f32.mrf.mxu0  ;;  %v5118_v35 = vpop.eup %5117 }
 0x4d4   : > { %8883 = vst [vmem:[#allocation35_spill] sm:$0xff] %v6868_v2  ;;  %v6870_v43 = vpop.f32.mrf.mxu1  ;;  %v5120_v63 = vpop.eup %5119 }
 0x4d5   : > { %874 = vperm.xlu1 %5012, %v776_v48   ;;  %v6886_v48 = vpop.trf.xlu2 }
 0x4d6   : > { %4777 = vmatmul.msk.bf16.vlgmr.msrb.gmra.mxu0 %vm1223_vm10, %v6558_v47  ;;  %8888 = vst [vmem:[#allocation32_spill] sm:$0xff] %v6886_v48 }
 0x4d7   : > { %4785 = vmatmul.msk.bf16.vlgmr.msrb.gmra.mxu1 %vm1223_vm10, %v6558_v47  ;;  %3913 = vmatpush.bf16.msrb.mxu0 %v6628_v30  ;;  %v1747_v56 = vpop.xlane.xlu1 %1746  ;;  %v1780_v30 = vsub.f32 %v6308_v54, %v6726_v28  ;;  %v1400_v54 = vsub.f32 %v8893_v25, %v8892_v5 }
 0x4d8   : > { %3962 = vmatpush.bf16.msrb.mxu1 %v6634_v7  ;;  %v1786_v55 = vsub.f32 %v6350_v39, %v1747_v56  ;;  %v1787_v19 = vsub.f32 %v6352_v31, %v1747_v56  ;;  %v1448_v39 = vmul.f32 1.442695, %v1405_v21  ;;  %v1781_v31 = vsub.f32 %v6310_v0, %v6726_v28  ;;  %v8894_v21 = vld [vmem:[#allocation23_spill] sm:$0xff]  ;;  %v5122_v0 = vpop.eup %5121 }
 0x4d9   : > { %1519 = vmatpush.bf16.xpose.msra.mxu2 %v6532_v34  ;;  %v1444_v56 = vmul.f32 1.442695, %v1403_v62  ;;  %v1398_v58 = vsub.f32 %v8894_v21, %v6696_v57  ;;  %v8895_v28 = vld [vmem:[#allocation27_spill] sm:$0xff]  ;;  %v5124_v48 = vpop.eup %5123  ;;  %v6910_v25 = vpack.c.bf16 %v5118_v35, %v5122_v0  ;;  %v1438_v2 = vmul.f32 1.442695, %v1400_v54 }
 0x4da   : > { %v1832_v47 = vmul.f32 1.442695, %v1786_v55  ;;  %v1834_v32 = vmul.f32 1.442695, %v1787_v19  ;;  %1533 = vmatpush.bf16.xpose.msra.mxu3 %v6534_v36  ;;  %v1820_v55 = vmul.f32 1.442695, %v1780_v30  ;;  %v1401_v19 = vsub.f32 %v8895_v28, %v8892_v5  ;;  %v5126_v21 = vpop.eup %5125 }
 0x4db   : > { %v6896_v7 = vpop.f32.mrf.mxu0  ;;  %v1822_v15 = vmul.f32 1.442695, %v1781_v31  ;;  %v1776_v31 = vsub.f32 %v6280_v11, %v6740_v33 }
 0x4dc   : > { %8890 = vst [vmem:[#allocation33_spill] sm:$0xff] %v6896_v7  ;;  %5127 = vpow2.f32 %v1832_v47  ;;  %v6898_v61 = vpop.f32.mrf.mxu1  ;;  %v6906_v47 = vpack.c.bf16 %v5116_v45, %v5120_v63  ;;  %v1440_v35 = vmul.f32 1.442695, %v1401_v19 }
 0x4dd   : > { %8891 = vst [vmem:[#allocation65_spill] sm:$0xff] %v6898_v61  ;;  %5129 = vpow2.f32 %v1834_v32  ;;  %v1812_v19 = vmul.f32 1.442695, %v1776_v31 }
 0x4de   : > { %5131 = vpow2.f32 %v1446_v42  ;;  %v8896_v42 = vld [vmem:[#allocation24_spill] sm:$0xff] }
 0x4df   : > { %5133 = vpow2.f32 %v1448_v39  ;;  %v1741_v1 = vpop.xlane.xlu1 %1740  ;;  %v1399_v30 = vsub.f32 %v8896_v42, %v6696_v57  ;;  %v8898_v57 = vld [vmem:[#allocation25_spill] sm:$0xff] }
 0x4e0   : > { %5135 = vpow2.f32 %v1442_v18  ;;  %v1782_v62 = vsub.f32 %v6324_v26, %v1741_v1  ;;  %v1783_v32 = vsub.f32 %v6326_v50, %v1741_v1  ;;  %v6918_v26 = vpop.trf.xlu2  ;;  %v1777_v5 = vsub.f32 %v8898_v57, %v6740_v33 }
 0x4e1   : > { %5137 = vpow2.f32 %v1444_v56  ;;  %1520 = vmatpush.bf16.xpose.msra.mxu2 %v6906_v47  ;;  %8897 = vst [vmem:[#allocation30_spill] sm:$0xff] %v6918_v26  ;;  %v1436_v1 = vmul.f32 1.442695, %v1399_v30 }
 0x4e2   : > { %v5128_v39 = vpop.eup %5127  ;;  %5139 = vpow2.f32 %v1820_v55  ;;  %v1824_v45 = vmul.f32 1.442695, %v1782_v62  ;;  %v1826_v18 = vmul.f32 1.442695, %v1783_v32  ;;  %1534 = vmatpush.bf16.xpose.msra.mxu3 %v6910_v25  ;;  %v1434_v55 = vmul.f32 1.442695, %v1398_v58 }
 0x4e3   : > { %v5130_v50 = vpop.eup %5129  ;;  %5141 = vpow2.f32 %v1822_v15  ;;  %v6922_v54 = vpop.f32.mrf.mxu0  ;;  %v6924_v56 = vpack.c.bf16 %v5128_v39, %v5124_v48  ;;  %v8899_v15 = vld [vmem:[#allocation85_spill] sm:$0xff]  ;;  %v1814_v48 = vmul.f32 1.442695, %v1777_v5 }
 0x4e4   : > { %v5132_v63 = vpop.eup %5131  ;;  %5143 = vpow2.f32 %v1824_v45  ;;  %v6926_v11 = vpop.f32.mrf.mxu1  ;;  %v6928_v0 = vpack.c.bf16 %v5130_v50, %v5126_v21  ;;  %v8900_v45 = vld [vmem:[#allocation21_spill] sm:$0xff] }
 0x4e5   : > { %v5134_v28 = vpop.eup %5133  ;;  %5145 = vpow2.f32 %v1826_v18  ;;  %v1772_v18 = vsub.f32 %v8900_v45, %v6752_v24  ;;  %v2114_v5 = vpop.xlane.xlu0 %2113 }
 0x4e6   : > { %v5136_v62 = vpop.eup %5135  ;;  %5147 = vpow2.f32 %v1438_v2  ;;  %4778 = vmatmul.msk.bf16.gmra.mxu0 %vm1223_vm10, %v8899_v15 }
 0x4e7   : > { %v5138_v33 = vpop.eup %5137  ;;  %5149 = vpow2.f32 %v1440_v35  ;;  %4786 = vmatmul.msk.bf16.gmra.mxu1 %vm1223_vm10, %v8899_v15  ;;  %v1735_v58 = vpop.xlane.xlu1 %1734  ;;  %v6934_v32 = vpack.c.bf16 %v5132_v63, %v5136_v62 }
 0x4e8   : > { %v5140_v21 = vpop.eup %5139  ;;  %5151 = vpow2.f32 %v1434_v55  ;;  %v1778_v42 = vsub.f32 %v6296_v23, %v1735_v58  ;;  %v1779_v30 = vsub.f32 %v6298_v17, %v1735_v58  ;;  %v6938_v2 = vpack.c.bf16 %v5134_v28, %v5138_v33  ;;  %v8901_v23 = vld [vmem:[#allocation22_spill] sm:$0xff] }
 0x4e9   : > { %v5142_v39 = vpop.eup %5141  ;;  %5153 = vpow2.f32 %v1436_v1  ;;  %1521 = vmatpush.bf16.xpose.msra.mxu2 %v6934_v32  ;;  %v1773_v17 = vsub.f32 %v8901_v23, %v6752_v24  ;;  %v2487_v55 = vmax.f32 %v6642_v38, %v6644_v46 }
 0x4ea   : > { %v5144_v31 = vpop.eup %5143  ;;  %5155 = vpow2.f32 %v1812_v19  ;;  %v1816_v50 = vmul.f32 1.442695, %v1778_v42  ;;  %v1818_v35 = vmul.f32 1.442695, %v1779_v30  ;;  %1535 = vmatpush.bf16.xpose.msra.mxu3 %v6938_v2  ;;  %v6954_v19 = vpop.trf.xlu2 }
 0x4eb   : > { %v5146_v57 = vpop.eup %5145  ;;  %5157 = vpow2.f32 %v1814_v48  ;;  %v6946_v63 = vpop.f32.mrf.mxu0  ;;  %v6950_v28 = vpack.c.bf16 %v5144_v31, %v5140_v21  ;;  %8904 = vst [vmem:[#allocation29_spill] sm:$0xff] %v6954_v19  ;;  %v1804_v48 = vmul.f32 1.442695, %v1772_v18  ;;  %v1806_v42 = vmul.f32 1.442695, %v1773_v17 }
 0x4ec   : > { %8902 = vst [vmem:[#allocation31_spill] sm:$0xff] %v6946_v63  ;;  %v5148_v1 = vpop.eup %5147  ;;  %5159 = vpow2.f32 %v1816_v50  ;;  %v6952_v62 = vpop.f32.mrf.mxu1  ;;  %v6956_v15 = vpack.c.bf16 %v5146_v57, %v5142_v39 }
 0x4ed   : > { %8903 = vst [vmem:[#allocation28_spill] sm:$0xff] %v6952_v62  ;;  %v5150_v33 = vpop.eup %5149  ;;  %5161 = vpow2.f32 %v1818_v35  ;;  %2488 = vmax.xlane.f32.xlu2 %v2487_v55  ;;  %v2158_v35 = vsub.f32 %v6466_v8, %v2114_v5  ;;  %v2159_v55 = vsub.f32 %v6468_v49, %v2114_v5  ;;  %v2120_v8 = vpop.xlane.xlu0 %2119 }
 0x4ee   : > { %v5152_v24 = vpop.eup %5151  ;;  %5163 = vpow2.f32 %v1804_v48 }
 0x4ef   : > { %v5154_v58 = vpop.eup %5153  ;;  %v1729_v30 = vpop.xlane.xlu1 %1728  ;;  %v6958_v45 = vpack.c.bf16 %v5148_v1, %v5152_v24  ;;  %5165 = vpow2.f32 %v1806_v42  ;;  %v2194_v48 = vmul.f32 1.442695, %v2158_v35  ;;  %v2196_v5 = vmul.f32 1.442695, %v2159_v55 }
 0x4f0   : > { %v5156_v21 = vpop.eup %5155  ;;  %v1774_v31 = vsub.f32 %v6270_v9, %v1729_v30  ;;  %v1775_v50 = vsub.f32 %v6272_v16, %v1729_v30  ;;  %v6962_v23 = vpack.c.bf16 %v5150_v33, %v5154_v58  ;;  %v2493_v16 = vmax.f32 %v6666_v53, %v6670_v41  ;;  %v8905_v58 = vld [vmem:[#allocation90_spill] sm:$0xff] }
 0x4f1   : > { %v5158_v19 = vpop.eup %5157  ;;  %1522 = vmatpush.bf16.xpose.msra.mxu2 %v6958_v45  ;;  %v2162_v35 = vsub.f32 %v6480_v13, %v2120_v8  ;;  %v8915_v53 = vld [vmem:[#allocation66_spill] sm:$0xff] }
 0x4f2   : > { %v5160_v39 = vpop.eup %5159  ;;  %v1808_v18 = vmul.f32 1.442695, %v1774_v31  ;;  %v1810_v57 = vmul.f32 1.442695, %v1775_v50  ;;  %1536 = vmatpush.bf16.xpose.msra.mxu3 %v6962_v23  ;;  %v6980_v49 = vpop.trf.xlu2  ;;  %v8907_v50 = vld [vmem:[#allocation81_spill] sm:$0xff] }
 0x4f3   : > { %v5162_v17 = vpop.eup %5161  ;;  %v6968_v9 = vpop.f32.mrf.mxu0  ;;  %v6972_v1 = vpack.c.bf16 %v5160_v39, %v5156_v21  ;;  %8906 = vst [vmem:[#allocation64_spill] sm:$0xff] %v6980_v49 }
 0x4f4   : > { %5167 = vpow2.f32 %v1808_v18  ;;  %v6974_v33 = vpop.f32.mrf.mxu1  ;;  %v6976_v24 = vpack.c.bf16 %v5162_v17, %v5158_v19  ;;  %v5164_v30 = vpop.eup %5163  ;;  %v8908_v17 = vld [vmem:[#allocation82_spill] sm:$0xff] }
 0x4f5   : > { %5169 = vpow2.f32 %v1810_v57  ;;  %2494 = vmax.xlane.f32.xlu2 %v2493_v16  ;;  %v5166_v31 = vpop.eup %5165  ;;  %v2163_v16 = vsub.f32 %v6482_v6, %v2120_v8  ;;  %v2202_v6 = vmul.f32 1.442695, %v2162_v35 }
 0x4f6   : > { %4779 = vmatmul.msk.bf16.gmra.mxu0 %vm1223_vm10, %v8905_v58  ;;  %5171 = vpow2.f32 %v2194_v48 }
 0x4f7   : > { %4787 = vmatmul.msk.bf16.gmra.mxu1 %vm1223_vm10, %v8905_v58  ;;  %v2117_v42 = vpop.xlane.xlu1 %2116  ;;  %5173 = vpow2.f32 %v2196_v5  ;;  %v8911_v58 = vld [vmem:[#allocation105_spill] sm:$0xff]  ;;  %v2204_v8 = vmul.f32 1.442695, %v2163_v16  ;;  %v8919_v16 = vld [vmem:[#allocation70_spill] sm:$0xff] }
 0x4f8   : > { %v2160_v21 = vsub.f32 %v8833_v14, %v2117_v42  ;;  %v2161_v19 = vsub.f32 %v8832_v44, %v2117_v42  ;;  %v8910_v44 = vld [vmem:[#allocation106_spill] sm:$0xff] }
 0x4f9   : > { %1523 = vmatpush.bf16.xpose.msra.mxu2 %v8907_v50  ;;  %v2499_v42 = vmax.f32 %v8911_v58, %v8910_v44 }
 0x4fa   : > { %v5168_v39 = vpop.eup %5167  ;;  %v2198_v18 = vmul.f32 1.442695, %v2160_v21  ;;  %v2200_v57 = vmul.f32 1.442695, %v2161_v19  ;;  %1537 = vmatpush.bf16.xpose.msra.mxu3 %v8908_v17  ;;  %v8913_v19 = vld [vmem:[#allocation92_spill] sm:$0xff] }
 0x4fb   : > { %v5170_v55 = vpop.eup %5169  ;;  %v6992_v14 = vpop.f32.mrf.mxu0  ;;  %v6996_v48 = vpack.c.bf16 %v5168_v39, %v5164_v30  ;;  %v8916_v30 = vld [vmem:[#allocation67_spill] sm:$0xff] }
 0x4fc   : > { %8909 = vst [vmem:[#allocation26_spill] sm:$0xff] %v6992_v14  ;;  %5175 = vpow2.f32 %v2198_v18  ;;  %v6998_v13 = vpop.f32.mrf.mxu1  ;;  %v7000_v21 = vpack.c.bf16 %v5170_v55, %v5166_v31  ;;  %v5172_v41 = vpop.eup %5171  ;;  %v8918_v55 = vld [vmem:[#allocation69_spill] sm:$0xff] }
 0x4fd   : > { %8912 = vst [vmem:[#allocation23_spill] sm:$0xff] %v6998_v13  ;;  %5177 = vpow2.f32 %v2200_v57  ;;  %2500 = vmax.xlane.f32.xlu2 %v2499_v42  ;;  %v7006_v18 = vpop.trf.xlu2  ;;  %v5174_v58 = vpop.eup %5173  ;;  %v8920_v42 = vld [vmem:[#allocation110_spill] sm:$0xff] }
 0x4fe   : > { %8917 = vst [vmem:[#allocation27_spill] sm:$0xff] %v7006_v18  ;;  %5179 = vpow2.f32 %v2202_v6 }
 0x4ff   : > { %v2123_v5 = vpop.xlane.xlu1 %2122  ;;  %5181 = vpow2.f32 %v2204_v8 }
 0x500   : > { %v2164_v44 = vsub.f32 %v8915_v53, %v2123_v5  ;;  %v2165_v39 = vsub.f32 %v8916_v30, %v2123_v5  ;;  %v8921_v5 = vld [vmem:[#allocation109_spill] sm:$0xff] }
 0x501   : > { %1544 = vmatpush.bf16.xpose.msrb.mxu2 %v6810_v4  ;;  %v8914_v4 = vld [vmem:[#allocation91_spill] sm:$0xff]  ;;  %v2505_v30 = vmax.f32 %v8921_v5, %v8920_v42 }
 0x502   : > { %1557 = vmatpush.bf16.xpose.msrb.mxu3 %v6814_v3  ;;  %v2151_v49 = vmax.f32 %v8914_v4, %v8913_v19  ;;  %v2126_v3 = vpop.xlane.xlu0 %2125  ;;  %v5176_v31 = vpop.eup %5175  ;;  %v2206_v19 = vmul.f32 1.442695, %v2164_v44  ;;  %v2208_v57 = vmul.f32 1.442695, %v2165_v39  ;;  %v8924_v39 = vld [vmem:[#allocation94_spill] sm:$0xff] }
 0x503   : > { %v2166_v26 = vsub.f32 %v8918_v55, %v2126_v3  ;;  %v5178_v35 = vpop.eup %5177  ;;  %v7012_v53 = vpop.f32.mrf.mxu0  ;;  %v7016_v18 = vpack.c.bf16 %v5176_v31, %v5172_v41  ;;  %v8927_v31 = vld [vmem:[#allocation71_spill] sm:$0xff]  ;;  %v8932_v4 = vld [vmem:[#allocation114_spill] sm:$0xff] }
 0x504   : > { %2152 = vmax.xlane.f32.xlu1 %v2151_v49  ;;  %v2167_v49 = vsub.f32 %v8919_v16, %v2126_v3  ;;  %5183 = vpow2.f32 %v2206_v19  ;;  %v7018_v6 = vpop.f32.mrf.mxu1  ;;  %v7020_v44 = vpack.c.bf16 %v5178_v35, %v5174_v58  ;;  %v8926_v3 = vld [vmem:[#allocation95_spill] sm:$0xff]  ;;  %v5180_v19 = vpop.eup %5179  ;;  %v8928_v58 = vld [vmem:[#allocation72_spill] sm:$0xff] }
 0x505   : > { %8922 = vst [vmem:[#allocation24_spill] sm:$0xff] %v7016_v18  ;;  %5185 = vpow2.f32 %v2208_v57  ;;  %2506 = vmax.xlane.f32.xlu2 %v2505_v30  ;;  %v2210_v8 = vmul.f32 1.442695, %v2166_v26  ;;  %v7031_v26 = vpop.trf.xlu2 }
 0x506   : > { %8923 = vst [vmem:[#allocation25_spill] sm:$0xff] %v7020_v44  ;;  %4780 = vmatmul.msk.bf16.gmra.mxu0 %vm1223_vm10, %v8926_v3  ;;  %v5182_v44 = vpop.eup %5181 }
 0x507   : > { %4788 = vmatmul.msk.bf16.gmra.mxu1 %vm1223_vm10, %v8926_v3  ;;  %v2129_v41 = vpop.xlane.xlu1 %2128  ;;  %5187 = vpow2.f32 %v2210_v8  ;;  %8929 = vst [vmem:[#allocation85_spill] sm:$0xff] %v7031_v26 }
 0x508   : > { %v2168_v16 = vsub.f32 %v8927_v31, %v2129_v41  ;;  %v2169_v35 = vsub.f32 %v8928_v58, %v2129_v41 }
 0x509   : > { %1545 = vmatpush.bf16.xpose.msrb.mxu2 %v6833_v20  ;;  %v8925_v20 = vld [vmem:[#allocation93_spill] sm:$0xff] }
 0x50a   : > { %1558 = vmatpush.bf16.xpose.msrb.mxu3 %v6835_v60  ;;  %v2484_v55 = vmax.f32 %v8925_v20, %v8924_v39  ;;  %v2212_v60 = vmul.f32 1.442695, %v2167_v49  ;;  %v5184_v18 = vpop.eup %5183  ;;  %v2214_v57 = vmul.f32 1.442695, %v2168_v16  ;;  %v2216_v30 = vmul.f32 1.442695, %v2169_v35 }
 0x50b   : > { %v5186_v49 = vpop.eup %5185  ;;  %v7034_v3 = vpop.f32.mrf.mxu0  ;;  %v7038_v42 = vpack.c.bf16 %v5184_v18, %v5180_v19  ;;  %v8936_v16 = vld [vmem:[#allocation97_spill] sm:$0xff] }
 0x50c   : > { %2485 = vmax.xlane.f32.xlu1 %v2484_v55  ;;  %5189 = vpow2.f32 %v2212_v60  ;;  %8930 = vst [vmem:[#allocation21_spill] sm:$0xff] %v7034_v3  ;;  %v8931_v55 = vld [vmem:[#allocation115_spill] sm:$0xff]  ;;  %v7040_v41 = vpop.f32.mrf.mxu1  ;;  %v7042_v8 = vpack.c.bf16 %v5186_v49, %v5182_v44  ;;  %v8939_v44 = vld [vmem:[#allocation57_spill] sm:$0xff] }
 0x50d   : > { %v2511_v31 = vmax.f32 %v8932_v4, %v8931_v55  ;;  %8933 = vst [vmem:[#allocation22_spill] sm:$0xff] %v7038_v42  ;;  %5191 = vpow2.f32 %v2214_v57  ;;  %v8940_v57 = vld [vmem:[#allocation56_spill] sm:$0xff]  ;;  %v8944_v42 = vld [vmem:[#allocation103_spill] sm:$0xff] }
 0x50e   : > { %8934 = vst [vmem:[#allocation90_spill] sm:$0xff] %v7040_v41  ;;  %5193 = vpow2.f32 %v2216_v30  ;;  %v2517_v49 = vmax.f32 %v8940_v57, %v8939_v44 }
 0x50f   : > { %8935 = vst [vmem:[#allocation81_spill] sm:$0xff] %v7042_v8  ;;  %2512 = vmax.xlane.f32.xlu2 %v2511_v31  ;;  %v7046_v60 = vpop.xlane.xlu1 %2134  ;;  %v7058_v31 = vpop.trf.xlu2 }
 0x510   : > { %8938 = vst [vmem:[#allocation82_spill] sm:$0xff] %v7046_v60  ;;  %v8945_v60 = vld [vmem:[#allocation102_spill] sm:$0xff] }
 0x511   : > { %1546 = vmatpush.bf16.xpose.msrb.mxu2 %v6851_v51  ;;  %v8937_v51 = vld [vmem:[#allocation96_spill] sm:$0xff]  ;;  %8942 = vst [vmem:[#allocation67_spill] sm:$0xff] %v7058_v31  ;;  %v2496_v55 = vmax.f32 %v8945_v60, %v8944_v42 }
 0x512   : > { %1559 = vmatpush.bf16.xpose.msrb.mxu3 %v6855_v40  ;;  %v2490_v58 = vmax.f32 %v8937_v51, %v8936_v16  ;;  %v5188_v40 = vpop.eup %5187 }
 0x513   : > { %v5190_v35 = vpop.eup %5189  ;;  %v7050_v19 = vpop.f32.mrf.mxu0 }
 0x514   : > { %2491 = vmax.xlane.f32.xlu1 %v2490_v58  ;;  %v5192_v26 = vpop.eup %5191  ;;  %v7056_v30 = vpop.f32.mrf.mxu1 }
 0x515   : > { %v5194_v18 = vpop.eup %5193  ;;  %v7054_v8 = vpack.c.bf16 %v5192_v26, %v5188_v40  ;;  %v2523_v40 = vmax.f32 %v6800_v37, %v6802_v10  ;;  %v2529_v10 = vmax.f32 %v6839_v29, %v6841_v27  ;;  %v8953_v37 = vld [vmem:[#allocation112_spill] sm:$0xff]  ;;  %v8960_v29 = vld [vmem:[#allocation53_spill] sm:$0xff] }
 0x516   : > { %v7060_v58 = vpack.c.bf16 %v5194_v18, %v5190_v35  ;;  %v8948_v18 = vld [vmem:[#allocation107_spill] sm:$0xff] }
 0x517   : > { %8941 = vst [vmem:[#allocation66_spill] sm:$0xff] %v7054_v8  ;;  %2518 = vmax.xlane.f32.xlu2 %v2517_v49  ;;  %v8949_v49 = vld [vmem:[#allocation62_spill] sm:$0xff] }
 0x518   : > { %8943 = vst [vmem:[#allocation69_spill] sm:$0xff] %v7060_v58  ;;  %v2502_v31 = vmax.f32 %v8949_v49, %v8948_v18 }
 0x519   : > { %1547 = vmatpush.bf16.xpose.msrb.mxu2 %v6532_v34  ;;  %v8946_v34 = vld [vmem:[#allocation100_spill] sm:$0xff] }
 0x51a   : > { %1560 = vmatpush.bf16.xpose.msrb.mxu3 %v6534_v36  ;;  %4781 = vmatmul.msk.bf16.gmra.mxu0 %vm1223_vm10, %v8946_v34  ;;  %v7068_v36 = vpop.xlane.xlu1 %2140 }
 0x51b   : > { %4789 = vmatmul.msk.bf16.gmra.mxu1 %vm1223_vm10, %v8946_v34  ;;  %8947 = vst [vmem:[#allocation70_spill] sm:$0xff] %v7068_v36  ;;  %v7072_v26 = vpop.f32.mrf.mxu0  ;;  %v8950_v34 = vld [vmem:[#allocation7_spill] sm:$0xff]  ;;  %v8951_v36 = vld [vmem:[#allocation8_spill] sm:$0xff] }
 0x51c   : > { %2497 = vmax.xlane.f32.xlu1 %v2496_v55  ;;  %v7076_v35 = vpop.f32.mrf.mxu1 }
 0x51e   : > { %v870_v58 = vpop.permute.xlu2 %869 }
 0x51f   : > { %2524 = vmax.xlane.f32.xlu2 %v2523_v40  ;;  %v1051_v8 = vadd.f32 %v8950_v34, %v870_v58  ;;  %v1120_v55 = vadd.f32 %v8951_v36, %v870_v58  ;;  %v8954_v34 = vld [vmem:[#allocation111_spill] sm:$0xff]  ;;  %v8955_v58 = vld [vmem:[#allocation101_spill] sm:$0xff]  ;;  %v8956_v36 = vld [vmem:[#allocation48_spill] sm:$0xff] }
 0x520   : > { %v2508_v57 = vmax.f32 %v8954_v34, %v8953_v37  ;;  %v4655_v34 = vld [vmem:[#allocation2 + $0x80] sm:$0xf] }
 0x521   : > { %1548 = vmatpush.bf16.xpose.msrb.mxu2 %v6906_v47  ;;  %v1154_v47 = vpack.c.bf16 %v1120_v55, %v1051_v8  ;;  %v8957_v8 = vld [vmem:[#allocation108_spill] sm:$0xff] }
 0x522   : > { %1561 = vmatpush.bf16.xpose.msrb.mxu3 %v6910_v25  ;;  %v7082_v44 = vpop.xlane.xlu1 %2146 }
 0x523   : > { %8952 = vst [vmem:[#allocation94_spill] sm:$0xff] %v7082_v44  ;;  %v7086_v25 = vpop.f32.mrf.mxu0 }
 0x524   : > { %2503 = vmax.xlane.f32.xlu1 %v2502_v31  ;;  %1178 = vst [vmem:[#allocation2 + $0x88] sm:$0xff] %v1154_v47  ;;  %v7090_v40 = vpop.f32.mrf.mxu1  ;;  %v1796_v31 = vsub.f32 %v8956_v36, %v8955_v58  ;;  %v8959_v47 = vld [vmem:[#allocation52_spill] sm:$0xff] }
 0x525   : > { %v1798_v27 = vsub.f32 %v8959_v47, %v6808_v52  ;;  %v8961_v47 = vld [vmem:[#allocation117_spill] sm:$0xff] }
 0x526   : > { %v1852_v37 = vmul.f32 1.442695, %v1796_v31 }
 0x527   : > { %2530 = vmax.xlane.f32.xlu2 %v2529_v10  ;;  %v1799_v10 = vsub.f32 %v8960_v29, %v6808_v52  ;;  %v4925_v52 = vld [vmem:[#allocation2 + $0x84] sm:$0xf]  ;;  %v1856_v31 = vmul.f32 1.442695, %v1798_v27  ;;  %v8963_v27 = vld [vmem:[#allocation46_spill] sm:$0xff] }
 0x528   : > { %5195 = vpow2.f32 %v1852_v37  ;;  %v8967_v37 = vld [vmem:[#allocation104_spill] sm:$0xff] }
 0x529   : > { %1549 = vmatpush.bf16.xpose.msrb.mxu2 %v6934_v32  ;;  %v8958_v32 = vld [vmem:[#allocation49_spill] sm:$0xff]  ;;  %v1858_v49 = vmul.f32 1.442695, %v1799_v10  ;;  %v8966_v10 = vld [vmem:[#allocation47_spill] sm:$0xff] }
 0x52a   : > { %1562 = vmatpush.bf16.xpose.msrb.mxu3 %v6938_v2  ;;  %4782 = vmatmul.msk.bf16.gmra.mxu0 %vm1223_vm10, %v8957_v8  ;;  %v1797_v2 = vsub.f32 %v8958_v32, %v8955_v58  ;;  %v2108_v55 = vpop.xlane.xlu1 %2107  ;;  %v2869_v58 = vmax.f32 %v6896_v7, %v6898_v61 }
 0x52b   : > { %4790 = vmatmul.msk.bf16.gmra.mxu1 %vm1223_vm10, %v8957_v8  ;;  %v2154_v36 = vsub.f32 %v8857_v59, %v2108_v55  ;;  %v4926_v44 = vld [vmem:[#allocation2 + $0x84] sm:$0xf0]  ;;  %v2155_v8 = vsub.f32 %v8856_v12, %v2108_v55  ;;  %v4657_v29 = vld [vmem:[#allocation2 + $0x88] sm:$0xf0] }
 0x52c   : > { %2509 = vmax.xlane.f32.xlu1 %v2508_v57  ;;  %v1854_v4 = vmul.f32 1.442695, %v1797_v2  ;;  %v7112_v57 = vpop.f32.mrf.mxu0  ;;  %v7114_v32 = vor.u32 %v4926_v44, %v4655_v34  ;;  %v7116_v59 = vpop.f32.mrf.mxu1  ;;  %v8962_v2 = vld [vmem:[#allocation116_spill] sm:$0xff]  ;;  %v1794_v34 = vsub.f32 %v8963_v27, %v6831_v22  ;;  %v2875_v27 = vmax.f32 %v6946_v63, %v6952_v62  ;;  %v8978_v63 = vld [vmem:[#allocation38_spill] sm:$0xff] }
 0x52d   : > { %v2514_v18 = vmax.f32 %v8962_v2, %v8961_v47  ;;  %v2186_v12 = vmul.f32 1.442695, %v2154_v36  ;;  %v8964_v55 = vld [vmem:[#allocation60_spill] sm:$0xff]  ;;  %v8968_v36 = vld [vmem:[#allocation42_spill] sm:$0xff] }
 0x52e   : > { %1524 = vmatmul.bf16.vlgmr.msra.gmra.mxu2 %v7114_v32  ;;  %5197 = vpow2.f32 %v1854_v4  ;;  %v1792_v7 = vsub.f32 %v8968_v36, %v8967_v37  ;;  %v8976_v36 = vld [vmem:[#allocation113_spill] sm:$0xff] }
 0x52f   : > { %2870 = vmax.xlane.f32.xlu2 %v2869_v58  ;;  %5199 = vpow2.f32 %v1856_v31  ;;  %v1795_v58 = vsub.f32 %v8966_v10, %v6831_v22 }
 0x530   : > { %5201 = vpow2.f32 %v1858_v49  ;;  %v8970_v49 = vld [vmem:[#allocation59_spill] sm:$0xff] }
 0x531   : > { %1550 = vmatpush.bf16.xpose.msrb.mxu2 %v6958_v45  ;;  %v7118_v45 = vor.u32 %v4925_v52, %v4657_v29  ;;  %v8965_v29 = vld [vmem:[#allocation61_spill] sm:$0xff]  ;;  %5203 = vpow2.f32 %v2186_v12  ;;  %v8972_v12 = vld [vmem:[#allocation58_spill] sm:$0xff] }
 0x532   : > { %1563 = vmatpush.bf16.xpose.msrb.mxu3 %v6962_v23  ;;  %v2188_v23 = vmul.f32 1.442695, %v2155_v8  ;;  %v2111_v44 = vpop.xlane.xlu1 %2110 }
 0x533   : > { %1538 = vmatmul.bf16.vlgmr.msra.gmra.mxu3 %v7118_v45  ;;  %v2156_v52 = vsub.f32 %v8964_v55, %v2111_v44  ;;  %v2157_v61 = vsub.f32 %v8965_v29, %v2111_v44  ;;  %v5196_v44 = vpop.eup %5195  ;;  %v1848_v55 = vmul.f32 1.442695, %v1794_v34  ;;  %v8975_v29 = vld [vmem:[#allocation54_spill] sm:$0xff] }
 0x534   : > { %2515 = vmax.xlane.f32.xlu1 %v2514_v18  ;;  %v8969_v18 = vld [vmem:[#allocation43_spill] sm:$0xff]  ;;  %5205 = vpow2.f32 %v2188_v23  ;;  %v7139_v22 = vpop.f32.mrf.mxu0 }
 0x535   : > { %v2190_v4 = vmul.f32 1.442695, %v2156_v52  ;;  %v2192_v8 = vmul.f32 1.442695, %v2157_v61  ;;  %v1793_v31 = vsub.f32 %v8969_v18, %v8967_v37  ;;  %8971 = vst [vmem:[#allocation93_spill] sm:$0xff] %v7139_v22  ;;  %v7142_v61 = vpop.f32.mrf.mxu1  ;;  %v8974_v52 = vld [vmem:[#allocation55_spill] sm:$0xff] }
 0x536   : > { %8973 = vst [vmem:[#allocation95_spill] sm:$0xff] %v7142_v61  ;;  %v2520_v10 = vmax.f32 %v8975_v29, %v8974_v52  ;;  %v1850_v37 = vmul.f32 1.442695, %v1795_v58  ;;  %v8979_v58 = vld [vmem:[#allocation39_spill] sm:$0xff] }
 0x537   : > { %5207 = vpow2.f32 %v2190_v4  ;;  %2876 = vmax.xlane.f32.xlu2 %v2875_v27  ;;  %v1846_v62 = vmul.f32 1.442695, %v1793_v31  ;;  %v8977_v4 = vld [vmem:[#allocation34_spill] sm:$0xff]  ;;  %v8980_v29 = vld [vmem:[#allocation63_spill] sm:$0xff]  ;;  %v8981_v31 = vld [vmem:[#allocation36_spill] sm:$0xff] }
 0x538   : > { %5209 = vpow2.f32 %v2192_v8  ;;  %v1790_v47 = vsub.f32 %v8978_v63, %v8977_v4  ;;  %v1791_v8 = vsub.f32 %v8979_v58, %v8977_v4  ;;  %v1788_v2 = vsub.f32 %v8981_v31, %v8980_v29 }
 0x539   : > { %1551 = vmatpush.bf16.xpose.msrb.mxu2 %v8907_v50  ;;  %v5198_v50 = vpop.eup %5197  ;;  %5211 = vpow2.f32 %v1848_v55  ;;  %v8982_v55 = vld [vmem:[#allocation37_spill] sm:$0xff]  ;;  %v2881_v63 = vmax.f32 %v6992_v14, %v6998_v13  ;;  %v8613_v58 = vmov 1065369472   ;;  %v2893_v13 = vmax.f32 %v7072_v26, %v7076_v35 }
 0x53a   : > { %1564 = vmatpush.bf16.xpose.msrb.mxu3 %v8908_v17  ;;  %v5200_v23 = vpop.eup %5199  ;;  %v1844_v17 = vmul.f32 1.442695, %v1792_v7  ;;  %4783 = vmatmul.msk.bf16.gmra.mxu0 %vm1223_vm10, %v8976_v36  ;;  %5213 = vpow2.f32 %v1850_v37 }
 0x53b   : > { %v5202_v18 = vpop.eup %5201  ;;  %4791 = vmatmul.msk.bf16.gmra.mxu1 %vm1223_vm10, %v8976_v36  ;;  %v7154_v7 = vpack.c.bf16 %v5200_v23, %v5196_v44  ;;  %v1789_v36 = vsub.f32 %v8982_v55, %v8980_v29  ;;  %v1840_v23 = vmul.f32 1.442695, %v1790_v47  ;;  %v1842_v29 = vmul.f32 1.442695, %v1791_v8 }
 0x53c   : > { %2521 = vmax.xlane.f32.xlu1 %v2520_v10  ;;  %v5204_v34 = vpop.eup %5203  ;;  %5215 = vpow2.f32 %v1844_v17  ;;  %v7158_v5 = vpack.c.bf16 %v5202_v18, %v5198_v50  ;;  %v7165_v37 = vpop.f32.mrf.mxu0  ;;  %v8988_v18 = vld [vmem:[#allocation44_spill] sm:$0xff]  ;;  %v1836_v55 = vmul.f32 1.442695, %v1788_v2  ;;  %v2887_v8 = vmax.f32 %v7034_v3, %v7040_v41 }
 0x53d   : > { %v5206_v52 = vpop.eup %5205  ;;  %5217 = vpow2.f32 %v1846_v62  ;;  %8983 = vst [vmem:[#allocation71_spill] sm:$0xff] %v7165_v37  ;;  %v7170_v17 = vpop.f32.mrf.mxu1  ;;  %v8987_v62 = vld [vmem:[#allocation45_spill] sm:$0xff]  ;;  %v1838_v47 = vmul.f32 1.442695, %v1789_v36 }
 0x53e   : > { %v5208_v27 = vpop.eup %5207  ;;  %8985 = vst [vmem:[#allocation97_spill] sm:$0xff] %v7170_v17  ;;  %v2526_v4 = vmax.f32 %v8988_v18, %v8987_v62  ;;  %5219 = vpow2.f32 %v1840_v23 }
 0x53f   : > { %v5210_v10 = vpop.eup %5209  ;;  %v7167_v44 = vpack.c.bf16 %v5208_v27, %v5204_v34  ;;  %2882 = vmax.xlane.f32.xlu2 %v2881_v63  ;;  %5221 = vpow2.f32 %v1842_v29  ;;  %v8991_v63 = vld [vmem:[#allocation35_spill] sm:$0xff]  ;;  %v8992_v29 = vld [vmem:[#allocation118_spill] sm:$0xff] }
 0x540   : > { %v7172_v50 = vpack.c.bf16 %v5210_v10, %v5206_v52  ;;  %1552 = vmatmul.bf16.vlgmr.msrb.gmra.mxu2 %v8613_v58  ;;  %v5212_v31 = vpop.eup %5211  ;;  %5223 = vpow2.f32 %v1836_v55  ;;  %v2866_v23 = vmax.f32 %v8991_v63, %v6870_v43 }
 0x541   : > { %1884 = vmatpush.bf16.xpose.msra.mxu2 %v8970_v49  ;;  %8984 = vst [vmem:[#allocation72_spill] sm:$0xff] %v7167_v44  ;;  %v5214_v34 = vpop.eup %5213  ;;  %5225 = vpow2.f32 %v1838_v47 }
 0x542   : > { %1898 = vmatpush.bf16.xpose.msra.mxu3 %v8972_v12  ;;  %8986 = vst [vmem:[#allocation96_spill] sm:$0xff] %v7172_v50  ;;  %v5216_v27 = vpop.eup %5215 }
 0x543   : > { %1565 = vmatmul.bf16.vlgmr.msrb.gmra.mxu3 %v8613_v58  ;;  %v5218_v44 = vpop.eup %5217  ;;  %v7178_v52 = vpack.c.bf16 %v5212_v31, %v5216_v27  ;;  %v8994_v27 = vld [vmem:[#allocation10_spill] sm:$0xff] }
 0x544   : > { %2527 = vmax.xlane.f32.xlu1 %v2526_v4  ;;  %v7180_v10 = vpack.c.bf16 %v5214_v34, %v5218_v44  ;;  %v7185_v2 = vpop.f32.mrf.mxu0  ;;  %v5220_v4 = vpop.eup %5219  ;;  %v8993_v34 = vld [vmem:[#allocation9_spill] sm:$0xff] }
 0x545   : > { %8989 = vst [vmem:[#allocation103_spill] sm:$0xff] %v7185_v2  ;;  %v7188_v36 = vpop.f32.mrf.mxu1  ;;  %v5222_v44 = vpop.eup %5221 }
 0x546   : > { %8990 = vst [vmem:[#allocation102_spill] sm:$0xff] %v7188_v36  ;;  %v5224_v55 = vpop.eup %5223 }
 0x547   : > { %2888 = vmax.xlane.f32.xlu2 %v2887_v8  ;;  %v875_v31 = vpop.permute.xlu1 %874  ;;  %v5226_v50 = vpop.eup %5225  ;;  %v7198_v41 = vpack.c.bf16 %v5220_v4, %v5224_v55 }
 0x548   : > { %v1054_v47 = vadd.f32 %v8993_v34, %v875_v31  ;;  %v1123_v58 = vadd.f32 %v8994_v27, %v875_v31  ;;  %v7200_v8 = vpack.c.bf16 %v5222_v44, %v5226_v50  ;;  %v2899_v50 = vmax.f32 %v7112_v57, %v7116_v59  ;;  %v8999_v44 = vld [vmem:[#allocation68_spill] sm:$0xff] }
 0x549   : > { %1885 = vmatpush.bf16.xpose.msra.mxu2 %v7154_v7  ;;  %v2884_v34 = vmax.f32 %v7012_v53, %v7018_v6 }
 0x54a   : > { %1899 = vmatpush.bf16.xpose.msra.mxu3 %v7158_v5  ;;  %4784 = vmatmul.msk.bf16.gmra.mxu0 %vm1223_vm10, %v8992_v29  ;;  %v1155_v3 = vpack.c.bf16 %v1123_v58, %v1054_v47 }
 0x54b   : > { %4792 = vmatmul.msk.bf16.gmra.mxu1 %vm1223_vm10, %v8992_v29  ;;  %v2872_v29 = vmax.f32 %v6922_v54, %v6926_v11 }
 0x54c   : > { %2867 = vmax.xlane.f32.xlu1 %v2866_v23  ;;  %v7205_v14 = vpop.f32.mrf.mxu0  ;;  %1179 = vst [vmem:[#allocation2 + $0x90] sm:$0xff] %v1155_v3  ;;  %v2878_v3 = vmax.f32 %v6968_v9, %v6974_v33 }
 0x54d   : > { %8995 = vst [vmem:[#allocation100_spill] sm:$0xff] %v7205_v14  ;;  %v7208_v23 = vpop.f32.mrf.mxu1 }
 0x54e   : > { %8996 = vst [vmem:[#allocation7_spill] sm:$0xff] %v7208_v23  ;;  %v2911_v27 = vmax.f32 %v7205_v14, %v7208_v23 }
 0x54f   : > { %2894 = vmax.xlane.f32.xlu2 %v2893_v13  ;;  %v2905_v13 = vmax.f32 %v7165_v37, %v7170_v17 }
 0x551   : > { %1886 = vmatpush.bf16.xpose.msra.mxu2 %v7178_v52 }
 0x552   : > { %1900 = vmatpush.bf16.xpose.msra.mxu3 %v7180_v10 }
 0x554   : > { %2873 = vmax.xlane.f32.xlu1 %v2872_v29  ;;  %v7215_v58 = vpop.f32.mrf.mxu0 }
 0x555   : > { %8997 = vst [vmem:[#allocation8_spill] sm:$0xff] %v7215_v58  ;;  %v7218_v4 = vpop.f32.mrf.mxu1 }
 0x556   : > { %8998 = vst [vmem:[#allocation101_spill] sm:$0xff] %v7218_v4 }
 0x557   : > { %2900 = vmax.xlane.f32.xlu2 %v2899_v50 }
 0x559   : > { %1887 = vmatpush.bf16.xpose.msra.mxu2 %v7198_v41 }
 0x55a   : > { %1901 = vmatpush.bf16.xpose.msra.mxu3 %v7200_v8  ;;  %4805 = vmatmul.msk.bf16.vlgmr.msra.gmra.mxu0 %vm1223_vm10, %v8999_v44 }
 0x55b   : > { %4813 = vmatmul.msk.bf16.vlgmr.msra.gmra.mxu1 %vm1223_vm10, %v8999_v44  ;;  %v9004_v44 = vld [vmem:[#allocation32_spill] sm:$0xff] }
 0x55c   : > { %2879 = vmax.xlane.f32.xlu1 %v2878_v3  ;;  %v7229_v31 = vpop.f32.mrf.mxu0  ;;  %v2890_v3 = vmax.f32 %v7050_v19, %v7056_v30 }
 0x55d   : > { %9000 = vst [vmem:[#allocation48_spill] sm:$0xff] %v7229_v31  ;;  %v7232_v55 = vpop.f32.mrf.mxu1 }
 0x55e   : > { %9001 = vst [vmem:[#allocation108_spill] sm:$0xff] %v7232_v55  ;;  %v7260_v55 = vpop.xlane.xlu0 %2131 }
 0x55f   : > { %2906 = vmax.xlane.f32.xlu2 %v2905_v13 }
 0x560   : > { %v2489_v47 = vpop.xlane.xlu2 %2488 }
 0x561   : > { %1888 = vmatpush.bf16.xpose.msra.mxu2 %v6924_v56 }
 0x562   : > { %1902 = vmatpush.bf16.xpose.msra.mxu3 %v6928_v0 }
 0x564   : > { %2885 = vmax.xlane.f32.xlu1 %v2884_v34  ;;  %v7239_v29 = vpop.f32.mrf.mxu0 }
 0x565   : > { %9002 = vst [vmem:[#allocation49_spill] sm:$0xff] %v7239_v29  ;;  %v7242_v50 = vpop.f32.mrf.mxu1 }
 0x566   : > { %9003 = vst [vmem:[#allocation52_spill] sm:$0xff] %v7242_v50 }
 0x567   : > { %2912 = vmax.xlane.f32.xlu2 %v2911_v27  ;;  %v2896_v27 = vmax.f32 %v7086_v25, %v7090_v40 }
 0x568   : > { %v2495_v13 = vpop.xlane.xlu2 %2494 }
 0x569   : > { %1889 = vmatpush.bf16.xpose.msra.mxu2 %v6950_v28 }
 0x56a   : > { %1903 = vmatpush.bf16.xpose.msra.mxu3 %v6956_v15  ;;  %4806 = vmatmul.msk.bf16.gmra.mxu0 %vm1223_vm10, %v9004_v44 }
 0x56b   : > { %4814 = vmatmul.msk.bf16.gmra.mxu1 %vm1223_vm10, %v9004_v44 }
 0x56c   : > { %2891 = vmax.xlane.f32.xlu1 %v2890_v3  ;;  %v7251_v34 = vpop.f32.mrf.mxu0 }
 0x56d   : > { %9005 = vst [vmem:[#allocation53_spill] sm:$0xff] %v7251_v34  ;;  %v7255_v31 = vpop.f32.mrf.mxu1 }
 0x56e   : > { %9006 = vst [vmem:[#allocation46_spill] sm:$0xff] %v7255_v31  ;;  %v2534_v31 = vsub.f32 %v6642_v38, %v2489_v47  ;;  %v779_v38 = vld [vmem:[%s8471_s2 + $0xa8] sm:$0xff] }
 0x570   : > { %v7262_v3 = vpop.xlane.xlu2 %2500  ;;  %v2568_v23 = vmul.f32 1.442695, %v2534_v31  ;;  %v777_v31 = vld [vmem:[%s8471_s2 + $0x98] sm:$0xff] }
 0x571   : > { %1890 = vmatpush.bf16.xpose.msra.mxu2 %v6972_v1 }
 0x572   : > { %1904 = vmatpush.bf16.xpose.msra.mxu3 %v6976_v24  ;;  %5227 = vpow2.f32 %v2568_v23 }
 0x574   : > { %2897 = vmax.xlane.f32.xlu1 %v2896_v27  ;;  %v7268_v34 = vpop.f32.mrf.mxu0  ;;  %v2535_v27 = vsub.f32 %v6644_v46, %v2489_v47 }
 0x575   : > { %9007 = vst [vmem:[#allocation60_spill] sm:$0xff] %v7268_v34 }
 0x576   : > { %v2570_v34 = vmul.f32 1.442695, %v2535_v27  ;;  %v9012_v27 = vld [vmem:[#allocation98_spill] sm:$0xff] }
 0x577   : > { %v7265_v44 = vpop.xlane.xlu1 %2152  ;;  %v2538_v14 = vsub.f32 %v9012_v27, %v2495_v13 }
 0x578   : > { %5229 = vpow2.f32 %v2570_v34  ;;  %v5228_v23 = vpop.eup %5227 }
 0x579   : > { %1891 = vmatpush.bf16.xpose.msra.mxu2 %v6996_v48 }
 0x57a   : > { %1905 = vmatpush.bf16.xpose.msra.mxu3 %v7000_v21 }
 0x57c   : > { %v7291_v47 = vpop.f32.mrf.mxu0 }
 0x57d   : > { %9010 = vst [vmem:[#allocation47_spill] sm:$0xff] %v7291_v47 }
 0x57e   : > { %v5230_v34 = vpop.eup %5229 }
 0x57f   : > { %889 = vperm.xlu2 %5013, %v779_v38   ;;  %879 = vperm.xlu0 %5014, %v777_v31  }
 0x580   : > { %1892 = vmatmul.bf16.vlgmr.msra.gmra.mxu2 %v7114_v32  ;;  %v9009_v32 = vld [vmem:[#allocation30_spill] sm:$0xff] }
 0x581   : > { %1912 = vmatpush.bf16.xpose.msrb.mxu2 %v8970_v49  ;;  %1906 = vmatmul.bf16.vlgmr.msra.gmra.mxu3 %v7118_v45  ;;  %v7271_v49 = vpop.f32.mrf.mxu1  ;;  %v7282_v45 = vpop.xlane.xlu2 %2506 }
 0x582   : > { %1925 = vmatpush.bf16.xpose.msrb.mxu3 %v8972_v12  ;;  %9008 = vst [vmem:[#allocation61_spill] sm:$0xff] %v7271_v49  ;;  %v2902_v12 = vmax.f32 %v7139_v22, %v7142_v61  ;;  %4807 = vmatmul.msk.bf16.gmra.mxu0 %vm1223_vm10, %v9009_v32  ;;  %v2486_v49 = vpop.xlane.xlu1 %2485 }
 0x583   : > { %4815 = vmatmul.msk.bf16.gmra.mxu1 %vm1223_vm10, %v9009_v32  ;;  %v2532_v46 = vsub.f32 %v8925_v20, %v2486_v49 }
 0x584   : > { %2903 = vmax.xlane.f32.xlu1 %v2902_v12  ;;  %v2908_v12 = vmax.f32 %v7185_v2, %v7188_v36  ;;  %v2576_v36 = vmul.f32 1.442695, %v2538_v14  ;;  %v7310_v38 = vpop.f32.mrf.mxu0  ;;  %v9016_v14 = vld [vmem:[#allocation105_spill] sm:$0xff] }
 0x585   : > { %v2564_v29 = vmul.f32 1.442695, %v2532_v46  ;;  %9014 = vst [vmem:[#allocation42_spill] sm:$0xff] %v7310_v38 }
 0x587   : > { %5231 = vpow2.f32 %v2564_v29 }
 0x589   : > { %1913 = vmatpush.bf16.xpose.msrb.mxu2 %v7154_v7  ;;  %v7284_v7 = vpop.xlane.xlu0 %2137  ;;  %v7296_v32 = vpop.f32.mrf.mxu1 }
 0x58a   : > { %1926 = vmatpush.bf16.xpose.msrb.mxu3 %v7158_v5  ;;  %v2533_v5 = vsub.f32 %v8924_v39, %v2486_v49  ;;  %9011 = vst [vmem:[#allocation104_spill] sm:$0xff] %v7296_v32  ;;  %v9013_v39 = vld [vmem:[#allocation99_spill] sm:$0xff]  ;;  %v2492_v50 = vpop.xlane.xlu1 %2491 }
 0x58b   : > { %v2539_v49 = vsub.f32 %v9013_v39, %v2495_v13  ;;  %v2536_v46 = vsub.f32 %v8937_v51, %v2492_v50 }
 0x58c   : > { %v2566_v20 = vmul.f32 1.442695, %v2533_v5  ;;  %2909 = vmax.xlane.f32.xlu1 %v2908_v12  ;;  %v2542_v5 = vsub.f32 %v9016_v14, %v7262_v3 }
 0x58d   : > { %v2578_v2 = vmul.f32 1.442695, %v2539_v49  ;;  %v5232_v13 = vpop.eup %5231  ;;  %v2572_v12 = vmul.f32 1.442695, %v2536_v46 }
 0x58e   : > { %5233 = vpow2.f32 %v2566_v20 }
 0x58f   : > { %5235 = vpow2.f32 %v2576_v36 }
 0x590   : > { %5237 = vpow2.f32 %v2578_v2 }
 0x591   : > { %1914 = vmatpush.bf16.xpose.msrb.mxu2 %v7178_v52  ;;  %v7304_v52 = vpop.xlane.xlu2 %2512  ;;  %v7306_v61 = vpop.xlane.xlu0 %2143  ;;  %5239 = vpow2.f32 %v2572_v12 }
 0x592   : > { %1927 = vmatpush.bf16.xpose.msrb.mxu3 %v7180_v10  ;;  %v2537_v10 = vsub.f32 %v8936_v16, %v2492_v50  ;;  %v7313_v29 = vpop.f32.mrf.mxu1  ;;  %v9017_v16 = vld [vmem:[#allocation106_spill] sm:$0xff]  ;;  %v9018_v50 = vld [vmem:[#allocation29_spill] sm:$0xff]  ;;  %v2498_v2 = vpop.xlane.xlu1 %2497 }
 0x593   : > { %9015 = vst [vmem:[#allocation43_spill] sm:$0xff] %v7313_v29  ;;  %v2543_v51 = vsub.f32 %v9017_v16, %v7262_v3  ;;  %4808 = vmatmul.msk.bf16.gmra.mxu0 %vm1223_vm10, %v9018_v50  ;;  %4816 = vmatmul.msk.bf16.gmra.mxu1 %vm1223_vm10, %v9018_v50  ;;  %v2540_v3 = vsub.f32 %v8945_v60, %v2498_v2  ;;  %v9061_v29 = vld [vmem:[#allocation78_spill] sm:$0xff] }
 0x594   : > { %v2574_v31 = vmul.f32 1.442695, %v2537_v10  ;;  %v5234_v27 = vpop.eup %5233  ;;  %v2541_v46 = vsub.f32 %v8944_v42, %v2498_v2  ;;  %v7332_v10 = vpop.f32.mrf.mxu0 }
 0x595   : > { %v7326_v36 = vpack.c.bf16 %v5230_v34, %v5234_v27  ;;  %v2586_v39 = vmul.f32 1.442695, %v2543_v51  ;;  %v5236_v49 = vpop.eup %5235  ;;  %9021 = vst [vmem:[#allocation113_spill] sm:$0xff] %v7332_v10  ;;  %v2580_v16 = vmul.f32 1.442695, %v2540_v3  ;;  %v9025_v51 = vld [vmem:[#allocation110_spill] sm:$0xff] }
 0x596   : > { %5241 = vpow2.f32 %v2574_v31  ;;  %v2582_v60 = vmul.f32 1.442695, %v2541_v46  ;;  %v2547_v50 = vsub.f32 %v9025_v51, %v7282_v45  ;;  %v9029_v46 = vld [vmem:[#allocation91_spill] sm:$0xff] }
 0x597   : > { %9020 = vst [vmem:[#allocation58_spill] sm:$0xff] %v7326_v36  ;;  %v9028_v36 = vld [vmem:[#allocation88_spill] sm:$0xff] }
 0x599   : > { %1915 = vmatpush.bf16.xpose.msrb.mxu2 %v7198_v41  ;;  %v7322_v41 = vpack.c.bf16 %v5228_v23, %v5232_v13  ;;  %v7328_v20 = vpop.xlane.xlu2 %2518  ;;  %v5238_v23 = vpop.eup %5237  ;;  %v9022_v13 = vld [vmem:[#allocation73_spill] sm:$0xff] }
 0x59a   : > { %1928 = vmatpush.bf16.xpose.msrb.mxu3 %v7200_v8  ;;  %v2584_v8 = vmul.f32 1.442695, %v2542_v5  ;;  %v2170_v14 = vsub.f32 %v9022_v13, %v7260_v55  ;;  %v7337_v34 = vpop.f32.mrf.mxu1  ;;  %v5240_v12 = vpop.eup %5239  ;;  %v9024_v5 = vld [vmem:[#allocation109_spill] sm:$0xff] }
 0x59b   : > { %9019 = vst [vmem:[#allocation59_spill] sm:$0xff] %v7322_v41  ;;  %v2150_v31 = vpop.xlane.xlu0 %2149  ;;  %v2546_v27 = vsub.f32 %v9024_v5, %v7282_v45  ;;  %v7344_v2 = vpack.c.bf16 %v5236_v49, %v5240_v12  ;;  %v2594_v5 = vmul.f32 1.442695, %v2547_v50  ;;  %v9030_v45 = vld [vmem:[#allocation92_spill] sm:$0xff]  ;;  %v9031_v12 = vld [vmem:[#allocation62_spill] sm:$0xff] }
 0x59c   : > { %9023 = vst [vmem:[#allocation34_spill] sm:$0xff] %v7337_v34  ;;  %5243 = vpow2.f32 %v2584_v8  ;;  %v5242_v42 = vpop.eup %5241  ;;  %v2218_v13 = vmul.f32 1.442695, %v2170_v14  ;;  %v2182_v8 = vsub.f32 %v9028_v36, %v2150_v31  ;;  %v2185_v49 = vsub.f32 %v9030_v45, %v7265_v44  ;;  %v7357_v14 = vpop.f32.mrf.mxu0 }
 0x59d   : > { %5245 = vpow2.f32 %v2586_v39  ;;  %9026 = vst [vmem:[#allocation38_spill] sm:$0xff] %v7344_v2  ;;  %v2592_v3 = vmul.f32 1.442695, %v2546_v27  ;;  %v2504_v39 = vpop.xlane.xlu1 %2503 }
 0x59e   : > { %5247 = vpow2.f32 %v2580_v16  ;;  %v2544_v16 = vsub.f32 %v9031_v12, %v2504_v39  ;;  %9033 = vst [vmem:[#allocation63_spill] sm:$0xff] %v7357_v14  ;;  %v2242_v27 = vmul.f32 1.442695, %v2182_v8 }
 0x59f   : > { %5249 = vpow2.f32 %v2582_v60  ;;  %v9034_v60 = vld [vmem:[#allocation89_spill] sm:$0xff] }
 0x5a0   : > { %5251 = vpow2.f32 %v2218_v13  ;;  %v2183_v51 = vsub.f32 %v9034_v60, %v2150_v31  ;;  %v2588_v45 = vmul.f32 1.442695, %v2544_v16  ;;  %v778_v13 = vld [vmem:[%s8471_s2 + $0xa0] sm:$0xff] }
 0x5a1   : > { %1916 = vmatpush.bf16.xpose.msrb.mxu2 %v6924_v56  ;;  %v7346_v56 = vpack.c.bf16 %v5238_v23, %v5242_v42  ;;  %v7349_v41 = vpop.xlane.xlu2 %2524  ;;  %v9032_v23 = vld [vmem:[#allocation107_spill] sm:$0xff]  ;;  %5253 = vpow2.f32 %v2592_v3 }
 0x5a2   : > { %1929 = vmatpush.bf16.xpose.msrb.mxu3 %v6928_v0  ;;  %v2184_v0 = vsub.f32 %v9029_v46, %v7265_v44  ;;  %v5244_v22 = vpop.eup %5243  ;;  %v2545_v42 = vsub.f32 %v9032_v23, %v2504_v39  ;;  %v7361_v46 = vpop.f32.mrf.mxu1  ;;  %5255 = vpow2.f32 %v2594_v5  ;;  %v9038_v23 = vld [vmem:[#allocation64_spill] sm:$0xff]  ;;  %v9041_v16 = vld [vmem:[#allocation83_spill] sm:$0xff] }
 0x5a3   : > { %9027 = vst [vmem:[#allocation39_spill] sm:$0xff] %v7346_v56  ;;  %v5246_v36 = vpop.eup %5245  ;;  %v9036_v56 = vld [vmem:[#allocation114_spill] sm:$0xff]  ;;  %4809 = vmatmul.msk.bf16.gmra.mxu0 %vm1223_vm10, %v9038_v23  ;;  %5257 = vpow2.f32 %v2588_v45  ;;  %4817 = vmatmul.msk.bf16.gmra.mxu1 %vm1223_vm10, %v9038_v23  ;;  %v7411_v17 = vpop.trf.xlu0 }
 0x5a4   : > { %9035 = vst [vmem:[#allocation36_spill] sm:$0xff] %v7361_v46  ;;  %v5248_v50 = vpop.eup %5247  ;;  %v2550_v44 = vsub.f32 %v9036_v56, %v7304_v52  ;;  %v2590_v12 = vmul.f32 1.442695, %v2545_v42  ;;  %v2246_v31 = vmul.f32 1.442695, %v2184_v0  ;;  %v2178_v42 = vsub.f32 %v9041_v16, %v7306_v61  ;;  %v9046_v16 = vld [vmem:[#allocation112_spill] sm:$0xff] }
 0x5a5   : > { %v5250_v39 = vpop.eup %5249  ;;  %v7373_v3 = vpack.c.bf16 %v5244_v22, %v5248_v50  ;;  %v2248_v56 = vmul.f32 1.442695, %v2185_v49  ;;  %v2244_v0 = vmul.f32 1.442695, %v2183_v51  ;;  %884 = vperm.xlu1 %5012, %v778_v13   ;;  %v9042_v22 = vld [vmem:[#allocation94_spill] sm:$0xff]  ;;  %v9045_v51 = vld [vmem:[#allocation111_spill] sm:$0xff]  ;;  %v7391_v13 = vpop.f32.mrf.mxu0 }
 0x5a6   : > { %5259 = vpow2.f32 %v2590_v12  ;;  %v7383_v60 = vpop.eup %5251  ;;  %v9043_v49 = vld [vmem:[#allocation86_spill] sm:$0xff]  ;;  %9047 = vst [vmem:[#allocation44_spill] sm:$0xff] %v7391_v13 }
 0x5a7   : > { %9039 = vst [vmem:[#allocation37_spill] sm:$0xff] %v7373_v3  ;;  %5261 = vpow2.f32 %v2242_v27  ;;  %v2180_v50 = vsub.f32 %v9043_v49, %v9042_v22  ;;  %v2234_v3 = vmul.f32 1.442695, %v2178_v42 }
 0x5a8   : > { %5263 = vpow2.f32 %v2246_v31 }
 0x5a9   : > { %1917 = vmatpush.bf16.xpose.msrb.mxu2 %v6950_v28  ;;  %v9037_v28 = vld [vmem:[#allocation115_spill] sm:$0xff]  ;;  %v7381_v5 = vpop.xlane.xlu2 %2530  ;;  %5265 = vpow2.f32 %v2248_v56  ;;  %v9050_v56 = vld [vmem:[#allocation56_spill] sm:$0xff] }
 0x5aa   : > { %1930 = vmatpush.bf16.xpose.msrb.mxu3 %v6956_v15  ;;  %v2551_v8 = vsub.f32 %v9037_v28, %v7304_v52  ;;  %v7377_v15 = vpack.c.bf16 %v5246_v36, %v5250_v39  ;;  %v2600_v52 = vmul.f32 1.442695, %v2550_v44  ;;  %v2510_v28 = vpop.xlane.xlu1 %2509  ;;  %v5254_v36 = vpop.eup %5253  ;;  %v9044_v39 = vld [vmem:[#allocation87_spill] sm:$0xff]  ;;  %v9048_v44 = vld [vmem:[#allocation84_spill] sm:$0xff]  ;;  %5267 = vpow2.f32 %v2244_v0 }
 0x5ab   : > { %v2181_v23 = vsub.f32 %v9044_v39, %v9042_v22  ;;  %v2548_v12 = vsub.f32 %v9045_v51, %v2510_v28  ;;  %v2549_v2 = vsub.f32 %v9046_v16, %v2510_v28  ;;  %v5256_v27 = vpop.eup %5255  ;;  %v7396_v31 = vpop.f32.mrf.mxu1  ;;  %v2554_v22 = vsub.f32 %v9050_v56, %v7328_v20  ;;  %v9054_v56 = vld [vmem:[#allocation77_spill] sm:$0xff] }
 0x5ac   : > { %9040 = vst [vmem:[#allocation45_spill] sm:$0xff] %v7377_v15  ;;  %v2602_v45 = vmul.f32 1.442695, %v2551_v8  ;;  %v2179_v15 = vsub.f32 %v9048_v44, %v7306_v61  ;;  %v5258_v8 = vpop.eup %5257  ;;  %5269 = vpow2.f32 %v2600_v52  ;;  %v2238_v51 = vmul.f32 1.442695, %v2180_v50  ;;  %v9051_v61 = vld [vmem:[#allocation57_spill] sm:$0xff] }
 0x5ad   : > { %9049 = vst [vmem:[#allocation35_spill] sm:$0xff] %v7396_v31  ;;  %v2596_v49 = vmul.f32 1.442695, %v2548_v12  ;;  %v2598_v39 = vmul.f32 1.442695, %v2549_v2  ;;  %v5260_v28 = vpop.eup %5259  ;;  %v2555_v42 = vsub.f32 %v9051_v61, %v7328_v20  ;;  %v7403_v0 = vpack.c.bf16 %v5254_v36, %v5258_v8  ;;  %v9055_v36 = vld [vmem:[#allocation70_spill] sm:$0xff] }
 0x5ae   : > { %5271 = vpow2.f32 %v2602_v45  ;;  %v2240_v16 = vmul.f32 1.442695, %v2181_v23  ;;  %v7405_v44 = vpack.c.bf16 %v5256_v27, %v5260_v28  ;;  %v2174_v12 = vsub.f32 %v9054_v56, %v7284_v7  ;;  %v9056_v8 = vld [vmem:[#allocation79_spill] sm:$0xff]  ;;  %v9057_v27 = vld [vmem:[#allocation80_spill] sm:$0xff] }
 0x5af   : > { %9052 = vst [vmem:[#allocation118_spill] sm:$0xff] %v7403_v0  ;;  %5273 = vpow2.f32 %v2596_v49  ;;  %v2236_v2 = vmul.f32 1.442695, %v2179_v15  ;;  %v2608_v45 = vmul.f32 1.442695, %v2554_v22  ;;  %v2176_v23 = vsub.f32 %v9056_v8, %v9055_v36  ;;  %v9058_v15 = vld [vmem:[#allocation116_spill] sm:$0xff] }
 0x5b0   : > { %9053 = vst [vmem:[#allocation9_spill] sm:$0xff] %v7405_v44  ;;  %5275 = vpow2.f32 %v2598_v39  ;;  %v2177_v49 = vsub.f32 %v9057_v27, %v9055_v36  ;;  %v2610_v28 = vmul.f32 1.442695, %v2555_v42  ;;  %v9059_v44 = vld [vmem:[#allocation117_spill] sm:$0xff]  ;;  %v2175_v8 = vsub.f32 %v9061_v29, %v7284_v7 }
 0x5b1   : > { %1918 = vmatpush.bf16.xpose.msrb.mxu2 %v6972_v1  ;;  %v5262_v1 = vpop.eup %5261  ;;  %5277 = vpow2.f32 %v2234_v3  ;;  %v7419_v3 = vpop.f32.mrf.mxu0  ;;  %v2226_v37 = vmul.f32 1.442695, %v2174_v12  ;;  %v2230_v29 = vmul.f32 1.442695, %v2176_v23  ;;  %v9065_v12 = vld [vmem:[#allocation27_spill] sm:$0xff] }
 0x5b2   : > { %1931 = vmatpush.bf16.xpose.msrb.mxu3 %v6976_v24  ;;  %v5264_v52 = vpop.eup %5263  ;;  %v7409_v24 = vpop.xlane.xlu2 %2870  ;;  %5279 = vpow2.f32 %v2238_v51  ;;  %9060 = vst [vmem:[#allocation10_spill] sm:$0xff] %v7419_v3 }
 0x5b3   : > { %v5266_v50 = vpop.eup %5265  ;;  %v2516_v61 = vpop.xlane.xlu1 %2515  ;;  %5281 = vpow2.f32 %v2240_v16  ;;  %v7421_v22 = vpack.c.bf16 %v5264_v52, %v5262_v1  ;;  %4810 = vmatmul.msk.bf16.gmra.mxu0 %vm1223_vm10, %v9065_v12  ;;  %4818 = vmatmul.msk.bf16.gmra.mxu1 %vm1223_vm10, %v9065_v12  ;;  %v9073_v12 = vld [vmem:[#allocation55_spill] sm:$0xff] }
 0x5b4   : > { %v5268_v20 = vpop.eup %5267  ;;  %v2552_v39 = vsub.f32 %v9058_v15, %v2516_v61  ;;  %v2553_v0 = vsub.f32 %v9059_v44, %v2516_v61  ;;  %5283 = vpow2.f32 %v2236_v2  ;;  %v7426_v51 = vpop.f32.mrf.mxu1  ;;  %v9063_v44 = vld [vmem:[#allocation50_spill] sm:$0xff] }
 0x5b5   : > { %v5270_v56 = vpop.eup %5269  ;;  %9062 = vst [vmem:[#allocation68_spill] sm:$0xff] %v7426_v51  ;;  %v7428_v42 = vpack.c.bf16 %v5266_v50, %v5268_v20  ;;  %5285 = vpow2.f32 %v2608_v45  ;;  %v2558_v36 = vsub.f32 %v9063_v44, %v7349_v41  ;;  %v2232_v45 = vmul.f32 1.442695, %v2177_v49  ;;  %v9070_v49 = vld [vmem:[#allocation75_spill] sm:$0xff]  ;;  %v9071_v44 = vld [vmem:[#allocation76_spill] sm:$0xff] }
 0x5b6   : > { %v5272_v38 = vpop.eup %5271  ;;  %v2604_v27 = vmul.f32 1.442695, %v2552_v39  ;;  %v2606_v1 = vmul.f32 1.442695, %v2553_v0  ;;  %5287 = vpow2.f32 %v2610_v28  ;;  %v2228_v20 = vmul.f32 1.442695, %v2175_v8 }
 0x5b7   : > { %v5274_v16 = vpop.eup %5273  ;;  %v9068_v28 = vld [vmem:[#allocation74_spill] sm:$0xff] }
 0x5b8   : > { %v5276_v7 = vpop.eup %5275  ;;  %v7439_v2 = vpack.c.bf16 %v5270_v56, %v5274_v16  ;;  %5289 = vpow2.f32 %v2604_v27  ;;  %v2171_v61 = vsub.f32 %v9068_v28, %v7260_v55  ;;  %v2616_v56 = vmul.f32 1.442695, %v2558_v36  ;;  %v9069_v39 = vld [vmem:[#allocation82_spill] sm:$0xff]  ;;  %v7460_v36 = vpop.trf.xlu0 }
 0x5b9   : > { %1919 = vmatpush.bf16.xpose.msrb.mxu2 %v6996_v48  ;;  %v9064_v48 = vld [vmem:[#allocation51_spill] sm:$0xff]  ;;  %v5278_v50 = vpop.eup %5277  ;;  %5291 = vpow2.f32 %v2606_v1  ;;  %v2172_v16 = vsub.f32 %v9070_v49, %v9069_v39  ;;  %v2173_v27 = vsub.f32 %v9071_v44, %v9069_v39  ;;  %v9072_v1 = vld [vmem:[#allocation54_spill] sm:$0xff] }
 0x5ba   : > { %1932 = vmatpush.bf16.xpose.msrb.mxu3 %v7000_v21  ;;  %v2559_v52 = vsub.f32 %v9064_v48, %v7349_v41  ;;  %9066 = vst [vmem:[#allocation32_spill] sm:$0xff] %v7439_v2  ;;  %v7443_v21 = vpack.c.bf16 %v5272_v38, %v5276_v7  ;;  %v5280_v0 = vpop.eup %5279  ;;  %v7445_v23 = vpop.xlane.xlu2 %2876  ;;  %5293 = vpow2.f32 %v2226_v37  ;;  %v9074_v2 = vmov 1065369472  }
 0x5bb   : > { %v5282_v41 = vpop.eup %5281  ;;  %5295 = vpow2.f32 %v2230_v29  ;;  %v2522_v7 = vpop.xlane.xlu1 %2521  ;;  %v7458_v55 = vpack.c.bf16 %v5280_v0, %v5278_v50  ;;  %v9076_v29 = vld [vmem:[#allocation40_spill] sm:$0xff]  ;;  %v2220_v44 = vmul.f32 1.442695, %v2171_v61  ;;  %v2222_v0 = vmul.f32 1.442695, %v2172_v16 }
 0x5bc   : > { %9067 = vst [vmem:[#allocation30_spill] sm:$0xff] %v7443_v21  ;;  %v5284_v15 = vpop.eup %5283  ;;  %v2618_v38 = vmul.f32 1.442695, %v2559_v52  ;;  %5297 = vpow2.f32 %v2232_v45  ;;  %v2556_v48 = vsub.f32 %v9072_v1, %v2522_v7  ;;  %v2557_v21 = vsub.f32 %v9073_v12, %v2522_v7  ;;  %v7456_v37 = vpop.f32.mrf.mxu0 }
 0x5bd   : > { %v5286_v8 = vpop.eup %5285  ;;  %9075 = vst [vmem:[#allocation98_spill] sm:$0xff] %v7456_v37  ;;  %5299 = vpow2.f32 %v2228_v20  ;;  %v2562_v52 = vsub.f32 %v9076_v29, %v7381_v5  ;;  %v7465_v45 = vpop.f32.mrf.mxu1  ;;  %v7467_v39 = vpack.c.bf16 %v5282_v41, %v5284_v15  ;;  %v9078_v20 = vld [vmem:[#allocation41_spill] sm:$0xff]  ;;  %v2224_v41 = vmul.f32 1.442695, %v2173_v27 }
 0x5be   : > { %v5288_v28 = vpop.eup %5287  ;;  %9077 = vst [vmem:[#allocation99_spill] sm:$0xff] %v7465_v45  ;;  %5301 = vpow2.f32 %v2616_v56  ;;  %v2612_v7 = vmul.f32 1.442695, %v2556_v48  ;;  %v2614_v1 = vmul.f32 1.442695, %v2557_v21  ;;  %v2563_v12 = vsub.f32 %v9078_v20, %v7381_v5  ;;  %v7479_v48 = vpop.f32.mrf.mxu2 }
 0x5bf   : > { %v5290_v49 = vpop.eup %5289  ;;  %5303 = vpow2.f32 %v2618_v38  ;;  %v2624_v56 = vmul.f32 1.442695, %v2562_v52  ;;  %v7481_v38 = vpop.f32.mrf.mxu3 }
 0x5c0   : > { %1920 = vmatmul.bf16.vlgmr.msrb.gmra.mxu2 %v9074_v2  ;;  %v5292_v50 = vpop.eup %5291  ;;  %v7473_v29 = vpack.c.bf16 %v5286_v8, %v5290_v49  ;;  %5305 = vpow2.f32 %v2612_v7  ;;  %v2626_v8 = vmul.f32 1.442695, %v2563_v12 }
 0x5c1   : > { %2276 = vmatpush.bf16.xpose.msra.mxu2 %v7421_v22  ;;  %1933 = vmatmul.bf16.vlgmr.msrb.gmra.mxu3 %v9074_v2  ;;  %v5294_v2 = vpop.eup %5293  ;;  %v7475_v15 = vpack.c.bf16 %v5288_v28, %v5292_v50  ;;  %5307 = vpow2.f32 %v2614_v1 }
 0x5c2   : > { %2290 = vmatpush.bf16.xpose.msra.mxu3 %v7428_v42  ;;  %9079 = vst [vmem:[#allocation105_spill] sm:$0xff] %v7473_v29  ;;  %v5296_v61 = vpop.eup %5295  ;;  %v7477_v21 = vpop.xlane.xlu2 %2882  ;;  %5309 = vpow2.f32 %v2220_v44 }
 0x5c3   : > { %9080 = vst [vmem:[#allocation106_spill] sm:$0xff] %v7475_v15  ;;  %v5298_v16 = vpop.eup %5297  ;;  %5311 = vpow2.f32 %v2222_v0  ;;  %v2528_v49 = vpop.xlane.xlu1 %2527  ;;  %v7487_v7 = vpack.c.bf16 %v5296_v61, %v5294_v2  ;;  %v9083_v0 = vld [vmem:[#allocation33_spill] sm:$0xff] }
 0x5c4   : > { %v5300_v5 = vpop.eup %5299  ;;  %5313 = vpow2.f32 %v2224_v41  ;;  %v2560_v27 = vsub.f32 %v8988_v18, %v2528_v49  ;;  %v2561_v28 = vsub.f32 %v8987_v62, %v2528_v49  ;;  %v7485_v52 = vpop.f32.mrf.mxu0  ;;  %v2916_v12 = vsub.f32 %v9083_v0, %v7409_v24  ;;  %v9085_v61 = vld [vmem:[#allocation65_spill] sm:$0xff] }
 0x5c5   : > { %v5302_v20 = vpop.eup %5301  ;;  %9081 = vst [vmem:[#allocation29_spill] sm:$0xff] %v7485_v52  ;;  %5315 = vpow2.f32 %v2624_v56  ;;  %v7489_v50 = vpop.f32.mrf.mxu1  ;;  %v7491_v44 = vpack.c.bf16 %v5298_v16, %v5300_v5  ;;  %v2917_v56 = vsub.f32 %v9085_v61, %v7409_v24  ;;  %v9086_v16 = vld [vmem:[#allocation85_spill] sm:$0xff] }
 0x5c6   : > { %v5304_v1 = vpop.eup %5303  ;;  %9082 = vst [vmem:[#allocation73_spill] sm:$0xff] %v7489_v50  ;;  %v2620_v29 = vmul.f32 1.442695, %v2560_v27  ;;  %v2622_v41 = vmul.f32 1.442695, %v2561_v28  ;;  %v3280_v18 = vmax.f32 %v7485_v52, %v7489_v50  ;;  %v7498_v62 = vpop.trf.xlu0  ;;  %5317 = vpow2.f32 %v2626_v8  ;;  %4811 = vmatmul.msk.bf16.gmra.mxu0 %vm1223_vm10, %v9086_v16  ;;  %4819 = vmatmul.msk.bf16.gmra.mxu1 %vm1223_vm10, %v9086_v16 }
 0x5c7   : > { %v5306_v15 = vpop.eup %5305  ;;  %9084 = vst [vmem:[#allocation109_spill] sm:$0xff] %v7498_v62  ;;  %v7513_v24 = vpop.f32.mrf.mxu2  ;;  %v2950_v61 = vmul.f32 1.442695, %v2916_v12 }
 0x5c8   : > { %v5308_v2 = vpop.eup %5307  ;;  %v7505_v5 = vpack.c.bf16 %v5302_v20, %v5306_v15  ;;  %5319 = vpow2.f32 %v2620_v29  ;;  %3281 = vmax.xlane.f32.xlu0 %v3280_v18  ;;  %v7515_v50 = vpop.f32.mrf.mxu3  ;;  %v2952_v20 = vmul.f32 1.442695, %v2917_v56  ;;  %v9090_v56 = vld [vmem:[#allocation31_spill] sm:$0xff] }
 0x5c9   : > { %2277 = vmatpush.bf16.xpose.msra.mxu2 %v7458_v55  ;;  %v5310_v49 = vpop.eup %5309  ;;  %v7509_v27 = vpack.c.bf16 %v5304_v1, %v5308_v2  ;;  %5321 = vpow2.f32 %v2622_v41  ;;  %v3259_v2 = vmax.f32 %v7291_v47, %v7296_v32 }
 0x5ca   : > { %2291 = vmatpush.bf16.xpose.msra.mxu3 %v7467_v39  ;;  %9087 = vst [vmem:[#allocation110_spill] sm:$0xff] %v7505_v5  ;;  %v5312_v28 = vpop.eup %5311  ;;  %v7511_v8 = vpop.xlane.xlu2 %2888  ;;  %5323 = vpow2.f32 %v2950_v61 }
 0x5cb   : > { %9088 = vst [vmem:[#allocation88_spill] sm:$0xff] %v7509_v27  ;;  %v5314_v0 = vpop.eup %5313  ;;  %v2868_v52 = vpop.xlane.xlu1 %2867  ;;  %v7522_v1 = vpack.c.bf16 %v5312_v28, %v7383_v60  ;;  %5325 = vpow2.f32 %v2952_v20  ;;  %v9091_v60 = vld [vmem:[#allocation28_spill] sm:$0xff] }
 0x5cc   : > { %v5316_v15 = vpop.eup %5315  ;;  %v2914_v29 = vsub.f32 %v8991_v63, %v2868_v52  ;;  %v2915_v18 = vsub.f32 %v6870_v43, %v2868_v52  ;;  %v7519_v16 = vpop.f32.mrf.mxu0  ;;  %v7528_v12 = vpack.c.bf16 %v5314_v0, %v5310_v49  ;;  %v2920_v63 = vsub.f32 %v9090_v56, %v7445_v23 }
 0x5cd   : > { %9089 = vst [vmem:[#allocation91_spill] sm:$0xff] %v7522_v1  ;;  %v5318_v41 = vpop.eup %5317  ;;  %v7526_v27 = vpop.f32.mrf.mxu1  ;;  %v2921_v28 = vsub.f32 %v9091_v60, %v7445_v23  ;;  %v9093_v60 = vld [vmem:[#allocation26_spill] sm:$0xff] }
 0x5ce   : > { %v5320_v5 = vpop.eup %5319  ;;  %v2946_v62 = vmul.f32 1.442695, %v2914_v29  ;;  %v2948_v43 = vmul.f32 1.442695, %v2915_v18  ;;  %v7538_v49 = vpop.trf.xlu0  ;;  %v2958_v18 = vmul.f32 1.442695, %v2920_v63 }
 0x5cf   : > { %v5322_v52 = vpop.eup %5321  ;;  %v7536_v32 = vpack.c.bf16 %v5316_v15, %v5320_v5  ;;  %v1553_v29 = vpop.f32.mrf.mxu2  ;;  %v2960_v20 = vmul.f32 1.442695, %v2921_v28  ;;  %v2924_v5 = vsub.f32 %v9093_v60, %v7477_v21  ;;  %v9095_v63 = vld [vmem:[#allocation23_spill] sm:$0xff] }
 0x5d0   : > { %5327 = vpow2.f32 %v2946_v62  ;;  %3260 = vmax.xlane.f32.xlu0 %v3259_v2  ;;  %v7540_v0 = vpack.c.bf16 %v5318_v41, %v5322_v52  ;;  %v1566_v56 = vpop.f32.mrf.mxu3  ;;  %v5324_v23 = vpop.eup %5323  ;;  %v2925_v52 = vsub.f32 %v9095_v63, %v7477_v21 }
 0x5d1   : > { %2278 = vmatpush.bf16.xpose.msra.mxu2 %v7487_v7  ;;  %5329 = vpow2.f32 %v2948_v43  ;;  %v1567_v47 = vadd.f32 %v1566_v56, %v1553_v29  ;;  %v5326_v41 = vpop.eup %5325  ;;  %v3244_v43 = vmax.f32 %v7215_v58, %v7218_v4  ;;  %v9099_v4 = vld [vmem:[#allocation67_spill] sm:$0xff] }
 0x5d2   : > { %2292 = vmatpush.bf16.xpose.msra.mxu3 %v7491_v44  ;;  %9092 = vst [vmem:[#allocation92_spill] sm:$0xff] %v7540_v0  ;;  %v7542_v61 = vpop.xlane.xlu2 %2894  ;;  %v9098_v0 = vld [vmem:[#allocation69_spill] sm:$0xff] }
 0x5d3   : > { %5331 = vrcp.f32 %v1567_v47  ;;  %v2966_v47 = vmul.f32 1.442695, %v2924_v5 }
 0x5d4   : > { %v7548_v2 = vpop.f32.mrf.mxu0  ;;  %5333 = vpow2.f32 %v2958_v18 }
 0x5d5   : > { %9094 = vst [vmem:[#allocation62_spill] sm:$0xff] %v7548_v2  ;;  %v7554_v28 = vpop.f32.mrf.mxu1  ;;  %5335 = vpow2.f32 %v2960_v20 }
 0x5d6   : > { %9096 = vst [vmem:[#allocation107_spill] sm:$0xff] %v7554_v28  ;;  %v5328_v29 = vpop.eup %5327  ;;  %4812 = vmatmul.msk.bf16.gmra.mxu0 %vm1223_vm10, %v9099_v4  ;;  %4820 = vmatmul.msk.bf16.gmra.mxu1 %vm1223_vm10, %v9099_v4  ;;  %v7570_v63 = vpop.trf.xlu0 }
 0x5d7   : > { %v7562_v21 = vpack.c.bf16 %v5324_v23, %v5328_v29  ;;  %v1555_v20 = vpop.f32.mrf.mxu2  ;;  %v1540_v23 = vadd.f32 %v7481_v38, %v7479_v48  ;;  %v3283_v38 = vmax.f32 %v7519_v16, %v7526_v27 }
 0x5d8   : > { %3245 = vmax.xlane.f32.xlu0 %v3244_v43  ;;  %v1568_v58 = vpop.f32.mrf.mxu3  ;;  %v9106_v20 = vld [vmem:[#allocation90_spill] sm:$0xff] }
 0x5d9   : > { %2279 = vmatpush.bf16.xpose.msra.mxu2 %v7522_v1  ;;  %v2874_v1 = vpop.xlane.xlu1 %2873  ;;  %9100 = vst [vmem:[#allocation89_spill] sm:$0xff] %v7562_v21 }
 0x5da   : > { %2293 = vmatpush.bf16.xpose.msra.mxu3 %v7528_v12  ;;  %v2918_v62 = vsub.f32 %v6922_v54, %v2874_v1  ;;  %v2919_v15 = vsub.f32 %v6926_v11, %v2874_v1  ;;  %v3286_v54 = vmax.f32 %v7548_v2, %v7554_v28  ;;  %v9097_v11 = vld [vmem:[#allocation66_spill] sm:$0xff]  ;;  %v5330_v1 = vpop.eup %5329 }
 0x5db   : > { %v7564_v18 = vpack.c.bf16 %v5326_v41, %v5330_v1  ;;  %v5332_v28 = vpop.eup %5331  ;;  %v1542_v41 = vadd.f32 %v7515_v50, %v7513_v24 }
 0x5dc   : > { %v2954_v56 = vmul.f32 1.442695, %v2918_v62  ;;  %v2956_v60 = vmul.f32 1.442695, %v2919_v15  ;;  %3287 = vmax.xlane.f32.xlu1 %v3286_v54  ;;  %v2968_v62 = vmul.f32 1.442695, %v2925_v52  ;;  %v7568_v15 = vpop.xlane.xlu2 %2900  ;;  %v5334_v43 = vpop.eup %5333 }
 0x5dd   : > { %9101 = vst [vmem:[#allocation114_spill] sm:$0xff] %v7564_v18  ;;  %v1571_v52 = vperm.slane %v5332_v28, 0  ;;  %v7577_v4 = vpop.f32.mrf.mxu0  ;;  %v7582_v1 = vpop.f32.mrf.mxu1  ;;  %v9105_v28 = vld [vmem:[#allocation22_spill] sm:$0xff] }
 0x5de   : > { %5337 = vpow2.f32 %v2954_v56  ;;  %9102 = vst [vmem:[#allocation115_spill] sm:$0xff] %v7577_v4  ;;  %v5336_v56 = vpop.eup %5335 }
 0x5df   : > { %5339 = vpow2.f32 %v2956_v60  ;;  %v9103_v60 = vld [vmem:[#allocation21_spill] sm:$0xff]  ;;  %9104 = vst [vmem:[#allocation64_spill] sm:$0xff] %v7582_v1  ;;  %v1573_v50 = vmul.f32 %v1571_v52, %v1542_v41 }
 0x5e0   : > { %5341 = vpow2.f32 %v2966_v47  ;;  %v2928_v58 = vsub.f32 %v9103_v60, %v7511_v8  ;;  %v1572_v47 = vmul.f32 %v1571_v52, %v1540_v23  ;;  %v3289_v60 = vmax.f32 %v7577_v4, %v7582_v1 }
 0x5e1   : > { %2280 = vmatpush.bf16.xpose.msra.mxu2 %v9097_v11  ;;  %v2880_v5 = vpop.xlane.xlu1 %2879  ;;  %5343 = vpow2.f32 %v2968_v62  ;;  %v2929_v62 = vsub.f32 %v9106_v20, %v7511_v8  ;;  %v1575_v21 = vpack.c.bf16 %v1573_v50, %v1573_v50 }
 0x5e2   : > { %2294 = vmatpush.bf16.xpose.msra.mxu3 %v9098_v0  ;;  %v2922_v29 = vsub.f32 %v6968_v9, %v2880_v5  ;;  %v2923_v54 = vsub.f32 %v6974_v33, %v2880_v5  ;;  %v9107_v33 = vld [vmem:[#allocation81_spill] sm:$0xff]  ;;  %v1574_v18 = vpack.c.bf16 %v1572_v47, %v1572_v47  ;;  %3290 = vmax.xlane.f32.xlu2 %v3289_v60  ;;  %v2974_v8 = vmul.f32 1.442695, %v2928_v58 }
 0x5e3   : > { %1577 = vst [vmem:[#allocation3 + $0x8] sm:$0xf] %v1575_v21 }
 0x5e4   : > { %v5338_v48 = vpop.eup %5337  ;;  %v2962_v24 = vmul.f32 1.442695, %v2922_v29  ;;  %v2964_v2 = vmul.f32 1.442695, %v2923_v54  ;;  %3284 = vmax.xlane.f32.xlu1 %v3283_v38  ;;  %v7596_v41 = vpop.xlane.xlu2 %2906  ;;  %1576 = vst [vmem:[#allocation3] sm:$0xf] %v1574_v18  ;;  %v2932_v18 = vsub.f32 %v7072_v26, %v7542_v61 }
 0x5e5   : > { %v5340_v9 = vpop.eup %5339  ;;  %v7592_v5 = vpack.c.bf16 %v5334_v43, %v5338_v48  ;;  %v2976_v54 = vmul.f32 1.442695, %v2929_v62  ;;  %v7600_v47 = vpop.f32.mrf.mxu0  ;;  %v9113_v62 = vld [vmem:[#allocation25_spill] sm:$0xff] }
 0x5e6   : > { %5345 = vpow2.f32 %v2962_v24  ;;  %v7594_v23 = vpack.c.bf16 %v5336_v56, %v5340_v9  ;;  %v5342_v52 = vpop.eup %5341  ;;  %9110 = vst [vmem:[#allocation86_spill] sm:$0xff] %v7600_v47  ;;  %v7602_v38 = vpop.trf.xlu0  ;;  %v9112_v24 = vld [vmem:[#allocation24_spill] sm:$0xff]  ;;  %v2933_v9 = vsub.f32 %v7076_v35, %v7542_v61  ;;  %4833 = vmatmul.msk.bf16.vlgmr.msrb.gmra.mxu0 %vm1223_vm10, %v7411_v17  ;;  %4841 = vmatmul.msk.bf16.vlgmr.msrb.gmra.mxu1 %vm1223_vm10, %v7411_v17 }
 0x5e7   : > { %9108 = vst [vmem:[#allocation83_spill] sm:$0xff] %v7592_v5  ;;  %5347 = vpow2.f32 %v2964_v2  ;;  %v5344_v29 = vpop.eup %5343  ;;  %v3277_v2 = vmax.f32 %v7456_v37, %v7465_v45  ;;  %v7606_v56 = vpop.f32.mrf.mxu1  ;;  %v2936_v17 = vsub.f32 %v7112_v57, %v7568_v15  ;;  %v9168_v45 = vld [vmem:[#allocation32_spill] sm:$0xff]  ;;  %v9169_v37 = vld [vmem:[#allocation30_spill] sm:$0xff] }
 0x5e8   : > { %9109 = vst [vmem:[#allocation94_spill] sm:$0xff] %v7594_v23  ;;  %5349 = vpow2.f32 %v2974_v8  ;;  %v2984_v35 = vmul.f32 1.442695, %v2933_v9  ;;  %v2937_v9 = vsub.f32 %v7116_v59, %v7568_v15 }
 0x5e9   : > { %2281 = vmatpush.bf16.xpose.msra.mxu2 %v9105_v28  ;;  %v2886_v20 = vpop.xlane.xlu1 %2885  ;;  %9111 = vst [vmem:[#allocation87_spill] sm:$0xff] %v7606_v56  ;;  %5351 = vpow2.f32 %v2976_v54  ;;  %v2982_v54 = vmul.f32 1.442695, %v2932_v18 }
 0x5ea   : > { %2295 = vmatpush.bf16.xpose.msra.mxu3 %v9107_v33  ;;  %v2926_v43 = vsub.f32 %v7012_v53, %v2886_v20  ;;  %v2927_v48 = vsub.f32 %v7018_v6, %v2886_v20  ;;  %v3274_v6 = vmax.f32 %v7419_v3, %v7426_v51  ;;  %v2992_v15 = vmul.f32 1.442695, %v2937_v9  ;;  %v9128_v9 = vld [vmem:[#allocation42_spill] sm:$0xff] }
 0x5ec   : > { %v5346_v50 = vpop.eup %5345  ;;  %v2970_v21 = vmul.f32 1.442695, %v2926_v43  ;;  %v2972_v58 = vmul.f32 1.442695, %v2927_v48  ;;  %3278 = vmax.xlane.f32.xlu1 %v3277_v2  ;;  %3275 = vmax.xlane.f32.xlu2 %v3274_v6  ;;  %v7624_v8 = vpop.xlane.xlu2 %2912  ;;  %v3268_v6 = vmax.f32 %v7357_v14, %v7361_v46  ;;  %v9123_v14 = vld [vmem:[#allocation20_spill] sm:$0xff] }
 0x5ed   : > { %v5348_v53 = vpop.eup %5347  ;;  %v7618_v60 = vpack.c.bf16 %v5342_v52, %v5346_v50  ;;  %v7628_v48 = vpop.f32.mrf.mxu0 }
 0x5ee   : > { %5353 = vpow2.f32 %v2970_v21  ;;  %v7620_v26 = vpack.c.bf16 %v5344_v29, %v5348_v53  ;;  %v5350_v20 = vpop.eup %5349  ;;  %9116 = vst [vmem:[#allocation84_spill] sm:$0xff] %v7628_v48  ;;  %v3271_v29 = vmax.f32 %v7391_v13, %v7396_v31  ;;  %v9118_v53 = vld [vmem:[#allocation72_spill] sm:$0xff] }
 0x5ef   : > { %9114 = vst [vmem:[#allocation111_spill] sm:$0xff] %v7618_v60  ;;  %5355 = vpow2.f32 %v2972_v58  ;;  %v5352_v2 = vpop.eup %5351  ;;  %v7632_v50 = vpop.f32.mrf.mxu1 }
 0x5f0   : > { %9115 = vst [vmem:[#allocation112_spill] sm:$0xff] %v7620_v26  ;;  %5357 = vpow2.f32 %v2982_v54 }
 0x5f1   : > { %2282 = vmatpush.bf16.xpose.msra.mxu2 %v9112_v24  ;;  %v2892_v61 = vpop.xlane.xlu1 %2891  ;;  %9117 = vst [vmem:[#allocation56_spill] sm:$0xff] %v7632_v50  ;;  %5359 = vpow2.f32 %v2984_v35  ;;  %v9122_v35 = vld [vmem:[#allocation19_spill] sm:$0xff] }
 0x5f2   : > { %2296 = vmatpush.bf16.xpose.msra.mxu3 %v9113_v62  ;;  %v2930_v43 = vsub.f32 %v7050_v19, %v2892_v61  ;;  %v2931_v52 = vsub.f32 %v7056_v30, %v2892_v61  ;;  %v7637_v19 = vpop.trf.xlu0  ;;  %v9119_v61 = vld [vmem:[#allocation96_spill] sm:$0xff] }
 0x5f4   : > { %v5354_v21 = vpop.eup %5353  ;;  %v2978_v18 = vmul.f32 1.442695, %v2930_v43  ;;  %v2980_v58 = vmul.f32 1.442695, %v2931_v52  ;;  %3272 = vmax.xlane.f32.xlu1 %v3271_v29  ;;  %3269 = vmax.xlane.f32.xlu2 %v3268_v6  ;;  %v890_v43 = vpop.permute.xlu2 %889  ;;  %v2990_v52 = vmul.f32 1.442695, %v2936_v17  ;;  %v3265_v29 = vmax.f32 %v7332_v10, %v7337_v34 }
 0x5f5   : > { %v5356_v30 = vpop.eup %5355  ;;  %v7645_v54 = vpack.c.bf16 %v5350_v20, %v5354_v21  ;;  %v1061_v46 = vadd.f32 %v9122_v35, %v890_v43  ;;  %v1130_v59 = vadd.f32 %v9123_v14, %v890_v43  ;;  %v9126_v14 = vld [vmem:[#allocation71_spill] sm:$0xff]  ;;  %v9147_v10 = vld [vmem:[#allocation53_spill] sm:$0xff] }
 0x5f6   : > { %5361 = vpow2.f32 %v2978_v18  ;;  %v7648_v57 = vpack.c.bf16 %v5352_v2, %v5356_v30  ;;  %v5358_v13 = vpop.eup %5357  ;;  %4834 = vmatmul.msk.bf16.gmra.mxu0 %vm1223_vm10, %v7460_v36  ;;  %4842 = vmatmul.msk.bf16.gmra.mxu1 %vm1223_vm10, %v7460_v36  ;;  %v9136_v36 = vld [vmem:[#allocation100_spill] sm:$0xff] }
 0x5f7   : > { %9120 = vst [vmem:[#allocation57_spill] sm:$0xff] %v7645_v54  ;;  %5363 = vpow2.f32 %v2980_v58  ;;  %v5360_v2 = vpop.eup %5359  ;;  %v7658_v18 = vpop.f32.mrf.mxu1  ;;  %v2940_v58 = vsub.f32 %v9126_v14, %v7596_v41 }
 0x5f8   : > { %9121 = vst [vmem:[#allocation77_spill] sm:$0xff] %v7648_v57  ;;  %5365 = vpow2.f32 %v2990_v52 }
 0x5f9   : > { %2283 = vmatpush.bf16.xpose.msra.mxu2 %v9118_v53  ;;  %v2898_v31 = vpop.xlane.xlu1 %2897  ;;  %9125 = vst [vmem:[#allocation79_spill] sm:$0xff] %v7658_v18  ;;  %5367 = vpow2.f32 %v2992_v15 }
 0x5fa   : > { %2297 = vmatpush.bf16.xpose.msra.mxu3 %v9119_v61  ;;  %v2934_v20 = vsub.f32 %v7086_v25, %v2898_v31  ;;  %v2935_v21 = vsub.f32 %v7090_v40, %v2898_v31  ;;  %v9127_v25 = vld [vmem:[#allocation43_spill] sm:$0xff]  ;;  %v9129_v31 = vld [vmem:[#allocation97_spill] sm:$0xff]  ;;  %v7672_v35 = vpop.trf.xlu0 }
 0x5fb   : > { %v3262_v40 = vmax.f32 %v9128_v9, %v9127_v25  ;;  %v2941_v43 = vsub.f32 %v9129_v31, %v7596_v41  ;;  %v2998_v41 = vmul.f32 1.442695, %v2940_v58  ;;  %v2944_v58 = vsub.f32 %v9136_v36, %v7624_v8  ;;  %v9137_v25 = vld [vmem:[#allocation61_spill] sm:$0xff] }
 0x5fc   : > { %v5362_v17 = vpop.eup %5361  ;;  %v2986_v30 = vmul.f32 1.442695, %v2934_v20  ;;  %3266 = vmax.xlane.f32.xlu1 %v3265_v29  ;;  %v9130_v20 = vld [vmem:[#allocation93_spill] sm:$0xff]  ;;  %v9133_v29 = vld [vmem:[#allocation52_spill] sm:$0xff] }
 0x5fd   : > { %v5364_v6 = vpop.eup %5363  ;;  %v7669_v52 = vpack.c.bf16 %v5358_v13, %v5362_v17  ;;  %3263 = vmax.xlane.f32.xlu2 %v3262_v40 }
 0x5fe   : > { %5369 = vpow2.f32 %v2986_v30  ;;  %v9134_v30 = vld [vmem:[#allocation49_spill] sm:$0xff] }
 0x601   : > { %2304 = vmatpush.bf16.xpose.msrb.mxu2 %v7421_v22  ;;  %v1158_v22 = vpack.c.bf16 %v1130_v59, %v1061_v46  ;;  %v2988_v46 = vmul.f32 1.442695, %v2935_v21  ;;  %v7674_v59 = vpack.c.bf16 %v5360_v2, %v5364_v6  ;;  %v2904_v15 = vpop.xlane.xlu1 %2903  ;;  %v9131_v21 = vld [vmem:[#allocation95_spill] sm:$0xff]  ;;  %v3250_v2 = vmax.f32 %v9134_v30, %v9133_v29  ;;  %v7684_v6 = vpop.f32.mrf.mxu1 }
 0x602   : > { %2317 = vmatpush.bf16.xpose.msrb.mxu3 %v7428_v42  ;;  %v7654_v42 = vpop.f32.mrf.mxu0  ;;  %v2938_v13 = vsub.f32 %v9130_v20, %v2904_v15  ;;  %v2939_v17 = vsub.f32 %v9131_v21, %v2904_v15  ;;  %9135 = vst [vmem:[#allocation116_spill] sm:$0xff] %v7684_v6  ;;  %v9138_v20 = vld [vmem:[#allocation60_spill] sm:$0xff]  ;;  %v9139_v15 = vld [vmem:[#allocation7_spill] sm:$0xff] }
 0x603   : > { %9124 = vst [vmem:[#allocation70_spill] sm:$0xff] %v7654_v42  ;;  %5371 = vpow2.f32 %v2988_v46  ;;  %v3256_v9 = vmax.f32 %v9138_v20, %v9137_v25  ;;  %v2945_v21 = vsub.f32 %v9139_v15, %v7624_v8  ;;  %v9140_v30 = vld [vmem:[#allocation11_spill] sm:$0xff]  ;;  %v9141_v25 = vld [vmem:[#allocation12_spill] sm:$0xff] }
 0x604   : > { %1182 = vst [vmem:[#allocation2 + $0xa8] sm:$0xff] %v1158_v22  ;;  %v5366_v22 = vpop.eup %5365  ;;  %5373 = vpow2.f32 %v2998_v41  ;;  %v2994_v40 = vmul.f32 1.442695, %v2938_v13  ;;  %v2996_v31 = vmul.f32 1.442695, %v2939_v17  ;;  %3251 = vmax.xlane.f32.xlu1 %v3250_v2  ;;  %v880_v17 = vpop.permute.xlu0 %879 }
 0x605   : > { %3257 = vmax.xlane.f32.xlu2 %v3256_v9  ;;  %v3006_v13 = vmul.f32 1.442695, %v2944_v58  ;;  %v3008_v36 = vmul.f32 1.442695, %v2945_v21  ;;  %v1125_v20 = vadd.f32 %v9141_v25, %v880_v17  ;;  %v9144_v58 = vld [vmem:[#allocation108_spill] sm:$0xff] }
 0x609   : > { %2305 = vmatpush.bf16.xpose.msrb.mxu2 %v7458_v55  ;;  %v3000_v55 = vmul.f32 1.442695, %v2941_v43  ;;  %v2910_v8 = vpop.xlane.xlu1 %2909  ;;  %v7704_v2 = vpop.f32.mrf.mxu1 }
 0x60a   : > { %2318 = vmatpush.bf16.xpose.msrb.mxu3 %v7467_v39  ;;  %v7680_v14 = vpop.f32.mrf.mxu0  ;;  %v5368_v39 = vpop.eup %5367 }
 0x60b   : > { %9132 = vst [vmem:[#allocation80_spill] sm:$0xff] %v7680_v14  ;;  %v5370_v46 = vpop.eup %5369  ;;  %5375 = vpow2.f32 %v3000_v55  ;;  %v1056_v55 = vadd.f32 %v9140_v30, %v880_v17  ;;  %v9146_v17 = vld [vmem:[#allocation46_spill] sm:$0xff] }
 0x60c   : > { %v5372_v43 = vpop.eup %5371  ;;  %v7693_v29 = vpack.c.bf16 %v5366_v22, %v5370_v46  ;;  %5377 = vpow2.f32 %v2994_v40  ;;  %v9143_v46 = vld [vmem:[#allocation102_spill] sm:$0xff]  ;;  %v3253_v51 = vmax.f32 %v9147_v10, %v9146_v17 }
 0x60d   : > { %v7696_v41 = vpack.c.bf16 %v5368_v39, %v5372_v43  ;;  %5379 = vpow2.f32 %v2996_v31  ;;  %v5374_v15 = vpop.eup %5373  ;;  %v2943_v40 = vsub.f32 %v9143_v46, %v2910_v8  ;;  %v1156_v39 = vpack.c.bf16 %v1125_v20, %v1056_v55  ;;  %v9145_v31 = vld [vmem:[#allocation48_spill] sm:$0xff] }
 0x60e   : > { %v3247_v43 = vmax.f32 %v9145_v31, %v9144_v58  ;;  %5381 = vpow2.f32 %v3006_v13  ;;  %3254 = vmax.xlane.f32.xlu2 %v3253_v51 }
 0x60f   : > { %v3004_v21 = vmul.f32 1.442695, %v2943_v40  ;;  %5383 = vpow2.f32 %v3008_v36  ;;  %1180 = vst [vmem:[#allocation2 + $0x98] sm:$0xff] %v1156_v39  ;;  %v4711_v40 = vld [vmem:[#allocation2 + $0x90] sm:$0xf] }
 0x610   : > { %3248 = vmax.xlane.f32.xlu1 %v3247_v43 }
 0x611   : > { %2306 = vmatpush.bf16.xpose.msrb.mxu2 %v7487_v7  ;;  %v9142_v7 = vld [vmem:[#allocation103_spill] sm:$0xff]  ;;  %v7722_v46 = vpop.f32.mrf.mxu1 }
 0x612   : > { %2319 = vmatpush.bf16.xpose.msrb.mxu3 %v7491_v44  ;;  %v2942_v22 = vsub.f32 %v9142_v7, %v2910_v8  ;;  %v7702_v34 = vpop.f32.mrf.mxu0  ;;  %v5376_v44 = vpop.eup %5375  ;;  %v9148_v8 = vld [vmem:[#allocation91_spill] sm:$0xff]  ;;  %v9149_v7 = vld [vmem:[#allocation109_spill] sm:$0xff] }
 0x613   : > { %v5378_v9 = vpop.eup %5377  ;;  %4835 = vmatmul.msk.bf16.gmra.mxu0 %vm1223_vm10, %v9149_v7  ;;  %4843 = vmatmul.msk.bf16.gmra.mxu1 %vm1223_vm10, %v9149_v7 }
 0x614   : > { %v3002_v30 = vmul.f32 1.442695, %v2942_v22  ;;  %v5380_v25 = vpop.eup %5379  ;;  %v7713_v20 = vpack.c.bf16 %v5374_v15, %v5378_v9  ;;  %v4931_v9 = vld [vmem:[#allocation2 + $0x94] sm:$0xf] }
 0x615   : > { %v7716_v13 = vpack.c.bf16 %v5376_v44, %v5380_v25  ;;  %v5382_v36 = vpop.eup %5381 }
 0x616   : > { %5385 = vpow2.f32 %v3002_v30  ;;  %v5384_v22 = vpop.eup %5383  ;;  %v4932_v39 = vld [vmem:[#allocation2 + $0x94] sm:$0xf0]  ;;  %v4713_v30 = vld [vmem:[#allocation2 + $0x98] sm:$0xf0] }
 0x617   : > { %5387 = vpow2.f32 %v3004_v21  ;;  %v7725_v44 = vor.u32 %v4932_v39, %v4711_v40  ;;  %v7727_v51 = vor.u32 %v4931_v9, %v4713_v30  ;;  %v1907_v30 = vpop.f32.mrf.mxu3 }
 0x619   : > { %2307 = vmatpush.bf16.xpose.msrb.mxu2 %v9148_v8  ;;  %2298 = vmatmul.bf16.vlgmr.msra.gmra.mxu3 %v7727_v51  ;;  %v7738_v8 = vpop.f32.mrf.mxu1 }
 0x61a   : > { %2320 = vmatpush.bf16.xpose.msrb.mxu3 %v7528_v12  ;;  %v7720_v55 = vpop.f32.mrf.mxu0  ;;  %2284 = vmatmul.bf16.vlgmr.msra.gmra.mxu2 %v7725_v44  ;;  %9151 = vst [vmem:[#allocation78_spill] sm:$0xff] %v7738_v8 }
 0x61c   : > { %v5386_v15 = vpop.eup %5385 }
 0x61d   : > { %v5388_v12 = vpop.eup %5387  ;;  %v7729_v43 = vpack.c.bf16 %v5382_v36, %v5386_v15  ;;  %v9153_v36 = vld [vmem:[#allocation16_spill] sm:$0xff] }
 0x61e   : > { %v7732_v21 = vpack.c.bf16 %v5384_v22, %v5388_v12  ;;  %v9161_v12 = vmov 1065369472  }
 0x621   : > { %2308 = vmatpush.bf16.xpose.msrb.mxu2 %v9097_v11  ;;  %v9152_v11 = vld [vmem:[#allocation15_spill] sm:$0xff]  ;;  %v7750_v15 = vpop.f32.mrf.mxu1 }
 0x622   : > { %2321 = vmatpush.bf16.xpose.msrb.mxu3 %v9098_v0  ;;  %v7736_v25 = vpop.f32.mrf.mxu0  ;;  %v885_v0 = vpop.permute.xlu1 %884  ;;  %9155 = vst [vmem:[#allocation51_spill] sm:$0xff] %v7750_v15 }
 0x623   : > { %9150 = vst [vmem:[#allocation117_spill] sm:$0xff] %v7736_v25  ;;  %4836 = vmatmul.msk.bf16.gmra.mxu0 %vm1223_vm10, %v7538_v49  ;;  %4844 = vmatmul.msk.bf16.gmra.mxu1 %vm1223_vm10, %v7538_v49  ;;  %v1059_v7 = vadd.f32 %v9152_v11, %v885_v0  ;;  %v1128_v22 = vadd.f32 %v9153_v36, %v885_v0  ;;  %v9158_v49 = vld [vmem:[#allocation92_spill] sm:$0xff]  ;;  %v1909_v36 = vpop.f32.mrf.mxu3 }
 0x625   : > { %v1157_v39 = vpack.c.bf16 %v1128_v22, %v1059_v7  ;;  %v9166_v22 = vld [vmem:[#allocation105_spill] sm:$0xff] }
 0x627   : > { %1181 = vst [vmem:[#allocation2 + $0xa0] sm:$0xff] %v1157_v39  ;;  %v9167_v39 = vld [vmem:[#allocation106_spill] sm:$0xff] }
 0x629   : > { %2309 = vmatpush.bf16.xpose.msrb.mxu2 %v9105_v28 }
 0x62a   : > { %2322 = vmatpush.bf16.xpose.msrb.mxu3 %v9107_v33  ;;  %v7748_v40 = vpop.f32.mrf.mxu0  ;;  %v7756_v33 = vpop.f32.mrf.mxu1 }
 0x62b   : > { %9154 = vst [vmem:[#allocation50_spill] sm:$0xff] %v7748_v40 }
 0x62c   : > { %9157 = vst [vmem:[#allocation74_spill] sm:$0xff] %v7756_v33 }
 0x631   : > { %2310 = vmatpush.bf16.xpose.msrb.mxu2 %v9112_v24 }
 0x632   : > { %2323 = vmatpush.bf16.xpose.msrb.mxu3 %v9113_v62  ;;  %v7754_v28 = vpop.f32.mrf.mxu0  ;;  %v1893_v62 = vpop.f32.mrf.mxu2 }
 0x633   : > { %9156 = vst [vmem:[#allocation27_spill] sm:$0xff] %v7754_v28  ;;  %4837 = vmatmul.msk.bf16.gmra.mxu0 %vm1223_vm10, %v7570_v63  ;;  %4845 = vmatmul.msk.bf16.gmra.mxu1 %vm1223_vm10, %v7570_v63  ;;  %v7768_v9 = vpop.f32.mrf.mxu1 }
 0x634   : > { %9160 = vst [vmem:[#allocation75_spill] sm:$0xff] %v7768_v9 }
 0x639   : > { %2311 = vmatpush.bf16.xpose.msrb.mxu2 %v9118_v53  ;;  %v9162_v53 = vld [vmem:[#allocation110_spill] sm:$0xff] }
 0x63a   : > { %2324 = vmatpush.bf16.xpose.msrb.mxu3 %v9119_v61  ;;  %v7766_v24 = vpop.f32.mrf.mxu0  ;;  %v9163_v61 = vld [vmem:[#allocation88_spill] sm:$0xff]  ;;  %v1895_v7 = vpop.f32.mrf.mxu2 }
 0x63b   : > { %9159 = vst [vmem:[#allocation82_spill] sm:$0xff] %v7766_v24  ;;  %v7776_v11 = vpop.f32.mrf.mxu1  ;;  %v3653_v17 = vmax.f32 %v7766_v24, %v7768_v9  ;;  %v9172_v24 = vld [vmem:[#allocation118_spill] sm:$0xff]  ;;  %v3282_v26 = vpop.xlane.xlu0 %3281 }
 0x63c   : > { %9165 = vst [vmem:[#allocation54_spill] sm:$0xff] %v7776_v11 }
 0x640   : > { %2312 = vmatmul.bf16.vlgmr.msrb.gmra.mxu2 %v9161_v12 }
 0x641   : > { %2644 = vmatpush.bf16.xpose.msra.mxu2 %v7536_v32  ;;  %2325 = vmatmul.bf16.vlgmr.msrb.gmra.mxu3 %v9161_v12 }
 0x642   : > { %2658 = vmatpush.bf16.xpose.msra.mxu3 %v9158_v49  ;;  %v7774_v0 = vpop.f32.mrf.mxu0 }
 0x643   : > { %9164 = vst [vmem:[#allocation76_spill] sm:$0xff] %v7774_v0  ;;  %v3656_v63 = vmax.f32 %v7774_v0, %v7776_v11  ;;  %4838 = vmatmul.msk.bf16.gmra.mxu0 %vm1223_vm10, %v7602_v38  ;;  %4846 = vmatmul.msk.bf16.gmra.mxu1 %vm1223_vm10, %v7602_v38  ;;  %v7788_v31 = vpop.f32.mrf.mxu1  ;;  %v1921_v10 = vpop.f32.mrf.mxu2 }
 0x644   : > { %v1934_v3 = vpop.f32.mrf.mxu3 }
 0x645   : > { %3657 = vmax.xlane.f32.xlu0 %v3656_v63  ;;  %v1935_v63 = vadd.f32 %v1934_v3, %v1921_v10  ;;  %v9173_v10 = vld [vmem:[#allocation9_spill] sm:$0xff]  ;;  %v1908_v3 = vadd.f32 %v1907_v30, %v1893_v62 }
 0x646   : > { %v9179_v30 = vld [vmem:[#allocation45_spill] sm:$0xff] }
 0x647   : > { %5389 = vrcp.f32 %v1935_v63  ;;  %v1910_v63 = vadd.f32 %v1909_v36, %v1895_v7 }
 0x649   : > { %2645 = vmatpush.bf16.xpose.msra.mxu2 %v9162_v53 }
 0x64a   : > { %2659 = vmatpush.bf16.xpose.msra.mxu3 %v9163_v61  ;;  %v7786_v58 = vpop.f32.mrf.mxu0 }
 0x64b   : > { %v7796_v4 = vpop.f32.mrf.mxu1  ;;  %v1923_v9 = vpop.f32.mrf.mxu2  ;;  %v3659_v0 = vmax.f32 %v7786_v58, %v7788_v31 }
 0x64c   : > { %9171 = vst [vmem:[#allocation40_spill] sm:$0xff] %v7796_v4 }
 0x64d   : > { %3654 = vmax.xlane.f32.xlu0 %v3653_v17  ;;  %v1936_v17 = vpop.f32.mrf.mxu3  ;;  %v5390_v23 = vpop.eup %5389 }
 0x64e   : > { %v1939_v5 = vperm.slane %v5390_v23, 0  ;;  %v9178_v23 = vld [vmem:[#allocation37_spill] sm:$0xff] }
 0x64f   : > { %v7806_v60 = vpop.xlane.xlu1 %3287 }
 0x651   : > { %2646 = vmatpush.bf16.xpose.msra.mxu2 %v9166_v22 }
 0x652   : > { %2660 = vmatpush.bf16.xpose.msra.mxu3 %v9167_v39  ;;  %v7794_v1 = vpop.f32.mrf.mxu0 }
 0x653   : > { %9170 = vst [vmem:[#allocation55_spill] sm:$0xff] %v7794_v1  ;;  %v3662_v38 = vmax.f32 %v7794_v1, %v7796_v4  ;;  %4839 = vmatmul.msk.bf16.gmra.mxu0 %vm1223_vm10, %v7637_v19  ;;  %4847 = vmatmul.msk.bf16.gmra.mxu1 %vm1223_vm10, %v7637_v19  ;;  %v1940_v4 = vmul.f32 %v1939_v5, %v1908_v3  ;;  %v7810_v9 = vpop.f32.mrf.mxu1  ;;  %v9177_v19 = vld [vmem:[#allocation73_spill] sm:$0xff] }
 0x654   : > { %v1941_v1 = vmul.f32 %v1939_v5, %v1910_v63  ;;  %9175 = vst [vmem:[#allocation33_spill] sm:$0xff] %v7810_v9  ;;  %v3317_v62 = vsub.f32 %v9177_v19, %v3282_v26 }
 0x655   : > { %3663 = vmax.xlane.f32.xlu1 %v3662_v38  ;;  %v9176_v38 = vld [vmem:[#allocation29_spill] sm:$0xff]  ;;  %v1942_v57 = vpack.c.bf16 %v1940_v4, %v1940_v4  ;;  %v3644_v4 = vmax.f32 %v7736_v25, %v7738_v8  ;;  %v3626_v8 = vmax.f32 %v7600_v47, %v7606_v56 }
 0x656   : > { %v3316_v17 = vsub.f32 %v9176_v38, %v3282_v26  ;;  %v1943_v54 = vpack.c.bf16 %v1941_v1, %v1941_v1  ;;  %v3374_v7 = vmul.f32 1.442695, %v3317_v62 }
 0x657   : > { %1944 = vst [vmem:[#allocation3 + $0x4] sm:$0xf] %v1942_v57  ;;  %v3285_v36 = vpop.xlane.xlu1 %3284 }
 0x658   : > { %1945 = vst [vmem:[#allocation3 + $0xc] sm:$0xf] %v1943_v54  ;;  %v3372_v5 = vmul.f32 1.442695, %v3316_v17  ;;  %v3318_v3 = vsub.f32 %v7519_v16, %v3285_v36  ;;  %v3319_v63 = vsub.f32 %v7526_v27, %v3285_v36  ;;  %v9182_v27 = vld [vmem:[#allocation38_spill] sm:$0xff]  ;;  %v9183_v16 = vld [vmem:[#allocation39_spill] sm:$0xff] }
 0x659   : > { %2647 = vmatpush.bf16.xpose.msra.mxu2 %v9168_v45 }
 0x65a   : > { %2661 = vmatpush.bf16.xpose.msra.mxu3 %v9169_v37  ;;  %v7808_v11 = vpop.f32.mrf.mxu0  ;;  %5391 = vpow2.f32 %v3372_v5  ;;  %v3376_v1 = vmul.f32 1.442695, %v3318_v3  ;;  %v3378_v26 = vmul.f32 1.442695, %v3319_v63  ;;  %v3641_v5 = vmax.f32 %v7720_v55, %v7722_v46 }
 0x65b   : > { %9174 = vst [vmem:[#allocation41_spill] sm:$0xff] %v7808_v11  ;;  %v7824_v57 = vpop.f32.mrf.mxu1  ;;  %5393 = vpow2.f32 %v3374_v7  ;;  %v3665_v3 = vmax.f32 %v7808_v11, %v7810_v9  ;;  %v9205_v11 = vld [vmem:[#allocation57_spill] sm:$0xff] }
 0x65c   : > { %9181 = vst [vmem:[#allocation85_spill] sm:$0xff] %v7824_v57  ;;  %5395 = vpow2.f32 %v3376_v1 }
 0x65d   : > { %3660 = vmax.xlane.f32.xlu1 %v3659_v0  ;;  %5397 = vpow2.f32 %v3378_v26  ;;  %v9187_v26 = vld [vmem:[#allocation58_spill] sm:$0xff] }
 0x660   : > { %v5392_v0 = vpop.eup %5391 }
 0x661   : > { %2648 = vmatpush.bf16.xpose.msra.mxu2 %v9172_v24  ;;  %v5394_v19 = vpop.eup %5393 }
 0x662   : > { %2662 = vmatpush.bf16.xpose.msra.mxu3 %v9173_v10  ;;  %v7820_v38 = vpop.f32.mrf.mxu0  ;;  %v5396_v62 = vpop.eup %5395 }
 0x663   : > { %9180 = vst [vmem:[#allocation65_spill] sm:$0xff] %v7820_v38  ;;  %v3668_v54 = vmax.f32 %v7820_v38, %v7824_v57  ;;  %4840 = vmatmul.msk.bf16.gmra.mxu0 %vm1223_vm10, %v7672_v35  ;;  %4848 = vmatmul.msk.bf16.gmra.mxu1 %vm1223_vm10, %v7672_v35  ;;  %v7838_v7 = vpop.f32.mrf.mxu1  ;;  %v5398_v36 = vpop.eup %5397  ;;  %v9186_v35 = vld [vmem:[#allocation59_spill] sm:$0xff] }
 0x664   : > { %9185 = vst [vmem:[#allocation28_spill] sm:$0xff] %v7838_v7  ;;  %v7847_v1 = vpack.c.bf16 %v5398_v36, %v5394_v19  ;;  %v3638_v19 = vmax.f32 %v7702_v34, %v7704_v2 }
 0x665   : > { %3645 = vmax.xlane.f32.xlu1 %v3644_v4  ;;  %3669 = vmax.xlane.f32.xlu2 %v3668_v54  ;;  %v7844_v4 = vpack.c.bf16 %v5396_v62, %v5392_v0  ;;  %v3650_v62 = vmax.f32 %v7754_v28, %v7756_v33 }
 0x669   : > { %2649 = vmatpush.bf16.xpose.msra.mxu2 %v9178_v23 }
 0x66a   : > { %2663 = vmatpush.bf16.xpose.msra.mxu3 %v9179_v30  ;;  %v7834_v17 = vpop.f32.mrf.mxu0 }
 0x66b   : > { %9184 = vst [vmem:[#allocation31_spill] sm:$0xff] %v7834_v17  ;;  %v3671_v63 = vmax.f32 %v7834_v17, %v7838_v7  ;;  %v7856_v0 = vpop.f32.mrf.mxu1  ;;  %v9208_v17 = vld [vmem:[#allocation76_spill] sm:$0xff] }
 0x66c   : > { %9189 = vst [vmem:[#allocation23_spill] sm:$0xff] %v7856_v0 }
 0x66d   : > { %3642 = vmax.xlane.f32.xlu1 %v3641_v5  ;;  %3666 = vmax.xlane.f32.xlu2 %v3665_v3  ;;  %v3647_v5 = vmax.f32 %v7748_v40, %v7750_v15 }
 0x66e   : > { %3672 = vmax.xlane.f32.xlu0 %v3671_v63  ;;  %v7903_v63 = vpop.xlane.xlu1 %3278 }
 0x671   : > { %2650 = vmatpush.bf16.xpose.msra.mxu2 %v9182_v27 }
 0x672   : > { %2664 = vmatpush.bf16.xpose.msra.mxu3 %v9183_v16  ;;  %v7852_v54 = vpop.f32.mrf.mxu0 }
 0x673   : > { %9188 = vst [vmem:[#allocation26_spill] sm:$0xff] %v7852_v54 }
 0x675   : > { %3627 = vmax.xlane.f32.xlu1 %v3626_v8  ;;  %3651 = vmax.xlane.f32.xlu2 %v3650_v62 }
 0x676   : > { %3639 = vmax.xlane.f32.xlu0 %v3638_v19 }
 0x679   : > { %2651 = vmatpush.bf16.xpose.msra.mxu2 %v9186_v35 }
 0x67a   : > { %2665 = vmatpush.bf16.xpose.msra.mxu3 %v9187_v26 }
 0x67d   : > { %3648 = vmax.xlane.f32.xlu2 %v3647_v5 }
 0x680   : > { %2652 = vmatmul.bf16.vlgmr.msra.gmra.mxu2 %v7725_v44  ;;  %v3635_v44 = vmax.f32 %v7680_v14, %v7684_v6 }
 0x681   : > { %2672 = vmatpush.bf16.xpose.msrb.mxu2 %v7536_v32  ;;  %2666 = vmatmul.bf16.vlgmr.msra.gmra.mxu3 %v7727_v51  ;;  %v7866_v32 = vpop.f32.mrf.mxu0 }
 0x682   : > { %2685 = vmatpush.bf16.xpose.msrb.mxu3 %v9158_v49  ;;  %9190 = vst [vmem:[#allocation66_spill] sm:$0xff] %v7866_v32  ;;  %v7868_v49 = vpop.f32.mrf.mxu1  ;;  %3636 = vmax.xlane.f32.xlu0 %v3635_v44 }
 0x683   : > { %9191 = vst [vmem:[#allocation69_spill] sm:$0xff] %v7868_v49 }
 0x689   : > { %2673 = vmatpush.bf16.xpose.msrb.mxu2 %v9162_v53  ;;  %v7876_v51 = vpop.f32.mrf.mxu0  ;;  %v3632_v53 = vmax.f32 %v7654_v42, %v7658_v18 }
 0x68a   : > { %2686 = vmatpush.bf16.xpose.msrb.mxu3 %v9163_v61  ;;  %9192 = vst [vmem:[#allocation67_spill] sm:$0xff] %v7876_v51  ;;  %v7878_v8 = vpop.f32.mrf.mxu1 }
 0x68b   : > { %9193 = vst [vmem:[#allocation21_spill] sm:$0xff] %v7878_v8  ;;  %3633 = vmax.xlane.f32.xlu2 %v3632_v53  ;;  %v7936_v53 = vpop.xlane.xlu0 %3260 }
 0x691   : > { %2674 = vmatpush.bf16.xpose.msrb.mxu2 %v9166_v22  ;;  %v7884_v61 = vpop.f32.mrf.mxu0  ;;  %v781_v22 = vld [vmem:[%s8471_s2 + $0xb8] sm:$0xff] }
 0x692   : > { %2687 = vmatpush.bf16.xpose.msrb.mxu3 %v9167_v39  ;;  %9194 = vst [vmem:[#allocation22_spill] sm:$0xff] %v7884_v61  ;;  %v7886_v36 = vpop.f32.mrf.mxu1  ;;  %v3629_v39 = vmax.f32 %v7628_v48, %v7632_v50  ;;  %899 = vperm.xlu1 %5012, %v781_v22  }
 0x693   : > { %9195 = vst [vmem:[#allocation90_spill] sm:$0xff] %v7886_v36  ;;  %v7946_v6 = vpop.xlane.xlu0 %3245 }
 0x694   : > { %3630 = vmax.xlane.f32.xlu2 %v3629_v39  ;;  %9201 = vst [vmem:[#allocation19_spill] sm:$0xff] %v7946_v6 }
 0x699   : > { %2675 = vmatpush.bf16.xpose.msrb.mxu2 %v9168_v45  ;;  %v7898_v45 = vpop.f32.mrf.mxu0 }
 0x69a   : > { %2688 = vmatpush.bf16.xpose.msrb.mxu3 %v9169_v37  ;;  %v780_v37 = vld [vmem:[%s8471_s2 + $0xb0] sm:$0xff]  ;;  %v7900_v3 = vpop.f32.mrf.mxu1 }
 0x69b   : > { %894 = vperm.xlu0 %5014, %v780_v37  }
 0x69c   : > { %v2299_v44 = vpop.f32.mrf.mxu3 }
 0x6a1   : > { %2676 = vmatpush.bf16.xpose.msrb.mxu2 %v9172_v24  ;;  %v7906_v62 = vpop.f32.mrf.mxu0 }
 0x6a2   : > { %2689 = vmatpush.bf16.xpose.msrb.mxu3 %v9173_v10  ;;  %9196 = vst [vmem:[#allocation81_spill] sm:$0xff] %v7906_v62  ;;  %v7908_v24 = vpop.f32.mrf.mxu1  ;;  %v7912_v10 = vpop.xlane.xlu1 %3272 }
 0x6a3   : > { %9197 = vst [vmem:[#allocation24_spill] sm:$0xff] %v7908_v24 }
 0x6a4   : > { %v2301_v37 = vpop.f32.mrf.mxu3 }
 0x6a9   : > { %2677 = vmatpush.bf16.xpose.msrb.mxu2 %v9178_v23  ;;  %v7914_v19 = vpop.f32.mrf.mxu0 }
 0x6aa   : > { %2690 = vmatpush.bf16.xpose.msrb.mxu3 %v9179_v30  ;;  %v7916_v5 = vpop.f32.mrf.mxu1 }
 0x6b1   : > { %2678 = vmatpush.bf16.xpose.msrb.mxu2 %v9182_v27  ;;  %v7922_v23 = vpop.f32.mrf.mxu0  ;;  %v7926_v27 = vpop.xlane.xlu1 %3266 }
 0x6b2   : > { %2691 = vmatpush.bf16.xpose.msrb.mxu3 %v9183_v16  ;;  %9198 = vst [vmem:[#allocation25_spill] sm:$0xff] %v7922_v23  ;;  %v7924_v30 = vpop.f32.mrf.mxu1  ;;  %v2285_v16 = vpop.f32.mrf.mxu2 }
 0x6b3   : > { %9199 = vst [vmem:[#allocation72_spill] sm:$0xff] %v7924_v30 }
 0x6b8   : > { %v3658_v9 = vpop.xlane.xlu0 %3657 }
 0x6b9   : > { %2679 = vmatpush.bf16.xpose.msrb.mxu2 %v9186_v35  ;;  %v7932_v35 = vpop.f32.mrf.mxu0  ;;  %v7938_v22 = vpop.xlane.xlu1 %3251  ;;  %v3694_v6 = vsub.f32 %v9208_v17, %v3658_v9  ;;  %v9211_v17 = vld [vmem:[#allocation112_spill] sm:$0xff] }
 0x6ba   : > { %2692 = vmatpush.bf16.xpose.msrb.mxu3 %v9187_v26  ;;  %v7934_v26 = vpop.f32.mrf.mxu1  ;;  %9200 = vst [vmem:[#allocation96_spill] sm:$0xff] %v7938_v22  ;;  %v2287_v39 = vpop.f32.mrf.mxu2 }
 0x6bb   : > { %v2302_v57 = vadd.f32 %v2301_v37, %v2287_v39 }
 0x6c0   : > { %2680 = vmatmul.bf16.vlgmr.msrb.gmra.mxu2 %v9161_v12 }
 0x6c1   : > { %3036 = vmatpush.bf16.xpose.msra.mxu2 %v7729_v43  ;;  %2693 = vmatmul.bf16.vlgmr.msrb.gmra.mxu3 %v9161_v12  ;;  %v7942_v56 = vpop.f32.mrf.mxu0  ;;  %v7948_v14 = vpop.xlane.xlu1 %3248 }
 0x6c2   : > { %3050 = vmatpush.bf16.xpose.msra.mxu3 %v7732_v21  ;;  %v7944_v47 = vpop.f32.mrf.mxu1  ;;  %9202 = vst [vmem:[#allocation20_spill] sm:$0xff] %v7948_v14 }
 0x6c3   : > { %v2313_v50 = vpop.f32.mrf.mxu2 }
 0x6c4   : > { %v2326_v48 = vpop.f32.mrf.mxu3 }
 0x6c5   : > { %v2327_v18 = vadd.f32 %v2326_v48, %v2313_v50  ;;  %v2300_v50 = vadd.f32 %v2299_v44, %v2285_v16  ;;  %v3746_v16 = vmul.f32 1.442695, %v3694_v6  ;;  %v9210_v44 = vld [vmem:[#allocation111_spill] sm:$0xff] }
 0x6c6   : > { %v9214_v6 = vld [vmem:[#allocation83_spill] sm:$0xff] }
 0x6c7   : > { %5399 = vrcp.f32 %v2327_v18  ;;  %v9207_v18 = vld [vmem:[#allocation77_spill] sm:$0xff] }
 0x6c8   : > { %5401 = vpow2.f32 %v3746_v16 }
 0x6c9   : > { %3037 = vmatpush.bf16.xpose.msra.mxu2 %v7713_v20  ;;  %v7952_v42 = vpop.f32.mrf.mxu0  ;;  %v7959_v48 = vpop.xlane.xlu1 %3663 }
 0x6ca   : > { %3051 = vmatpush.bf16.xpose.msra.mxu3 %v7716_v13  ;;  %9203 = vst [vmem:[#allocation71_spill] sm:$0xff] %v7952_v42  ;;  %v7954_v25 = vpop.f32.mrf.mxu1 }
 0x6cb   : > { %9204 = vst [vmem:[#allocation97_spill] sm:$0xff] %v7954_v25  ;;  %v4034_v15 = vmax.f32 %v7952_v42, %v7954_v25  ;;  %v2315_v40 = vpop.f32.mrf.mxu2 }
 0x6cc   : > { %v2328_v33 = vpop.f32.mrf.mxu3  ;;  %9206 = vst [vmem:[#allocation93_spill] sm:$0xff] %v7959_v48  ;;  %v4013_v40 = vmax.f32 %v7884_v61, %v7886_v36 }
 0x6cd   : > { %4035 = vmax.xlane.f32.xlu1 %v4034_v15  ;;  %v5400_v28 = vpop.eup %5399  ;;  %v9209_v33 = vld [vmem:[#allocation54_spill] sm:$0xff] }
 0x6ce   : > { %v2331_v38 = vperm.slane %v5400_v28, 0  ;;  %v3695_v42 = vsub.f32 %v9209_v33, %v3658_v9 }
 0x6d0   : > { %v2332_v14 = vmul.f32 %v2331_v38, %v2300_v50  ;;  %v2333_v25 = vmul.f32 %v2331_v38, %v2302_v57  ;;  %v3748_v28 = vmul.f32 1.442695, %v3695_v42 }
 0x6d1   : > { %3038 = vmatpush.bf16.xpose.msra.mxu2 %v7693_v29  ;;  %v7962_v7 = vpop.f32.mrf.mxu0  ;;  %v3661_v39 = vpop.xlane.xlu1 %3660 }
 0x6d2   : > { %3052 = vmatpush.bf16.xpose.msra.mxu3 %v7696_v41  ;;  %v7965_v15 = vpop.f32.mrf.mxu1  ;;  %v2334_v22 = vpack.c.bf16 %v2332_v14, %v2332_v14  ;;  %v2335_v48 = vpack.c.bf16 %v2333_v25, %v2333_v25  ;;  %v3696_v38 = vsub.f32 %v7786_v58, %v3661_v39  ;;  %v3697_v57 = vsub.f32 %v7788_v31, %v3661_v39  ;;  %v7981_v58 = vpop.xlane.xlu0 %3654  ;;  %v9215_v31 = vld [vmem:[#allocation94_spill] sm:$0xff] }
 0x6d3   : > { %5403 = vpow2.f32 %v3748_v28  ;;  %v4025_v39 = vmax.f32 %v7922_v23, %v7924_v30  ;;  %v4767_v30 = vld [vmem:[#allocation2 + $0xa0] sm:$0xf]  ;;  %v4937_v23 = vld [vmem:[#allocation2 + $0xa4] sm:$0xf] }
 0x6d4   : > { %2336 = vst [vmem:[#allocation3 + $0x10] sm:$0xf] %v2334_v22  ;;  %v3750_v9 = vmul.f32 1.442695, %v3696_v38  ;;  %v3752_v14 = vmul.f32 1.442695, %v3697_v57  ;;  %v5402_v22 = vpop.eup %5401 }
 0x6d5   : > { %4014 = vmax.xlane.f32.xlu1 %v4013_v40  ;;  %2337 = vst [vmem:[#allocation3 + $0x18] sm:$0xf] %v2335_v48 }
 0x6d6   : > { %5405 = vpow2.f32 %v3750_v9 }
 0x6d7   : > { %5407 = vpow2.f32 %v3752_v14  ;;  %v9216_v14 = vld [vmem:[#allocation89_spill] sm:$0xff] }
 0x6d9   : > { %3039 = vmatpush.bf16.xpose.msra.mxu2 %v7669_v52  ;;  %v7974_v37 = vpop.f32.mrf.mxu0  ;;  %v5404_v48 = vpop.eup %5403 }
 0x6da   : > { %3053 = vmatpush.bf16.xpose.msra.mxu3 %v7674_v59  ;;  %9212 = vst [vmem:[#allocation95_spill] sm:$0xff] %v7974_v37  ;;  %v7976_v25 = vpop.f32.mrf.mxu1  ;;  %v7984_v50 = vpop.xlane.xlu1 %3645 }
 0x6db   : > { %9213 = vst [vmem:[#allocation100_spill] sm:$0xff] %v7976_v25  ;;  %v4040_v42 = vmax.f32 %v7974_v37, %v7976_v25 }
 0x6dc   : > { %v5406_v33 = vpop.eup %5405 }
 0x6dd   : > { %4041 = vmax.xlane.f32.xlu0 %v4040_v42  ;;  %v5408_v28 = vpop.eup %5407  ;;  %v7994_v57 = vpack.c.bf16 %v5406_v33, %v5402_v22  ;;  %v9217_v42 = vld [vmem:[#allocation114_spill] sm:$0xff]  ;;  %v4019_v22 = vmax.f32 %v7906_v62, %v7908_v24 }
 0x6de   : > { %v7996_v9 = vpack.c.bf16 %v5408_v28, %v5404_v48  ;;  %v4242_v28 = vld [vmem:[%s8473_s4] sm:$0xff] }
 0x6e1   : > { %3040 = vmatpush.bf16.xpose.msra.mxu2 %v9205_v11  ;;  %v7986_v40 = vpop.f32.mrf.mxu0  ;;  %v8001_v36 = vpop.xlane.xlu0 %3672 }
 0x6e2   : > { %3054 = vmatpush.bf16.xpose.msra.mxu3 %v9207_v18  ;;  %v7988_v16 = vpop.f32.mrf.mxu1  ;;  %v3643_v48 = vpop.xlane.xlu1 %3642 }
 0x6e3   : > { %v4043_v38 = vmax.f32 %v7986_v40, %v7988_v16  ;;  %v3684_v37 = vsub.f32 %v7720_v55, %v3643_v48  ;;  %v3685_v24 = vsub.f32 %v7722_v46, %v3643_v48 }
 0x6e5   : > { %4026 = vmax.xlane.f32.xlu0 %v4025_v39  ;;  %4044 = vmax.xlane.f32.xlu2 %v4043_v38  ;;  %v4938_v39 = vld [vmem:[#allocation2 + $0xa4] sm:$0xf0]  ;;  %v4769_v38 = vld [vmem:[#allocation2 + $0xa8] sm:$0xf0]  ;;  %v3728_v46 = vmul.f32 1.442695, %v3685_v24 }
 0x6e6   : > { %v8017_v25 = vor.u32 %v4937_v23, %v4769_v38 }
 0x6e9   : > { %3041 = vmatpush.bf16.xpose.msra.mxu2 %v9210_v44  ;;  %v8004_v61 = vpop.f32.mrf.mxu0  ;;  %v3640_v62 = vpop.xlane.xlu0 %3639 }
 0x6ea   : > { %3055 = vmatpush.bf16.xpose.msra.mxu3 %v9211_v17  ;;  %v8008_v33 = vpop.f32.mrf.mxu1  ;;  %v3682_v23 = vsub.f32 %v7702_v34, %v3640_v62  ;;  %v3683_v55 = vsub.f32 %v7704_v2, %v3640_v62  ;;  %v4248_v34 = vld [vmem:[%s8473_s4 + $0x30] sm:$0xff]  ;;  %v4037_v62 = vmax.f32 %v7962_v7, %v7965_v15 }
 0x6ed   : > { %4020 = vmax.xlane.f32.xlu0 %v4019_v22 }
 0x6ee   : > { %4252 = vperm.xlu1 %5012, %v4242_v28   ;;  %v4004_v28 = vmax.f32 %v7852_v54, %v7856_v0 }
 0x6f1   : > { %3042 = vmatpush.bf16.xpose.msra.mxu2 %v9214_v6  ;;  %v8025_v22 = vpop.f32.mrf.mxu0 }
 0x6f2   : > { %3056 = vmatpush.bf16.xpose.msra.mxu3 %v9215_v31  ;;  %v8031_v48 = vpop.f32.mrf.mxu1 }
 0x6f5   : > { %4005 = vmax.xlane.f32.xlu0 %v4004_v28  ;;  %v4243_v28 = vld [vmem:[%s8473_s4 + $0x8] sm:$0xff] }
 0x6f9   : > { %3043 = vmatpush.bf16.xpose.msra.mxu2 %v9216_v14 }
 0x6fa   : > { %3057 = vmatpush.bf16.xpose.msra.mxu3 %v9217_v42 }
 0x701   : > { %3064 = vmatpush.bf16.xpose.msrb.mxu2 %v7729_v43  ;;  %v4046_v43 = vmax.f32 %v8004_v61, %v8008_v33  ;;  %3058 = vmatmul.bf16.vlgmr.msra.gmra.mxu3 %v8017_v25 }
 0x702   : > { %3077 = vmatpush.bf16.xpose.msrb.mxu3 %v7732_v21  ;;  %v8015_v21 = vor.u32 %v4938_v39, %v4767_v30  ;;  %v3726_v30 = vmul.f32 1.442695, %v3684_v37  ;;  %v3724_v39 = vmul.f32 1.442695, %v3683_v55  ;;  %v8055_v55 = vpop.xlane.xlu0 %3636 }
 0x703   : > { %4047 = vmax.xlane.f32.xlu2 %v4046_v43  ;;  %v3722_v43 = vmul.f32 1.442695, %v3682_v23 }
 0x704   : > { %3044 = vmatmul.bf16.vlgmr.msra.gmra.mxu2 %v8015_v21  ;;  %5409 = vpow2.f32 %v3726_v30  ;;  %v8045_v30 = vpop.xlane.xlu1 %3627 }
 0x705   : > { %5411 = vpow2.f32 %v3728_v46 }
 0x706   : > { %5413 = vpow2.f32 %v3722_v43 }
 0x707   : > { %5415 = vpow2.f32 %v3724_v39 }
 0x709   : > { %3065 = vmatpush.bf16.xpose.msrb.mxu2 %v7713_v20  ;;  %v4245_v20 = vld [vmem:[%s8473_s4 + $0x18] sm:$0xff]  ;;  %4257 = vperm.xlu0 %5014, %v4243_v28  }
 0x70a   : > { %3078 = vmatpush.bf16.xpose.msrb.mxu3 %v7716_v13  ;;  %v4049_v13 = vmax.f32 %v8025_v22, %v8031_v48  ;;  %4267 = vperm.xlu1 %5012, %v4245_v20   ;;  %v5410_v2 = vpop.eup %5409  ;;  %v9218_v20 = vld [vmem:[#allocation17_spill] sm:$0xff] }
 0x70b   : > { %v5412_v24 = vpop.eup %5411 }
 0x70c   : > { %4050 = vmax.xlane.f32.xlu2 %v4049_v13  ;;  %v5414_v37 = vpop.eup %5413  ;;  %v900_v46 = vpop.permute.xlu1 %899  ;;  %v9219_v13 = vld [vmem:[#allocation18_spill] sm:$0xff] }
 0x70d   : > { %v5416_v38 = vpop.eup %5415  ;;  %v8047_v23 = vpack.c.bf16 %v5410_v2, %v5414_v37  ;;  %v1066_v43 = vadd.f32 %v9218_v20, %v900_v46  ;;  %v1135_v39 = vadd.f32 %v9219_v13, %v900_v46  ;;  %v895_v2 = vpop.permute.xlu0 %894  ;;  %v9221_v37 = vld [vmem:[#allocation14_spill] sm:$0xff]  ;;  %v9223_v46 = vld [vmem:[#allocation64_spill] sm:$0xff] }
 0x711   : > { %3066 = vmatpush.bf16.xpose.msrb.mxu2 %v7693_v29  ;;  %v8050_v29 = vpack.c.bf16 %v5412_v24, %v5416_v38  ;;  %v1133_v38 = vadd.f32 %v9221_v37, %v895_v2 }
 0x712   : > { %3079 = vmatpush.bf16.xpose.msrb.mxu3 %v7696_v41  ;;  %4282 = vperm.xlu1 %5012, %v4248_v34   ;;  %v4028_v41 = vmax.f32 %v7932_v35, %v7934_v26  ;;  %v4031_v34 = vmax.f32 %v7942_v56, %v7944_v47 }
 0x714   : > { %4038 = vmax.xlane.f32.xlu2 %v4037_v62  ;;  %v9220_v62 = vld [vmem:[#allocation13_spill] sm:$0xff] }
 0x715   : > { %v1064_v24 = vadd.f32 %v9220_v62, %v895_v2 }
 0x717   : > { %v1159_v28 = vpack.c.bf16 %v1133_v38, %v1064_v24 }
 0x719   : > { %3067 = vmatpush.bf16.xpose.msrb.mxu2 %v7669_v52  ;;  %v3291_v52 = vpop.xlane.xlu2 %3290  ;;  %1183 = vst [vmem:[#allocation2 + $0xb0] sm:$0xff] %v1159_v28 }
 0x71a   : > { %3080 = vmatpush.bf16.xpose.msrb.mxu3 %v7674_v59  ;;  %v1160_v59 = vpack.c.bf16 %v1135_v39, %v1066_v43  ;;  %v9224_v43 = vld [vmem:[#allocation62_spill] sm:$0xff]  ;;  %v9225_v39 = vld [vmem:[#allocation107_spill] sm:$0xff] }
 0x71b   : > { %v3320_v13 = vsub.f32 %v9224_v43, %v7806_v60  ;;  %v9228_v43 = vld [vmem:[#allocation10_spill] sm:$0xff] }
 0x71c   : > { %4029 = vmax.xlane.f32.xlu2 %v4028_v41  ;;  %1184 = vst [vmem:[#allocation2 + $0xb8] sm:$0xff] %v1160_v59  ;;  %v9222_v41 = vld [vmem:[#allocation115_spill] sm:$0xff]  ;;  %v3321_v59 = vsub.f32 %v9225_v39, %v7806_v60  ;;  %v9229_v39 = vld [vmem:[#allocation68_spill] sm:$0xff] }
 0x71d   : > { %v3322_v20 = vsub.f32 %v9222_v41, %v3291_v52  ;;  %v3380_v37 = vmul.f32 1.442695, %v3320_v13  ;;  %v4016_v41 = vmax.f32 %v7898_v45, %v7900_v3 }
 0x71e   : > { %v3382_v24 = vmul.f32 1.442695, %v3321_v59 }
 0x721   : > { %3068 = vmatpush.bf16.xpose.msrb.mxu2 %v9205_v11  ;;  %v4246_v11 = vld [vmem:[%s8473_s4 + $0x20] sm:$0xff]  ;;  %v3276_v62 = vpop.xlane.xlu2 %3275 }
 0x722   : > { %3081 = vmatpush.bf16.xpose.msrb.mxu3 %v9207_v18  ;;  %v3323_v18 = vsub.f32 %v9223_v46, %v3291_v52  ;;  %4272 = vperm.xlu0 %5014, %v4246_v11   ;;  %v4022_v52 = vmax.f32 %v7914_v19, %v7916_v5  ;;  %v9227_v11 = vld [vmem:[#allocation99_spill] sm:$0xff]  ;;  %v3312_v13 = vsub.f32 %v9228_v43, %v3276_v62 }
 0x723   : > { %v3315_v46 = vsub.f32 %v9227_v11, %v7903_v63 }
 0x724   : > { %4032 = vmax.xlane.f32.xlu2 %v4031_v34  ;;  %v3384_v34 = vmul.f32 1.442695, %v3322_v20  ;;  %v3386_v2 = vmul.f32 1.442695, %v3323_v18 }
 0x726   : > { %5417 = vpow2.f32 %v3384_v34 }
 0x727   : > { %5419 = vpow2.f32 %v3386_v2 }
 0x728   : > { %5421 = vpow2.f32 %v3380_v37  ;;  %v3370_v37 = vmul.f32 1.442695, %v3315_v46  ;;  %v8112_v46 = vpop.f32.mrf.mxu3 }
 0x729   : > { %3069 = vmatpush.bf16.xpose.msrb.mxu2 %v9210_v44  ;;  %v4249_v44 = vld [vmem:[%s8473_s4 + $0x38] sm:$0xff]  ;;  %5423 = vpow2.f32 %v3382_v24  ;;  %v3270_v18 = vpop.xlane.xlu2 %3269  ;;  %v9230_v24 = vld [vmem:[#allocation44_spill] sm:$0xff] }
 0x72a   : > { %3082 = vmatpush.bf16.xpose.msrb.mxu3 %v9211_v17  ;;  %4287 = vperm.xlu0 %5014, %v4249_v44   ;;  %v9226_v17 = vld [vmem:[#allocation98_spill] sm:$0xff]  ;;  %v4010_v44 = vmax.f32 %v7876_v51, %v7878_v8 }
 0x72b   : > { %v3314_v38 = vsub.f32 %v9226_v17, %v7903_v63  ;;  %v3364_v63 = vmul.f32 1.442695, %v3312_v13  ;;  %v9232_v17 = vld [vmem:[#allocation63_spill] sm:$0xff] }
 0x72c   : > { %4023 = vmax.xlane.f32.xlu2 %v4022_v52  ;;  %v5418_v60 = vpop.eup %5417 }
 0x72d   : > { %v5420_v20 = vpop.eup %5419  ;;  %v3368_v34 = vmul.f32 1.442695, %v3314_v38  ;;  %v8109_v38 = vpop.f32.mrf.mxu2 }
 0x72e   : > { %v5422_v28 = vpop.eup %5421 }
 0x72f   : > { %v8094_v59 = vpack.c.bf16 %v5418_v60, %v5422_v28  ;;  %5425 = vpow2.f32 %v3368_v34 }
 0x730   : > { %5427 = vpow2.f32 %v3370_v37  ;;  %v4007_v37 = vmax.f32 %v7866_v32, %v7868_v49  ;;  %v2669_v0 = vpop.f32.mrf.mxu3 }
 0x731   : > { %3070 = vmatpush.bf16.xpose.msrb.mxu2 %v9214_v6  ;;  %v5424_v6 = vpop.eup %5423  ;;  %5429 = vpow2.f32 %v3364_v63  ;;  %v3264_v11 = vpop.xlane.xlu2 %3263 }
 0x732   : > { %3083 = vmatpush.bf16.xpose.msrb.mxu3 %v9215_v31  ;;  %v3313_v31 = vsub.f32 %v9229_v39, %v3276_v62  ;;  %v8097_v2 = vpack.c.bf16 %v5420_v20, %v5424_v6  ;;  %v3310_v62 = vsub.f32 %v9230_v24, %v7912_v10 }
 0x734   : > { %4017 = vmax.xlane.f32.xlu2 %v4016_v41  ;;  %v3366_v52 = vmul.f32 1.442695, %v3313_v31  ;;  %v9233_v41 = vld [vmem:[#allocation36_spill] sm:$0xff]  ;;  %v3360_v28 = vmul.f32 1.442695, %v3310_v62  ;;  %v9236_v62 = vld [vmem:[#allocation42_spill] sm:$0xff] }
 0x735   : > { %v3309_v20 = vsub.f32 %v9233_v41, %v3270_v18  ;;  %v2655_v41 = vpop.f32.mrf.mxu2 }
 0x736   : > { %5431 = vpow2.f32 %v3366_v52  ;;  %v9235_v52 = vld [vmem:[#allocation34_spill] sm:$0xff] }
 0x737   : > { %v3358_v39 = vmul.f32 1.442695, %v3309_v20  ;;  %5433 = vpow2.f32 %v3360_v28  ;;  %v3307_v24 = vsub.f32 %v9235_v52, %v7926_v27  ;;  %v9240_v52 = vld [vmem:[#allocation47_spill] sm:$0xff] }
 0x739   : > { %3071 = vmatpush.bf16.xpose.msrb.mxu2 %v9216_v14  ;;  %v9231_v14 = vld [vmem:[#allocation35_spill] sm:$0xff]  ;;  %v3354_v28 = vmul.f32 1.442695, %v3307_v24  ;;  %v3302_v24 = vsub.f32 %v9240_v52, %v7936_v53 }
 0x73a   : > { %3084 = vmatpush.bf16.xpose.msrb.mxu3 %v9217_v42  ;;  %v3311_v60 = vsub.f32 %v9231_v14, %v7912_v10  ;;  %v3308_v42 = vsub.f32 %v9232_v17, %v3270_v18  ;;  %v5426_v10 = vpop.eup %5425  ;;  %v9234_v18 = vld [vmem:[#allocation113_spill] sm:$0xff]  ;;  %v9237_v14 = vld [vmem:[#allocation43_spill] sm:$0xff] }
 0x73b   : > { %v5428_v6 = vpop.eup %5427  ;;  %v3306_v34 = vsub.f32 %v9234_v18, %v7926_v27  ;;  %v3258_v18 = vpop.xlane.xlu2 %3257 }
 0x73c   : > { %4011 = vmax.xlane.f32.xlu2 %v4010_v44  ;;  %v3362_v43 = vmul.f32 1.442695, %v3311_v60  ;;  %v3356_v13 = vmul.f32 1.442695, %v3308_v42  ;;  %v5430_v31 = vpop.eup %5429  ;;  %v3304_v44 = vsub.f32 %v9236_v62, %v3264_v11  ;;  %v3305_v60 = vsub.f32 %v9237_v14, %v3264_v11  ;;  %v9241_v14 = vld [vmem:[#allocation104_spill] sm:$0xff] }
 0x73d   : > { %v5432_v63 = vpop.eup %5431  ;;  %v8126_v17 = vpack.c.bf16 %v5426_v10, %v5430_v31  ;;  %v3352_v42 = vmul.f32 1.442695, %v3306_v34  ;;  %v9238_v10 = vld [vmem:[#allocation60_spill] sm:$0xff] }
 0x73e   : > { %5435 = vpow2.f32 %v3362_v43  ;;  %v8128_v20 = vpack.c.bf16 %v5428_v6, %v5432_v63  ;;  %v5434_v43 = vpop.eup %5433  ;;  %v3348_v27 = vmul.f32 1.442695, %v3304_v44  ;;  %v3300_v31 = vsub.f32 %v9238_v10, %v3258_v18  ;;  %v9239_v6 = vld [vmem:[#allocation61_spill] sm:$0xff] }
 0x73f   : > { %5437 = vpow2.f32 %v3356_v13  ;;  %v3301_v34 = vsub.f32 %v9239_v6, %v3258_v18  ;;  %v3344_v6 = vmul.f32 1.442695, %v3302_v24  ;;  %v9246_v24 = vld [vmem:[#allocation52_spill] sm:$0xff] }
 0x740   : > { %3072 = vmatmul.bf16.vlgmr.msrb.gmra.mxu2 %v9161_v12  ;;  %5439 = vpow2.f32 %v3358_v39 }
 0x741   : > { %3404 = vmatpush.bf16.xpose.msra.mxu2 %v8094_v59  ;;  %3085 = vmatmul.bf16.vlgmr.msrb.gmra.mxu3 %v9161_v12  ;;  %5441 = vpow2.f32 %v3352_v42 }
 0x742   : > { %3418 = vmatpush.bf16.xpose.msra.mxu3 %v8097_v2  ;;  %5443 = vpow2.f32 %v3354_v28 }
 0x743   : > { %5445 = vpow2.f32 %v3348_v27  ;;  %v2681_v62 = vpop.f32.mrf.mxu2  ;;  %v3340_v27 = vmul.f32 1.442695, %v3300_v31  ;;  %v9244_v31 = vld [vmem:[#allocation96_spill] sm:$0xff] }
 0x744   : > { %4008 = vmax.xlane.f32.xlu2 %v4007_v37  ;;  %v5436_v13 = vpop.eup %5435  ;;  %v3350_v37 = vmul.f32 1.442695, %v3305_v60  ;;  %v3303_v60 = vsub.f32 %v9241_v14, %v7936_v53  ;;  %v2694_v42 = vpop.f32.mrf.mxu3  ;;  %v9243_v53 = vld [vmem:[#allocation46_spill] sm:$0xff] }
 0x745   : > { %v5438_v39 = vpop.eup %5437  ;;  %v2695_v10 = vadd.f32 %v2694_v42, %v2681_v62  ;;  %v9245_v62 = vld [vmem:[#allocation49_spill] sm:$0xff] }
 0x746   : > { %v5440_v11 = vpop.eup %5439  ;;  %5447 = vpow2.f32 %v3350_v37  ;;  %v8134_v63 = vpack.c.bf16 %v5434_v43, %v5438_v39  ;;  %v3342_v43 = vmul.f32 1.442695, %v3301_v34  ;;  %v3255_v37 = vpop.xlane.xlu2 %3254  ;;  %v3296_v42 = vsub.f32 %v9245_v62, %v9244_v31 }
 0x747   : > { %v8138_v44 = vpack.c.bf16 %v5436_v13, %v5440_v11  ;;  %v5442_v28 = vpop.eup %5441  ;;  %5449 = vrcp.f32 %v2695_v10  ;;  %v3346_v13 = vmul.f32 1.442695, %v3303_v60  ;;  %v9242_v11 = vld [vmem:[#allocation53_spill] sm:$0xff]  ;;  %v3299_v14 = vsub.f32 %v9243_v53, %v3255_v37 }
 0x748   : > { %v5444_v18 = vpop.eup %5443  ;;  %5451 = vpow2.f32 %v3340_v27  ;;  %v3298_v54 = vsub.f32 %v9242_v11, %v3255_v37  ;;  %v3297_v10 = vsub.f32 %v9246_v24, %v9244_v31  ;;  %v2668_v37 = vadd.f32 %v8112_v46, %v8109_v38  ;;  %v9248_v24 = vld [vmem:[#allocation48_spill] sm:$0xff] }
 0x749   : > { %3405 = vmatpush.bf16.xpose.msra.mxu2 %v7844_v4  ;;  %v5446_v39 = vpop.eup %5445  ;;  %5453 = vpow2.f32 %v3342_v43 }
 0x74a   : > { %3419 = vmatpush.bf16.xpose.msra.mxu3 %v7847_v1  ;;  %v8146_v49 = vpack.c.bf16 %v5442_v28, %v5446_v39  ;;  %5455 = vpow2.f32 %v3344_v6  ;;  %v3336_v43 = vmul.f32 1.442695, %v3298_v54  ;;  %v3338_v28 = vmul.f32 1.442695, %v3299_v14  ;;  %v9247_v54 = vld [vmem:[#allocation20_spill] sm:$0xff] }
 0x74b   : > { %v2683_v34 = vpop.f32.mrf.mxu2  ;;  %5457 = vpow2.f32 %v3346_v13  ;;  %v2670_v39 = vadd.f32 %v2669_v0, %v2655_v41  ;;  %v3332_v13 = vmul.f32 1.442695, %v3296_v42  ;;  %v3334_v53 = vmul.f32 1.442695, %v3297_v10  ;;  %v9249_v14 = vld [vmem:[#allocation108_spill] sm:$0xff] }
 0x74c   : > { %v5448_v52 = vpop.eup %5447  ;;  %v2696_v60 = vpop.f32.mrf.mxu3  ;;  %v3295_v8 = vsub.f32 %v9249_v14, %v9247_v54  ;;  %5459 = vpow2.f32 %v3336_v43  ;;  %v9251_v42 = vld [vmem:[#allocation8_spill] sm:$0xff] }
 0x74d   : > { %v8150_v32 = vpack.c.bf16 %v5444_v18, %v5448_v52  ;;  %v5450_v27 = vpop.eup %5449  ;;  %v4244_v18 = vld [vmem:[%s8473_s4 + $0x10] sm:$0xff]  ;;  %v3294_v60 = vsub.f32 %v9248_v24, %v9247_v54  ;;  %5461 = vpow2.f32 %v3338_v28  ;;  %v4247_v28 = vld [vmem:[%s8473_s4 + $0x28] sm:$0xff] }
 0x74e   : > { %v2699_v6 = vperm.slane %v5450_v27, 0  ;;  %v5452_v52 = vpop.eup %5451  ;;  %v9250_v27 = vld [vmem:[#allocation19_spill] sm:$0xff]  ;;  %5463 = vpow2.f32 %v3332_v13  ;;  %v3330_v43 = vmul.f32 1.442695, %v3295_v8 }
 0x74f   : > { %v5454_v11 = vpop.eup %5453  ;;  %v3292_v51 = vsub.f32 %v9251_v42, %v9250_v27  ;;  %5465 = vpow2.f32 %v3334_v53 }
 0x750   : > { %v2700_v31 = vmul.f32 %v2699_v6, %v2668_v37  ;;  %v2701_v62 = vmul.f32 %v2699_v6, %v2670_v39  ;;  %v5456_v34 = vpop.eup %5455  ;;  %v9252_v37 = vld [vmem:[#allocation101_spill] sm:$0xff]  ;;  %v3328_v6 = vmul.f32 1.442695, %v3294_v60 }
 0x751   : > { %3406 = vmatpush.bf16.xpose.msra.mxu2 %v8126_v17  ;;  %v5458_v0 = vpop.eup %5457  ;;  %v3392_v41 = vpack.c.bf16 %v5456_v34, %v5452_v52  ;;  %v3293_v39 = vsub.f32 %v9252_v37, %v9250_v27  ;;  %v3324_v52 = vmul.f32 1.442695, %v3292_v51  ;;  %v3670_v51 = vpop.xlane.xlu2 %3669  ;;  %v9257_v27 = vld [vmem:[#allocation41_spill] sm:$0xff] }
 0x752   : > { %3420 = vmatpush.bf16.xpose.msra.mxu3 %v8128_v20  ;;  %v2702_v38 = vpack.c.bf16 %v2700_v31, %v2700_v31  ;;  %v2703_v46 = vpack.c.bf16 %v2701_v62, %v2701_v62  ;;  %v3393_v10 = vpack.c.bf16 %v5458_v0, %v5454_v11  ;;  %5467 = vpow2.f32 %v3328_v6  ;;  %v9260_v6 = vld [vmem:[#allocation55_spill] sm:$0xff] }
 0x753   : > { %v3326_v62 = vmul.f32 1.442695, %v3293_v39  ;;  %5469 = vpow2.f32 %v3330_v43  ;;  %v9259_v39 = vld [vmem:[#allocation93_spill] sm:$0xff] }
 0x754   : > { %2704 = vst [vmem:[#allocation3 + $0x14] sm:$0xf] %v2702_v38  ;;  %5471 = vpow2.f32 %v3324_v52 }
 0x755   : > { %2705 = vst [vmem:[#allocation3 + $0x1c] sm:$0xf] %v2703_v46  ;;  %5473 = vpow2.f32 %v3326_v62 }
 0x759   : > { %3407 = vmatpush.bf16.xpose.msra.mxu2 %v8134_v63  ;;  %v3667_v38 = vpop.xlane.xlu2 %3666 }
 0x75a   : > { %3421 = vmatpush.bf16.xpose.msra.mxu3 %v8138_v44  ;;  %v3700_v42 = vsub.f32 %v9257_v27, %v3667_v38 }
 0x75c   : > { %4262 = vperm.xlu2 %5013, %v4244_v18   ;;  %v5460_v18 = vpop.eup %5459 }
 0x75d   : > { %v5462_v31 = vpop.eup %5461 }
 0x75e   : > { %v5464_v13 = vpop.eup %5463 }
 0x75f   : > { %v5466_v11 = vpop.eup %5465  ;;  %v3390_v53 = vpack.c.bf16 %v5460_v18, %v5464_v13 }
 0x760   : > { %v3391_v34 = vpack.c.bf16 %v5462_v31, %v5466_v11  ;;  %v5468_v8 = vpop.eup %5467 }
 0x761   : > { %3408 = vmatpush.bf16.xpose.msra.mxu2 %v8146_v49  ;;  %v5470_v54 = vpop.eup %5469 }
 0x762   : > { %3422 = vmatpush.bf16.xpose.msra.mxu3 %v8150_v32  ;;  %v5472_v24 = vpop.eup %5471 }
 0x763   : > { %v5474_v60 = vpop.eup %5473  ;;  %v3388_v14 = vpack.c.bf16 %v5468_v8, %v5472_v24 }
 0x764   : > { %4277 = vperm.xlu2 %5013, %v4247_v28   ;;  %v3389_v0 = vpack.c.bf16 %v5470_v54, %v5474_v60  ;;  %v3652_v54 = vpop.xlane.xlu2 %3651 }
 0x769   : > { %3409 = vmatpush.bf16.xpose.msra.mxu2 %v3392_v41 }
 0x76a   : > { %3423 = vmatpush.bf16.xpose.msra.mxu3 %v3393_v10 }
 0x771   : > { %3410 = vmatpush.bf16.xpose.msra.mxu2 %v3390_v53 }
 0x772   : > { %3424 = vmatpush.bf16.xpose.msra.mxu3 %v3391_v34 }
 0x779   : > { %3411 = vmatpush.bf16.xpose.msra.mxu2 %v3388_v14 }
 0x77a   : > { %3425 = vmatpush.bf16.xpose.msra.mxu3 %v3389_v0 }
 0x780   : > { %3412 = vmatmul.bf16.vlgmr.msra.gmra.mxu2 %v8015_v21  ;;  %v9253_v21 = vld [vmem:[#allocation31_spill] sm:$0xff] }
 0x781   : > { %3432 = vmatpush.bf16.xpose.msrb.mxu2 %v8094_v59  ;;  %3426 = vmatmul.bf16.vlgmr.msra.gmra.mxu3 %v8017_v25  ;;  %v3704_v25 = vsub.f32 %v9253_v21, %v8001_v36 }
 0x782   : > { %3445 = vmatpush.bf16.xpose.msrb.mxu3 %v8097_v2 }
 0x789   : > { %3433 = vmatpush.bf16.xpose.msrb.mxu2 %v7844_v4  ;;  %v9254_v4 = vld [vmem:[#allocation28_spill] sm:$0xff] }
 0x78a   : > { %3446 = vmatpush.bf16.xpose.msrb.mxu3 %v7847_v1  ;;  %v3705_v59 = vsub.f32 %v9254_v4, %v8001_v36  ;;  %v9255_v1 = vld [vmem:[#allocation65_spill] sm:$0xff]  ;;  %v3698_v36 = vsub.f32 %v9260_v6, %v9259_v39 }
 0x78b   : > { %v3702_v2 = vsub.f32 %v9255_v1, %v3670_v51 }
 0x78c   : > { %v3754_v52 = vmul.f32 1.442695, %v3698_v36  ;;  %v9268_v36 = vld [vmem:[#allocation117_spill] sm:$0xff] }
 0x78d   : > { %v3762_v46 = vmul.f32 1.442695, %v3702_v2 }
 0x791   : > { %3434 = vmatpush.bf16.xpose.msrb.mxu2 %v8126_v17  ;;  %v9256_v17 = vld [vmem:[#allocation85_spill] sm:$0xff] }
 0x792   : > { %3447 = vmatpush.bf16.xpose.msrb.mxu3 %v8128_v20  ;;  %v3703_v20 = vsub.f32 %v9256_v17, %v3670_v51  ;;  %v9262_v51 = vld [vmem:[#allocation27_spill] sm:$0xff] }
 0x793   : > { %v3690_v21 = vsub.f32 %v9262_v51, %v3652_v54 }
 0x799   : > { %3435 = vmatpush.bf16.xpose.msrb.mxu2 %v8134_v63  ;;  %v3766_v63 = vmul.f32 1.442695, %v3704_v25  ;;  %v8203_v25 = vpop.f32.mrf.mxu2 }
 0x79a   : > { %3448 = vmatpush.bf16.xpose.msrb.mxu3 %v8138_v44  ;;  %v3768_v44 = vmul.f32 1.442695, %v3705_v59  ;;  %v9263_v59 = vld [vmem:[#allocation74_spill] sm:$0xff] }
 0x79b   : > { %5475 = vpow2.f32 %v3766_v63  ;;  %v3691_v1 = vsub.f32 %v9263_v59, %v3652_v54  ;;  %v9265_v63 = vld [vmem:[#allocation75_spill] sm:$0xff] }
 0x79c   : > { %5477 = vpow2.f32 %v3768_v44  ;;  %v3738_v44 = vmul.f32 1.442695, %v3690_v21 }
 0x79d   : > { %5479 = vpow2.f32 %v3762_v46  ;;  %v3740_v46 = vmul.f32 1.442695, %v3691_v1 }
 0x7a1   : > { %3436 = vmatpush.bf16.xpose.msrb.mxu2 %v8146_v49  ;;  %v3764_v49 = vmul.f32 1.442695, %v3703_v20  ;;  %v5476_v18 = vpop.eup %5475 }
 0x7a2   : > { %3449 = vmatpush.bf16.xpose.msrb.mxu3 %v8150_v32  ;;  %v9258_v32 = vld [vmem:[#allocation33_spill] sm:$0xff]  ;;  %v5478_v31 = vpop.eup %5477 }
 0x7a3   : > { %v3701_v37 = vsub.f32 %v9258_v32, %v3667_v38  ;;  %5481 = vpow2.f32 %v3764_v49  ;;  %v5480_v13 = vpop.eup %5479  ;;  %v3693_v38 = vsub.f32 %v9265_v63, %v7981_v58  ;;  %v3649_v49 = vpop.xlane.xlu2 %3648  ;;  %v9266_v32 = vld [vmem:[#allocation50_spill] sm:$0xff] }
 0x7a4   : > { %v8196_v8 = vpack.c.bf16 %v5476_v18, %v5480_v13 }
 0x7a5   : > { %v3760_v28 = vmul.f32 1.442695, %v3701_v37  ;;  %v3688_v37 = vsub.f32 %v9266_v32, %v3649_v49 }
 0x7a7   : > { %v3734_v18 = vmul.f32 1.442695, %v3688_v37 }
 0x7a9   : > { %3437 = vmatpush.bf16.xpose.msrb.mxu2 %v3392_v41  ;;  %v9261_v41 = vld [vmem:[#allocation40_spill] sm:$0xff]  ;;  %v5482_v11 = vpop.eup %5481 }
 0x7aa   : > { %3450 = vmatpush.bf16.xpose.msrb.mxu3 %v3393_v10  ;;  %v3699_v43 = vsub.f32 %v9261_v41, %v9259_v39  ;;  %v3758_v10 = vmul.f32 1.442695, %v3700_v42  ;;  %v3744_v42 = vmul.f32 1.442695, %v3693_v38  ;;  %v9267_v39 = vld [vmem:[#allocation51_spill] sm:$0xff]  ;;  %v3686_v41 = vsub.f32 %v9268_v36, %v7984_v50 }
 0x7ab   : > { %v3689_v6 = vsub.f32 %v9267_v39, %v3649_v49  ;;  %v3634_v51 = vpop.xlane.xlu2 %3633  ;;  %v9273_v39 = vld [vmem:[#allocation116_spill] sm:$0xff] }
 0x7ac   : > { %v3756_v62 = vmul.f32 1.442695, %v3699_v43  ;;  %5483 = vpow2.f32 %v3758_v10  ;;  %v9269_v43 = vld [vmem:[#allocation78_spill] sm:$0xff] }
 0x7ad   : > { %5485 = vpow2.f32 %v3760_v28  ;;  %v3687_v10 = vsub.f32 %v9269_v43, %v7984_v50 }
 0x7ae   : > { %5487 = vpow2.f32 %v3754_v52  ;;  %v3736_v52 = vmul.f32 1.442695, %v3689_v6  ;;  %v3681_v6 = vsub.f32 %v9273_v39, %v8055_v55 }
 0x7af   : > { %5489 = vpow2.f32 %v3756_v62  ;;  %v3730_v62 = vmul.f32 1.442695, %v3686_v41 }
 0x7b0   : > { %5491 = vpow2.f32 %v3738_v44  ;;  %v9271_v44 = vld [vmem:[#allocation79_spill] sm:$0xff] }
 0x7b1   : > { %3438 = vmatpush.bf16.xpose.msrb.mxu2 %v3390_v53  ;;  %v8198_v53 = vpack.c.bf16 %v5478_v31, %v5482_v11  ;;  %5493 = vpow2.f32 %v3740_v46  ;;  %v3732_v11 = vmul.f32 1.442695, %v3687_v10  ;;  %v3679_v46 = vsub.f32 %v9271_v44, %v3634_v51 }
 0x7b2   : > { %3451 = vmatpush.bf16.xpose.msrb.mxu3 %v3391_v34  ;;  %v5484_v34 = vpop.eup %5483 }
 0x7b3   : > { %v5486_v24 = vpop.eup %5485  ;;  %v3716_v10 = vmul.f32 1.442695, %v3679_v46 }
 0x7b4   : > { %v5488_v60 = vpop.eup %5487 }
 0x7b5   : > { %v5490_v4 = vpop.eup %5489  ;;  %v8209_v2 = vpack.c.bf16 %v5484_v34, %v5488_v60 }
 0x7b6   : > { %v8214_v20 = vpack.c.bf16 %v5486_v24, %v5490_v4  ;;  %v5492_v31 = vpop.eup %5491 }
 0x7b7   : > { %v5494_v13 = vpop.eup %5493 }
 0x7b9   : > { %3439 = vmatpush.bf16.xpose.msrb.mxu2 %v3388_v14  ;;  %v8206_v14 = vpop.f32.mrf.mxu3 }
 0x7ba   : > { %3452 = vmatpush.bf16.xpose.msrb.mxu3 %v3389_v0  ;;  %v9264_v0 = vld [vmem:[#allocation82_spill] sm:$0xff] }
 0x7bb   : > { %v3692_v17 = vsub.f32 %v9264_v0, %v7981_v58  ;;  %v3047_v58 = vpop.f32.mrf.mxu2 }
 0x7bd   : > { %v3742_v27 = vmul.f32 1.442695, %v3692_v17  ;;  %v9270_v17 = vld [vmem:[#allocation70_spill] sm:$0xff] }
 0x7be   : > { %v3678_v63 = vsub.f32 %v9270_v17, %v3634_v51  ;;  %v9275_v51 = vld [vmem:[#allocation56_spill] sm:$0xff] }
 0x7bf   : > { %5495 = vpow2.f32 %v3742_v27  ;;  %v9272_v27 = vld [vmem:[#allocation80_spill] sm:$0xff] }
 0x7c0   : > { %3440 = vmatmul.bf16.vlgmr.msrb.gmra.mxu2 %v9161_v12  ;;  %5497 = vpow2.f32 %v3744_v42  ;;  %v3680_v42 = vsub.f32 %v9272_v27, %v8055_v55  ;;  %v3714_v43 = vmul.f32 1.442695, %v3678_v63  ;;  %v9274_v55 = vld [vmem:[#allocation84_spill] sm:$0xff] }
 0x7c1   : > { %3796 = vmatpush.bf16.xpose.msra.mxu2 %v8196_v8  ;;  %3453 = vmatmul.bf16.vlgmr.msrb.gmra.mxu3 %v9161_v12  ;;  %v3061_v28 = vpop.f32.mrf.mxu3  ;;  %5499 = vpow2.f32 %v3734_v18  ;;  %v3631_v18 = vpop.xlane.xlu2 %3630 }
 0x7c2   : > { %3810 = vmatpush.bf16.xpose.msra.mxu3 %v8198_v53  ;;  %5501 = vpow2.f32 %v3736_v52  ;;  %v3060_v52 = vadd.f32 %v8206_v14, %v8203_v25  ;;  %v9277_v25 = vld [vmem:[#allocation87_spill] sm:$0xff] }
 0x7c3   : > { %5503 = vpow2.f32 %v3730_v62  ;;  %v3073_v60 = vpop.f32.mrf.mxu2  ;;  %v3675_v14 = vsub.f32 %v9277_v25, %v8045_v30 }
 0x7c4   : > { %5505 = vpow2.f32 %v3732_v11  ;;  %v3720_v11 = vmul.f32 1.442695, %v3681_v6 }
 0x7c5   : > { %v5496_v54 = vpop.eup %5495  ;;  %v3708_v44 = vmul.f32 1.442695, %v3675_v14 }
 0x7c6   : > { %v5498_v34 = vpop.eup %5497  ;;  %v8228_v24 = vpack.c.bf16 %v5496_v54, %v5492_v31  ;;  %v3062_v31 = vadd.f32 %v3061_v28, %v3047_v58 }
 0x7c7   : > { %v8230_v50 = vpack.c.bf16 %v5498_v34, %v5494_v13  ;;  %v5500_v59 = vpop.eup %5499  ;;  %v3718_v13 = vmul.f32 1.442695, %v3680_v42 }
 0x7c8   : > { %v5502_v1 = vpop.eup %5501 }
 0x7c9   : > { %3797 = vmatpush.bf16.xpose.msra.mxu2 %v8209_v2  ;;  %v3086_v21 = vpop.f32.mrf.mxu3  ;;  %v5504_v0 = vpop.eup %5503 }
 0x7ca   : > { %3811 = vmatpush.bf16.xpose.msra.mxu3 %v8214_v20  ;;  %v3087_v4 = vadd.f32 %v3086_v21, %v3073_v60  ;;  %v5506_v38 = vpop.eup %5505  ;;  %v8236_v49 = vpack.c.bf16 %v5500_v59, %v5504_v0  ;;  %v3676_v60 = vsub.f32 %v9274_v55, %v3631_v18  ;;  %v3677_v21 = vsub.f32 %v9275_v51, %v3631_v18  ;;  %v4823_v18 = vld [vmem:[#allocation2 + $0xb0] sm:$0xf] }
 0x7cb   : > { %v8240_v32 = vpack.c.bf16 %v5502_v1, %v5506_v38  ;;  %v3075_v37 = vpop.f32.mrf.mxu2  ;;  %v9276_v1 = vld [vmem:[#allocation86_spill] sm:$0xff] }
 0x7cc   : > { %5507 = vrcp.f32 %v3087_v4  ;;  %v3674_v0 = vsub.f32 %v9276_v1, %v8045_v30  ;;  %v3710_v58 = vmul.f32 1.442695, %v3676_v60  ;;  %v3712_v28 = vmul.f32 1.442695, %v3677_v21 }
 0x7cd   : > { %5509 = vpow2.f32 %v3714_v43 }
 0x7ce   : > { %5511 = vpow2.f32 %v3716_v10  ;;  %v3706_v63 = vmul.f32 1.442695, %v3674_v0  ;;  %v4045_v10 = vpop.xlane.xlu2 %4044  ;;  %v4036_v0 = vpop.xlane.xlu1 %4035 }
 0x7cf   : > { %5513 = vpow2.f32 %v3718_v13  ;;  %v4825_v13 = vld [vmem:[#allocation2 + $0xb8] sm:$0xf0] }
 0x7d0   : > { %5515 = vpow2.f32 %v3720_v11 }
 0x7d1   : > { %3798 = vmatpush.bf16.xpose.msra.mxu2 %v7994_v57  ;;  %v3088_v36 = vpop.f32.mrf.mxu3  ;;  %5517 = vpow2.f32 %v3710_v58 }
 0x7d2   : > { %3812 = vmatpush.bf16.xpose.msra.mxu3 %v7996_v9  ;;  %v5508_v41 = vpop.eup %5507  ;;  %5519 = vpow2.f32 %v3712_v28 }
 0x7d3   : > { %v3091_v62 = vperm.slane %v5508_v41, 0  ;;  %v5510_v17 = vpop.eup %5509  ;;  %5521 = vpow2.f32 %v3706_v63 }
 0x7d4   : > { %v5512_v38 = vpop.eup %5511  ;;  %5523 = vpow2.f32 %v3708_v44  ;;  %v9281_v44 = vld [vmem:[#allocation97_spill] sm:$0xff] }
 0x7d5   : > { %v3092_v54 = vmul.f32 %v3091_v62, %v3060_v52  ;;  %v3093_v34 = vmul.f32 %v3091_v62, %v3062_v31  ;;  %v5514_v46 = vpop.eup %5513  ;;  %v4943_v52 = vld [vmem:[#allocation2 + $0xb4] sm:$0xf]  ;;  %v4944_v31 = vld [vmem:[#allocation2 + $0xb4] sm:$0xf0] }
 0x7d6   : > { %v5516_v27 = vpop.eup %5515  ;;  %v3772_v42 = vpack.c.bf16 %v5514_v46, %v5510_v17  ;;  %v8264_v62 = vor.u32 %v4944_v31, %v4823_v18  ;;  %v8266_v11 = vor.u32 %v4943_v52, %v4825_v13  ;;  %v9280_v17 = vld [vmem:[#allocation71_spill] sm:$0xff]  ;;  %v4073_v46 = vsub.f32 %v9281_v44, %v4036_v0 }
 0x7d7   : > { %v3094_v4 = vpack.c.bf16 %v3092_v54, %v3092_v54  ;;  %v3095_v59 = vpack.c.bf16 %v3093_v34, %v3093_v34  ;;  %v3773_v30 = vpack.c.bf16 %v5516_v27, %v5512_v38  ;;  %v5518_v37 = vpop.eup %5517  ;;  %v4072_v63 = vsub.f32 %v9280_v17, %v4036_v0  ;;  %v9285_v17 = vld [vmem:[#allocation24_spill] sm:$0xff] }
 0x7d8   : > { %v5520_v39 = vpop.eup %5519 }
 0x7d9   : > { %3799 = vmatpush.bf16.xpose.msra.mxu2 %v8228_v24  ;;  %3096 = vst [vmem:[#allocation3 + $0x20] sm:$0xf] %v3094_v4  ;;  %v5522_v6 = vpop.eup %5521 }
 0x7da   : > { %3813 = vmatpush.bf16.xpose.msra.mxu3 %v8230_v50  ;;  %3097 = vst [vmem:[#allocation3 + $0x28] sm:$0xf] %v3095_v59  ;;  %v5524_v36 = vpop.eup %5523  ;;  %v8256_v41 = vpack.c.bf16 %v5518_v37, %v5522_v6  ;;  %v4126_v37 = vmul.f32 1.442695, %v4073_v46 }
 0x7db   : > { %v8258_v43 = vpack.c.bf16 %v5520_v39, %v5524_v36 }
 0x7e1   : > { %3800 = vmatpush.bf16.xpose.msra.mxu2 %v8236_v49 }
 0x7e2   : > { %3814 = vmatpush.bf16.xpose.msra.mxu3 %v8240_v32 }
 0x7e9   : > { %3801 = vmatpush.bf16.xpose.msra.mxu2 %v8047_v23 }
 0x7ea   : > { %3815 = vmatpush.bf16.xpose.msra.mxu3 %v8050_v29 }
 0x7f1   : > { %3802 = vmatpush.bf16.xpose.msra.mxu2 %v3772_v42 }
 0x7f2   : > { %3816 = vmatpush.bf16.xpose.msra.mxu3 %v3773_v30 }
 0x7f9   : > { %3803 = vmatpush.bf16.xpose.msra.mxu2 %v8256_v41 }
 0x7fa   : > { %3817 = vmatpush.bf16.xpose.msra.mxu3 %v8258_v43 }
 0x800   : > { %3804 = vmatmul.bf16.vlgmr.msra.gmra.mxu2 %v8264_v62 }
 0x801   : > { %3824 = vmatpush.bf16.xpose.msrb.mxu2 %v8196_v8  ;;  %3818 = vmatmul.bf16.vlgmr.msra.gmra.mxu3 %v8266_v11  ;;  %v4048_v8 = vpop.xlane.xlu2 %4047 }
 0x802   : > { %3837 = vmatpush.bf16.xpose.msrb.mxu3 %v8198_v53 }
 0x804   : > { %v8306_v18 = vpop.f32.mrf.mxu3 }
 0x809   : > { %3825 = vmatpush.bf16.xpose.msrb.mxu2 %v8209_v2  ;;  %v4051_v53 = vpop.xlane.xlu2 %4050 }
 0x80a   : > { %3838 = vmatpush.bf16.xpose.msrb.mxu3 %v8214_v20  ;;  %v4082_v34 = vsub.f32 %v8025_v22, %v4051_v53  ;;  %v4083_v2 = vsub.f32 %v8031_v48, %v4051_v53  ;;  %v4080_v20 = vsub.f32 %v8004_v61, %v4048_v8  ;;  %v4079_v22 = vsub.f32 %v7988_v16, %v4045_v10  ;;  %v9278_v61 = vld [vmem:[#allocation95_spill] sm:$0xff] }
 0x80c   : > { %v4140_v55 = vmul.f32 1.442695, %v4080_v20  ;;  %v4138_v51 = vmul.f32 1.442695, %v4079_v22  ;;  %v9283_v22 = vld [vmem:[#allocation72_spill] sm:$0xff] }
 0x811   : > { %3826 = vmatpush.bf16.xpose.msrb.mxu2 %v7994_v57  ;;  %v4039_v54 = vpop.xlane.xlu2 %4038  ;;  %v4081_v57 = vsub.f32 %v8008_v33, %v4048_v8  ;;  %v9279_v33 = vld [vmem:[#allocation100_spill] sm:$0xff] }
 0x812   : > { %3839 = vmatpush.bf16.xpose.msrb.mxu3 %v7996_v9  ;;  %v4074_v16 = vsub.f32 %v7962_v7, %v4039_v54  ;;  %v4075_v58 = vsub.f32 %v7965_v15, %v4039_v54 }
 0x813   : > { %v4142_v60 = vmul.f32 1.442695, %v4081_v57 }
 0x814   : > { %v4128_v7 = vmul.f32 1.442695, %v4074_v16  ;;  %v4130_v15 = vmul.f32 1.442695, %v4075_v58 }
 0x819   : > { %3827 = vmatpush.bf16.xpose.msrb.mxu2 %v8228_v24  ;;  %v8283_v9 = vpop.xlane.xlu2 %4029  ;;  %v4144_v24 = vmul.f32 1.442695, %v4082_v34 }
 0x81a   : > { %3840 = vmatpush.bf16.xpose.msrb.mxu3 %v8230_v50  ;;  %v4146_v50 = vmul.f32 1.442695, %v4083_v2  ;;  %v4068_v31 = vsub.f32 %v7932_v35, %v8283_v9  ;;  %v4069_v8 = vsub.f32 %v7934_v26, %v8283_v9  ;;  %v9282_v9 = vld [vmem:[#allocation25_spill] sm:$0xff] }
 0x81b   : > { %5525 = vpow2.f32 %v4144_v24 }
 0x81c   : > { %5527 = vpow2.f32 %v4146_v50  ;;  %v4116_v34 = vmul.f32 1.442695, %v4068_v31  ;;  %v4118_v20 = vmul.f32 1.442695, %v4069_v8  ;;  %v9288_v8 = vld [vmem:[#allocation22_spill] sm:$0xff] }
 0x81d   : > { %5529 = vpow2.f32 %v4140_v55 }
 0x81e   : > { %5531 = vpow2.f32 %v4142_v60 }
 0x821   : > { %3828 = vmatpush.bf16.xpose.msrb.mxu2 %v8236_v49  ;;  %v4042_v49 = vpop.xlane.xlu0 %4041  ;;  %v4033_v21 = vpop.xlane.xlu2 %4032 }
 0x822   : > { %3841 = vmatpush.bf16.xpose.msrb.mxu3 %v8240_v32  ;;  %v4078_v32 = vsub.f32 %v7986_v40, %v4045_v10  ;;  %v4076_v48 = vsub.f32 %v9278_v61, %v4042_v49  ;;  %v5526_v4 = vpop.eup %5525  ;;  %v4070_v36 = vsub.f32 %v7942_v56, %v4033_v21 }
 0x823   : > { %v5528_v1 = vpop.eup %5527 }
 0x824   : > { %v4132_v59 = vmul.f32 1.442695, %v4076_v48  ;;  %v5530_v25 = vpop.eup %5529  ;;  %v3429_v48 = vpop.f32.mrf.mxu3 }
 0x825   : > { %v5532_v14 = vpop.eup %5531  ;;  %v8292_v28 = vpack.c.bf16 %v5526_v4, %v5530_v25 }
 0x826   : > { %v8296_v38 = vpack.c.bf16 %v5528_v1, %v5532_v14  ;;  %v9284_v1 = vld [vmem:[#allocation81_spill] sm:$0xff] }
 0x829   : > { %3829 = vmatpush.bf16.xpose.msrb.mxu2 %v8047_v23  ;;  %v4077_v23 = vsub.f32 %v9279_v33, %v4042_v49  ;;  %v4024_v39 = vpop.xlane.xlu2 %4023  ;;  %v4027_v56 = vpop.xlane.xlu0 %4026 }
 0x82a   : > { %3842 = vmatpush.bf16.xpose.msrb.mxu3 %v8050_v29  ;;  %v4136_v29 = vmul.f32 1.442695, %v4078_v32  ;;  %v4064_v57 = vsub.f32 %v7914_v19, %v4024_v39  ;;  %v4065_v50 = vsub.f32 %v7916_v5, %v4024_v39  ;;  %v4066_v49 = vsub.f32 %v9282_v9, %v4027_v56 }
 0x82b   : > { %v4134_v40 = vmul.f32 1.442695, %v4077_v23  ;;  %v4067_v61 = vsub.f32 %v9283_v22, %v4027_v56 }
 0x82c   : > { %5533 = vpow2.f32 %v4136_v29  ;;  %v4108_v19 = vmul.f32 1.442695, %v4064_v57  ;;  %v4110_v5 = vmul.f32 1.442695, %v4065_v50  ;;  %v4112_v29 = vmul.f32 1.442695, %v4066_v49 }
 0x82d   : > { %5535 = vpow2.f32 %v4138_v51 }
 0x82e   : > { %5537 = vpow2.f32 %v4132_v59 }
 0x82f   : > { %5539 = vpow2.f32 %v4134_v40 }
 0x830   : > { %5541 = vpow2.f32 %v4128_v7 }
 0x831   : > { %3830 = vmatpush.bf16.xpose.msrb.mxu2 %v3772_v42  ;;  %v4124_v42 = vmul.f32 1.442695, %v4072_v63  ;;  %5543 = vpow2.f32 %v4130_v15  ;;  %v4018_v55 = vpop.xlane.xlu2 %4017  ;;  %v4021_v33 = vpop.xlane.xlu0 %4020 }
 0x832   : > { %3843 = vmatpush.bf16.xpose.msrb.mxu3 %v3773_v30  ;;  %v5534_v27 = vpop.eup %5533  ;;  %v4060_v4 = vsub.f32 %v7898_v45, %v4018_v55  ;;  %v4062_v0 = vsub.f32 %v9284_v1, %v4021_v33  ;;  %v4061_v25 = vsub.f32 %v7900_v3, %v4018_v55  ;;  %v4063_v63 = vsub.f32 %v9285_v17, %v4021_v33 }
 0x833   : > { %v5536_v30 = vpop.eup %5535  ;;  %5545 = vpow2.f32 %v4124_v42 }
 0x834   : > { %v5538_v6 = vpop.eup %5537  ;;  %5547 = vpow2.f32 %v4126_v37  ;;  %v4100_v44 = vmul.f32 1.442695, %v4060_v4  ;;  %v4104_v7 = vmul.f32 1.442695, %v4062_v0  ;;  %v4106_v37 = vmul.f32 1.442695, %v4063_v63 }
 0x835   : > { %v5540_v10 = vpop.eup %5539  ;;  %v8309_v52 = vpack.c.bf16 %v5534_v27, %v5538_v6  ;;  %v4102_v27 = vmul.f32 1.442695, %v4061_v25  ;;  %v9286_v6 = vld [vmem:[#allocation67_spill] sm:$0xff]  ;;  %v9291_v0 = vld [vmem:[#allocation69_spill] sm:$0xff] }
 0x836   : > { %v8314_v13 = vpack.c.bf16 %v5536_v30, %v5540_v10  ;;  %v5542_v54 = vpop.eup %5541  ;;  %v4015_v30 = vpop.xlane.xlu1 %4014 }
 0x837   : > { %v5544_v2 = vpop.eup %5543 }
 0x839   : > { %3831 = vmatpush.bf16.xpose.msrb.mxu2 %v8256_v41  ;;  %v8303_v41 = vpop.f32.mrf.mxu2  ;;  %v5546_v35 = vpop.eup %5545 }
 0x83a   : > { %3844 = vmatpush.bf16.xpose.msrb.mxu3 %v8258_v43  ;;  %v4071_v43 = vsub.f32 %v7944_v47, %v4033_v21  ;;  %v4120_v47 = vmul.f32 1.442695, %v4070_v36  ;;  %v5548_v24 = vpop.eup %5547  ;;  %v8322_v26 = vpack.c.bf16 %v5542_v54, %v5546_v35  ;;  %v4114_v21 = vmul.f32 1.442695, %v4067_v61  ;;  %v4012_v46 = vpop.xlane.xlu2 %4011 }
 0x83b   : > { %v8325_v32 = vpack.c.bf16 %v5544_v2, %v5548_v24  ;;  %v4056_v36 = vsub.f32 %v9286_v6, %v4012_v46  ;;  %v3428_v9 = vadd.f32 %v8306_v18, %v8303_v41  ;;  %v9292_v41 = vld [vmem:[#allocation26_spill] sm:$0xff] }
 0x83c   : > { %v4122_v53 = vmul.f32 1.442695, %v4071_v43  ;;  %5549 = vpow2.f32 %v4120_v47  ;;  %v9287_v43 = vld [vmem:[#allocation21_spill] sm:$0xff]  ;;  %v4058_v47 = vsub.f32 %v9288_v8, %v4015_v30 }
 0x83d   : > { %v4057_v31 = vsub.f32 %v9287_v43, %v4012_v46  ;;  %v4092_v57 = vmul.f32 1.442695, %v4056_v36 }
 0x83e   : > { %5551 = vpow2.f32 %v4122_v53 }
 0x83f   : > { %5553 = vpow2.f32 %v4116_v34  ;;  %v9289_v34 = vld [vmem:[#allocation90_spill] sm:$0xff]  ;;  %v4094_v50 = vmul.f32 1.442695, %v4057_v31 }
 0x840   : > { %3832 = vmatmul.bf16.vlgmr.msrb.gmra.mxu2 %v9161_v12  ;;  %5555 = vpow2.f32 %v4118_v20  ;;  %v4059_v2 = vsub.f32 %v9289_v34, %v4015_v30 }
 0x841   : > { %4164 = vmatpush.bf16.xpose.msra.mxu2 %v8292_v28  ;;  %3845 = vmatmul.bf16.vlgmr.msrb.gmra.mxu3 %v9161_v12  ;;  %v3415_v60 = vpop.f32.mrf.mxu2  ;;  %5557 = vpow2.f32 %v4108_v19  ;;  %v4096_v19 = vmul.f32 1.442695, %v4058_v47 }
 0x842   : > { %4178 = vmatpush.bf16.xpose.msra.mxu3 %v8296_v38  ;;  %v5550_v23 = vpop.eup %5549  ;;  %5559 = vpow2.f32 %v4110_v5  ;;  %v4009_v55 = vpop.xlane.xlu2 %4008  ;;  %v3430_v49 = vadd.f32 %v3429_v48, %v3415_v60  ;;  %v4098_v5 = vmul.f32 1.442695, %v4059_v2  ;;  %v9293_v48 = vld [vmem:[#allocation23_spill] sm:$0xff] }
 0x843   : > { %5561 = vpow2.f32 %v4112_v29 }
 0x844   : > { %v5552_v51 = vpop.eup %5551  ;;  %5563 = vpow2.f32 %v4114_v21  ;;  %v3454_v45 = vpop.f32.mrf.mxu3  ;;  %v9290_v21 = vld [vmem:[#allocation66_spill] sm:$0xff] }
 0x845   : > { %v5554_v59 = vpop.eup %5553  ;;  %v4054_v4 = vsub.f32 %v9290_v21, %v4009_v55 }
 0x846   : > { %v5556_v40 = vpop.eup %5555  ;;  %v8333_v16 = vpack.c.bf16 %v5550_v23, %v5554_v59  ;;  %v4006_v23 = vpop.xlane.xlu0 %4005 }
 0x847   : > { %v8335_v58 = vpack.c.bf16 %v5552_v51, %v5556_v40  ;;  %v5558_v3 = vpop.eup %5557  ;;  %v4055_v40 = vsub.f32 %v9291_v0, %v4009_v55  ;;  %v4052_v18 = vsub.f32 %v9292_v41, %v4006_v23  ;;  %v4053_v17 = vsub.f32 %v9293_v48, %v4006_v23  ;;  %v4954_v55 = vld [vmem:[#allocation3 + $0x14] sm:$0xf0] }
 0x848   : > { %v5560_v42 = vpop.eup %5559  ;;  %v4088_v63 = vmul.f32 1.442695, %v4054_v4  ;;  %v8388_v23 = vld [vmem:[%s8472_s3 + $0x18] sm:$0xff] }
 0x849   : > { %4165 = vmatpush.bf16.xpose.msra.mxu2 %v8309_v52  ;;  %v3441_v14 = vpop.f32.mrf.mxu2  ;;  %v5562_v39 = vpop.eup %5561 }
 0x84a   : > { %4179 = vmatpush.bf16.xpose.msra.mxu3 %v8314_v13  ;;  %v3455_v15 = vadd.f32 %v3454_v45, %v3441_v14  ;;  %v5564_v10 = vpop.eup %5563  ;;  %v8342_v56 = vpack.c.bf16 %v5562_v39, %v5558_v3  ;;  %v4084_v45 = vmul.f32 1.442695, %v4052_v18 }
 0x84b   : > { %v8345_v53 = vpack.c.bf16 %v5564_v10, %v5560_v42 }
 0x84c   : > { %5565 = vrcp.f32 %v3455_v15  ;;  %v3456_v20 = vpop.f32.mrf.mxu3  ;;  %v4086_v15 = vmul.f32 1.442695, %v4053_v17 }
 0x84d   : > { %5567 = vpow2.f32 %v4100_v44  ;;  %v4090_v44 = vmul.f32 1.442695, %v4055_v40 }
 0x84e   : > { %5569 = vpow2.f32 %v4104_v7 }
 0x84f   : > { %5571 = vpow2.f32 %v4102_v27 }
 0x850   : > { %5573 = vpow2.f32 %v4106_v37 }
 0x851   : > { %4166 = vmatpush.bf16.xpose.msra.mxu2 %v8322_v26  ;;  %v3443_v54 = vpop.f32.mrf.mxu2  ;;  %5575 = vpow2.f32 %v4092_v57  ;;  %v4956_v57 = vld [vmem:[#allocation3 + $0x24] sm:$0xf0] }
 0x852   : > { %4180 = vmatpush.bf16.xpose.msra.mxu3 %v8325_v32  ;;  %v5566_v35 = vpop.eup %5565  ;;  %5577 = vpow2.f32 %v4094_v50  ;;  %v4875_v50 = vld [vmem:[#allocation3 + $0x10] sm:$0xf] }
 0x853   : > { %v5568_v24 = vpop.eup %5567  ;;  %v3459_v22 = vperm.slane %v5566_v35, 0  ;;  %5579 = vpow2.f32 %v4096_v19  ;;  %v4883_v35 = vld [vmem:[#allocation3 + $0x20] sm:$0xf] }
 0x854   : > { %v5570_v61 = vpop.eup %5569  ;;  %5581 = vpow2.f32 %v4098_v5  ;;  %v4947_v19 = vld [vmem:[%s8472_s3] sm:$0xff]  ;;  %v8381_v5 = vld [vmem:[%s8472_s3 + $0x10] sm:$0xff] }
 0x855   : > { %v5572_v33 = vpop.eup %5571  ;;  %v3460_v29 = vmul.f32 %v3459_v22, %v3428_v9  ;;  %v3461_v51 = vmul.f32 %v3459_v22, %v3430_v49  ;;  %v4152_v59 = vpack.c.bf16 %v5570_v61, %v5568_v24  ;;  %5583 = vpow2.f32 %v4088_v63  ;;  %v4867_v49 = vld [vmem:[#allocation3] sm:$0xf]  ;;  %v4952_v22 = vld [vmem:[#allocation3 + $0x4] sm:$0xf0] }
 0x856   : > { %v5574_v1 = vpop.eup %5573  ;;  %5585 = vpow2.f32 %v4090_v44  ;;  %v4884_v24 = vor.u32 %v4956_v57, %v4883_v35  ;;  %v4876_v9 = vor.u32 %v4954_v55, %v4875_v50  ;;  %v4868_v61 = vor.u32 %v4952_v22, %v4867_v49  ;;  %v4428_v35 = vld [vmem:[%s5757_s17 + $0x40] sm:$0xff] }
 0x857   : > { %v3462_v25 = vpack.c.bf16 %v3460_v29, %v3460_v29  ;;  %v3463_v14 = vpack.c.bf16 %v3461_v51, %v3461_v51  ;;  %v4153_v60 = vpack.c.bf16 %v5574_v1, %v5572_v33  ;;  %v5576_v46 = vpop.eup %5575  ;;  %5587 = vpow2.f32 %v4084_v45  ;;  %v4948_v33 = vld [vmem:[%s8472_s3 + $0x8] sm:$0xff] }
 0x858   : > { %v5578_v7 = vpop.eup %5577  ;;  %5589 = vpow2.f32 %v4086_v15 }
 0x859   : > { %4167 = vmatpush.bf16.xpose.msra.mxu2 %v8333_v16  ;;  %3464 = vst [vmem:[#allocation3 + $0x24] sm:$0xf] %v3462_v25  ;;  %v5580_v27 = vpop.eup %5579 }
 0x85a   : > { %4181 = vmatpush.bf16.xpose.msra.mxu3 %v8335_v58  ;;  %3465 = vst [vmem:[#allocation3 + $0x2c] sm:$0xf] %v3463_v14  ;;  %v5582_v3 = vpop.eup %5581  ;;  %v4150_v42 = vpack.c.bf16 %v5580_v27, %v5576_v46 }
 0x85b   : > { %v4151_v30 = vpack.c.bf16 %v5582_v3, %v5578_v7  ;;  %v5584_v37 = vpop.eup %5583 }
 0x85c   : > { %v5586_v39 = vpop.eup %5585 }
 0x85d   : > { %v5588_v6 = vpop.eup %5587 }
 0x85e   : > { %v5590_v36 = vpop.eup %5589  ;;  %v4148_v10 = vpack.c.bf16 %v5584_v37, %v5588_v6  ;;  %v4869_v6 = vld [vmem:[#allocation3 + $0x8] sm:$0xf0] }
 0x85f   : > { %v4149_v43 = vpack.c.bf16 %v5586_v39, %v5590_v36  ;;  %v4951_v39 = vld [vmem:[#allocation3 + $0x4] sm:$0xf] }
 0x860   : > { %v4955_v15 = vld [vmem:[#allocation3 + $0x24] sm:$0xf]  ;;  %v4872_v36 = vor.u32 %v4951_v39, %v4869_v6  ;;  %v4431_v39 = vld [vmem:[%s5757_s17 + $0x58] sm:$0xff] }
 0x861   : > { %4168 = vmatpush.bf16.xpose.msra.mxu2 %v8342_v56  ;;  %v4885_v27 = vld [vmem:[#allocation3 + $0x28] sm:$0xf0] }
 0x862   : > { %4182 = vmatpush.bf16.xpose.msra.mxu3 %v8345_v53  ;;  %v4888_v3 = vor.u32 %v4955_v15, %v4885_v27 }
 0x869   : > { %4169 = vmatpush.bf16.xpose.msra.mxu2 %v4152_v59 }
 0x86a   : > { %4183 = vmatpush.bf16.xpose.msra.mxu3 %v4153_v60 }
 0x871   : > { %4170 = vmatpush.bf16.xpose.msra.mxu2 %v4150_v42 }
 0x872   : > { %4184 = vmatpush.bf16.xpose.msra.mxu3 %v4151_v30 }
 0x879   : > { %4171 = vmatpush.bf16.xpose.msra.mxu2 %v4148_v10 }
 0x87a   : > { %4185 = vmatpush.bf16.xpose.msra.mxu3 %v4149_v43 }
 0x880   : > { %4172 = vmatmul.bf16.vlgmr.msra.gmra.mxu2 %v8264_v62 }
 0x881   : > { %4192 = vmatpush.bf16.xpose.msrb.mxu2 %v8292_v28  ;;  %4186 = vmatmul.bf16.vlgmr.msra.gmra.mxu3 %v8266_v11 }
 0x882   : > { %4205 = vmatpush.bf16.xpose.msrb.mxu3 %v8296_v38 }
 0x883   : > { %v3805_v62 = vpop.f32.mrf.mxu2 }
 0x884   : > { %v3819_v11 = vpop.f32.mrf.mxu3 }
 0x885   : > { %v3820_v31 = vadd.f32 %v3819_v11, %v3805_v62  ;;  %v4420_v62 = vld [vmem:[%s5757_s17] sm:$0xff] }
 0x889   : > { %4193 = vmatpush.bf16.xpose.msrb.mxu2 %v8309_v52 }
 0x88a   : > { %4206 = vmatpush.bf16.xpose.msrb.mxu3 %v8314_v13 }
 0x88b   : > { %v3807_v28 = vpop.f32.mrf.mxu2 }
 0x88c   : > { %v3821_v38 = vpop.f32.mrf.mxu3 }
 0x891   : > { %4194 = vmatpush.bf16.xpose.msrb.mxu2 %v8322_v26 }
 0x892   : > { %4207 = vmatpush.bf16.xpose.msrb.mxu3 %v8325_v32 }
 0x899   : > { %4195 = vmatpush.bf16.xpose.msrb.mxu2 %v8333_v16 }
 0x89a   : > { %4208 = vmatpush.bf16.xpose.msrb.mxu3 %v8335_v58 }
 0x8a1   : > { %4196 = vmatpush.bf16.xpose.msrb.mxu2 %v8342_v56  ;;  %v3822_v56 = vadd.f32 %v3821_v38, %v3807_v28  ;;  %v4258_v38 = vpop.permute.xlu0 %4257 }
 0x8a2   : > { %4209 = vmatpush.bf16.xpose.msrb.mxu3 %v8345_v53 }
 0x8a9   : > { %4197 = vmatpush.bf16.xpose.msrb.mxu2 %v4152_v59 }
 0x8aa   : > { %4210 = vmatpush.bf16.xpose.msrb.mxu3 %v4153_v60 }
 0x8b1   : > { %4198 = vmatpush.bf16.xpose.msrb.mxu2 %v4150_v42  ;;  %v4953_v42 = vld [vmem:[#allocation3 + $0x14] sm:$0xf] }
 0x8b2   : > { %4211 = vmatpush.bf16.xpose.msrb.mxu3 %v4151_v30  ;;  %v4877_v30 = vld [vmem:[#allocation3 + $0x18] sm:$0xf0] }
 0x8b3   : > { %v4880_v37 = vor.u32 %v4953_v42, %v4877_v30 }
 0x8b9   : > { %4199 = vmatpush.bf16.xpose.msrb.mxu2 %v4148_v10  ;;  %v4253_v10 = vpop.permute.xlu1 %4252 }
 0x8ba   : > { %4212 = vmatpush.bf16.xpose.msrb.mxu3 %v4149_v43 }
 0x8c0   : > { %4200 = vmatmul.bf16.vlgmr.msrb.gmra.mxu2 %v9161_v12 }
 0x8c1   : > { %4213 = vmatmul.bf16.vlgmr.msrb.gmra.mxu3 %v9161_v12 }
 0x8c3   : > { %v3833_v52 = vpop.f32.mrf.mxu2 }
 0x8c4   : > { %v3846_v13 = vpop.f32.mrf.mxu3 }
 0x8c5   : > { %v3847_v26 = vadd.f32 %v3846_v13, %v3833_v52  ;;  %v4422_v13 = vld [vmem:[%s5757_s17 + $0x10] sm:$0xff] }
 0x8c7   : > { %5591 = vrcp.f32 %v3847_v26 }
 0x8cb   : > { %v3835_v32 = vpop.f32.mrf.mxu2 }
 0x8cc   : > { %v3848_v16 = vpop.f32.mrf.mxu3 }
 0x8cd   : > { %v5592_v58 = vpop.eup %5591  ;;  %v4263_v16 = vpop.permute.xlu2 %4262 }
 0x8ce   : > { %v3851_v8 = vperm.slane %v5592_v58, 0 }
 0x8d0   : > { %v3852_v47 = vmul.f32 %v3851_v8, %v3820_v31  ;;  %v3853_v53 = vmul.f32 %v3851_v8, %v3822_v56  ;;  %v4424_v31 = vld [vmem:[%s5757_s17 + $0x20] sm:$0xff] }
 0x8d2   : > { %v3854_v54 = vpack.c.bf16 %v3852_v47, %v3852_v47  ;;  %v3855_v34 = vpack.c.bf16 %v3853_v53, %v3853_v53  ;;  %v4268_v47 = vpop.permute.xlu1 %4267 }
 0x8d4   : > { %3856 = vst [vmem:[#allocation3 + $0x30] sm:$0xf] %v3854_v54  ;;  %v4426_v54 = vld [vmem:[%s5757_s17 + $0x30] sm:$0xff] }
 0x8d5   : > { %3857 = vst [vmem:[#allocation3 + $0x38] sm:$0xf] %v3855_v34  ;;  %v4278_v50 = vpop.permute.xlu2 %4277 }
 0x8db   : > { %v4891_v2 = vld [vmem:[#allocation3 + $0x30] sm:$0xf] }
 0x8dc   : > { %v4958_v12 = vld [vmem:[#allocation3 + $0x34] sm:$0xf0] }
 0x8dd   : > { %v4892_v20 = vor.u32 %v4958_v12, %v4891_v2  ;;  %v4273_v12 = vpop.permute.xlu0 %4272 }
 0x8df   : > { %4366 = vmatpush.bf16.msra.mxu0 %v4892_v20 }
 0x8e3   : > { %4367 = vmatpush.bf16.msra.mxu0 %v4884_v24 }
 0x8e7   : > { %4368 = vmatpush.bf16.msra.mxu0 %v4876_v9  ;;  %v4430_v9 = vld [vmem:[%s5757_s17 + $0x50] sm:$0xff] }
 0x8eb   : > { %4369 = vmatpush.bf16.msra.mxu0 %v4868_v61  ;;  %v4283_v61 = vpop.permute.xlu1 %4282 }
 0x8ee   : > { %4897 = vmatmul.msk.bf16.vlgmr.msra.gmra.mxu0 %vm962_vm9, %v4947_v19 }
 0x8fe   : > { %4898 = vmatmul.msk.bf16.gmra.mxu0 %vm962_vm9, %v4948_v33 }
 0x903   : > { %v4173_v29 = vpop.f32.mrf.mxu2 }
 0x904   : > { %v4187_v51 = vpop.f32.mrf.mxu3 }
 0x905   : > { %v4188_v41 = vadd.f32 %v4187_v51, %v4173_v29  ;;  %v4288_v51 = vpop.permute.xlu0 %4287 }
 0x90b   : > { %v4175_v21 = vpop.f32.mrf.mxu2 }
 0x90c   : > { %v4189_v4 = vpop.f32.mrf.mxu3 }
 0x90d   : > { %v4190_v18 = vadd.f32 %v4189_v4, %v4175_v21 }
 0x90e   : > { %4899 = vmatmul.msk.bf16.gmra.mxu0 %vm962_vm9, %v8381_v5 }
 0x91e   : > { %4900 = vmatmul.msk.bf16.gmra.mxu0 %vm962_vm9, %v8388_v23 }
 0x943   : > { %v4201_v59 = vpop.f32.mrf.mxu2 }
 0x944   : > { %v4214_v1 = vpop.f32.mrf.mxu3 }
 0x945   : > { %v4215_v0 = vadd.f32 %v4214_v1, %v4201_v59 }
 0x947   : > { %5593 = vrcp.f32 %v4215_v0  ;;  %v4421_v0 = vld [vmem:[%s5757_s17 + $0x8] sm:$0xff] }
 0x94b   : > { %v4203_v40 = vpop.f32.mrf.mxu2 }
 0x94c   : > { %v4216_v25 = vpop.f32.mrf.mxu3 }
 0x94d   : > { %v5594_v14 = vpop.eup %5593 }
 0x94e   : > { %v4219_v60 = vperm.slane %v5594_v14, 0 }
 0x950   : > { %v4220_v48 = vmul.f32 %v4219_v60, %v4188_v41  ;;  %v4221_v17 = vmul.f32 %v4219_v60, %v4190_v18  ;;  %v4423_v41 = vld [vmem:[%s5757_s17 + $0x18] sm:$0xff] }
 0x952   : > { %v4222_v63 = vpack.c.bf16 %v4220_v48, %v4220_v48  ;;  %v4223_v44 = vpack.c.bf16 %v4221_v17, %v4221_v17  ;;  %v4425_v17 = vld [vmem:[%s5757_s17 + $0x28] sm:$0xff] }
 0x954   : > { %4224 = vst [vmem:[#allocation3 + $0x34] sm:$0xf] %v4222_v63 }
 0x955   : > { %4225 = vst [vmem:[#allocation3 + $0x3c] sm:$0xf] %v4223_v44 }
 0x95b   : > { %v4957_v46 = vld [vmem:[#allocation3 + $0x34] sm:$0xf] }
 0x95c   : > { %v4893_v45 = vld [vmem:[#allocation3 + $0x38] sm:$0xf0] }
 0x95d   : > { %v4896_v7 = vor.u32 %v4957_v46, %v4893_v45  ;;  %v4427_v45 = vld [vmem:[%s5757_s17 + $0x38] sm:$0xff] }
 0x95f   : > { %4395 = vmatpush.bf16.msra.mxu1 %v4896_v7 }
 0x963   : > { %4396 = vmatpush.bf16.msra.mxu1 %v4888_v3  ;;  %v4429_v3 = vld [vmem:[%s5757_s17 + $0x48] sm:$0xff] }
 0x967   : > { %4397 = vmatpush.bf16.msra.mxu1 %v4880_v37 }
 0x96b   : > { %4398 = vmatpush.bf16.msra.mxu1 %v4872_v36  ;;  %v4371_v43 = vpop.f32.mrf.mxu0 }
 0x96c   : > { %v4372_v11 = vadd.f32 %v4371_v43, %v4253_v10  ;;  %v4433_v43 = vld [vmem:[%s5757_s17 + $0x68] sm:$0xff] }
 0x96e   : > { %4901 = vmatmul.msk.bf16.vlgmr.msra.gmra.mxu1 %vm962_vm9, %v4947_v19  ;;  %v4436_v28 = vadd.f32 %v4420_v62, %v4372_v11 }
 0x970   : > { %4452 = vst [vmem:[%s8397_s18] sm:$0xff] %v4436_v28 }
 0x973   : > { %v4373_v52 = vpop.f32.mrf.mxu0 }
 0x974   : > { %v4374_v26 = vadd.f32 %v4373_v52, %v4258_v38 }
 0x976   : > { %v4438_v32 = vadd.f32 %v4422_v13, %v4374_v26 }
 0x978   : > { %4454 = vst [vmem:[%s8397_s18 + $0x10] sm:$0xff] %v4438_v32 }
 0x97b   : > { %v4376_v58 = vpop.f32.mrf.mxu0 }
 0x97c   : > { %v4377_v56 = vadd.f32 %v4376_v58, %v4263_v16 }
 0x97e   : > { %4902 = vmatmul.msk.bf16.gmra.mxu1 %vm962_vm9, %v4948_v33  ;;  %v4440_v8 = vadd.f32 %v4424_v31, %v4377_v56  ;;  %v4432_v33 = vld [vmem:[%s5757_s17 + $0x60] sm:$0xff] }
 0x980   : > { %4456 = vst [vmem:[%s8397_s18 + $0x20] sm:$0xff] %v4440_v8 }
 0x983   : > { %v4378_v53 = vpop.f32.mrf.mxu0 }
 0x984   : > { %v4379_v34 = vadd.f32 %v4378_v53, %v4268_v47 }
 0x986   : > { %v4442_v2 = vadd.f32 %v4426_v54, %v4379_v34 }
 0x988   : > { %4458 = vst [vmem:[%s8397_s18 + $0x30] sm:$0xff] %v4442_v2 }
 0x98b   : > { %v4381_v20 = vpop.f32.mrf.mxu0 }
 0x98c   : > { %v4382_v57 = vadd.f32 %v4381_v20, %v4273_v12 }
 0x98e   : > { %4903 = vmatmul.msk.bf16.gmra.mxu1 %vm962_vm9, %v8381_v5  ;;  %v4444_v24 = vadd.f32 %v4428_v35, %v4382_v57 }
 0x990   : > { %4460 = vst [vmem:[%s8397_s18 + $0x40] sm:$0xff] %v4444_v24 }
 0x993   : > { %v4383_v55 = vpop.f32.mrf.mxu0 }
 0x994   : > { %v4384_v49 = vadd.f32 %v4383_v55, %v4278_v50 }
 0x996   : > { %v4446_v22 = vadd.f32 %v4430_v9, %v4384_v49 }
 0x998   : > { %4462 = vst [vmem:[%s8397_s18 + $0x50] sm:$0xff] %v4446_v22 }
 0x99b   : > { %v4386_v19 = vpop.f32.mrf.mxu0 }
 0x99c   : > { %v4387_v5 = vadd.f32 %v4386_v19, %v4283_v61 }
 0x99e   : > { %4904 = vmatmul.msk.bf16.gmra.mxu1 %vm962_vm9, %v8388_v23  ;;  %v4448_v29 = vadd.f32 %v4432_v33, %v4387_v5  ;;  %v4434_v23 = vld [vmem:[%s5757_s17 + $0x70] sm:$0xff] }
 0x9a0   : > { %4464 = vst [vmem:[%s8397_s18 + $0x60] sm:$0xff] %v4448_v29 }
 0x9a3   : > { %v4388_v21 = vpop.f32.mrf.mxu0 }
 0x9a4   : > { %v4389_v4 = vadd.f32 %v4388_v21, %v4288_v51 }
 0x9a6   : > { %v4450_v59 = vadd.f32 %v4434_v23, %v4389_v4 }
 0x9a8   : > { %4466 = vst [vmem:[%s8397_s18 + $0x70] sm:$0xff] %v4450_v59 }
 0x9eb   : > { %v4400_v1 = vpop.f32.mrf.mxu1 }
 0x9ec   : > { %v4401_v40 = vadd.f32 %v4400_v1, %v4253_v10 }
 0x9ee   : > { %v4437_v25 = vadd.f32 %v4421_v0, %v4401_v40 }
 0x9f0   : > { %4453 = vst [vmem:[%s8397_s18 + $0x8] sm:$0xff] %v4437_v25 }
 0x9f3   : > { %v4402_v14 = vpop.f32.mrf.mxu1 }
 0x9f4   : > { %v4403_v18 = vadd.f32 %v4402_v14, %v4258_v38  ;;  %v4435_v38 = vld [vmem:[%s5757_s17 + $0x78] sm:$0xff] }
 0x9f6   : > { %v4439_v60 = vadd.f32 %v4423_v41, %v4403_v18 }
 0x9f8   : > { %4455 = vst [vmem:[%s8397_s18 + $0x18] sm:$0xff] %v4439_v60 }
 0x9fb   : > { %v4405_v48 = vpop.f32.mrf.mxu1 }
 0x9fc   : > { %v4406_v63 = vadd.f32 %v4405_v48, %v4263_v16 }
 0x9fe   : > { %v4441_v44 = vadd.f32 %v4425_v17, %v4406_v63 }
 0xa00   : > { %4457 = vst [vmem:[%s8397_s18 + $0x28] sm:$0xff] %v4441_v44 }
 0xa03   : > { %v4407_v46 = vpop.f32.mrf.mxu1 }
 0xa04   : > { %v4408_v7 = vadd.f32 %v4407_v46, %v4268_v47 }
 0xa06   : > { %v4443_v15 = vadd.f32 %v4427_v45, %v4408_v7 }
 0xa08   : > { %4459 = vst [vmem:[%s8397_s18 + $0x38] sm:$0xff] %v4443_v15 }
 0xa0b   : > { %v4410_v27 = vpop.f32.mrf.mxu1 }
 0xa0c   : > { %v4411_v42 = vadd.f32 %v4410_v27, %v4273_v12 }
 0xa0e   : > { %v4445_v30 = vadd.f32 %v4429_v3, %v4411_v42 }
 0xa10   : > { %4461 = vst [vmem:[%s8397_s18 + $0x48] sm:$0xff] %v4445_v30 }
 0xa13   : > { %v4412_v37 = vpop.f32.mrf.mxu1 }
 0xa14   : > { %v4413_v6 = vadd.f32 %v4412_v37, %v4278_v50 }
 0xa16   : > { %v4447_v36 = vadd.f32 %v4431_v39, %v4413_v6 }
 0xa18   : > { %4463 = vst [vmem:[%s8397_s18 + $0x58] sm:$0xff] %v4447_v36 }
 0xa1b   : > { %v4415_v10 = vpop.f32.mrf.mxu1 }
 0xa1c   : > { %v4416_v62 = vadd.f32 %v4415_v10, %v4283_v61 }
 0xa1e   : > { %v4449_v11 = vadd.f32 %v4433_v43, %v4416_v62 }
 0xa20   : > { %4465 = vst [vmem:[%s8397_s18 + $0x68] sm:$0xff] %v4449_v11 }
 0xa23   : > { %v4417_v28 = vpop.f32.mrf.mxu1 }
 0xa24   : > { %v4418_v52 = vadd.f32 %v4417_v28, %v4288_v51 }
 0xa26   : > { %v4451_v13 = vadd.f32 %v4435_v38, %v4418_v52 }
 0xa28   : > { %4467 = vst [vmem:[%s8397_s18 + $0x78] sm:$0xff] %v4451_v13 }
 0xa29   : > { %5622 = shalt.err (!%p5619_p3)
}
 0xa2a   : > { %s5662_s15 = smov 256   ;;  %s5663_s18 = smov 16  }
 0xa2b   : > { %4968 = dma.vmem_to_hbm [thread:$0]  (%p5742_p5), %s4482_s23, 2048, %s4484_s29, %s4469_s8, %s5662_s15, %s5662_s15, %s5663_s18  }
 0xa2c PF: > { %p4974_p4 = scmp.ge.s32.totalorder %s5657_s27, 2  ;;  %s4498_s20 = sand.u32 1, %s5645_s24  }
 0xa2d   : > { %s4499_s21 = scalar_lea.sflag [#allocation5], %s4498_s20 }
 0xa2e   : > { %p4971_p7 = pnand %p4974_p4, %p5746_p6 }
 0xa30   : > { %p4972_p8 = pneg %p4971_p7 }
 0xa32   : > { %5640 = dma.done.wait (%p4972_p8), %s4499_s21, 2048  }
 0xa33   : > { %5642 = vsyncadd (%p4972_p8), %s4499_s21, 4294965248  ;;  %p17_p9 = scmp.ge.s32.totalorder %s5729_s30, 4   ;;  %s9294_s24 = smov %s5649_s25 }
 0xa34   : > { %s9295_s25 = smov %s5653_s26  ;;  %s9296_s26 = smov %s5740_s10 }
 0xa35   : > { %s9297_s27 = smov %s5729_s30  ;;  %19 = sbr.rel (!%p17_p9) target bundleno = 3 (0x3), region = 83 }
 0xa3a   :  { %4505 = vsyncpa [#allocation5], 1 }
 0xa3b   :  { %4507 = vsyncpa [#allocation5 + $0x1], 1 }

</bundles_post_ra>
